<compile_context>
chip_gen: v7x
topology: tpu7x:2x2x1
jax: 0.10.0
libtpu: 0.0.40
codegen_flags: <defaults>
</compile_context>

<pallas_src>
import jax
import jax.numpy as jnp
from jax.experimental import pallas as pl
from jax.experimental.pallas import tpu as pltpu


_LANE = 128
_SUBLANE = 8
_TARGET_TILE_BYTES = 4 * 1024 * 1024    # ~4 MiB per block (2 arrays x 2 bufs = 16 MiB VMEM)
_MIN_PALLAS_ELEMENTS = 1 << 20          # below this, fused XLA beats a custom call
_VMEM_LIMIT_BYTES = 32 * 1024 * 1024    # safe on v7x (64 MiB phys); needed on v5e (16 MiB default)


def _hardswish_kernel(x_ref, o_ref):
    x = x_ref[...].astype(jnp.float32)
    # relu6(x + 3) / 6, fused with the outer multiply.
    gate = jnp.clip(x + 3.0, 0.0, 6.0) * (1.0 / 6.0)
    o_ref[...] = (x * gate).astype(o_ref.dtype)


def _hard_swish_xla(x):
    """Fused-XLA fallback for small / lane-ragged inputs (already HBM-roofline)."""
    xf = x.astype(jnp.float32)
    return (xf * (jnp.clip(xf + 3.0, 0.0, 6.0) * (1.0 / 6.0))).astype(x.dtype)


def _choose_tiles(n, itemsize):
    """Pick (lanes, rows_total, tile_rows):
       lanes: widest power-of-two multiple of 128 (<=2048) dividing n -> unmasked vst.
       tile_rows: multiple of 8 targeting ~4 MiB blocks, capped so >= 2 grid steps."""
    lanes = _LANE
    for cand in (2048, 1024, 512, 256):
        if n % cand == 0:
            lanes = cand
            break
    rows_total = n // lanes
    target_rows = max(_SUBLANE,
                      (_TARGET_TILE_BYTES // (lanes * itemsize)) // _SUBLANE * _SUBLANE)
    half_rows = max(_SUBLANE, (rows_total // 2) // _SUBLANE * _SUBLANE)
    tile_rows = min(target_rows, half_rows)
    return lanes, rows_total, tile_rows


def hard_swish_pallas(x):
    """Elementwise hard-swish of an arbitrarily shaped array via a tiled Pallas kernel."""
    n = x.size
    dtype = x.dtype

    # Small-input / ragged fast path: skip the custom call entirely.
    if n < _MIN_PALLAS_ELEMENTS or n % _LANE != 0:
        return _hard_swish_xla(x)

    itemsize = jnp.dtype(dtype).itemsize
    lanes, rows_total, tile_rows = _choose_tiles(n, itemsize)
    num_tiles = pl.cdiv(rows_total, tile_rows)   # partial last block handled by Pallas masking

    x2 = x.reshape(rows_total, lanes)            # contiguous reshape: free, no pad / no slice

    out2 = pl.pallas_call(
        _hardswish_kernel,
        out_shape=jax.ShapeDtypeStruct((rows_total, lanes), dtype),
        grid=(num_tiles,),
        in_specs=[pl.BlockSpec((tile_rows, lanes), lambda i: (i, 0))],
        out_specs=pl.BlockSpec((tile_rows, lanes), lambda i: (i, 0)),
        compiler_params=pltpu.CompilerParams(
            dimension_semantics=("parallel",),
            vmem_limit_bytes=_VMEM_LIMIT_BYTES,
        ),
    )(x2)

    return out2.reshape(x.shape)


def hard_swish_ref(x):
    """Pure-JAX reference matching the PyTorch HardSwish module."""
    return x * (jnp.clip(x + 3.0, 0.0, 6.0) / 6.0)


if __name__ == "__main__":
    key = jax.random.PRNGKey(0)
    k1, k2 = jax.random.split(key)

    # Small backbone-style activation (B, C, H, W) per the module spec:
    # takes the fused-XLA fast path (custom-call overhead would dominate here).
    x_small = jax.random.normal(k1, (2, 4, 16, 16), dtype=jnp.float32) * 4.0
    out_small = hard_swish_pallas(x_small)
    jax.block_until_ready(out_small)
    assert out_small.shape == x_small.shape
    assert jnp.allclose(out_small, hard_swish_ref(x_small), atol=1e-6, rtol=1e-6), \
        "small-path mismatch vs reference"

    # Larger activation (>= 1M elements) that exercises the tiled Pallas path.
    x_big = jax.random.normal(k2, (2, 64, 128, 128), dtype=jnp.float32) * 4.0
    out_big = hard_swish_pallas(x_big)
    jax.block_until_ready(out_big)
    assert out_big.shape == x_big.shape
    assert jnp.allclose(out_big, hard_swish_ref(x_big), atol=1e-6, rtol=1e-6), \
        "pallas-path mismatch vs reference"

    print("KERNEL_OK")
</pallas_src>

<mosaic_0001>
module attributes {stable_mosaic.version = 11 : i64} {
  func.func @_hardswish_kernel(%arg0: i32, %arg1: memref<512x2048xf32, #tpu.memory_space<vmem>>, %arg2: memref<512x2048xf32, #tpu.memory_space<vmem>>) attributes {dimension_semantics = [#tpu.dimension_semantics<parallel>], iteration_bounds = array<i64: 2>, scalar_prefetch = 0 : i64, scratch_operands = 0 : i64, tpu.core_type = #tpu.core_type<tc>, window_params = [{transform_indices = @transform_0, window_bounds = array<i64: 512, 2048>}, {transform_indices = @transform_1, window_bounds = array<i64: 512, 2048>}]} {
    %c0 = arith.constant 0 : index
    %c0_0 = arith.constant 0 : index
    %0 = vector.load %arg1[%c0, %c0_0] : memref<512x2048xf32, #tpu.memory_space<vmem>>, vector<512x2048xf32>
    %cst = arith.constant 3.000000e+00 : f32
    %1 = vector.broadcast %cst : f32 to vector<512x2048xf32>
    %2 = arith.addf %0, %1 : vector<512x2048xf32>
    %cst_1 = arith.constant 0.000000e+00 : f32
    %cst_2 = arith.constant 6.000000e+00 : f32
    %3 = vector.broadcast %cst_1 : f32 to vector<512x2048xf32>
    %4 = arith.maximumf %3, %2 : vector<512x2048xf32>
    %5 = vector.broadcast %cst_2 : f32 to vector<512x2048xf32>
    %6 = arith.minimumf %5, %4 : vector<512x2048xf32>
    %cst_3 = arith.constant 0.166666672 : f32
    %7 = vector.broadcast %cst_3 : f32 to vector<512x2048xf32>
    %8 = arith.mulf %6, %7 : vector<512x2048xf32>
    %9 = arith.mulf %0, %8 : vector<512x2048xf32>
    %c0_4 = arith.constant 0 : index
    %c0_5 = arith.constant 0 : index
    %10 = vector.load %arg2[%c0_4, %c0_5] : memref<512x2048xf32, #tpu.memory_space<vmem>>, vector<512x2048xf32>
    tpu.vector_store %arg2[%c0_4, %c0_5], %9 {strides = array<i32>} : memref<512x2048xf32, #tpu.memory_space<vmem>>, vector<512x2048xf32>,
    return
  }
  func.func @transform_0(%arg0: i32) -> (i32, i32) {
    %c0_i32 = arith.constant 0 : i32
    %c0_i32_0 = arith.constant 0 : i32
    return %arg0, %c0_i32 : i32, i32
  }
  func.func @transform_1(%arg0: i32) -> (i32, i32) {
    %c0_i32 = arith.constant 0 : i32
    %c0_i32_0 = arith.constant 0 : i32
    return %arg0, %c0_i32 : i32, i32
  }
}

</mosaic_0001>

<bundles_post_ra>
// kernel: tpu_custom_call.1
= control target key start
LH: loop header
LB: loop body
LE: loop exit
PB: predicated region body
PF: predicated region fallthrough
CT: control target
= control target key end

     0   :  { %6 = vsyncpa [#allocation3], 0  ;;  %s12325_s0 = inlined_call_operand.hbm [shape: f32[1024,2048], index: 0, kind: input, shape index: {}]   ;;  %s12326_s1 = inlined_call_operand.hbm [shape: f32[1024,2048], index: 1, kind: output, shape index: {}]  }
   0x1   :  { %8 = vsyncpa [#allocation3 + $0x1], 0 }
   0x2   :  { %9 = vsyncpa [#allocation4], 0 }
   0x3   :  { %11 = vsyncpa [#allocation4 + $0x1], 0  ;;  %s7578_s6 = smov 0   ;;  %s7580_s7 = smov 0  }
   0x4   :  { %s7582_s8 = smov 0   ;;  %s7584_s9 = smov 0  }
   0x5 LB: > { %s7599_s10 = sadd.s32 4294967295, %s7560_s9   ;;  %s7394_s11 = sadd.s32 4294967294, %s7560_s9   ;;  %s7560_s9 = sphi %s7584_s9, %s12339_s9   ;;  %s7556_s8 = sphi %s7582_s8, %s12338_s8   ;;  %s7552_s7 = sphi %s7580_s7, %s12337_s7   ;;  %s7548_s6 = sphi %s7578_s6, %s12336_s6  }
   0x6   : > { %s7603_s12 = sadd.s32 1, %s7560_s9   ;;  %s24_s13 = sadd.s32 1, %s7556_s8 }
   0x7   : > { %s21_s14 = ssub.s32 %s7560_s9, %s7603_s12  ;;  %p31_p0 = scmp.ne.s32.totalorder %s7556_s8, %s7552_s7 }
   0x8   : > { %p22_p1 = scmp.eq.s32.totalorder %s21_s14, 0  ;;  %p32_p2 = scmp.eq.s32.totalorder %s7560_s9, 0 }
   0x9   : > { %p37_p3 = scmp.ne.s32.totalorder %s7552_s7, %s7548_s6  ;;  %p38_p4 = scmp.eq.s32.totalorder %s7599_s10, 0 }
   0xa   : > { %s7615_s15 = scalar_select %p22_p1, %s7556_s8, %s24_s13  }
   0xb   : > { %p7617_p5 = por %p32_p2, %p31_p0  ;;  %p7621_p6 = por %p38_p4, %p37_p3 }
   0xc   : > { %p61_p7 = scmp.eq.s32.totalorder %s7599_s10, 1  ;;  %p67_p8 = scmp.eq.s32.totalorder %s7394_s11, 1 }
   0xd   : > { %p7426_p10 = scmp.lt.s32.totalorder %s7560_s9, 2  ;;  %s87_s20 = sand.u32 1, %s7556_s8  }
   0xe   : > { %p7628_p11 = por %p61_p7, %p31_p0  ;;  %p7632_p12 = por %p67_p8, %p37_p3 }
   0xf   : > { %s7411_s21 = sshll.u32 %s7560_s9, 17  ;;  %s7397_s22 = sshll.u32 %s87_s20, 13 }
  0x10   : > { %s12330_s18 = scalar_select %p7628_p11, 1, 0 }
  0x11   : > { %s12331_s19 = scalar_select %p7632_p12, 1, 0 }
  0x12   : > { %s7641_s25 = scalar_lea.hbm %s12325_s0, %s7411_s21  ;;  %s91_s26 = scalar_lea.vmem [#allocation2], %s7397_s22 }
  0x13   : > { %s99_s27 = sshll.u32 %s91_s26, 4  ;;  %p7645_p13 = pnand %p7426_p10, %p7617_p5  ;;  %s7649_s27 = int_to_ptr.vmem [resolvable:$true] %s99_s27 }
  0x14   : > { %s7651_s29 = scalar_lea.sflag [#allocation3], %s87_s20  ;;  %s7464_s30 = scalar_lea.hbm %s7641_s25, 131072 }
  0x15   : > { %p7465_p0 = scmp.ne.s32.totalorder %s7641_s25, %s7464_s30  ;;  %p7466_p1 = pneg %p7645_p13 }
  0x16   : > { %s7469_s4 = scalar_lea.hbm %s12325_s0, 262144  ;;  %p7470_p4 = scmp.lt.u32.totalorder %s7641_s25, %s12325_s0 }
  0x17   : > { %p7467_p2 = pnand %p7466_p1, %p7465_p0  ;;  %p7471_p5 = scmp.lt.u32.totalorder %s7469_s4, %s7464_s30 }
  0x18   : > { %p7473_p8 = scmp.lt.u32.totalorder %s7464_s30, %s7641_s25 }
  0x19   : > { %p7468_p3 = pneg %p7467_p2  ;;  %p7472_p7 = por %p7471_p5, %p7470_p4 }
  0x1b   : > { %p7474_p10 = por %p7473_p8, %p7472_p7 }
  0x1d   : > { %p7475_p9 = pnand %p7474_p10, %p7468_p3 }
  0x1f   : > { %7478 = shalt.err (!%p7475_p9)
}
  0x20   : > { %s7479_s13 = scalar_lea.vmem %s7649_s27, 131072  ;;  %s7562_s14 = smov [#allocation2]  }
  0x21   : > { %p7480_p0 = scmp.ne.s32.totalorder %s7649_s27, %s7479_s13  ;;  %s7484_s16 = sshll.u32 %s7562_s14, 4  ;;  %s7485_s16 = int_to_ptr.vmem [resolvable:$false] %s7484_s16 }
  0x22   : > { %s7486_s20 = scalar_lea.vmem %s7485_s16, 262144  ;;  %p7487_p11 = scmp.lt.s32.totalorder %s7649_s27, %s7485_s16 }
  0x23   : > { %p7482_p2 = pnand %p7480_p0, %p7466_p1  ;;  %p7488_p4 = scmp.lt.s32.totalorder %s7486_s20, %s7479_s13 }
  0x25   : > { %p7483_p12 = pneg %p7482_p2  ;;  %p7489_p5 = por %p7488_p4, %p7487_p11 }
  0x27   : > { %p7490_p7 = pnand %p7489_p5, %p7483_p12 }
  0x29   : > { %7493 = shalt.err (!%p7490_p7)
}
  0x2a   : > { %s7563_s21 = smov 2048   ;;  %s7564_s22 = smov 128  }
  0x2b   : > { %7421 = dma.hbm_to_vmem [thread:$0]  (!%p7645_p13), %s7641_s25, 131072, %s7649_s27, %s7651_s29, %s7563_s21, %s7563_s21, %s7564_s22  }
  0x2c   : > { %p7401_p9 = scmp.ge.s32.totalorder %s7560_s9, 1  ;;  %p107_p1 = scmp.lt.s32.totalorder %s7560_s9, 3 }
  0x2e   : > { %p108_p3 = pnand %p7401_p9, %p107_p1 }
  0x2f   : > { %s7682_s23 = sand.u32 (!%p108_p3), 1, %s7552_s7  }
  0x30   : > { %111 = sbr.rel (%p108_p3) target bundleno = 1361 (0x551), region = 24  ;;  %s7402_s24 = sshll.u32 (!%p108_p3), %s7682_s23, 13 }
  0x31   : > { %s114_s26 = scalar_lea.sflag (!%p108_p3), [#allocation3], %s7682_s23  ;;  %s7688_s30 = scalar_lea.vmem (!%p108_p3), [#allocation2], %s7402_s24 }
  0x37   : > { %7539 = dma.done.wait (%p7621_p6), %s114_s26, 131072  }
  0x38   : > { %7541 = vsyncadd (%p7621_p6), %s114_s26, 4294836224  ;;  %v138_v0 = vld [vmem:[%s7688_s30] sm:$0xff]  ;;  %v139_v1 = vld [vmem:[%s7688_s30 + $0x8] sm:$0xff]  ;;  %s7716_s17 = scalar_lea.vmem [#allocation5], %s7402_s24  ;;  %s7413_s25 = sshll.u32 %s7599_s10, 17 }
  0x39   : > { %v140_v2 = vld [vmem:[%s7688_s30 + $0x10] sm:$0xff]  ;;  %v1162_v3 = vadd.f32 3.0, %v138_v0  ;;  %v1163_v4 = vadd.f32 3.0, %v139_v1  ;;  %v141_v6 = vld [vmem:[%s7688_s30 + $0x18] sm:$0xff]  ;;  %v142_v7 = vld [vmem:[%s7688_s30 + $0x20] sm:$0xff]  ;;  %s7321_s27 = sshll.u32 %s7716_s17, 4  ;;  %s12277_s2 = scalar_lea.hbm %s12326_s1, %s7413_s25  ;;  %s12279_s27 = int_to_ptr.vmem [resolvable:$true] %s7321_s27 }
  0x3a   : > { %v1164_v5 = vadd.f32 3.0, %v140_v2  ;;  %v143_v8 = vld [vmem:[%s7688_s30 + $0x28] sm:$0xff]  ;;  %v1165_v9 = vadd.f32 3.0, %v141_v6  ;;  %v1166_v10 = vadd.f32 3.0, %v142_v7  ;;  %v144_v12 = vld [vmem:[%s7688_s30 + $0x30] sm:$0xff]  ;;  %v145_v13 = vld [vmem:[%s7688_s30 + $0x38] sm:$0xff] }
  0x3b   : > { %v1167_v11 = vadd.f32 3.0, %v143_v8  ;;  %v2186_v14 = vmax.f32 %v1162_v3, 0.0  ;;  %v2187_v15 = vmax.f32 %v1163_v4, 0.0  ;;  %v1168_v17 = vadd.f32 3.0, %v144_v12  ;;  %v7703_v30 = vld [vmem:[%s7688_s30 + $0x40] sm:$0xff]  ;;  %v7706_v31 = vld [vmem:[%s7688_s30 + $0x48] sm:$0xff] }
  0x3c   : > { %v2188_v16 = vmax.f32 %v1164_v5, 0.0  ;;  %v2189_v18 = vmax.f32 %v1165_v9, 0.0  ;;  %v2190_v19 = vmax.f32 %v1166_v10, 0.0  ;;  %v1169_v21 = vadd.f32 3.0, %v145_v13  ;;  %v7709_v32 = vld [vmem:[%s7688_s30 + $0x50] sm:$0xff]  ;;  %v149_v43 = vld [vmem:[%s7688_s30 + $0x58] sm:$0xff] }
  0x3d   : > { %v2191_v20 = vmax.f32 %v1167_v11, 0.0  ;;  %v3210_v22 = vmin.f32 %v2186_v14, 6.0  ;;  %v3211_v23 = vmin.f32 %v2187_v15, 6.0  ;;  %v2192_v25 = vmax.f32 %v1168_v17, 0.0  ;;  %v150_v44 = vld [vmem:[%s7688_s30 + $0x60] sm:$0xff]  ;;  %v151_v45 = vld [vmem:[%s7688_s30 + $0x68] sm:$0xff] }
  0x3e   : > { %v3212_v24 = vmin.f32 %v2188_v16, 6.0  ;;  %v3213_v26 = vmin.f32 %v2189_v18, 6.0  ;;  %v3214_v27 = vmin.f32 %v2190_v19, 6.0  ;;  %v2193_v29 = vmax.f32 %v1169_v21, 0.0  ;;  %v152_v58 = vld [vmem:[%s7688_s30 + $0x70] sm:$0xff]  ;;  %v7729_v63 = vld [vmem:[%s7688_s30 + $0x78] sm:$0xff] }
  0x3f   : > { %v3215_v28 = vmin.f32 %v2191_v20, 6.0  ;;  %v4234_v33 = vmul.f32 0.16666667, %v3210_v22  ;;  %v4235_v34 = vmul.f32 0.16666667, %v3211_v23  ;;  %v3216_v42 = vmin.f32 %v2192_v25, 6.0 }
  0x40   : > { %v4236_v35 = vmul.f32 0.16666667, %v3212_v24  ;;  %v4237_v36 = vmul.f32 0.16666667, %v3213_v26  ;;  %v4238_v37 = vmul.f32 0.16666667, %v3214_v27 }
  0x41   : > { %v4239_v38 = vmul.f32 0.16666667, %v3215_v28  ;;  %v5258_v39 = vmul.f32 %v4234_v33, %v138_v0  ;;  %v5259_v40 = vmul.f32 %v4235_v34, %v139_v1  ;;  %v3217_v49 = vmin.f32 %v2193_v29, 6.0  ;;  %v7741_v14 = vld [vmem:[%s7688_s30 + $0x90] sm:$0xff]  ;;  %v157_v25 = vld [vmem:[%s7688_s30 + $0x98] sm:$0xff]  ;;  %v158_v26 = vld [vmem:[%s7688_s30 + $0xa0] sm:$0xff] }
  0x42   : > { %v5260_v41 = vmul.f32 %v4236_v35, %v140_v2  ;;  %v5261_v46 = vmul.f32 %v4237_v36, %v141_v6  ;;  %v5262_v47 = vmul.f32 %v4238_v37, %v142_v7  ;;  %v4240_v50 = vmul.f32 0.16666667, %v3216_v42  ;;  %v159_v27 = vld [vmem:[%s7688_s30 + $0xa8] sm:$0xff]  ;;  %s7307_s3 = scalar_lea.sflag [#allocation4], %s7682_s23  ;;  %s7494_s4 = scalar_lea.vmem %s12279_s27, 131072 }
  0x43   : > { %v5263_v48 = vmul.f32 %v4239_v38, %v143_v8  ;;  %6282 = vst [vmem:[%s7716_s17] sm:$0xff] %v5258_v39  ;;  %6283 = vst [vmem:[%s7716_s17 + $0x8] sm:$0xff] %v5259_v40  ;;  %v1170_v51 = vadd.f32 3.0, %v7703_v30  ;;  %v1171_v52 = vadd.f32 3.0, %v7706_v31  ;;  %v1172_v53 = vadd.f32 3.0, %v7709_v32  ;;  %p7495_p6 = scmp.ne.s32.totalorder %s12279_s27, %s7494_s4  ;;  %p12333_p11 = scmp.ne.s32.totalorder %s12330_s18, 0 }
  0x44   : > { %6284 = vst [vmem:[%s7716_s17 + $0x10] sm:$0xff] %v5260_v41  ;;  %6285 = vst [vmem:[%s7716_s17 + $0x18] sm:$0xff] %v5261_v46  ;;  %v4241_v54 = vmul.f32 0.16666667, %v3217_v49  ;;  %v1173_v55 = vadd.f32 3.0, %v149_v43  ;;  %v1174_v56 = vadd.f32 3.0, %v150_v44  ;;  %v5264_v59 = vmul.f32 %v4240_v50, %v144_v12 }
  0x45   : > { %6286 = vst [vmem:[%s7716_s17 + $0x20] sm:$0xff] %v5262_v47  ;;  %6287 = vst [vmem:[%s7716_s17 + $0x28] sm:$0xff] %v5263_v48  ;;  %v1175_v57 = vadd.f32 3.0, %v151_v45  ;;  %v2194_v60 = vmax.f32 %v1170_v51, 0.0  ;;  %v2195_v61 = vmax.f32 %v1171_v52, 0.0  ;;  %v2196_v62 = vmax.f32 %v1172_v53, 0.0  ;;  %p7496_p12 = pnand %p7495_p6, %p12333_p11 }
  0x46   : > { %v5265_v0 = vmul.f32 %v4241_v54, %v145_v13  ;;  %v2197_v1 = vmax.f32 %v1173_v55, 0.0  ;;  %v2198_v2 = vmax.f32 %v1174_v56, 0.0  ;;  %6288 = vst [vmem:[%s7716_s17 + $0x30] sm:$0xff] %v5264_v59  ;;  %v1176_v7 = vadd.f32 3.0, %v152_v58  ;;  %v7735_v12 = vld [vmem:[%s7688_s30 + $0x80] sm:$0xff]  ;;  %v7738_v13 = vld [vmem:[%s7688_s30 + $0x88] sm:$0xff] }
  0x47   : > { %v2199_v3 = vmax.f32 %v1175_v57, 0.0  ;;  %v3218_v4 = vmin.f32 %v2194_v60, 6.0  ;;  %v3219_v5 = vmin.f32 %v2195_v61, 6.0  ;;  %v3220_v6 = vmin.f32 %v2196_v62, 6.0  ;;  %v7759_v52 = vld [vmem:[%s7688_s30 + $0xb0] sm:$0xff]  ;;  %v7762_v53 = vld [vmem:[%s7688_s30 + $0xb8] sm:$0xff]  ;;  %p7497_p13 = pneg %p7496_p12 }
  0x48   : > { %6289 = vst [vmem:[%s7716_s17 + $0x38] sm:$0xff] %v5265_v0  ;;  %v3221_v8 = vmin.f32 %v2197_v1, 6.0  ;;  %v3222_v9 = vmin.f32 %v2198_v2, 6.0  ;;  %v1177_v11 = vadd.f32 3.0, %v7729_v63  ;;  %v2200_v24 = vmax.f32 %v1176_v7, 0.0  ;;  %v7766_v59 = vld [vmem:[%s7688_s30 + $0xc0] sm:$0xff] }
  0x49   : > { %v3223_v10 = vmin.f32 %v2199_v3, 6.0  ;;  %v4242_v15 = vmul.f32 0.16666667, %v3218_v4  ;;  %v4243_v16 = vmul.f32 0.16666667, %v3219_v5  ;;  %v1181_v37 = vadd.f32 3.0, %v157_v25 }
  0x4a   : > { %v4244_v17 = vmul.f32 0.16666667, %v3220_v6  ;;  %v4245_v18 = vmul.f32 0.16666667, %v3221_v8  ;;  %v4246_v19 = vmul.f32 0.16666667, %v3222_v9 }
  0x4b   : > { %v4247_v20 = vmul.f32 0.16666667, %v3223_v10  ;;  %v5266_v21 = vmul.f32 %v4242_v15, %v7703_v30  ;;  %v5267_v22 = vmul.f32 %v4243_v16, %v7706_v31  ;;  %v2201_v34 = vmax.f32 %v1177_v11, 0.0  ;;  %v7769_v60 = vld [vmem:[%s7688_s30 + $0xc8] sm:$0xff]  ;;  %v165_v7 = vld [vmem:[%s7688_s30 + $0xd8] sm:$0xff]  ;;  %v166_v8 = vld [vmem:[%s7688_s30 + $0xe0] sm:$0xff] }
  0x4c   : > { %v5268_v23 = vmul.f32 %v4244_v17, %v7709_v32  ;;  %v5269_v28 = vmul.f32 %v4245_v18, %v149_v43  ;;  %v5270_v29 = vmul.f32 %v4246_v19, %v150_v44  ;;  %v3224_v35 = vmin.f32 %v2200_v24, 6.0  ;;  %v167_v9 = vld [vmem:[%s7688_s30 + $0xe8] sm:$0xff]  ;;  %s7565_s10 = smov [#allocation5]  }
  0x4d   : > { %v5271_v33 = vmul.f32 %v4247_v20, %v151_v45  ;;  %6290 = vst [vmem:[%s7716_s17 + $0x40] sm:$0xff] %v5266_v21  ;;  %6291 = vst [vmem:[%s7716_s17 + $0x48] sm:$0xff] %v5267_v22  ;;  %v1178_v30 = vadd.f32 3.0, %v7735_v12  ;;  %v1179_v31 = vadd.f32 3.0, %v7738_v13  ;;  %v1180_v32 = vadd.f32 3.0, %v7741_v14  ;;  %s7498_s5 = sshll.u32 %s7565_s10, 4  ;;  %s7499_s5 = int_to_ptr.vmem [resolvable:$false] %s7498_s5 }
  0x4e   : > { %6292 = vst [vmem:[%s7716_s17 + $0x50] sm:$0xff] %v5268_v23  ;;  %6293 = vst [vmem:[%s7716_s17 + $0x58] sm:$0xff] %v5269_v28  ;;  %v3225_v36 = vmin.f32 %v2201_v34, 6.0  ;;  %v1182_v38 = vadd.f32 3.0, %v158_v26  ;;  %v1183_v39 = vadd.f32 3.0, %v159_v27  ;;  %v2205_v45 = vmax.f32 %v1181_v37, 0.0  ;;  %p7501_p8 = scmp.lt.s32.totalorder %s12279_s27, %s7499_s5 }
  0x4f   : > { %6294 = vst [vmem:[%s7716_s17 + $0x60] sm:$0xff] %v5270_v29  ;;  %6295 = vst [vmem:[%s7716_s17 + $0x68] sm:$0xff] %v5271_v33  ;;  %v4248_v40 = vmul.f32 0.16666667, %v3224_v35  ;;  %v2202_v41 = vmax.f32 %v1178_v30, 0.0  ;;  %v2203_v42 = vmax.f32 %v1179_v31, 0.0 }
  0x50   : > { %v2204_v43 = vmax.f32 %v1180_v32, 0.0  ;;  %v4249_v44 = vmul.f32 0.16666667, %v3225_v36  ;;  %v2206_v46 = vmax.f32 %v1182_v38, 0.0  ;;  %v2207_v47 = vmax.f32 %v1183_v39, 0.0  ;;  %v7794_v33 = vld [vmem:[%s7688_s30 + $0xf0] sm:$0xff] }
  0x51   : > { %v5272_v48 = vmul.f32 %v4248_v40, %v152_v58  ;;  %v3226_v49 = vmin.f32 %v2202_v41, 6.0  ;;  %v3227_v50 = vmin.f32 %v2203_v42, 6.0  ;;  %v3229_v55 = vmin.f32 %v2205_v45, 6.0  ;;  %v7772_v58 = vld [vmem:[%s7688_s30 + $0xd0] sm:$0xff]  ;;  %v7797_v32 = vld [vmem:[%s7688_s30 + $0xf8] sm:$0xff]  ;;  %v7800_v40 = vld [vmem:[%s7688_s30 + $0x100] sm:$0xff] }
  0x52   : > { %v3228_v51 = vmin.f32 %v2204_v43, 6.0  ;;  %v5273_v54 = vmul.f32 %v4249_v44, %v7729_v63  ;;  %v3230_v56 = vmin.f32 %v2206_v46, 6.0  ;;  %v3231_v57 = vmin.f32 %v2207_v47, 6.0  ;;  %v7803_v41 = vld [vmem:[%s7688_s30 + $0x108] sm:$0xff]  ;;  %v7806_v42 = vld [vmem:[%s7688_s30 + $0x110] sm:$0xff]  ;;  %s7500_s11 = scalar_lea.vmem %s7499_s5, 262144 }
  0x53   : > { %6296 = vst [vmem:[%s7716_s17 + $0x70] sm:$0xff] %v5272_v48  ;;  %v4250_v61 = vmul.f32 0.16666667, %v3226_v49  ;;  %v4251_v62 = vmul.f32 0.16666667, %v3227_v50  ;;  %v1184_v6 = vadd.f32 3.0, %v7759_v52  ;;  %p7502_p10 = scmp.lt.s32.totalorder %s7500_s11, %s7494_s4 }
  0x54   : > { %v4252_v0 = vmul.f32 0.16666667, %v3228_v51  ;;  %6297 = vst [vmem:[%s7716_s17 + $0x78] sm:$0xff] %v5273_v54  ;;  %v4253_v63 = vmul.f32 0.16666667, %v3229_v55  ;;  %v1185_v16 = vadd.f32 3.0, %v7762_v53 }
  0x55   : > { %v4254_v1 = vmul.f32 0.16666667, %v3230_v56  ;;  %v4255_v2 = vmul.f32 0.16666667, %v3231_v57  ;;  %v5274_v3 = vmul.f32 %v4250_v61, %v7735_v12  ;;  %v5275_v4 = vmul.f32 %v4251_v62, %v7738_v13  ;;  %v173_v56 = vld [vmem:[%s7688_s30 + $0x118] sm:$0xff]  ;;  %v174_v57 = vld [vmem:[%s7688_s30 + $0x120] sm:$0xff]  ;;  %p7503_p0 = por %p7502_p10, %p7501_p8 }
  0x56   : > { %v5276_v5 = vmul.f32 %v4252_v0, %v7741_v14  ;;  %v5277_v10 = vmul.f32 %v4253_v63, %v157_v25  ;;  %v2208_v12 = vmax.f32 %v1184_v6, 0.0  ;;  %v1186_v13 = vadd.f32 3.0, %v7766_v59 }
  0x57   : > { %v5278_v11 = vmul.f32 %v4254_v1, %v158_v26  ;;  %v5279_v15 = vmul.f32 %v4255_v2, %v159_v27  ;;  %6298 = vst [vmem:[%s7716_s17 + $0x80] sm:$0xff] %v5274_v3  ;;  %6299 = vst [vmem:[%s7716_s17 + $0x88] sm:$0xff] %v5275_v4  ;;  %v1187_v14 = vadd.f32 3.0, %v7769_v60  ;;  %v1188_v17 = vadd.f32 3.0, %v7772_v58  ;;  %p7504_p2 = pnand %p7503_p0, %p7497_p13 }
  0x58   : > { %6300 = vst [vmem:[%s7716_s17 + $0x90] sm:$0xff] %v5276_v5  ;;  %6301 = vst [vmem:[%s7716_s17 + $0x98] sm:$0xff] %v5277_v10  ;;  %v2209_v18 = vmax.f32 %v1185_v16, 0.0  ;;  %v1189_v19 = vadd.f32 3.0, %v165_v7  ;;  %v1190_v20 = vadd.f32 3.0, %v166_v8  ;;  %v1191_v21 = vadd.f32 3.0, %v167_v9 }
  0x59   : > { %6302 = vst [vmem:[%s7716_s17 + $0xa0] sm:$0xff] %v5278_v11  ;;  %6303 = vst [vmem:[%s7716_s17 + $0xa8] sm:$0xff] %v5279_v15  ;;  %v3232_v22 = vmin.f32 %v2208_v12, 6.0  ;;  %v2210_v23 = vmax.f32 %v1186_v13, 0.0  ;;  %v2211_v24 = vmax.f32 %v1187_v14, 0.0  ;;  %v2212_v25 = vmax.f32 %v1188_v17, 0.0 }
  0x5a   : > { %v3233_v26 = vmin.f32 %v2209_v18, 6.0  ;;  %v2213_v27 = vmax.f32 %v1189_v19, 0.0  ;;  %v2214_v28 = vmax.f32 %v1190_v20, 0.0  ;;  %v2215_v29 = vmax.f32 %v1191_v21, 0.0  ;;  %v7830_v12 = vld [vmem:[%s7688_s30 + $0x130] sm:$0xff]  ;;  %v7833_v19 = vld [vmem:[%s7688_s30 + $0x138] sm:$0xff] }
  0x5b   : > { %v4256_v34 = vmul.f32 0.16666667, %v3232_v22  ;;  %v3234_v35 = vmin.f32 %v2210_v23, 6.0  ;;  %v3235_v30 = vmin.f32 %v2211_v24, 6.0  ;;  %v3236_v31 = vmin.f32 %v2212_v25, 6.0  ;;  %v7836_v24 = vld [vmem:[%s7688_s30 + $0x140] sm:$0xff] }
  0x5c   : > { %v4257_v36 = vmul.f32 0.16666667, %v3233_v26  ;;  %v3237_v37 = vmin.f32 %v2213_v27, 6.0  ;;  %v3238_v38 = vmin.f32 %v2214_v28, 6.0  ;;  %v3239_v39 = vmin.f32 %v2215_v29, 6.0  ;;  %v7839_v25 = vld [vmem:[%s7688_s30 + $0x148] sm:$0xff] }
  0x5d   : > { %v5280_v43 = vmul.f32 %v4256_v34, %v7759_v52  ;;  %v4258_v44 = vmul.f32 0.16666667, %v3234_v35  ;;  %v4259_v45 = vmul.f32 0.16666667, %v3235_v30  ;;  %v4260_v46 = vmul.f32 0.16666667, %v3236_v31 }
  0x5e   : > { %v5281_v47 = vmul.f32 %v4257_v36, %v7762_v53  ;;  %v4261_v48 = vmul.f32 0.16666667, %v3237_v37  ;;  %v4262_v49 = vmul.f32 0.16666667, %v3238_v38  ;;  %v4263_v50 = vmul.f32 0.16666667, %v3239_v39 }
  0x5f   : > { %6304 = vst [vmem:[%s7716_s17 + $0xb0] sm:$0xff] %v5280_v43  ;;  %v5282_v51 = vmul.f32 %v4258_v44, %v7766_v59  ;;  %v5283_v54 = vmul.f32 %v4259_v45, %v7769_v60  ;;  %v5284_v55 = vmul.f32 %v4260_v46, %v7772_v58  ;;  %v1192_v52 = vadd.f32 3.0, %v7794_v33  ;;  %v175_v53 = vld [vmem:[%s7688_s30 + $0x128] sm:$0xff]  ;;  %v7842_v26 = vld [vmem:[%s7688_s30 + $0x150] sm:$0xff]  ;;  %v181_v43 = vld [vmem:[%s7688_s30 + $0x158] sm:$0xff] }
  0x60   : > { %6305 = vst [vmem:[%s7716_s17 + $0xb8] sm:$0xff] %v5281_v47  ;;  %v5285_v61 = vmul.f32 %v4261_v48, %v165_v7  ;;  %v5286_v62 = vmul.f32 %v4262_v49, %v166_v8  ;;  %v5287_v0 = vmul.f32 %v4263_v50, %v167_v9  ;;  %v1193_v63 = vadd.f32 3.0, %v7797_v32  ;;  %v182_v44 = vld [vmem:[%s7688_s30 + $0x160] sm:$0xff] }
  0x61   : > { %6306 = vst [vmem:[%s7716_s17 + $0xc0] sm:$0xff] %v5282_v51  ;;  %6307 = vst [vmem:[%s7716_s17 + $0xc8] sm:$0xff] %v5283_v54  ;;  %v2216_v59 = vmax.f32 %v1192_v52, 0.0  ;;  %v1194_v60 = vadd.f32 3.0, %v7800_v40  ;;  %v1195_v58 = vadd.f32 3.0, %v7803_v41  ;;  %v1196_v1 = vadd.f32 3.0, %v7806_v42 }
  0x62   : > { %6308 = vst [vmem:[%s7716_s17 + $0xd0] sm:$0xff] %v5284_v55  ;;  %6309 = vst [vmem:[%s7716_s17 + $0xd8] sm:$0xff] %v5285_v61  ;;  %v2217_v2 = vmax.f32 %v1193_v63, 0.0  ;;  %v1197_v3 = vadd.f32 3.0, %v173_v56  ;;  %v1198_v4 = vadd.f32 3.0, %v174_v57  ;;  %v1199_v5 = vadd.f32 3.0, %v175_v53 }
  0x63   : > { %6310 = vst [vmem:[%s7716_s17 + $0xe0] sm:$0xff] %v5286_v62  ;;  %6311 = vst [vmem:[%s7716_s17 + $0xe8] sm:$0xff] %v5287_v0  ;;  %v3240_v6 = vmin.f32 %v2216_v59, 6.0  ;;  %v2218_v7 = vmax.f32 %v1194_v60, 0.0  ;;  %v2219_v8 = vmax.f32 %v1195_v58, 0.0  ;;  %v2220_v9 = vmax.f32 %v1196_v1, 0.0 }
  0x64   : > { %v3241_v10 = vmin.f32 %v2217_v2, 6.0  ;;  %v2221_v11 = vmax.f32 %v1197_v3, 0.0  ;;  %v2222_v15 = vmax.f32 %v1198_v4, 0.0  ;;  %v2223_v16 = vmax.f32 %v1199_v5, 0.0  ;;  %v7866_v59 = vld [vmem:[%s7688_s30 + $0x170] sm:$0xff]  ;;  %v7869_v3 = vld [vmem:[%s7688_s30 + $0x178] sm:$0xff] }
  0x65   : > { %v4264_v13 = vmul.f32 0.16666667, %v3240_v6  ;;  %v3242_v14 = vmin.f32 %v2218_v7, 6.0  ;;  %v3243_v17 = vmin.f32 %v2219_v8, 6.0  ;;  %v3244_v18 = vmin.f32 %v2220_v9, 6.0  ;;  %v7872_v8 = vld [vmem:[%s7688_s30 + $0x180] sm:$0xff] }
  0x66   : > { %v4265_v20 = vmul.f32 0.16666667, %v3241_v10  ;;  %v3245_v21 = vmin.f32 %v2221_v11, 6.0  ;;  %v3246_v22 = vmin.f32 %v2222_v15, 6.0  ;;  %v3247_v23 = vmin.f32 %v2223_v16, 6.0  ;;  %v7875_v9 = vld [vmem:[%s7688_s30 + $0x188] sm:$0xff] }
  0x67   : > { %v5288_v27 = vmul.f32 %v4264_v13, %v7794_v33  ;;  %v4266_v28 = vmul.f32 0.16666667, %v3242_v14  ;;  %v4267_v29 = vmul.f32 0.16666667, %v3243_v17  ;;  %v4268_v34 = vmul.f32 0.16666667, %v3244_v18 }
  0x68   : > { %v5289_v35 = vmul.f32 %v4265_v20, %v7797_v32  ;;  %v4269_v30 = vmul.f32 0.16666667, %v3245_v21  ;;  %v4270_v31 = vmul.f32 0.16666667, %v3246_v22  ;;  %v4271_v36 = vmul.f32 0.16666667, %v3247_v23 }
  0x69   : > { %6312 = vst [vmem:[%s7716_s17 + $0xf0] sm:$0xff] %v5288_v27  ;;  %v5290_v37 = vmul.f32 %v4266_v28, %v7800_v40  ;;  %v5291_v38 = vmul.f32 %v4267_v29, %v7803_v41  ;;  %v5292_v39 = vmul.f32 %v4268_v34, %v7806_v42  ;;  %v1200_v33 = vadd.f32 3.0, %v7830_v12  ;;  %v183_v32 = vld [vmem:[%s7688_s30 + $0x168] sm:$0xff]  ;;  %v7878_v10 = vld [vmem:[%s7688_s30 + $0x190] sm:$0xff]  ;;  %v189_v27 = vld [vmem:[%s7688_s30 + $0x198] sm:$0xff] }
  0x6a   : > { %6313 = vst [vmem:[%s7716_s17 + $0xf8] sm:$0xff] %v5289_v35  ;;  %v5293_v45 = vmul.f32 %v4269_v30, %v173_v56  ;;  %v5294_v46 = vmul.f32 %v4270_v31, %v174_v57  ;;  %v5295_v47 = vmul.f32 %v4271_v36, %v175_v53  ;;  %v1201_v48 = vadd.f32 3.0, %v7833_v19  ;;  %v190_v28 = vld [vmem:[%s7688_s30 + $0x1a0] sm:$0xff] }
  0x6b   : > { %6314 = vst [vmem:[%s7716_s17 + $0x100] sm:$0xff] %v5290_v37  ;;  %6315 = vst [vmem:[%s7716_s17 + $0x108] sm:$0xff] %v5291_v38  ;;  %v2224_v40 = vmax.f32 %v1200_v33, 0.0  ;;  %v1202_v41 = vadd.f32 3.0, %v7836_v24  ;;  %v1203_v42 = vadd.f32 3.0, %v7839_v25  ;;  %v1204_v49 = vadd.f32 3.0, %v7842_v26 }
  0x6c   : > { %6316 = vst [vmem:[%s7716_s17 + $0x110] sm:$0xff] %v5292_v39  ;;  %6317 = vst [vmem:[%s7716_s17 + $0x118] sm:$0xff] %v5293_v45  ;;  %v2225_v50 = vmax.f32 %v1201_v48, 0.0  ;;  %v1205_v51 = vadd.f32 3.0, %v181_v43  ;;  %v1206_v54 = vadd.f32 3.0, %v182_v44  ;;  %v1207_v55 = vadd.f32 3.0, %v183_v32 }
  0x6d   : > { %6318 = vst [vmem:[%s7716_s17 + $0x120] sm:$0xff] %v5294_v46  ;;  %6319 = vst [vmem:[%s7716_s17 + $0x128] sm:$0xff] %v5295_v47  ;;  %v3248_v52 = vmin.f32 %v2224_v40, 6.0  ;;  %v2226_v56 = vmax.f32 %v1202_v41, 0.0  ;;  %v2227_v57 = vmax.f32 %v1203_v42, 0.0  ;;  %v2228_v53 = vmax.f32 %v1204_v49, 0.0 }
  0x6e   : > { %v3249_v61 = vmin.f32 %v2225_v50, 6.0  ;;  %v2229_v62 = vmax.f32 %v1205_v51, 0.0  ;;  %v2230_v0 = vmax.f32 %v1206_v54, 0.0  ;;  %v2231_v63 = vmax.f32 %v1207_v55, 0.0  ;;  %v7902_v40 = vld [vmem:[%s7688_s30 + $0x1b0] sm:$0xff]  ;;  %v7905_v51 = vld [vmem:[%s7688_s30 + $0x1b8] sm:$0xff] }
  0x6f   : > { %v4272_v60 = vmul.f32 0.16666667, %v3248_v52  ;;  %v3250_v58 = vmin.f32 %v2226_v56, 6.0  ;;  %v3251_v1 = vmin.f32 %v2227_v57, 6.0  ;;  %v3252_v2 = vmin.f32 %v2228_v53, 6.0  ;;  %v7908_v57 = vld [vmem:[%s7688_s30 + $0x1c0] sm:$0xff] }
  0x70   : > { %v4273_v4 = vmul.f32 0.16666667, %v3249_v61  ;;  %v3253_v5 = vmin.f32 %v2229_v62, 6.0  ;;  %v3254_v6 = vmin.f32 %v2230_v0, 6.0  ;;  %v3255_v7 = vmin.f32 %v2231_v63, 6.0  ;;  %v7911_v53 = vld [vmem:[%s7688_s30 + $0x1c8] sm:$0xff] }
  0x71   : > { %v5296_v11 = vmul.f32 %v4272_v60, %v7830_v12  ;;  %v4274_v15 = vmul.f32 0.16666667, %v3250_v58  ;;  %v4275_v16 = vmul.f32 0.16666667, %v3251_v1  ;;  %v4276_v13 = vmul.f32 0.16666667, %v3252_v2 }
  0x72   : > { %v5297_v14 = vmul.f32 %v4273_v4, %v7833_v19  ;;  %v4277_v17 = vmul.f32 0.16666667, %v3253_v5  ;;  %v4278_v18 = vmul.f32 0.16666667, %v3254_v6  ;;  %v4279_v20 = vmul.f32 0.16666667, %v3255_v7 }
  0x73   : > { %6320 = vst [vmem:[%s7716_s17 + $0x130] sm:$0xff] %v5296_v11  ;;  %v5298_v21 = vmul.f32 %v4274_v15, %v7836_v24  ;;  %v5299_v22 = vmul.f32 %v4275_v16, %v7839_v25  ;;  %v5300_v23 = vmul.f32 %v4276_v13, %v7842_v26  ;;  %v1208_v12 = vadd.f32 3.0, %v7866_v59  ;;  %v191_v19 = vld [vmem:[%s7688_s30 + $0x1a8] sm:$0xff]  ;;  %v7914_v61 = vld [vmem:[%s7688_s30 + $0x1d0] sm:$0xff]  ;;  %v197_v11 = vld [vmem:[%s7688_s30 + $0x1d8] sm:$0xff] }
  0x74   : > { %6321 = vst [vmem:[%s7716_s17 + $0x138] sm:$0xff] %v5297_v14  ;;  %v5301_v29 = vmul.f32 %v4277_v17, %v181_v43  ;;  %v5302_v34 = vmul.f32 %v4278_v18, %v182_v44  ;;  %v5303_v35 = vmul.f32 %v4279_v20, %v183_v32  ;;  %v1209_v30 = vadd.f32 3.0, %v7869_v3  ;;  %v198_v15 = vld [vmem:[%s7688_s30 + $0x1e0] sm:$0xff] }
  0x75   : > { %6322 = vst [vmem:[%s7716_s17 + $0x140] sm:$0xff] %v5298_v21  ;;  %6323 = vst [vmem:[%s7716_s17 + $0x148] sm:$0xff] %v5299_v22  ;;  %v2232_v24 = vmax.f32 %v1208_v12, 0.0  ;;  %v1210_v25 = vadd.f32 3.0, %v7872_v8  ;;  %v1211_v26 = vadd.f32 3.0, %v7875_v9  ;;  %v1212_v31 = vadd.f32 3.0, %v7878_v10 }
  0x76   : > { %6324 = vst [vmem:[%s7716_s17 + $0x150] sm:$0xff] %v5300_v23  ;;  %6325 = vst [vmem:[%s7716_s17 + $0x158] sm:$0xff] %v5301_v29  ;;  %v2233_v36 = vmax.f32 %v1209_v30, 0.0  ;;  %v1213_v37 = vadd.f32 3.0, %v189_v27  ;;  %v1214_v38 = vadd.f32 3.0, %v190_v28  ;;  %v1215_v39 = vadd.f32 3.0, %v191_v19 }
  0x77   : > { %6326 = vst [vmem:[%s7716_s17 + $0x160] sm:$0xff] %v5302_v34  ;;  %6327 = vst [vmem:[%s7716_s17 + $0x168] sm:$0xff] %v5303_v35  ;;  %v3256_v33 = vmin.f32 %v2232_v24, 6.0  ;;  %v2234_v43 = vmax.f32 %v1210_v25, 0.0  ;;  %v2235_v44 = vmax.f32 %v1211_v26, 0.0  ;;  %v2236_v32 = vmax.f32 %v1212_v31, 0.0 }
  0x78   : > { %v3257_v45 = vmin.f32 %v2233_v36, 6.0  ;;  %v2237_v46 = vmax.f32 %v1213_v37, 0.0  ;;  %v2238_v47 = vmax.f32 %v1214_v38, 0.0  ;;  %v2239_v48 = vmax.f32 %v1215_v39, 0.0  ;;  %v7938_v24 = vld [vmem:[%s7688_s30 + $0x1f0] sm:$0xff]  ;;  %v7941_v37 = vld [vmem:[%s7688_s30 + $0x1f8] sm:$0xff] }
  0x79   : > { %v4280_v41 = vmul.f32 0.16666667, %v3256_v33  ;;  %v3258_v42 = vmin.f32 %v2234_v43, 6.0  ;;  %v3259_v49 = vmin.f32 %v2235_v44, 6.0  ;;  %v3260_v50 = vmin.f32 %v2236_v32, 6.0  ;;  %v7944_v44 = vld [vmem:[%s7688_s30 + $0x200] sm:$0xff] }
  0x7a   : > { %v4281_v54 = vmul.f32 0.16666667, %v3257_v45  ;;  %v3261_v55 = vmin.f32 %v2237_v46, 6.0  ;;  %v3262_v52 = vmin.f32 %v2238_v47, 6.0  ;;  %v3263_v56 = vmin.f32 %v2239_v48, 6.0  ;;  %v7947_v32 = vld [vmem:[%s7688_s30 + $0x208] sm:$0xff] }
  0x7b   : > { %v5304_v62 = vmul.f32 %v4280_v41, %v7866_v59  ;;  %v4282_v0 = vmul.f32 0.16666667, %v3258_v42  ;;  %v4283_v63 = vmul.f32 0.16666667, %v3259_v49  ;;  %v4284_v60 = vmul.f32 0.16666667, %v3260_v50 }
  0x7c   : > { %v5305_v58 = vmul.f32 %v4281_v54, %v7869_v3  ;;  %v4285_v1 = vmul.f32 0.16666667, %v3261_v55  ;;  %v4286_v2 = vmul.f32 0.16666667, %v3262_v52  ;;  %v4287_v4 = vmul.f32 0.16666667, %v3263_v56 }
  0x7d   : > { %6328 = vst [vmem:[%s7716_s17 + $0x170] sm:$0xff] %v5304_v62  ;;  %v5306_v5 = vmul.f32 %v4282_v0, %v7872_v8  ;;  %v5307_v6 = vmul.f32 %v4283_v63, %v7875_v9  ;;  %v5308_v7 = vmul.f32 %v4284_v60, %v7878_v10  ;;  %v1216_v59 = vadd.f32 3.0, %v7902_v40  ;;  %v199_v3 = vld [vmem:[%s7688_s30 + $0x1e8] sm:$0xff]  ;;  %v7950_v45 = vld [vmem:[%s7688_s30 + $0x210] sm:$0xff]  ;;  %v205_v62 = vld [vmem:[%s7688_s30 + $0x218] sm:$0xff] }
  0x7e   : > { %6329 = vst [vmem:[%s7716_s17 + $0x178] sm:$0xff] %v5305_v58  ;;  %v5309_v16 = vmul.f32 %v4285_v1, %v189_v27  ;;  %v5310_v13 = vmul.f32 %v4286_v2, %v190_v28  ;;  %v5311_v14 = vmul.f32 %v4287_v4, %v191_v19  ;;  %v1217_v17 = vadd.f32 3.0, %v7905_v51  ;;  %v206_v0 = vld [vmem:[%s7688_s30 + $0x220] sm:$0xff] }
  0x7f   : > { %6330 = vst [vmem:[%s7716_s17 + $0x180] sm:$0xff] %v5306_v5  ;;  %6331 = vst [vmem:[%s7716_s17 + $0x188] sm:$0xff] %v5307_v6  ;;  %v2240_v8 = vmax.f32 %v1216_v59, 0.0  ;;  %v1218_v9 = vadd.f32 3.0, %v7908_v57  ;;  %v1219_v10 = vadd.f32 3.0, %v7911_v53  ;;  %v1220_v18 = vadd.f32 3.0, %v7914_v61 }
  0x80   : > { %6332 = vst [vmem:[%s7716_s17 + $0x190] sm:$0xff] %v5308_v7  ;;  %6333 = vst [vmem:[%s7716_s17 + $0x198] sm:$0xff] %v5309_v16  ;;  %v2241_v20 = vmax.f32 %v1217_v17, 0.0  ;;  %v1221_v21 = vadd.f32 3.0, %v197_v11  ;;  %v1222_v22 = vadd.f32 3.0, %v198_v15  ;;  %v1223_v23 = vadd.f32 3.0, %v199_v3 }
  0x81   : > { %6334 = vst [vmem:[%s7716_s17 + $0x1a0] sm:$0xff] %v5310_v13  ;;  %6335 = vst [vmem:[%s7716_s17 + $0x1a8] sm:$0xff] %v5311_v14  ;;  %v3264_v12 = vmin.f32 %v2240_v8, 6.0  ;;  %v2242_v27 = vmax.f32 %v1218_v9, 0.0  ;;  %v2243_v28 = vmax.f32 %v1219_v10, 0.0  ;;  %v2244_v19 = vmax.f32 %v1220_v18, 0.0 }
  0x82   : > { %v3265_v29 = vmin.f32 %v2241_v20, 6.0  ;;  %v2245_v34 = vmax.f32 %v1221_v21, 0.0  ;;  %v2246_v35 = vmax.f32 %v1222_v22, 0.0  ;;  %v2247_v30 = vmax.f32 %v1223_v23, 0.0  ;;  %v7974_v8 = vld [vmem:[%s7688_s30 + $0x230] sm:$0xff]  ;;  %v7977_v21 = vld [vmem:[%s7688_s30 + $0x238] sm:$0xff] }
  0x83   : > { %v4288_v25 = vmul.f32 0.16666667, %v3264_v12  ;;  %v3266_v26 = vmin.f32 %v2242_v27, 6.0  ;;  %v3267_v31 = vmin.f32 %v2243_v28, 6.0  ;;  %v3268_v36 = vmin.f32 %v2244_v19, 6.0  ;;  %v7980_v28 = vld [vmem:[%s7688_s30 + $0x240] sm:$0xff] }
  0x84   : > { %v4289_v38 = vmul.f32 0.16666667, %v3265_v29  ;;  %v3269_v39 = vmin.f32 %v2245_v34, 6.0  ;;  %v3270_v33 = vmin.f32 %v2246_v35, 6.0  ;;  %v3271_v43 = vmin.f32 %v2247_v30, 6.0  ;;  %v7983_v19 = vld [vmem:[%s7688_s30 + $0x248] sm:$0xff] }
  0x85   : > { %v5312_v46 = vmul.f32 %v4288_v25, %v7902_v40  ;;  %v4290_v47 = vmul.f32 0.16666667, %v3266_v26  ;;  %v4291_v48 = vmul.f32 0.16666667, %v3267_v31  ;;  %v4292_v41 = vmul.f32 0.16666667, %v3268_v36 }
  0x86   : > { %v5313_v42 = vmul.f32 %v4289_v38, %v7905_v51  ;;  %v4293_v49 = vmul.f32 0.16666667, %v3269_v39  ;;  %v4294_v50 = vmul.f32 0.16666667, %v3270_v33  ;;  %v4295_v54 = vmul.f32 0.16666667, %v3271_v43 }
  0x87   : > { %6336 = vst [vmem:[%s7716_s17 + $0x1b0] sm:$0xff] %v5312_v46  ;;  %v5314_v55 = vmul.f32 %v4290_v47, %v7908_v57  ;;  %v5315_v52 = vmul.f32 %v4291_v48, %v7911_v53  ;;  %v5316_v56 = vmul.f32 %v4292_v41, %v7914_v61  ;;  %v1224_v40 = vadd.f32 3.0, %v7938_v24  ;;  %v207_v51 = vld [vmem:[%s7688_s30 + $0x228] sm:$0xff]  ;;  %v7986_v29 = vld [vmem:[%s7688_s30 + $0x250] sm:$0xff]  ;;  %v213_v46 = vld [vmem:[%s7688_s30 + $0x258] sm:$0xff] }
  0x88   : > { %6337 = vst [vmem:[%s7716_s17 + $0x1b8] sm:$0xff] %v5313_v42  ;;  %v5317_v63 = vmul.f32 %v4293_v49, %v197_v11  ;;  %v5318_v60 = vmul.f32 %v4294_v50, %v198_v15  ;;  %v5319_v58 = vmul.f32 %v4295_v54, %v199_v3  ;;  %v1225_v1 = vadd.f32 3.0, %v7941_v37  ;;  %v214_v47 = vld [vmem:[%s7688_s30 + $0x260] sm:$0xff] }
  0x89   : > { %6338 = vst [vmem:[%s7716_s17 + $0x1c0] sm:$0xff] %v5314_v55  ;;  %6339 = vst [vmem:[%s7716_s17 + $0x1c8] sm:$0xff] %v5315_v52  ;;  %v2248_v57 = vmax.f32 %v1224_v40, 0.0  ;;  %v1226_v53 = vadd.f32 3.0, %v7944_v44  ;;  %v1227_v61 = vadd.f32 3.0, %v7947_v32  ;;  %v1228_v2 = vadd.f32 3.0, %v7950_v45 }
  0x8a   : > { %6340 = vst [vmem:[%s7716_s17 + $0x1d0] sm:$0xff] %v5316_v56  ;;  %6341 = vst [vmem:[%s7716_s17 + $0x1d8] sm:$0xff] %v5317_v63  ;;  %v2249_v4 = vmax.f32 %v1225_v1, 0.0  ;;  %v1229_v5 = vadd.f32 3.0, %v205_v62  ;;  %v1230_v6 = vadd.f32 3.0, %v206_v0  ;;  %v1231_v7 = vadd.f32 3.0, %v207_v51 }
  0x8b   : > { %6342 = vst [vmem:[%s7716_s17 + $0x1e0] sm:$0xff] %v5318_v60  ;;  %6343 = vst [vmem:[%s7716_s17 + $0x1e8] sm:$0xff] %v5319_v58  ;;  %v3272_v59 = vmin.f32 %v2248_v57, 6.0  ;;  %v2250_v11 = vmax.f32 %v1226_v53, 0.0  ;;  %v2251_v15 = vmax.f32 %v1227_v61, 0.0  ;;  %v2252_v3 = vmax.f32 %v1228_v2, 0.0 }
  0x8c   : > { %v3273_v16 = vmin.f32 %v2249_v4, 6.0  ;;  %v2253_v13 = vmax.f32 %v1229_v5, 0.0  ;;  %v2254_v14 = vmax.f32 %v1230_v6, 0.0  ;;  %v2255_v17 = vmax.f32 %v1231_v7, 0.0  ;;  %v8010_v57 = vld [vmem:[%s7688_s30 + $0x270] sm:$0xff]  ;;  %v8013_v5 = vld [vmem:[%s7688_s30 + $0x278] sm:$0xff] }
  0x8d   : > { %v4296_v9 = vmul.f32 0.16666667, %v3272_v59  ;;  %v3274_v10 = vmin.f32 %v2250_v11, 6.0  ;;  %v3275_v18 = vmin.f32 %v2251_v15, 6.0  ;;  %v3276_v20 = vmin.f32 %v2252_v3, 6.0  ;;  %v8016_v15 = vld [vmem:[%s7688_s30 + $0x280] sm:$0xff] }
  0x8e   : > { %v4297_v22 = vmul.f32 0.16666667, %v3273_v16  ;;  %v3277_v23 = vmin.f32 %v2253_v13, 6.0  ;;  %v3278_v12 = vmin.f32 %v2254_v14, 6.0  ;;  %v3279_v27 = vmin.f32 %v2255_v17, 6.0  ;;  %v8019_v3 = vld [vmem:[%s7688_s30 + $0x288] sm:$0xff] }
  0x8f   : > { %v5320_v34 = vmul.f32 %v4296_v9, %v7938_v24  ;;  %v4298_v35 = vmul.f32 0.16666667, %v3274_v10  ;;  %v4299_v30 = vmul.f32 0.16666667, %v3275_v18  ;;  %v4300_v25 = vmul.f32 0.16666667, %v3276_v20 }
  0x90   : > { %v5321_v26 = vmul.f32 %v4297_v22, %v7941_v37  ;;  %v4301_v31 = vmul.f32 0.16666667, %v3277_v23  ;;  %v4302_v36 = vmul.f32 0.16666667, %v3278_v12  ;;  %v4303_v38 = vmul.f32 0.16666667, %v3279_v27 }
  0x91   : > { %6344 = vst [vmem:[%s7716_s17 + $0x1f0] sm:$0xff] %v5320_v34  ;;  %v5322_v39 = vmul.f32 %v4298_v35, %v7944_v44  ;;  %v5323_v33 = vmul.f32 %v4299_v30, %v7947_v32  ;;  %v5324_v43 = vmul.f32 %v4300_v25, %v7950_v45  ;;  %v1232_v24 = vadd.f32 3.0, %v7974_v8  ;;  %v215_v37 = vld [vmem:[%s7688_s30 + $0x268] sm:$0xff]  ;;  %v8022_v16 = vld [vmem:[%s7688_s30 + $0x290] sm:$0xff]  ;;  %v221_v34 = vld [vmem:[%s7688_s30 + $0x298] sm:$0xff] }
  0x92   : > { %6345 = vst [vmem:[%s7716_s17 + $0x1f8] sm:$0xff] %v5321_v26  ;;  %v5325_v48 = vmul.f32 %v4301_v31, %v205_v62  ;;  %v5326_v41 = vmul.f32 %v4302_v36, %v206_v0  ;;  %v5327_v42 = vmul.f32 %v4303_v38, %v207_v51  ;;  %v1233_v49 = vadd.f32 3.0, %v7977_v21  ;;  %v222_v35 = vld [vmem:[%s7688_s30 + $0x2a0] sm:$0xff] }
  0x93   : > { %6346 = vst [vmem:[%s7716_s17 + $0x200] sm:$0xff] %v5322_v39  ;;  %6347 = vst [vmem:[%s7716_s17 + $0x208] sm:$0xff] %v5323_v33  ;;  %v2256_v44 = vmax.f32 %v1232_v24, 0.0  ;;  %v1234_v32 = vadd.f32 3.0, %v7980_v28  ;;  %v1235_v45 = vadd.f32 3.0, %v7983_v19  ;;  %v1236_v50 = vadd.f32 3.0, %v7986_v29 }
  0x94   : > { %6348 = vst [vmem:[%s7716_s17 + $0x210] sm:$0xff] %v5324_v43  ;;  %6349 = vst [vmem:[%s7716_s17 + $0x218] sm:$0xff] %v5325_v48  ;;  %v2257_v54 = vmax.f32 %v1233_v49, 0.0  ;;  %v1237_v55 = vadd.f32 3.0, %v213_v46  ;;  %v1238_v52 = vadd.f32 3.0, %v214_v47  ;;  %v1239_v56 = vadd.f32 3.0, %v215_v37 }
  0x95   : > { %6350 = vst [vmem:[%s7716_s17 + $0x220] sm:$0xff] %v5326_v41  ;;  %6351 = vst [vmem:[%s7716_s17 + $0x228] sm:$0xff] %v5327_v42  ;;  %v3280_v40 = vmin.f32 %v2256_v44, 6.0  ;;  %v2258_v62 = vmax.f32 %v1234_v32, 0.0  ;;  %v2259_v0 = vmax.f32 %v1235_v45, 0.0  ;;  %v2260_v51 = vmax.f32 %v1236_v50, 0.0 }
  0x96   : > { %v3281_v63 = vmin.f32 %v2257_v54, 6.0  ;;  %v2261_v60 = vmax.f32 %v1237_v55, 0.0  ;;  %v2262_v58 = vmax.f32 %v1238_v52, 0.0  ;;  %v2263_v1 = vmax.f32 %v1239_v56, 0.0  ;;  %v8046_v44 = vld [vmem:[%s7688_s30 + $0x2b0] sm:$0xff]  ;;  %v8049_v55 = vld [vmem:[%s7688_s30 + $0x2b8] sm:$0xff] }
  0x97   : > { %v4304_v53 = vmul.f32 0.16666667, %v3280_v40  ;;  %v3282_v61 = vmin.f32 %v2258_v62, 6.0  ;;  %v3283_v2 = vmin.f32 %v2259_v0, 6.0  ;;  %v3284_v4 = vmin.f32 %v2260_v51, 6.0  ;;  %v8052_v0 = vld [vmem:[%s7688_s30 + $0x2c0] sm:$0xff] }
  0x98   : > { %v4305_v6 = vmul.f32 0.16666667, %v3281_v63  ;;  %v3285_v7 = vmin.f32 %v2261_v60, 6.0  ;;  %v3286_v59 = vmin.f32 %v2262_v58, 6.0  ;;  %v3287_v11 = vmin.f32 %v2263_v1, 6.0  ;;  %v8055_v51 = vld [vmem:[%s7688_s30 + $0x2c8] sm:$0xff] }
  0x99   : > { %v5328_v13 = vmul.f32 %v4304_v53, %v7974_v8  ;;  %v4306_v14 = vmul.f32 0.16666667, %v3282_v61  ;;  %v4307_v17 = vmul.f32 0.16666667, %v3283_v2  ;;  %v4308_v9 = vmul.f32 0.16666667, %v3284_v4 }
  0x9a   : > { %v5329_v10 = vmul.f32 %v4305_v6, %v7977_v21  ;;  %v4309_v18 = vmul.f32 0.16666667, %v3285_v7  ;;  %v4310_v20 = vmul.f32 0.16666667, %v3286_v59  ;;  %v4311_v22 = vmul.f32 0.16666667, %v3287_v11 }
  0x9b   : > { %6352 = vst [vmem:[%s7716_s17 + $0x230] sm:$0xff] %v5328_v13  ;;  %v5330_v23 = vmul.f32 %v4306_v14, %v7980_v28  ;;  %v5331_v12 = vmul.f32 %v4307_v17, %v7983_v19  ;;  %v5332_v27 = vmul.f32 %v4308_v9, %v7986_v29  ;;  %v1240_v8 = vadd.f32 3.0, %v8010_v57  ;;  %v223_v21 = vld [vmem:[%s7688_s30 + $0x2a8] sm:$0xff]  ;;  %v8058_v63 = vld [vmem:[%s7688_s30 + $0x2d0] sm:$0xff]  ;;  %v229_v13 = vld [vmem:[%s7688_s30 + $0x2d8] sm:$0xff] }
  0x9c   : > { %6353 = vst [vmem:[%s7716_s17 + $0x238] sm:$0xff] %v5329_v10  ;;  %v5333_v30 = vmul.f32 %v4309_v18, %v213_v46  ;;  %v5334_v25 = vmul.f32 %v4310_v20, %v214_v47  ;;  %v5335_v26 = vmul.f32 %v4311_v22, %v215_v37  ;;  %v1241_v31 = vadd.f32 3.0, %v8013_v5  ;;  %v230_v14 = vld [vmem:[%s7688_s30 + $0x2e0] sm:$0xff] }
  0x9d   : > { %6354 = vst [vmem:[%s7716_s17 + $0x240] sm:$0xff] %v5330_v23  ;;  %6355 = vst [vmem:[%s7716_s17 + $0x248] sm:$0xff] %v5331_v12  ;;  %v2264_v28 = vmax.f32 %v1240_v8, 0.0  ;;  %v1242_v19 = vadd.f32 3.0, %v8016_v15  ;;  %v1243_v29 = vadd.f32 3.0, %v8019_v3  ;;  %v1244_v36 = vadd.f32 3.0, %v8022_v16 }
  0x9e   : > { %6356 = vst [vmem:[%s7716_s17 + $0x250] sm:$0xff] %v5332_v27  ;;  %6357 = vst [vmem:[%s7716_s17 + $0x258] sm:$0xff] %v5333_v30  ;;  %v2265_v38 = vmax.f32 %v1241_v31, 0.0  ;;  %v1245_v39 = vadd.f32 3.0, %v221_v34  ;;  %v1246_v33 = vadd.f32 3.0, %v222_v35  ;;  %v1247_v43 = vadd.f32 3.0, %v223_v21 }
  0x9f   : > { %6358 = vst [vmem:[%s7716_s17 + $0x260] sm:$0xff] %v5334_v25  ;;  %6359 = vst [vmem:[%s7716_s17 + $0x268] sm:$0xff] %v5335_v26  ;;  %v3288_v24 = vmin.f32 %v2264_v28, 6.0  ;;  %v2266_v46 = vmax.f32 %v1242_v19, 0.0  ;;  %v2267_v47 = vmax.f32 %v1243_v29, 0.0  ;;  %v2268_v37 = vmax.f32 %v1244_v36, 0.0 }
  0xa0   : > { %v3289_v48 = vmin.f32 %v2265_v38, 6.0  ;;  %v2269_v41 = vmax.f32 %v1245_v39, 0.0  ;;  %v2270_v42 = vmax.f32 %v1246_v33, 0.0  ;;  %v2271_v49 = vmax.f32 %v1247_v43, 0.0  ;;  %v8082_v28 = vld [vmem:[%s7688_s30 + $0x2f0] sm:$0xff]  ;;  %v8085_v39 = vld [vmem:[%s7688_s30 + $0x2f8] sm:$0xff] }
  0xa1   : > { %v4312_v32 = vmul.f32 0.16666667, %v3288_v24  ;;  %v3290_v45 = vmin.f32 %v2266_v46, 6.0  ;;  %v3291_v50 = vmin.f32 %v2267_v47, 6.0  ;;  %v3292_v54 = vmin.f32 %v2268_v37, 6.0  ;;  %v8088_v47 = vld [vmem:[%s7688_s30 + $0x300] sm:$0xff] }
  0xa2   : > { %v4313_v52 = vmul.f32 0.16666667, %v3289_v48  ;;  %v3293_v56 = vmin.f32 %v2269_v41, 6.0  ;;  %v3294_v40 = vmin.f32 %v2270_v42, 6.0  ;;  %v3295_v62 = vmin.f32 %v2271_v49, 6.0  ;;  %v8091_v37 = vld [vmem:[%s7688_s30 + $0x308] sm:$0xff] }
  0xa3   : > { %v5336_v60 = vmul.f32 %v4312_v32, %v8010_v57  ;;  %v4314_v58 = vmul.f32 0.16666667, %v3290_v45  ;;  %v4315_v1 = vmul.f32 0.16666667, %v3291_v50  ;;  %v4316_v53 = vmul.f32 0.16666667, %v3292_v54 }
  0xa4   : > { %v5337_v61 = vmul.f32 %v4313_v52, %v8013_v5  ;;  %v4317_v2 = vmul.f32 0.16666667, %v3293_v56  ;;  %v4318_v4 = vmul.f32 0.16666667, %v3294_v40  ;;  %v4319_v6 = vmul.f32 0.16666667, %v3295_v62 }
  0xa5   : > { %6360 = vst [vmem:[%s7716_s17 + $0x270] sm:$0xff] %v5336_v60  ;;  %v5338_v7 = vmul.f32 %v4314_v58, %v8016_v15  ;;  %v5339_v59 = vmul.f32 %v4315_v1, %v8019_v3  ;;  %v5340_v11 = vmul.f32 %v4316_v53, %v8022_v16  ;;  %v1248_v57 = vadd.f32 3.0, %v8046_v44  ;;  %v231_v5 = vld [vmem:[%s7688_s30 + $0x2e8] sm:$0xff]  ;;  %v8094_v48 = vld [vmem:[%s7688_s30 + $0x310] sm:$0xff]  ;;  %v237_v60 = vld [vmem:[%s7688_s30 + $0x318] sm:$0xff] }
  0xa6   : > { %6361 = vst [vmem:[%s7716_s17 + $0x278] sm:$0xff] %v5337_v61  ;;  %v5341_v17 = vmul.f32 %v4317_v2, %v221_v34  ;;  %v5342_v9 = vmul.f32 %v4318_v4, %v222_v35  ;;  %v5343_v10 = vmul.f32 %v4319_v6, %v223_v21  ;;  %v1249_v18 = vadd.f32 3.0, %v8049_v55  ;;  %v238_v58 = vld [vmem:[%s7688_s30 + $0x320] sm:$0xff] }
  0xa7   : > { %6362 = vst [vmem:[%s7716_s17 + $0x280] sm:$0xff] %v5338_v7  ;;  %6363 = vst [vmem:[%s7716_s17 + $0x288] sm:$0xff] %v5339_v59  ;;  %v2272_v15 = vmax.f32 %v1248_v57, 0.0  ;;  %v1250_v3 = vadd.f32 3.0, %v8052_v0  ;;  %v1251_v16 = vadd.f32 3.0, %v8055_v51  ;;  %v1252_v20 = vadd.f32 3.0, %v8058_v63 }
  0xa8   : > { %6364 = vst [vmem:[%s7716_s17 + $0x290] sm:$0xff] %v5340_v11  ;;  %6365 = vst [vmem:[%s7716_s17 + $0x298] sm:$0xff] %v5341_v17  ;;  %v2273_v22 = vmax.f32 %v1249_v18, 0.0  ;;  %v1253_v23 = vadd.f32 3.0, %v229_v13  ;;  %v1254_v12 = vadd.f32 3.0, %v230_v14  ;;  %v1255_v27 = vadd.f32 3.0, %v231_v5 }
  0xa9   : > { %6366 = vst [vmem:[%s7716_s17 + $0x2a0] sm:$0xff] %v5342_v9  ;;  %6367 = vst [vmem:[%s7716_s17 + $0x2a8] sm:$0xff] %v5343_v10  ;;  %v3296_v8 = vmin.f32 %v2272_v15, 6.0  ;;  %v2274_v34 = vmax.f32 %v1250_v3, 0.0  ;;  %v2275_v35 = vmax.f32 %v1251_v16, 0.0  ;;  %v2276_v21 = vmax.f32 %v1252_v20, 0.0 }
  0xaa   : > { %v3297_v30 = vmin.f32 %v2273_v22, 6.0  ;;  %v2277_v25 = vmax.f32 %v1253_v23, 0.0  ;;  %v2278_v26 = vmax.f32 %v1254_v12, 0.0  ;;  %v2279_v31 = vmax.f32 %v1255_v27, 0.0  ;;  %v8118_v15 = vld [vmem:[%s7688_s30 + $0x330] sm:$0xff]  ;;  %v8121_v23 = vld [vmem:[%s7688_s30 + $0x338] sm:$0xff] }
  0xab   : > { %v4320_v19 = vmul.f32 0.16666667, %v3296_v8  ;;  %v3298_v29 = vmin.f32 %v2274_v34, 6.0  ;;  %v3299_v36 = vmin.f32 %v2275_v35, 6.0  ;;  %v3300_v38 = vmin.f32 %v2276_v21, 6.0  ;;  %v8124_v35 = vld [vmem:[%s7688_s30 + $0x340] sm:$0xff] }
  0xac   : > { %v4321_v33 = vmul.f32 0.16666667, %v3297_v30  ;;  %v3301_v43 = vmin.f32 %v2277_v25, 6.0  ;;  %v3302_v24 = vmin.f32 %v2278_v26, 6.0  ;;  %v3303_v46 = vmin.f32 %v2279_v31, 6.0  ;;  %v8127_v21 = vld [vmem:[%s7688_s30 + $0x348] sm:$0xff] }
  0xad   : > { %v5344_v41 = vmul.f32 %v4320_v19, %v8046_v44  ;;  %v4322_v42 = vmul.f32 0.16666667, %v3298_v29  ;;  %v4323_v49 = vmul.f32 0.16666667, %v3299_v36  ;;  %v4324_v32 = vmul.f32 0.16666667, %v3300_v38 }
  0xae   : > { %v5345_v45 = vmul.f32 %v4321_v33, %v8049_v55  ;;  %v4325_v50 = vmul.f32 0.16666667, %v3301_v43  ;;  %v4326_v54 = vmul.f32 0.16666667, %v3302_v24  ;;  %v4327_v52 = vmul.f32 0.16666667, %v3303_v46 }
  0xaf   : > { %6368 = vst [vmem:[%s7716_s17 + $0x2b0] sm:$0xff] %v5344_v41  ;;  %v5346_v56 = vmul.f32 %v4322_v42, %v8052_v0  ;;  %v5347_v40 = vmul.f32 %v4323_v49, %v8055_v51  ;;  %v5348_v62 = vmul.f32 %v4324_v32, %v8058_v63  ;;  %v1256_v44 = vadd.f32 3.0, %v8082_v28  ;;  %v239_v55 = vld [vmem:[%s7688_s30 + $0x328] sm:$0xff]  ;;  %v8130_v30 = vld [vmem:[%s7688_s30 + $0x350] sm:$0xff]  ;;  %v245_v41 = vld [vmem:[%s7688_s30 + $0x358] sm:$0xff] }
  0xb0   : > { %6369 = vst [vmem:[%s7716_s17 + $0x2b8] sm:$0xff] %v5345_v45  ;;  %v5349_v1 = vmul.f32 %v4325_v50, %v229_v13  ;;  %v5350_v53 = vmul.f32 %v4326_v54, %v230_v14  ;;  %v5351_v61 = vmul.f32 %v4327_v52, %v231_v5  ;;  %v1257_v2 = vadd.f32 3.0, %v8085_v39  ;;  %v246_v42 = vld [vmem:[%s7688_s30 + $0x360] sm:$0xff] }
  0xb1   : > { %6370 = vst [vmem:[%s7716_s17 + $0x2c0] sm:$0xff] %v5346_v56  ;;  %6371 = vst [vmem:[%s7716_s17 + $0x2c8] sm:$0xff] %v5347_v40  ;;  %v2280_v0 = vmax.f32 %v1256_v44, 0.0  ;;  %v1258_v51 = vadd.f32 3.0, %v8088_v47  ;;  %v1259_v63 = vadd.f32 3.0, %v8091_v37  ;;  %v1260_v4 = vadd.f32 3.0, %v8094_v48 }
  0xb2   : > { %6372 = vst [vmem:[%s7716_s17 + $0x2d0] sm:$0xff] %v5348_v62  ;;  %6373 = vst [vmem:[%s7716_s17 + $0x2d8] sm:$0xff] %v5349_v1  ;;  %v2281_v6 = vmax.f32 %v1257_v2, 0.0  ;;  %v1261_v7 = vadd.f32 3.0, %v237_v60  ;;  %v1262_v59 = vadd.f32 3.0, %v238_v58  ;;  %v1263_v11 = vadd.f32 3.0, %v239_v55 }
  0xb3   : > { %6374 = vst [vmem:[%s7716_s17 + $0x2e0] sm:$0xff] %v5350_v53  ;;  %6375 = vst [vmem:[%s7716_s17 + $0x2e8] sm:$0xff] %v5351_v61  ;;  %v3304_v57 = vmin.f32 %v2280_v0, 6.0  ;;  %v2282_v13 = vmax.f32 %v1258_v51, 0.0  ;;  %v2283_v14 = vmax.f32 %v1259_v63, 0.0  ;;  %v2284_v5 = vmax.f32 %v1260_v4, 0.0 }
  0xb4   : > { %v3305_v17 = vmin.f32 %v2281_v6, 6.0  ;;  %v2285_v9 = vmax.f32 %v1261_v7, 0.0  ;;  %v2286_v10 = vmax.f32 %v1262_v59, 0.0  ;;  %v2287_v18 = vmax.f32 %v1263_v11, 0.0  ;;  %v8154_v0 = vld [vmem:[%s7688_s30 + $0x370] sm:$0xff]  ;;  %v8157_v7 = vld [vmem:[%s7688_s30 + $0x378] sm:$0xff] }
  0xb5   : > { %v4328_v3 = vmul.f32 0.16666667, %v3304_v57  ;;  %v3306_v16 = vmin.f32 %v2282_v13, 6.0  ;;  %v3307_v20 = vmin.f32 %v2283_v14, 6.0  ;;  %v3308_v22 = vmin.f32 %v2284_v5, 6.0  ;;  %v8160_v14 = vld [vmem:[%s7688_s30 + $0x380] sm:$0xff] }
  0xb6   : > { %v4329_v12 = vmul.f32 0.16666667, %v3305_v17  ;;  %v3309_v27 = vmin.f32 %v2285_v9, 6.0  ;;  %v3310_v8 = vmin.f32 %v2286_v10, 6.0  ;;  %v3311_v34 = vmin.f32 %v2287_v18, 6.0  ;;  %v8163_v5 = vld [vmem:[%s7688_s30 + $0x388] sm:$0xff] }
  0xb7   : > { %v5352_v25 = vmul.f32 %v4328_v3, %v8082_v28  ;;  %v4330_v26 = vmul.f32 0.16666667, %v3306_v16  ;;  %v4331_v31 = vmul.f32 0.16666667, %v3307_v20  ;;  %v4332_v19 = vmul.f32 0.16666667, %v3308_v22 }
  0xb8   : > { %v5353_v29 = vmul.f32 %v4329_v12, %v8085_v39  ;;  %v4333_v36 = vmul.f32 0.16666667, %v3309_v27  ;;  %v4334_v38 = vmul.f32 0.16666667, %v3310_v8  ;;  %v4335_v33 = vmul.f32 0.16666667, %v3311_v34 }
  0xb9   : > { %6376 = vst [vmem:[%s7716_s17 + $0x2f0] sm:$0xff] %v5352_v25  ;;  %v5354_v43 = vmul.f32 %v4330_v26, %v8088_v47  ;;  %v5355_v24 = vmul.f32 %v4331_v31, %v8091_v37  ;;  %v5356_v46 = vmul.f32 %v4332_v19, %v8094_v48  ;;  %v1264_v28 = vadd.f32 3.0, %v8118_v15  ;;  %v247_v39 = vld [vmem:[%s7688_s30 + $0x368] sm:$0xff]  ;;  %v8166_v17 = vld [vmem:[%s7688_s30 + $0x390] sm:$0xff]  ;;  %v253_v25 = vld [vmem:[%s7688_s30 + $0x398] sm:$0xff] }
  0xba   : > { %6377 = vst [vmem:[%s7716_s17 + $0x2f8] sm:$0xff] %v5353_v29  ;;  %v5357_v49 = vmul.f32 %v4333_v36, %v237_v60  ;;  %v5358_v32 = vmul.f32 %v4334_v38, %v238_v58  ;;  %v5359_v45 = vmul.f32 %v4335_v33, %v239_v55  ;;  %v1265_v50 = vadd.f32 3.0, %v8121_v23  ;;  %v254_v26 = vld [vmem:[%s7688_s30 + $0x3a0] sm:$0xff] }
  0xbb   : > { %6378 = vst [vmem:[%s7716_s17 + $0x300] sm:$0xff] %v5354_v43  ;;  %6379 = vst [vmem:[%s7716_s17 + $0x308] sm:$0xff] %v5355_v24  ;;  %v2288_v47 = vmax.f32 %v1264_v28, 0.0  ;;  %v1266_v37 = vadd.f32 3.0, %v8124_v35  ;;  %v1267_v48 = vadd.f32 3.0, %v8127_v21  ;;  %v1268_v54 = vadd.f32 3.0, %v8130_v30 }
  0xbc   : > { %6380 = vst [vmem:[%s7716_s17 + $0x310] sm:$0xff] %v5356_v46  ;;  %6381 = vst [vmem:[%s7716_s17 + $0x318] sm:$0xff] %v5357_v49  ;;  %v2289_v52 = vmax.f32 %v1265_v50, 0.0  ;;  %v1269_v56 = vadd.f32 3.0, %v245_v41  ;;  %v1270_v40 = vadd.f32 3.0, %v246_v42  ;;  %v1271_v62 = vadd.f32 3.0, %v247_v39 }
  0xbd   : > { %6382 = vst [vmem:[%s7716_s17 + $0x320] sm:$0xff] %v5358_v32  ;;  %6383 = vst [vmem:[%s7716_s17 + $0x328] sm:$0xff] %v5359_v45  ;;  %v3312_v44 = vmin.f32 %v2288_v47, 6.0  ;;  %v2290_v60 = vmax.f32 %v1266_v37, 0.0  ;;  %v2291_v58 = vmax.f32 %v1267_v48, 0.0  ;;  %v2292_v55 = vmax.f32 %v1268_v54, 0.0 }
  0xbe   : > { %v3313_v1 = vmin.f32 %v2289_v52, 6.0  ;;  %v2293_v53 = vmax.f32 %v1269_v56, 0.0  ;;  %v2294_v61 = vmax.f32 %v1270_v40, 0.0  ;;  %v2295_v2 = vmax.f32 %v1271_v62, 0.0  ;;  %v8190_v47 = vld [vmem:[%s7688_s30 + $0x3b0] sm:$0xff]  ;;  %v8193_v56 = vld [vmem:[%s7688_s30 + $0x3b8] sm:$0xff] }
  0xbf   : > { %v4336_v51 = vmul.f32 0.16666667, %v3312_v44  ;;  %v3314_v63 = vmin.f32 %v2290_v60, 6.0  ;;  %v3315_v4 = vmin.f32 %v2291_v58, 6.0  ;;  %v3316_v6 = vmin.f32 %v2292_v55, 6.0  ;;  %v8196_v58 = vld [vmem:[%s7688_s30 + $0x3c0] sm:$0xff] }
  0xc0   : > { %v4337_v59 = vmul.f32 0.16666667, %v3313_v1  ;;  %v3317_v11 = vmin.f32 %v2293_v53, 6.0  ;;  %v3318_v57 = vmin.f32 %v2294_v61, 6.0  ;;  %v3319_v13 = vmin.f32 %v2295_v2, 6.0  ;;  %v8199_v55 = vld [vmem:[%s7688_s30 + $0x3c8] sm:$0xff] }
  0xc1   : > { %v5360_v9 = vmul.f32 %v4336_v51, %v8118_v15  ;;  %v4338_v10 = vmul.f32 0.16666667, %v3314_v63  ;;  %v4339_v18 = vmul.f32 0.16666667, %v3315_v4  ;;  %v4340_v3 = vmul.f32 0.16666667, %v3316_v6 }
  0xc2   : > { %v5361_v16 = vmul.f32 %v4337_v59, %v8121_v23  ;;  %v4341_v20 = vmul.f32 0.16666667, %v3317_v11  ;;  %v4342_v22 = vmul.f32 0.16666667, %v3318_v57  ;;  %v4343_v12 = vmul.f32 0.16666667, %v3319_v13 }
  0xc3   : > { %6384 = vst [vmem:[%s7716_s17 + $0x330] sm:$0xff] %v5360_v9  ;;  %v5362_v27 = vmul.f32 %v4338_v10, %v8124_v35  ;;  %v5363_v8 = vmul.f32 %v4339_v18, %v8127_v21  ;;  %v5364_v34 = vmul.f32 %v4340_v3, %v8130_v30  ;;  %v1272_v15 = vadd.f32 3.0, %v8154_v0  ;;  %v255_v23 = vld [vmem:[%s7688_s30 + $0x3a8] sm:$0xff]  ;;  %v8202_v1 = vld [vmem:[%s7688_s30 + $0x3d0] sm:$0xff]  ;;  %v261_v9 = vld [vmem:[%s7688_s30 + $0x3d8] sm:$0xff] }
  0xc4   : > { %6385 = vst [vmem:[%s7716_s17 + $0x338] sm:$0xff] %v5361_v16  ;;  %v5365_v31 = vmul.f32 %v4341_v20, %v245_v41  ;;  %v5366_v19 = vmul.f32 %v4342_v22, %v246_v42  ;;  %v5367_v29 = vmul.f32 %v4343_v12, %v247_v39  ;;  %v1273_v36 = vadd.f32 3.0, %v8157_v7  ;;  %v262_v10 = vld [vmem:[%s7688_s30 + $0x3e0] sm:$0xff] }
  0xc5   : > { %6386 = vst [vmem:[%s7716_s17 + $0x340] sm:$0xff] %v5362_v27  ;;  %6387 = vst [vmem:[%s7716_s17 + $0x348] sm:$0xff] %v5363_v8  ;;  %v2296_v35 = vmax.f32 %v1272_v15, 0.0  ;;  %v1274_v21 = vadd.f32 3.0, %v8160_v14  ;;  %v1275_v30 = vadd.f32 3.0, %v8163_v5  ;;  %v1276_v38 = vadd.f32 3.0, %v8166_v17 }
  0xc6   : > { %6388 = vst [vmem:[%s7716_s17 + $0x350] sm:$0xff] %v5364_v34  ;;  %6389 = vst [vmem:[%s7716_s17 + $0x358] sm:$0xff] %v5365_v31  ;;  %v2297_v33 = vmax.f32 %v1273_v36, 0.0  ;;  %v1277_v43 = vadd.f32 3.0, %v253_v25  ;;  %v1278_v24 = vadd.f32 3.0, %v254_v26  ;;  %v1279_v46 = vadd.f32 3.0, %v255_v23 }
  0xc7   : > { %6390 = vst [vmem:[%s7716_s17 + $0x360] sm:$0xff] %v5366_v19  ;;  %6391 = vst [vmem:[%s7716_s17 + $0x368] sm:$0xff] %v5367_v29  ;;  %v3320_v28 = vmin.f32 %v2296_v35, 6.0  ;;  %v2298_v41 = vmax.f32 %v1274_v21, 0.0  ;;  %v2299_v42 = vmax.f32 %v1275_v30, 0.0  ;;  %v2300_v39 = vmax.f32 %v1276_v38, 0.0 }
  0xc8   : > { %v3321_v49 = vmin.f32 %v2297_v33, 6.0  ;;  %v2301_v32 = vmax.f32 %v1277_v43, 0.0  ;;  %v2302_v45 = vmax.f32 %v1278_v24, 0.0  ;;  %v2303_v50 = vmax.f32 %v1279_v46, 0.0  ;;  %v8226_v35 = vld [vmem:[%s7688_s30 + $0x3f0] sm:$0xff]  ;;  %v8229_v43 = vld [vmem:[%s7688_s30 + $0x3f8] sm:$0xff] }
  0xc9   : > { %v4344_v37 = vmul.f32 0.16666667, %v3320_v28  ;;  %v3322_v48 = vmin.f32 %v2298_v41, 6.0  ;;  %v3323_v54 = vmin.f32 %v2299_v42, 6.0  ;;  %v3324_v52 = vmin.f32 %v2300_v39, 6.0  ;;  %v8232_v42 = vld [vmem:[%s7688_s30 + $0x400] sm:$0xff] }
  0xca   : > { %v4345_v40 = vmul.f32 0.16666667, %v3321_v49  ;;  %v3325_v62 = vmin.f32 %v2301_v32, 6.0  ;;  %v3326_v44 = vmin.f32 %v2302_v45, 6.0  ;;  %v3327_v60 = vmin.f32 %v2303_v50, 6.0  ;;  %v8235_v39 = vld [vmem:[%s7688_s30 + $0x408] sm:$0xff] }
  0xcb   : > { %v5368_v53 = vmul.f32 %v4344_v37, %v8154_v0  ;;  %v4346_v61 = vmul.f32 0.16666667, %v3322_v48  ;;  %v4347_v2 = vmul.f32 0.16666667, %v3323_v54  ;;  %v4348_v51 = vmul.f32 0.16666667, %v3324_v52 }
  0xcc   : > { %v5369_v63 = vmul.f32 %v4345_v40, %v8157_v7  ;;  %v4349_v4 = vmul.f32 0.16666667, %v3325_v62  ;;  %v4350_v6 = vmul.f32 0.16666667, %v3326_v44  ;;  %v4351_v59 = vmul.f32 0.16666667, %v3327_v60 }
  0xcd   : > { %6392 = vst [vmem:[%s7716_s17 + $0x370] sm:$0xff] %v5368_v53  ;;  %v5370_v11 = vmul.f32 %v4346_v61, %v8160_v14  ;;  %v5371_v57 = vmul.f32 %v4347_v2, %v8163_v5  ;;  %v5372_v13 = vmul.f32 %v4348_v51, %v8166_v17  ;;  %v1280_v0 = vadd.f32 3.0, %v8190_v47  ;;  %v263_v7 = vld [vmem:[%s7688_s30 + $0x3e8] sm:$0xff]  ;;  %v8238_v49 = vld [vmem:[%s7688_s30 + $0x410] sm:$0xff]  ;;  %v269_v53 = vld [vmem:[%s7688_s30 + $0x418] sm:$0xff] }
  0xce   : > { %6393 = vst [vmem:[%s7716_s17 + $0x378] sm:$0xff] %v5369_v63  ;;  %v5373_v18 = vmul.f32 %v4349_v4, %v253_v25  ;;  %v5374_v3 = vmul.f32 %v4350_v6, %v254_v26  ;;  %v5375_v16 = vmul.f32 %v4351_v59, %v255_v23  ;;  %v1281_v20 = vadd.f32 3.0, %v8193_v56  ;;  %v270_v61 = vld [vmem:[%s7688_s30 + $0x420] sm:$0xff] }
  0xcf   : > { %6394 = vst [vmem:[%s7716_s17 + $0x380] sm:$0xff] %v5370_v11  ;;  %6395 = vst [vmem:[%s7716_s17 + $0x388] sm:$0xff] %v5371_v57  ;;  %v2304_v14 = vmax.f32 %v1280_v0, 0.0  ;;  %v1282_v5 = vadd.f32 3.0, %v8196_v58  ;;  %v1283_v17 = vadd.f32 3.0, %v8199_v55  ;;  %v1284_v22 = vadd.f32 3.0, %v8202_v1 }
  0xd0   : > { %6396 = vst [vmem:[%s7716_s17 + $0x390] sm:$0xff] %v5372_v13  ;;  %6397 = vst [vmem:[%s7716_s17 + $0x398] sm:$0xff] %v5373_v18  ;;  %v2305_v12 = vmax.f32 %v1281_v20, 0.0  ;;  %v1285_v27 = vadd.f32 3.0, %v261_v9  ;;  %v1286_v8 = vadd.f32 3.0, %v262_v10  ;;  %v1287_v34 = vadd.f32 3.0, %v263_v7 }
  0xd1   : > { %6398 = vst [vmem:[%s7716_s17 + $0x3a0] sm:$0xff] %v5374_v3  ;;  %6399 = vst [vmem:[%s7716_s17 + $0x3a8] sm:$0xff] %v5375_v16  ;;  %v3328_v15 = vmin.f32 %v2304_v14, 6.0  ;;  %v2306_v25 = vmax.f32 %v1282_v5, 0.0  ;;  %v2307_v26 = vmax.f32 %v1283_v17, 0.0  ;;  %v2308_v23 = vmax.f32 %v1284_v22, 0.0 }
  0xd2   : > { %v3329_v31 = vmin.f32 %v2305_v12, 6.0  ;;  %v2309_v19 = vmax.f32 %v1285_v27, 0.0  ;;  %v2310_v29 = vmax.f32 %v1286_v8, 0.0  ;;  %v2311_v36 = vmax.f32 %v1287_v34, 0.0  ;;  %v8262_v14 = vld [vmem:[%s7688_s30 + $0x430] sm:$0xff]  ;;  %v8265_v27 = vld [vmem:[%s7688_s30 + $0x438] sm:$0xff] }
  0xd3   : > { %v4352_v21 = vmul.f32 0.16666667, %v3328_v15  ;;  %v3330_v30 = vmin.f32 %v2306_v25, 6.0  ;;  %v3331_v38 = vmin.f32 %v2307_v26, 6.0  ;;  %v3332_v33 = vmin.f32 %v2308_v23, 6.0  ;;  %v8268_v26 = vld [vmem:[%s7688_s30 + $0x440] sm:$0xff] }
  0xd4   : > { %v4353_v24 = vmul.f32 0.16666667, %v3329_v31  ;;  %v3333_v46 = vmin.f32 %v2309_v19, 6.0  ;;  %v3334_v28 = vmin.f32 %v2310_v29, 6.0  ;;  %v3335_v41 = vmin.f32 %v2311_v36, 6.0  ;;  %v8271_v23 = vld [vmem:[%s7688_s30 + $0x448] sm:$0xff] }
  0xd5   : > { %v5376_v32 = vmul.f32 %v4352_v21, %v8190_v47  ;;  %v4354_v45 = vmul.f32 0.16666667, %v3330_v30  ;;  %v4355_v50 = vmul.f32 0.16666667, %v3331_v38  ;;  %v4356_v37 = vmul.f32 0.16666667, %v3332_v33 }
  0xd6   : > { %v5377_v48 = vmul.f32 %v4353_v24, %v8193_v56  ;;  %v4357_v54 = vmul.f32 0.16666667, %v3333_v46  ;;  %v4358_v52 = vmul.f32 0.16666667, %v3334_v28  ;;  %v4359_v40 = vmul.f32 0.16666667, %v3335_v41 }
  0xd7   : > { %6400 = vst [vmem:[%s7716_s17 + $0x3b0] sm:$0xff] %v5376_v32  ;;  %v5378_v62 = vmul.f32 %v4354_v45, %v8196_v58  ;;  %v5379_v44 = vmul.f32 %v4355_v50, %v8199_v55  ;;  %v5380_v60 = vmul.f32 %v4356_v37, %v8202_v1  ;;  %v1288_v47 = vadd.f32 3.0, %v8226_v35  ;;  %v271_v56 = vld [vmem:[%s7688_s30 + $0x428] sm:$0xff]  ;;  %v8274_v31 = vld [vmem:[%s7688_s30 + $0x450] sm:$0xff]  ;;  %v277_v32 = vld [vmem:[%s7688_s30 + $0x458] sm:$0xff] }
  0xd8   : > { %6401 = vst [vmem:[%s7716_s17 + $0x3b8] sm:$0xff] %v5377_v48  ;;  %v5381_v2 = vmul.f32 %v4357_v54, %v261_v9  ;;  %v5382_v51 = vmul.f32 %v4358_v52, %v262_v10  ;;  %v5383_v63 = vmul.f32 %v4359_v40, %v263_v7  ;;  %v1289_v4 = vadd.f32 3.0, %v8229_v43  ;;  %v278_v45 = vld [vmem:[%s7688_s30 + $0x460] sm:$0xff] }
  0xd9   : > { %6402 = vst [vmem:[%s7716_s17 + $0x3c0] sm:$0xff] %v5378_v62  ;;  %6403 = vst [vmem:[%s7716_s17 + $0x3c8] sm:$0xff] %v5379_v44  ;;  %v2312_v58 = vmax.f32 %v1288_v47, 0.0  ;;  %v1290_v55 = vadd.f32 3.0, %v8232_v42  ;;  %v1291_v1 = vadd.f32 3.0, %v8235_v39  ;;  %v1292_v6 = vadd.f32 3.0, %v8238_v49 }
  0xda   : > { %6404 = vst [vmem:[%s7716_s17 + $0x3d0] sm:$0xff] %v5380_v60  ;;  %6405 = vst [vmem:[%s7716_s17 + $0x3d8] sm:$0xff] %v5381_v2  ;;  %v2313_v59 = vmax.f32 %v1289_v4, 0.0  ;;  %v1293_v11 = vadd.f32 3.0, %v269_v53  ;;  %v1294_v57 = vadd.f32 3.0, %v270_v61  ;;  %v1295_v13 = vadd.f32 3.0, %v271_v56 }
  0xdb   : > { %6406 = vst [vmem:[%s7716_s17 + $0x3e0] sm:$0xff] %v5382_v51  ;;  %6407 = vst [vmem:[%s7716_s17 + $0x3e8] sm:$0xff] %v5383_v63  ;;  %v3336_v0 = vmin.f32 %v2312_v58, 6.0  ;;  %v2314_v9 = vmax.f32 %v1290_v55, 0.0  ;;  %v2315_v10 = vmax.f32 %v1291_v1, 0.0  ;;  %v2316_v7 = vmax.f32 %v1292_v6, 0.0 }
  0xdc   : > { %v3337_v18 = vmin.f32 %v2313_v59, 6.0  ;;  %v2317_v3 = vmax.f32 %v1293_v11, 0.0  ;;  %v2318_v16 = vmax.f32 %v1294_v57, 0.0  ;;  %v2319_v20 = vmax.f32 %v1295_v13, 0.0  ;;  %v8298_v58 = vld [vmem:[%s7688_s30 + $0x470] sm:$0xff]  ;;  %v8301_v11 = vld [vmem:[%s7688_s30 + $0x478] sm:$0xff] }
  0xdd   : > { %v4360_v5 = vmul.f32 0.16666667, %v3336_v0  ;;  %v3338_v17 = vmin.f32 %v2314_v9, 6.0  ;;  %v3339_v22 = vmin.f32 %v2315_v10, 6.0  ;;  %v3340_v12 = vmin.f32 %v2316_v7, 6.0  ;;  %v8304_v10 = vld [vmem:[%s7688_s30 + $0x480] sm:$0xff] }
  0xde   : > { %v4361_v8 = vmul.f32 0.16666667, %v3337_v18  ;;  %v3341_v34 = vmin.f32 %v2317_v3, 6.0  ;;  %v3342_v15 = vmin.f32 %v2318_v16, 6.0  ;;  %v3343_v25 = vmin.f32 %v2319_v20, 6.0  ;;  %v8307_v7 = vld [vmem:[%s7688_s30 + $0x488] sm:$0xff] }
  0xdf   : > { %v5384_v19 = vmul.f32 %v4360_v5, %v8226_v35  ;;  %v4362_v29 = vmul.f32 0.16666667, %v3338_v17  ;;  %v4363_v36 = vmul.f32 0.16666667, %v3339_v22  ;;  %v4364_v21 = vmul.f32 0.16666667, %v3340_v12 }
  0xe0   : > { %v5385_v30 = vmul.f32 %v4361_v8, %v8229_v43  ;;  %v4365_v38 = vmul.f32 0.16666667, %v3341_v34  ;;  %v4366_v33 = vmul.f32 0.16666667, %v3342_v15  ;;  %v4367_v24 = vmul.f32 0.16666667, %v3343_v25 }
  0xe1   : > { %6408 = vst [vmem:[%s7716_s17 + $0x3f0] sm:$0xff] %v5384_v19  ;;  %v5386_v46 = vmul.f32 %v4362_v29, %v8232_v42  ;;  %v5387_v28 = vmul.f32 %v4363_v36, %v8235_v39  ;;  %v5388_v41 = vmul.f32 %v4364_v21, %v8238_v49  ;;  %v1296_v35 = vadd.f32 3.0, %v8262_v14  ;;  %v279_v43 = vld [vmem:[%s7688_s30 + $0x468] sm:$0xff]  ;;  %v8310_v18 = vld [vmem:[%s7688_s30 + $0x490] sm:$0xff]  ;;  %v285_v19 = vld [vmem:[%s7688_s30 + $0x498] sm:$0xff] }
  0xe2   : > { %6409 = vst [vmem:[%s7716_s17 + $0x3f8] sm:$0xff] %v5385_v30  ;;  %v5389_v50 = vmul.f32 %v4365_v38, %v269_v53  ;;  %v5390_v37 = vmul.f32 %v4366_v33, %v270_v61  ;;  %v5391_v48 = vmul.f32 %v4367_v24, %v271_v56  ;;  %v1297_v54 = vadd.f32 3.0, %v8265_v27  ;;  %v286_v29 = vld [vmem:[%s7688_s30 + $0x4a0] sm:$0xff] }
  0xe3   : > { %6410 = vst [vmem:[%s7716_s17 + $0x400] sm:$0xff] %v5386_v46  ;;  %6411 = vst [vmem:[%s7716_s17 + $0x408] sm:$0xff] %v5387_v28  ;;  %v2320_v42 = vmax.f32 %v1296_v35, 0.0  ;;  %v1298_v39 = vadd.f32 3.0, %v8268_v26  ;;  %v1299_v49 = vadd.f32 3.0, %v8271_v23  ;;  %v1300_v52 = vadd.f32 3.0, %v8274_v31 }
  0xe4   : > { %6412 = vst [vmem:[%s7716_s17 + $0x410] sm:$0xff] %v5388_v41  ;;  %6413 = vst [vmem:[%s7716_s17 + $0x418] sm:$0xff] %v5389_v50  ;;  %v2321_v40 = vmax.f32 %v1297_v54, 0.0  ;;  %v1301_v62 = vadd.f32 3.0, %v277_v32  ;;  %v1302_v44 = vadd.f32 3.0, %v278_v45  ;;  %v1303_v60 = vadd.f32 3.0, %v279_v43 }
  0xe5   : > { %6414 = vst [vmem:[%s7716_s17 + $0x420] sm:$0xff] %v5390_v37  ;;  %6415 = vst [vmem:[%s7716_s17 + $0x428] sm:$0xff] %v5391_v48  ;;  %v3344_v47 = vmin.f32 %v2320_v42, 6.0  ;;  %v2322_v53 = vmax.f32 %v1298_v39, 0.0  ;;  %v2323_v61 = vmax.f32 %v1299_v49, 0.0  ;;  %v2324_v56 = vmax.f32 %v1300_v52, 0.0 }
  0xe6   : > { %v3345_v2 = vmin.f32 %v2321_v40, 6.0  ;;  %v2325_v51 = vmax.f32 %v1301_v62, 0.0  ;;  %v2326_v63 = vmax.f32 %v1302_v44, 0.0  ;;  %v2327_v4 = vmax.f32 %v1303_v60, 0.0  ;;  %v8334_v42 = vld [vmem:[%s7688_s30 + $0x4b0] sm:$0xff]  ;;  %v8337_v62 = vld [vmem:[%s7688_s30 + $0x4b8] sm:$0xff] }
  0xe7   : > { %v4368_v55 = vmul.f32 0.16666667, %v3344_v47  ;;  %v3346_v1 = vmin.f32 %v2322_v53, 6.0  ;;  %v3347_v6 = vmin.f32 %v2323_v61, 6.0  ;;  %v3348_v59 = vmin.f32 %v2324_v56, 6.0  ;;  %v8340_v61 = vld [vmem:[%s7688_s30 + $0x4c0] sm:$0xff] }
  0xe8   : > { %v4369_v57 = vmul.f32 0.16666667, %v3345_v2  ;;  %v3349_v13 = vmin.f32 %v2325_v51, 6.0  ;;  %v3350_v0 = vmin.f32 %v2326_v63, 6.0  ;;  %v3351_v9 = vmin.f32 %v2327_v4, 6.0  ;;  %v8343_v56 = vld [vmem:[%s7688_s30 + $0x4c8] sm:$0xff] }
  0xe9   : > { %v5392_v3 = vmul.f32 %v4368_v55, %v8262_v14  ;;  %v4370_v16 = vmul.f32 0.16666667, %v3346_v1  ;;  %v4371_v20 = vmul.f32 0.16666667, %v3347_v6  ;;  %v4372_v5 = vmul.f32 0.16666667, %v3348_v59 }
  0xea   : > { %v5393_v17 = vmul.f32 %v4369_v57, %v8265_v27  ;;  %v4373_v22 = vmul.f32 0.16666667, %v3349_v13  ;;  %v4374_v12 = vmul.f32 0.16666667, %v3350_v0  ;;  %v4375_v8 = vmul.f32 0.16666667, %v3351_v9 }
  0xeb   : > { %6416 = vst [vmem:[%s7716_s17 + $0x430] sm:$0xff] %v5392_v3  ;;  %v5394_v34 = vmul.f32 %v4370_v16, %v8268_v26  ;;  %v5395_v15 = vmul.f32 %v4371_v20, %v8271_v23  ;;  %v5396_v25 = vmul.f32 %v4372_v5, %v8274_v31  ;;  %v1304_v14 = vadd.f32 3.0, %v8298_v58  ;;  %v287_v27 = vld [vmem:[%s7688_s30 + $0x4a8] sm:$0xff]  ;;  %v8346_v2 = vld [vmem:[%s7688_s30 + $0x4d0] sm:$0xff]  ;;  %v293_v3 = vld [vmem:[%s7688_s30 + $0x4d8] sm:$0xff] }
  0xec   : > { %6417 = vst [vmem:[%s7716_s17 + $0x438] sm:$0xff] %v5393_v17  ;;  %v5397_v36 = vmul.f32 %v4373_v22, %v277_v32  ;;  %v5398_v21 = vmul.f32 %v4374_v12, %v278_v45  ;;  %v5399_v30 = vmul.f32 %v4375_v8, %v279_v43  ;;  %v1305_v38 = vadd.f32 3.0, %v8301_v11  ;;  %v294_v16 = vld [vmem:[%s7688_s30 + $0x4e0] sm:$0xff] }
  0xed   : > { %6418 = vst [vmem:[%s7716_s17 + $0x440] sm:$0xff] %v5394_v34  ;;  %6419 = vst [vmem:[%s7716_s17 + $0x448] sm:$0xff] %v5395_v15  ;;  %v2328_v26 = vmax.f32 %v1304_v14, 0.0  ;;  %v1306_v23 = vadd.f32 3.0, %v8304_v10  ;;  %v1307_v31 = vadd.f32 3.0, %v8307_v7  ;;  %v1308_v33 = vadd.f32 3.0, %v8310_v18 }
  0xee   : > { %6420 = vst [vmem:[%s7716_s17 + $0x450] sm:$0xff] %v5396_v25  ;;  %6421 = vst [vmem:[%s7716_s17 + $0x458] sm:$0xff] %v5397_v36  ;;  %v2329_v24 = vmax.f32 %v1305_v38, 0.0  ;;  %v1309_v46 = vadd.f32 3.0, %v285_v19  ;;  %v1310_v28 = vadd.f32 3.0, %v286_v29  ;;  %v1311_v41 = vadd.f32 3.0, %v287_v27 }
  0xef   : > { %6422 = vst [vmem:[%s7716_s17 + $0x460] sm:$0xff] %v5398_v21  ;;  %6423 = vst [vmem:[%s7716_s17 + $0x468] sm:$0xff] %v5399_v30  ;;  %v3352_v35 = vmin.f32 %v2328_v26, 6.0  ;;  %v2330_v32 = vmax.f32 %v1306_v23, 0.0  ;;  %v2331_v45 = vmax.f32 %v1307_v31, 0.0  ;;  %v2332_v43 = vmax.f32 %v1308_v33, 0.0 }
  0xf0   : > { %v3353_v50 = vmin.f32 %v2329_v24, 6.0  ;;  %v2333_v37 = vmax.f32 %v1309_v46, 0.0  ;;  %v2334_v48 = vmax.f32 %v1310_v28, 0.0  ;;  %v2335_v54 = vmax.f32 %v1311_v41, 0.0  ;;  %v8370_v26 = vld [vmem:[%s7688_s30 + $0x4f0] sm:$0xff]  ;;  %v8373_v46 = vld [vmem:[%s7688_s30 + $0x4f8] sm:$0xff] }
  0xf1   : > { %v4376_v39 = vmul.f32 0.16666667, %v3352_v35  ;;  %v3354_v49 = vmin.f32 %v2330_v32, 6.0  ;;  %v3355_v52 = vmin.f32 %v2331_v45, 6.0  ;;  %v3356_v40 = vmin.f32 %v2332_v43, 6.0  ;;  %v8376_v45 = vld [vmem:[%s7688_s30 + $0x500] sm:$0xff] }
  0xf2   : > { %v4377_v44 = vmul.f32 0.16666667, %v3353_v50  ;;  %v3357_v60 = vmin.f32 %v2333_v37, 6.0  ;;  %v3358_v47 = vmin.f32 %v2334_v48, 6.0  ;;  %v3359_v53 = vmin.f32 %v2335_v54, 6.0  ;;  %v8379_v43 = vld [vmem:[%s7688_s30 + $0x508] sm:$0xff] }
  0xf3   : > { %v5400_v51 = vmul.f32 %v4376_v39, %v8298_v58  ;;  %v4378_v63 = vmul.f32 0.16666667, %v3354_v49  ;;  %v4379_v4 = vmul.f32 0.16666667, %v3355_v52  ;;  %v4380_v55 = vmul.f32 0.16666667, %v3356_v40 }
  0xf4   : > { %v5401_v1 = vmul.f32 %v4377_v44, %v8301_v11  ;;  %v4381_v6 = vmul.f32 0.16666667, %v3357_v60  ;;  %v4382_v59 = vmul.f32 0.16666667, %v3358_v47  ;;  %v4383_v57 = vmul.f32 0.16666667, %v3359_v53 }
  0xf5   : > { %6424 = vst [vmem:[%s7716_s17 + $0x470] sm:$0xff] %v5400_v51  ;;  %v5402_v13 = vmul.f32 %v4378_v63, %v8304_v10  ;;  %v5403_v0 = vmul.f32 %v4379_v4, %v8307_v7  ;;  %v5404_v9 = vmul.f32 %v4380_v55, %v8310_v18  ;;  %v1312_v58 = vadd.f32 3.0, %v8334_v42  ;;  %v295_v11 = vld [vmem:[%s7688_s30 + $0x4e8] sm:$0xff]  ;;  %v8382_v50 = vld [vmem:[%s7688_s30 + $0x510] sm:$0xff]  ;;  %v301_v51 = vld [vmem:[%s7688_s30 + $0x518] sm:$0xff] }
  0xf6   : > { %6425 = vst [vmem:[%s7716_s17 + $0x478] sm:$0xff] %v5401_v1  ;;  %v5405_v20 = vmul.f32 %v4381_v6, %v285_v19  ;;  %v5406_v5 = vmul.f32 %v4382_v59, %v286_v29  ;;  %v5407_v17 = vmul.f32 %v4383_v57, %v287_v27  ;;  %v1313_v22 = vadd.f32 3.0, %v8337_v62  ;;  %v302_v63 = vld [vmem:[%s7688_s30 + $0x520] sm:$0xff] }
  0xf7   : > { %6426 = vst [vmem:[%s7716_s17 + $0x480] sm:$0xff] %v5402_v13  ;;  %6427 = vst [vmem:[%s7716_s17 + $0x488] sm:$0xff] %v5403_v0  ;;  %v2336_v10 = vmax.f32 %v1312_v58, 0.0  ;;  %v1314_v7 = vadd.f32 3.0, %v8340_v61  ;;  %v1315_v18 = vadd.f32 3.0, %v8343_v56  ;;  %v1316_v12 = vadd.f32 3.0, %v8346_v2 }
  0xf8   : > { %6428 = vst [vmem:[%s7716_s17 + $0x490] sm:$0xff] %v5404_v9  ;;  %6429 = vst [vmem:[%s7716_s17 + $0x498] sm:$0xff] %v5405_v20  ;;  %v2337_v8 = vmax.f32 %v1313_v22, 0.0  ;;  %v1317_v34 = vadd.f32 3.0, %v293_v3  ;;  %v1318_v15 = vadd.f32 3.0, %v294_v16  ;;  %v1319_v25 = vadd.f32 3.0, %v295_v11 }
  0xf9   : > { %6430 = vst [vmem:[%s7716_s17 + $0x4a0] sm:$0xff] %v5406_v5  ;;  %6431 = vst [vmem:[%s7716_s17 + $0x4a8] sm:$0xff] %v5407_v17  ;;  %v3360_v14 = vmin.f32 %v2336_v10, 6.0  ;;  %v2338_v19 = vmax.f32 %v1314_v7, 0.0  ;;  %v2339_v29 = vmax.f32 %v1315_v18, 0.0  ;;  %v2340_v27 = vmax.f32 %v1316_v12, 0.0 }
  0xfa   : > { %v3361_v36 = vmin.f32 %v2337_v8, 6.0  ;;  %v2341_v21 = vmax.f32 %v1317_v34, 0.0  ;;  %v2342_v30 = vmax.f32 %v1318_v15, 0.0  ;;  %v2343_v38 = vmax.f32 %v1319_v25, 0.0  ;;  %v8406_v10 = vld [vmem:[%s7688_s30 + $0x530] sm:$0xff]  ;;  %v8409_v34 = vld [vmem:[%s7688_s30 + $0x538] sm:$0xff] }
  0xfb   : > { %v4384_v23 = vmul.f32 0.16666667, %v3360_v14  ;;  %v3362_v31 = vmin.f32 %v2338_v19, 6.0  ;;  %v3363_v33 = vmin.f32 %v2339_v29, 6.0  ;;  %v3364_v24 = vmin.f32 %v2340_v27, 6.0  ;;  %v8412_v29 = vld [vmem:[%s7688_s30 + $0x540] sm:$0xff] }
  0xfc   : > { %v4385_v28 = vmul.f32 0.16666667, %v3361_v36  ;;  %v3365_v41 = vmin.f32 %v2341_v21, 6.0  ;;  %v3366_v35 = vmin.f32 %v2342_v30, 6.0  ;;  %v3367_v32 = vmin.f32 %v2343_v38, 6.0  ;;  %v8415_v27 = vld [vmem:[%s7688_s30 + $0x548] sm:$0xff] }
  0xfd   : > { %v5408_v37 = vmul.f32 %v4384_v23, %v8334_v42  ;;  %v4386_v48 = vmul.f32 0.16666667, %v3362_v31  ;;  %v4387_v54 = vmul.f32 0.16666667, %v3363_v33  ;;  %v4388_v39 = vmul.f32 0.16666667, %v3364_v24 }
  0xfe   : > { %v5409_v49 = vmul.f32 %v4385_v28, %v8337_v62  ;;  %v4389_v52 = vmul.f32 0.16666667, %v3365_v41  ;;  %v4390_v40 = vmul.f32 0.16666667, %v3366_v35  ;;  %v4391_v44 = vmul.f32 0.16666667, %v3367_v32 }
  0xff   : > { %6432 = vst [vmem:[%s7716_s17 + $0x4b0] sm:$0xff] %v5408_v37  ;;  %v5410_v60 = vmul.f32 %v4386_v48, %v8340_v61  ;;  %v5411_v47 = vmul.f32 %v4387_v54, %v8343_v56  ;;  %v5412_v53 = vmul.f32 %v4388_v39, %v8346_v2  ;;  %v1320_v42 = vadd.f32 3.0, %v8370_v26  ;;  %v303_v62 = vld [vmem:[%s7688_s30 + $0x528] sm:$0xff]  ;;  %v8418_v36 = vld [vmem:[%s7688_s30 + $0x550] sm:$0xff]  ;;  %v309_v37 = vld [vmem:[%s7688_s30 + $0x558] sm:$0xff] }
 0x100   : > { %6433 = vst [vmem:[%s7716_s17 + $0x4b8] sm:$0xff] %v5409_v49  ;;  %v5413_v4 = vmul.f32 %v4389_v52, %v293_v3  ;;  %v5414_v55 = vmul.f32 %v4390_v40, %v294_v16  ;;  %v5415_v1 = vmul.f32 %v4391_v44, %v295_v11  ;;  %v1321_v6 = vadd.f32 3.0, %v8373_v46  ;;  %v310_v48 = vld [vmem:[%s7688_s30 + $0x560] sm:$0xff] }
 0x101   : > { %6434 = vst [vmem:[%s7716_s17 + $0x4c0] sm:$0xff] %v5410_v60  ;;  %6435 = vst [vmem:[%s7716_s17 + $0x4c8] sm:$0xff] %v5411_v47  ;;  %v2344_v61 = vmax.f32 %v1320_v42, 0.0  ;;  %v1322_v56 = vadd.f32 3.0, %v8376_v45  ;;  %v1323_v2 = vadd.f32 3.0, %v8379_v43  ;;  %v1324_v59 = vadd.f32 3.0, %v8382_v50 }
 0x102   : > { %6436 = vst [vmem:[%s7716_s17 + $0x4d0] sm:$0xff] %v5412_v53  ;;  %6437 = vst [vmem:[%s7716_s17 + $0x4d8] sm:$0xff] %v5413_v4  ;;  %v2345_v57 = vmax.f32 %v1321_v6, 0.0  ;;  %v1325_v13 = vadd.f32 3.0, %v301_v51  ;;  %v1326_v0 = vadd.f32 3.0, %v302_v63  ;;  %v1327_v9 = vadd.f32 3.0, %v303_v62 }
 0x103   : > { %6438 = vst [vmem:[%s7716_s17 + $0x4e0] sm:$0xff] %v5414_v55  ;;  %6439 = vst [vmem:[%s7716_s17 + $0x4e8] sm:$0xff] %v5415_v1  ;;  %v3368_v58 = vmin.f32 %v2344_v61, 6.0  ;;  %v2346_v3 = vmax.f32 %v1322_v56, 0.0  ;;  %v2347_v16 = vmax.f32 %v1323_v2, 0.0  ;;  %v2348_v11 = vmax.f32 %v1324_v59, 0.0 }
 0x104   : > { %v3369_v20 = vmin.f32 %v2345_v57, 6.0  ;;  %v2349_v5 = vmax.f32 %v1325_v13, 0.0  ;;  %v2350_v17 = vmax.f32 %v1326_v0, 0.0  ;;  %v2351_v22 = vmax.f32 %v1327_v9, 0.0  ;;  %v8442_v61 = vld [vmem:[%s7688_s30 + $0x570] sm:$0xff]  ;;  %v8445_v13 = vld [vmem:[%s7688_s30 + $0x578] sm:$0xff] }
 0x105   : > { %v4392_v7 = vmul.f32 0.16666667, %v3368_v58  ;;  %v3370_v18 = vmin.f32 %v2346_v3, 6.0  ;;  %v3371_v12 = vmin.f32 %v2347_v16, 6.0  ;;  %v3372_v8 = vmin.f32 %v2348_v11, 6.0  ;;  %v8448_v16 = vld [vmem:[%s7688_s30 + $0x580] sm:$0xff] }
 0x106   : > { %v4393_v15 = vmul.f32 0.16666667, %v3369_v20  ;;  %v3373_v25 = vmin.f32 %v2349_v5, 6.0  ;;  %v3374_v14 = vmin.f32 %v2350_v17, 6.0  ;;  %v3375_v19 = vmin.f32 %v2351_v22, 6.0  ;;  %v8451_v11 = vld [vmem:[%s7688_s30 + $0x588] sm:$0xff] }
 0x107   : > { %v5416_v21 = vmul.f32 %v4392_v7, %v8370_v26  ;;  %v4394_v30 = vmul.f32 0.16666667, %v3370_v18  ;;  %v4395_v38 = vmul.f32 0.16666667, %v3371_v12  ;;  %v4396_v23 = vmul.f32 0.16666667, %v3372_v8 }
 0x108   : > { %v5417_v31 = vmul.f32 %v4393_v15, %v8373_v46  ;;  %v4397_v33 = vmul.f32 0.16666667, %v3373_v25  ;;  %v4398_v24 = vmul.f32 0.16666667, %v3374_v14  ;;  %v4399_v28 = vmul.f32 0.16666667, %v3375_v19 }
 0x109   : > { %6440 = vst [vmem:[%s7716_s17 + $0x4f0] sm:$0xff] %v5416_v21  ;;  %v5418_v41 = vmul.f32 %v4394_v30, %v8376_v45  ;;  %v5419_v35 = vmul.f32 %v4395_v38, %v8379_v43  ;;  %v5420_v32 = vmul.f32 %v4396_v23, %v8382_v50  ;;  %v1328_v26 = vadd.f32 3.0, %v8406_v10  ;;  %v311_v46 = vld [vmem:[%s7688_s30 + $0x568] sm:$0xff]  ;;  %v8454_v20 = vld [vmem:[%s7688_s30 + $0x590] sm:$0xff]  ;;  %v317_v21 = vld [vmem:[%s7688_s30 + $0x598] sm:$0xff] }
 0x10a   : > { %6441 = vst [vmem:[%s7716_s17 + $0x4f8] sm:$0xff] %v5417_v31  ;;  %v5421_v54 = vmul.f32 %v4397_v33, %v301_v51  ;;  %v5422_v39 = vmul.f32 %v4398_v24, %v302_v63  ;;  %v5423_v49 = vmul.f32 %v4399_v28, %v303_v62  ;;  %v1329_v52 = vadd.f32 3.0, %v8409_v34  ;;  %v318_v30 = vld [vmem:[%s7688_s30 + $0x5a0] sm:$0xff] }
 0x10b   : > { %6442 = vst [vmem:[%s7716_s17 + $0x500] sm:$0xff] %v5418_v41  ;;  %6443 = vst [vmem:[%s7716_s17 + $0x508] sm:$0xff] %v5419_v35  ;;  %v2352_v45 = vmax.f32 %v1328_v26, 0.0  ;;  %v1330_v43 = vadd.f32 3.0, %v8412_v29  ;;  %v1331_v50 = vadd.f32 3.0, %v8415_v27  ;;  %v1332_v40 = vadd.f32 3.0, %v8418_v36 }
 0x10c   : > { %6444 = vst [vmem:[%s7716_s17 + $0x510] sm:$0xff] %v5420_v32  ;;  %6445 = vst [vmem:[%s7716_s17 + $0x518] sm:$0xff] %v5421_v54  ;;  %v2353_v44 = vmax.f32 %v1329_v52, 0.0  ;;  %v1333_v60 = vadd.f32 3.0, %v309_v37  ;;  %v1334_v47 = vadd.f32 3.0, %v310_v48  ;;  %v1335_v53 = vadd.f32 3.0, %v311_v46 }
 0x10d   : > { %6446 = vst [vmem:[%s7716_s17 + $0x520] sm:$0xff] %v5422_v39  ;;  %6447 = vst [vmem:[%s7716_s17 + $0x528] sm:$0xff] %v5423_v49  ;;  %v3376_v42 = vmin.f32 %v2352_v45, 6.0  ;;  %v2354_v51 = vmax.f32 %v1330_v43, 0.0  ;;  %v2355_v63 = vmax.f32 %v1331_v50, 0.0  ;;  %v2356_v62 = vmax.f32 %v1332_v40, 0.0 }
 0x10e   : > { %v3377_v4 = vmin.f32 %v2353_v44, 6.0  ;;  %v2357_v55 = vmax.f32 %v1333_v60, 0.0  ;;  %v2358_v1 = vmax.f32 %v1334_v47, 0.0  ;;  %v2359_v6 = vmax.f32 %v1335_v53, 0.0  ;;  %v8478_v45 = vld [vmem:[%s7688_s30 + $0x5b0] sm:$0xff]  ;;  %v8481_v60 = vld [vmem:[%s7688_s30 + $0x5b8] sm:$0xff] }
 0x10f   : > { %v4400_v56 = vmul.f32 0.16666667, %v3376_v42  ;;  %v3378_v2 = vmin.f32 %v2354_v51, 6.0  ;;  %v3379_v59 = vmin.f32 %v2355_v63, 6.0  ;;  %v3380_v57 = vmin.f32 %v2356_v62, 6.0  ;;  %v8484_v63 = vld [vmem:[%s7688_s30 + $0x5c0] sm:$0xff] }
 0x110   : > { %v4401_v0 = vmul.f32 0.16666667, %v3377_v4  ;;  %v3381_v9 = vmin.f32 %v2357_v55, 6.0  ;;  %v3382_v58 = vmin.f32 %v2358_v1, 6.0  ;;  %v3383_v3 = vmin.f32 %v2359_v6, 6.0  ;;  %v8487_v62 = vld [vmem:[%s7688_s30 + $0x5c8] sm:$0xff] }
 0x111   : > { %v5424_v5 = vmul.f32 %v4400_v56, %v8406_v10  ;;  %v4402_v17 = vmul.f32 0.16666667, %v3378_v2  ;;  %v4403_v22 = vmul.f32 0.16666667, %v3379_v59  ;;  %v4404_v7 = vmul.f32 0.16666667, %v3380_v57 }
 0x112   : > { %v5425_v18 = vmul.f32 %v4401_v0, %v8409_v34  ;;  %v4405_v12 = vmul.f32 0.16666667, %v3381_v9  ;;  %v4406_v8 = vmul.f32 0.16666667, %v3382_v58  ;;  %v4407_v15 = vmul.f32 0.16666667, %v3383_v3 }
 0x113   : > { %6448 = vst [vmem:[%s7716_s17 + $0x530] sm:$0xff] %v5424_v5  ;;  %v5426_v25 = vmul.f32 %v4402_v17, %v8412_v29  ;;  %v5427_v14 = vmul.f32 %v4403_v22, %v8415_v27  ;;  %v5428_v19 = vmul.f32 %v4404_v7, %v8418_v36  ;;  %v1336_v10 = vadd.f32 3.0, %v8442_v61  ;;  %v319_v34 = vld [vmem:[%s7688_s30 + $0x5a8] sm:$0xff]  ;;  %v8490_v4 = vld [vmem:[%s7688_s30 + $0x5d0] sm:$0xff]  ;;  %v325_v5 = vld [vmem:[%s7688_s30 + $0x5d8] sm:$0xff] }
 0x114   : > { %6449 = vst [vmem:[%s7716_s17 + $0x538] sm:$0xff] %v5425_v18  ;;  %v5429_v38 = vmul.f32 %v4405_v12, %v309_v37  ;;  %v5430_v23 = vmul.f32 %v4406_v8, %v310_v48  ;;  %v5431_v31 = vmul.f32 %v4407_v15, %v311_v46  ;;  %v1337_v33 = vadd.f32 3.0, %v8445_v13  ;;  %v326_v17 = vld [vmem:[%s7688_s30 + $0x5e0] sm:$0xff] }
 0x115   : > { %6450 = vst [vmem:[%s7716_s17 + $0x540] sm:$0xff] %v5426_v25  ;;  %6451 = vst [vmem:[%s7716_s17 + $0x548] sm:$0xff] %v5427_v14  ;;  %v2360_v29 = vmax.f32 %v1336_v10, 0.0  ;;  %v1338_v27 = vadd.f32 3.0, %v8448_v16  ;;  %v1339_v36 = vadd.f32 3.0, %v8451_v11  ;;  %v1340_v24 = vadd.f32 3.0, %v8454_v20 }
 0x116   : > { %6452 = vst [vmem:[%s7716_s17 + $0x550] sm:$0xff] %v5428_v19  ;;  %6453 = vst [vmem:[%s7716_s17 + $0x558] sm:$0xff] %v5429_v38  ;;  %v2361_v28 = vmax.f32 %v1337_v33, 0.0  ;;  %v1341_v41 = vadd.f32 3.0, %v317_v21  ;;  %v1342_v35 = vadd.f32 3.0, %v318_v30  ;;  %v1343_v32 = vadd.f32 3.0, %v319_v34 }
 0x117   : > { %6454 = vst [vmem:[%s7716_s17 + $0x560] sm:$0xff] %v5430_v23  ;;  %6455 = vst [vmem:[%s7716_s17 + $0x568] sm:$0xff] %v5431_v31  ;;  %v3384_v26 = vmin.f32 %v2360_v29, 6.0  ;;  %v2362_v37 = vmax.f32 %v1338_v27, 0.0  ;;  %v2363_v48 = vmax.f32 %v1339_v36, 0.0  ;;  %v2364_v46 = vmax.f32 %v1340_v24, 0.0 }
 0x118   : > { %v3385_v54 = vmin.f32 %v2361_v28, 6.0  ;;  %v2365_v39 = vmax.f32 %v1341_v41, 0.0  ;;  %v2366_v49 = vmax.f32 %v1342_v35, 0.0  ;;  %v2367_v52 = vmax.f32 %v1343_v32, 0.0  ;;  %v8514_v29 = vld [vmem:[%s7688_s30 + $0x5f0] sm:$0xff]  ;;  %v8517_v41 = vld [vmem:[%s7688_s30 + $0x5f8] sm:$0xff] }
 0x119   : > { %v4408_v43 = vmul.f32 0.16666667, %v3384_v26  ;;  %v3386_v50 = vmin.f32 %v2362_v37, 6.0  ;;  %v3387_v40 = vmin.f32 %v2363_v48, 6.0  ;;  %v3388_v44 = vmin.f32 %v2364_v46, 6.0  ;;  %v8520_v48 = vld [vmem:[%s7688_s30 + $0x600] sm:$0xff] }
 0x11a   : > { %v4409_v47 = vmul.f32 0.16666667, %v3385_v54  ;;  %v3389_v53 = vmin.f32 %v2365_v39, 6.0  ;;  %v3390_v42 = vmin.f32 %v2366_v49, 6.0  ;;  %v3391_v51 = vmin.f32 %v2367_v52, 6.0  ;;  %v8523_v46 = vld [vmem:[%s7688_s30 + $0x608] sm:$0xff] }
 0x11b   : > { %v5432_v55 = vmul.f32 %v4408_v43, %v8442_v61  ;;  %v4410_v1 = vmul.f32 0.16666667, %v3386_v50  ;;  %v4411_v6 = vmul.f32 0.16666667, %v3387_v40  ;;  %v4412_v56 = vmul.f32 0.16666667, %v3388_v44 }
 0x11c   : > { %v5433_v2 = vmul.f32 %v4409_v47, %v8445_v13  ;;  %v4413_v59 = vmul.f32 0.16666667, %v3389_v53  ;;  %v4414_v57 = vmul.f32 0.16666667, %v3390_v42  ;;  %v4415_v0 = vmul.f32 0.16666667, %v3391_v51 }
 0x11d   : > { %6456 = vst [vmem:[%s7716_s17 + $0x570] sm:$0xff] %v5432_v55  ;;  %v5434_v9 = vmul.f32 %v4410_v1, %v8448_v16  ;;  %v5435_v58 = vmul.f32 %v4411_v6, %v8451_v11  ;;  %v5436_v3 = vmul.f32 %v4412_v56, %v8454_v20  ;;  %v1344_v61 = vadd.f32 3.0, %v8478_v45  ;;  %v327_v13 = vld [vmem:[%s7688_s30 + $0x5e8] sm:$0xff]  ;;  %v8526_v54 = vld [vmem:[%s7688_s30 + $0x610] sm:$0xff]  ;;  %v333_v55 = vld [vmem:[%s7688_s30 + $0x618] sm:$0xff] }
 0x11e   : > { %6457 = vst [vmem:[%s7716_s17 + $0x578] sm:$0xff] %v5433_v2  ;;  %v5437_v22 = vmul.f32 %v4413_v59, %v317_v21  ;;  %v5438_v7 = vmul.f32 %v4414_v57, %v318_v30  ;;  %v5439_v18 = vmul.f32 %v4415_v0, %v319_v34  ;;  %v1345_v12 = vadd.f32 3.0, %v8481_v60  ;;  %v334_v1 = vld [vmem:[%s7688_s30 + $0x620] sm:$0xff] }
 0x11f   : > { %6458 = vst [vmem:[%s7716_s17 + $0x580] sm:$0xff] %v5434_v9  ;;  %6459 = vst [vmem:[%s7716_s17 + $0x588] sm:$0xff] %v5435_v58  ;;  %v2368_v16 = vmax.f32 %v1344_v61, 0.0  ;;  %v1346_v11 = vadd.f32 3.0, %v8484_v63  ;;  %v1347_v20 = vadd.f32 3.0, %v8487_v62  ;;  %v1348_v8 = vadd.f32 3.0, %v8490_v4 }
 0x120   : > { %6460 = vst [vmem:[%s7716_s17 + $0x590] sm:$0xff] %v5436_v3  ;;  %6461 = vst [vmem:[%s7716_s17 + $0x598] sm:$0xff] %v5437_v22  ;;  %v2369_v15 = vmax.f32 %v1345_v12, 0.0  ;;  %v1349_v25 = vadd.f32 3.0, %v325_v5  ;;  %v1350_v14 = vadd.f32 3.0, %v326_v17  ;;  %v1351_v19 = vadd.f32 3.0, %v327_v13 }
 0x121   : > { %6462 = vst [vmem:[%s7716_s17 + $0x5a0] sm:$0xff] %v5438_v7  ;;  %6463 = vst [vmem:[%s7716_s17 + $0x5a8] sm:$0xff] %v5439_v18  ;;  %v3392_v10 = vmin.f32 %v2368_v16, 6.0  ;;  %v2370_v21 = vmax.f32 %v1346_v11, 0.0  ;;  %v2371_v30 = vmax.f32 %v1347_v20, 0.0  ;;  %v2372_v34 = vmax.f32 %v1348_v8, 0.0 }
 0x122   : > { %v3393_v38 = vmin.f32 %v2369_v15, 6.0  ;;  %v2373_v23 = vmax.f32 %v1349_v25, 0.0  ;;  %v2374_v31 = vmax.f32 %v1350_v14, 0.0  ;;  %v2375_v33 = vmax.f32 %v1351_v19, 0.0  ;;  %v8550_v16 = vld [vmem:[%s7688_s30 + $0x630] sm:$0xff]  ;;  %v8553_v25 = vld [vmem:[%s7688_s30 + $0x638] sm:$0xff] }
 0x123   : > { %v4416_v27 = vmul.f32 0.16666667, %v3392_v10  ;;  %v3394_v36 = vmin.f32 %v2370_v21, 6.0  ;;  %v3395_v24 = vmin.f32 %v2371_v30, 6.0  ;;  %v3396_v28 = vmin.f32 %v2372_v34, 6.0  ;;  %v8556_v30 = vld [vmem:[%s7688_s30 + $0x640] sm:$0xff] }
 0x124   : > { %v4417_v35 = vmul.f32 0.16666667, %v3393_v38  ;;  %v3397_v32 = vmin.f32 %v2373_v23, 6.0  ;;  %v3398_v26 = vmin.f32 %v2374_v31, 6.0  ;;  %v3399_v37 = vmin.f32 %v2375_v33, 6.0  ;;  %v8559_v34 = vld [vmem:[%s7688_s30 + $0x648] sm:$0xff] }
 0x125   : > { %v5440_v39 = vmul.f32 %v4416_v27, %v8478_v45  ;;  %v4418_v49 = vmul.f32 0.16666667, %v3394_v36  ;;  %v4419_v52 = vmul.f32 0.16666667, %v3395_v24  ;;  %v4420_v43 = vmul.f32 0.16666667, %v3396_v28 }
 0x126   : > { %v5441_v50 = vmul.f32 %v4417_v35, %v8481_v60  ;;  %v4421_v40 = vmul.f32 0.16666667, %v3397_v32  ;;  %v4422_v44 = vmul.f32 0.16666667, %v3398_v26  ;;  %v4423_v47 = vmul.f32 0.16666667, %v3399_v37 }
 0x127   : > { %6464 = vst [vmem:[%s7716_s17 + $0x5b0] sm:$0xff] %v5440_v39  ;;  %v5442_v53 = vmul.f32 %v4418_v49, %v8484_v63  ;;  %v5443_v42 = vmul.f32 %v4419_v52, %v8487_v62  ;;  %v5444_v51 = vmul.f32 %v4420_v43, %v8490_v4  ;;  %v1352_v45 = vadd.f32 3.0, %v8514_v29  ;;  %v335_v60 = vld [vmem:[%s7688_s30 + $0x628] sm:$0xff]  ;;  %v8562_v38 = vld [vmem:[%s7688_s30 + $0x650] sm:$0xff]  ;;  %v341_v39 = vld [vmem:[%s7688_s30 + $0x658] sm:$0xff] }
 0x128   : > { %6465 = vst [vmem:[%s7716_s17 + $0x5b8] sm:$0xff] %v5441_v50  ;;  %v5445_v6 = vmul.f32 %v4421_v40, %v325_v5  ;;  %v5446_v56 = vmul.f32 %v4422_v44, %v326_v17  ;;  %v5447_v2 = vmul.f32 %v4423_v47, %v327_v13  ;;  %v1353_v59 = vadd.f32 3.0, %v8517_v41  ;;  %v342_v49 = vld [vmem:[%s7688_s30 + $0x660] sm:$0xff] }
 0x129   : > { %6466 = vst [vmem:[%s7716_s17 + $0x5c0] sm:$0xff] %v5442_v53  ;;  %6467 = vst [vmem:[%s7716_s17 + $0x5c8] sm:$0xff] %v5443_v42  ;;  %v2376_v63 = vmax.f32 %v1352_v45, 0.0  ;;  %v1354_v62 = vadd.f32 3.0, %v8520_v48  ;;  %v1355_v4 = vadd.f32 3.0, %v8523_v46  ;;  %v1356_v57 = vadd.f32 3.0, %v8526_v54 }
 0x12a   : > { %6468 = vst [vmem:[%s7716_s17 + $0x5d0] sm:$0xff] %v5444_v51  ;;  %6469 = vst [vmem:[%s7716_s17 + $0x5d8] sm:$0xff] %v5445_v6  ;;  %v2377_v0 = vmax.f32 %v1353_v59, 0.0  ;;  %v1357_v9 = vadd.f32 3.0, %v333_v55  ;;  %v1358_v58 = vadd.f32 3.0, %v334_v1  ;;  %v1359_v3 = vadd.f32 3.0, %v335_v60 }
 0x12b   : > { %6470 = vst [vmem:[%s7716_s17 + $0x5e0] sm:$0xff] %v5446_v56  ;;  %6471 = vst [vmem:[%s7716_s17 + $0x5e8] sm:$0xff] %v5447_v2  ;;  %v3400_v61 = vmin.f32 %v2376_v63, 6.0  ;;  %v2378_v5 = vmax.f32 %v1354_v62, 0.0  ;;  %v2379_v17 = vmax.f32 %v1355_v4, 0.0  ;;  %v2380_v13 = vmax.f32 %v1356_v57, 0.0 }
 0x12c   : > { %v3401_v22 = vmin.f32 %v2377_v0, 6.0  ;;  %v2381_v7 = vmax.f32 %v1357_v9, 0.0  ;;  %v2382_v18 = vmax.f32 %v1358_v58, 0.0  ;;  %v2383_v12 = vmax.f32 %v1359_v3, 0.0  ;;  %v8586_v63 = vld [vmem:[%s7688_s30 + $0x670] sm:$0xff]  ;;  %v8589_v9 = vld [vmem:[%s7688_s30 + $0x678] sm:$0xff] }
 0x12d   : > { %v4424_v11 = vmul.f32 0.16666667, %v3400_v61  ;;  %v3402_v20 = vmin.f32 %v2378_v5, 6.0  ;;  %v3403_v8 = vmin.f32 %v2379_v17, 6.0  ;;  %v3404_v15 = vmin.f32 %v2380_v13, 6.0  ;;  %v8592_v17 = vld [vmem:[%s7688_s30 + $0x680] sm:$0xff] }
 0x12e   : > { %v4425_v14 = vmul.f32 0.16666667, %v3401_v22  ;;  %v3405_v19 = vmin.f32 %v2381_v7, 6.0  ;;  %v3406_v10 = vmin.f32 %v2382_v18, 6.0  ;;  %v3407_v21 = vmin.f32 %v2383_v12, 6.0  ;;  %v8595_v13 = vld [vmem:[%s7688_s30 + $0x688] sm:$0xff] }
 0x12f   : > { %v5448_v23 = vmul.f32 %v4424_v11, %v8514_v29  ;;  %v4426_v31 = vmul.f32 0.16666667, %v3402_v20  ;;  %v4427_v33 = vmul.f32 0.16666667, %v3403_v8  ;;  %v4428_v27 = vmul.f32 0.16666667, %v3404_v15 }
 0x130   : > { %v5449_v36 = vmul.f32 %v4425_v14, %v8517_v41  ;;  %v4429_v24 = vmul.f32 0.16666667, %v3405_v19  ;;  %v4430_v28 = vmul.f32 0.16666667, %v3406_v10  ;;  %v4431_v35 = vmul.f32 0.16666667, %v3407_v21 }
 0x131   : > { %6472 = vst [vmem:[%s7716_s17 + $0x5f0] sm:$0xff] %v5448_v23  ;;  %v5450_v32 = vmul.f32 %v4426_v31, %v8520_v48  ;;  %v5451_v26 = vmul.f32 %v4427_v33, %v8523_v46  ;;  %v5452_v37 = vmul.f32 %v4428_v27, %v8526_v54  ;;  %v1360_v29 = vadd.f32 3.0, %v8550_v16  ;;  %v343_v41 = vld [vmem:[%s7688_s30 + $0x668] sm:$0xff]  ;;  %v8598_v22 = vld [vmem:[%s7688_s30 + $0x690] sm:$0xff]  ;;  %v349_v23 = vld [vmem:[%s7688_s30 + $0x698] sm:$0xff] }
 0x132   : > { %6473 = vst [vmem:[%s7716_s17 + $0x5f8] sm:$0xff] %v5449_v36  ;;  %v5453_v52 = vmul.f32 %v4429_v24, %v333_v55  ;;  %v5454_v43 = vmul.f32 %v4430_v28, %v334_v1  ;;  %v5455_v50 = vmul.f32 %v4431_v35, %v335_v60  ;;  %v1361_v40 = vadd.f32 3.0, %v8553_v25  ;;  %v350_v31 = vld [vmem:[%s7688_s30 + $0x6a0] sm:$0xff] }
 0x133   : > { %6474 = vst [vmem:[%s7716_s17 + $0x600] sm:$0xff] %v5450_v32  ;;  %6475 = vst [vmem:[%s7716_s17 + $0x608] sm:$0xff] %v5451_v26  ;;  %v2384_v48 = vmax.f32 %v1360_v29, 0.0  ;;  %v1362_v46 = vadd.f32 3.0, %v8556_v30  ;;  %v1363_v54 = vadd.f32 3.0, %v8559_v34  ;;  %v1364_v44 = vadd.f32 3.0, %v8562_v38 }
 0x134   : > { %6476 = vst [vmem:[%s7716_s17 + $0x610] sm:$0xff] %v5452_v37  ;;  %6477 = vst [vmem:[%s7716_s17 + $0x618] sm:$0xff] %v5453_v52  ;;  %v2385_v47 = vmax.f32 %v1361_v40, 0.0  ;;  %v1365_v53 = vadd.f32 3.0, %v341_v39  ;;  %v1366_v42 = vadd.f32 3.0, %v342_v49  ;;  %v1367_v51 = vadd.f32 3.0, %v343_v41 }
 0x135   : > { %6478 = vst [vmem:[%s7716_s17 + $0x620] sm:$0xff] %v5454_v43  ;;  %6479 = vst [vmem:[%s7716_s17 + $0x628] sm:$0xff] %v5455_v50  ;;  %v3408_v45 = vmin.f32 %v2384_v48, 6.0  ;;  %v2386_v55 = vmax.f32 %v1362_v46, 0.0  ;;  %v2387_v1 = vmax.f32 %v1363_v54, 0.0  ;;  %v2388_v60 = vmax.f32 %v1364_v44, 0.0 }
 0x136   : > { %v3409_v6 = vmin.f32 %v2385_v47, 6.0  ;;  %v2389_v56 = vmax.f32 %v1365_v53, 0.0  ;;  %v2390_v2 = vmax.f32 %v1366_v42, 0.0  ;;  %v2391_v59 = vmax.f32 %v1367_v51, 0.0  ;;  %v8622_v48 = vld [vmem:[%s7688_s30 + $0x6b0] sm:$0xff]  ;;  %v8625_v53 = vld [vmem:[%s7688_s30 + $0x6b8] sm:$0xff] }
 0x137   : > { %v4432_v62 = vmul.f32 0.16666667, %v3408_v45  ;;  %v3410_v4 = vmin.f32 %v2386_v55, 6.0  ;;  %v3411_v57 = vmin.f32 %v2387_v1, 6.0  ;;  %v3412_v0 = vmin.f32 %v2388_v60, 6.0  ;;  %v8628_v1 = vld [vmem:[%s7688_s30 + $0x6c0] sm:$0xff] }
 0x138   : > { %v4433_v58 = vmul.f32 0.16666667, %v3409_v6  ;;  %v3413_v3 = vmin.f32 %v2389_v56, 6.0  ;;  %v3414_v61 = vmin.f32 %v2390_v2, 6.0  ;;  %v3415_v5 = vmin.f32 %v2391_v59, 6.0  ;;  %v8631_v60 = vld [vmem:[%s7688_s30 + $0x6c8] sm:$0xff] }
 0x139   : > { %v5456_v7 = vmul.f32 %v4432_v62, %v8550_v16  ;;  %v4434_v18 = vmul.f32 0.16666667, %v3410_v4  ;;  %v4435_v12 = vmul.f32 0.16666667, %v3411_v57  ;;  %v4436_v11 = vmul.f32 0.16666667, %v3412_v0 }
 0x13a   : > { %v5457_v20 = vmul.f32 %v4433_v58, %v8553_v25  ;;  %v4437_v8 = vmul.f32 0.16666667, %v3413_v3  ;;  %v4438_v15 = vmul.f32 0.16666667, %v3414_v61  ;;  %v4439_v14 = vmul.f32 0.16666667, %v3415_v5 }
 0x13b   : > { %6480 = vst [vmem:[%s7716_s17 + $0x630] sm:$0xff] %v5456_v7  ;;  %v5458_v19 = vmul.f32 %v4434_v18, %v8556_v30  ;;  %v5459_v10 = vmul.f32 %v4435_v12, %v8559_v34  ;;  %v5460_v21 = vmul.f32 %v4436_v11, %v8562_v38  ;;  %v1368_v16 = vadd.f32 3.0, %v8586_v63  ;;  %v351_v25 = vld [vmem:[%s7688_s30 + $0x6a8] sm:$0xff]  ;;  %v8634_v6 = vld [vmem:[%s7688_s30 + $0x6d0] sm:$0xff]  ;;  %v357_v7 = vld [vmem:[%s7688_s30 + $0x6d8] sm:$0xff] }
 0x13c   : > { %6481 = vst [vmem:[%s7716_s17 + $0x638] sm:$0xff] %v5457_v20  ;;  %v5461_v33 = vmul.f32 %v4437_v8, %v341_v39  ;;  %v5462_v27 = vmul.f32 %v4438_v15, %v342_v49  ;;  %v5463_v36 = vmul.f32 %v4439_v14, %v343_v41  ;;  %v1369_v24 = vadd.f32 3.0, %v8589_v9  ;;  %v358_v18 = vld [vmem:[%s7688_s30 + $0x6e0] sm:$0xff] }
 0x13d   : > { %6482 = vst [vmem:[%s7716_s17 + $0x640] sm:$0xff] %v5458_v19  ;;  %6483 = vst [vmem:[%s7716_s17 + $0x648] sm:$0xff] %v5459_v10  ;;  %v2392_v30 = vmax.f32 %v1368_v16, 0.0  ;;  %v1370_v34 = vadd.f32 3.0, %v8592_v17  ;;  %v1371_v38 = vadd.f32 3.0, %v8595_v13  ;;  %v1372_v28 = vadd.f32 3.0, %v8598_v22 }
 0x13e   : > { %6484 = vst [vmem:[%s7716_s17 + $0x650] sm:$0xff] %v5460_v21  ;;  %6485 = vst [vmem:[%s7716_s17 + $0x658] sm:$0xff] %v5461_v33  ;;  %v2393_v35 = vmax.f32 %v1369_v24, 0.0  ;;  %v1373_v32 = vadd.f32 3.0, %v349_v23  ;;  %v1374_v26 = vadd.f32 3.0, %v350_v31  ;;  %v1375_v37 = vadd.f32 3.0, %v351_v25 }
 0x13f   : > { %6486 = vst [vmem:[%s7716_s17 + $0x660] sm:$0xff] %v5462_v27  ;;  %6487 = vst [vmem:[%s7716_s17 + $0x668] sm:$0xff] %v5463_v36  ;;  %v3416_v29 = vmin.f32 %v2392_v30, 6.0  ;;  %v2394_v39 = vmax.f32 %v1370_v34, 0.0  ;;  %v2395_v49 = vmax.f32 %v1371_v38, 0.0  ;;  %v2396_v41 = vmax.f32 %v1372_v28, 0.0 }
 0x140   : > { %v3417_v52 = vmin.f32 %v2393_v35, 6.0  ;;  %v2397_v43 = vmax.f32 %v1373_v32, 0.0  ;;  %v2398_v50 = vmax.f32 %v1374_v26, 0.0  ;;  %v2399_v40 = vmax.f32 %v1375_v37, 0.0  ;;  %v8658_v30 = vld [vmem:[%s7688_s30 + $0x6f0] sm:$0xff]  ;;  %v8661_v32 = vld [vmem:[%s7688_s30 + $0x6f8] sm:$0xff] }
 0x141   : > { %v4440_v46 = vmul.f32 0.16666667, %v3416_v29  ;;  %v3418_v54 = vmin.f32 %v2394_v39, 6.0  ;;  %v3419_v44 = vmin.f32 %v2395_v49, 6.0  ;;  %v3420_v47 = vmin.f32 %v2396_v41, 6.0  ;;  %v8664_v49 = vld [vmem:[%s7688_s30 + $0x700] sm:$0xff] }
 0x142   : > { %v4441_v42 = vmul.f32 0.16666667, %v3417_v52  ;;  %v3421_v51 = vmin.f32 %v2397_v43, 6.0  ;;  %v3422_v45 = vmin.f32 %v2398_v50, 6.0  ;;  %v3423_v55 = vmin.f32 %v2399_v40, 6.0  ;;  %v8667_v41 = vld [vmem:[%s7688_s30 + $0x708] sm:$0xff] }
 0x143   : > { %v5464_v56 = vmul.f32 %v4440_v46, %v8586_v63  ;;  %v4442_v2 = vmul.f32 0.16666667, %v3418_v54  ;;  %v4443_v59 = vmul.f32 0.16666667, %v3419_v44  ;;  %v4444_v62 = vmul.f32 0.16666667, %v3420_v47 }
 0x144   : > { %v5465_v4 = vmul.f32 %v4441_v42, %v8589_v9  ;;  %v4445_v57 = vmul.f32 0.16666667, %v3421_v51  ;;  %v4446_v0 = vmul.f32 0.16666667, %v3422_v45  ;;  %v4447_v58 = vmul.f32 0.16666667, %v3423_v55 }
 0x145   : > { %6488 = vst [vmem:[%s7716_s17 + $0x670] sm:$0xff] %v5464_v56  ;;  %v5466_v3 = vmul.f32 %v4442_v2, %v8592_v17  ;;  %v5467_v61 = vmul.f32 %v4443_v59, %v8595_v13  ;;  %v5468_v5 = vmul.f32 %v4444_v62, %v8598_v22  ;;  %v1376_v63 = vadd.f32 3.0, %v8622_v48  ;;  %v359_v9 = vld [vmem:[%s7688_s30 + $0x6e8] sm:$0xff]  ;;  %v8670_v52 = vld [vmem:[%s7688_s30 + $0x710] sm:$0xff]  ;;  %v365_v56 = vld [vmem:[%s7688_s30 + $0x718] sm:$0xff] }
 0x146   : > { %6489 = vst [vmem:[%s7716_s17 + $0x678] sm:$0xff] %v5465_v4  ;;  %v5469_v12 = vmul.f32 %v4445_v57, %v349_v23  ;;  %v5470_v11 = vmul.f32 %v4446_v0, %v350_v31  ;;  %v5471_v20 = vmul.f32 %v4447_v58, %v351_v25  ;;  %v1377_v8 = vadd.f32 3.0, %v8625_v53  ;;  %v366_v2 = vld [vmem:[%s7688_s30 + $0x720] sm:$0xff] }
 0x147   : > { %6490 = vst [vmem:[%s7716_s17 + $0x680] sm:$0xff] %v5466_v3  ;;  %6491 = vst [vmem:[%s7716_s17 + $0x688] sm:$0xff] %v5467_v61  ;;  %v2400_v17 = vmax.f32 %v1376_v63, 0.0  ;;  %v1378_v13 = vadd.f32 3.0, %v8628_v1  ;;  %v1379_v22 = vadd.f32 3.0, %v8631_v60  ;;  %v1380_v15 = vadd.f32 3.0, %v8634_v6 }
 0x148   : > { %6492 = vst [vmem:[%s7716_s17 + $0x690] sm:$0xff] %v5468_v5  ;;  %6493 = vst [vmem:[%s7716_s17 + $0x698] sm:$0xff] %v5469_v12  ;;  %v2401_v14 = vmax.f32 %v1377_v8, 0.0  ;;  %v1381_v19 = vadd.f32 3.0, %v357_v7  ;;  %v1382_v10 = vadd.f32 3.0, %v358_v18  ;;  %v1383_v21 = vadd.f32 3.0, %v359_v9 }
 0x149   : > { %6494 = vst [vmem:[%s7716_s17 + $0x6a0] sm:$0xff] %v5470_v11  ;;  %6495 = vst [vmem:[%s7716_s17 + $0x6a8] sm:$0xff] %v5471_v20  ;;  %v3424_v16 = vmin.f32 %v2400_v17, 6.0  ;;  %v2402_v23 = vmax.f32 %v1378_v13, 0.0  ;;  %v2403_v31 = vmax.f32 %v1379_v22, 0.0  ;;  %v2404_v25 = vmax.f32 %v1380_v15, 0.0 }
 0x14a   : > { %v3425_v33 = vmin.f32 %v2401_v14, 6.0  ;;  %v2405_v27 = vmax.f32 %v1381_v19, 0.0  ;;  %v2406_v36 = vmax.f32 %v1382_v10, 0.0  ;;  %v2407_v24 = vmax.f32 %v1383_v21, 0.0  ;;  %v8694_v17 = vld [vmem:[%s7688_s30 + $0x730] sm:$0xff]  ;;  %v8697_v19 = vld [vmem:[%s7688_s30 + $0x738] sm:$0xff] }
 0x14b   : > { %v4448_v34 = vmul.f32 0.16666667, %v3424_v16  ;;  %v3426_v38 = vmin.f32 %v2402_v23, 6.0  ;;  %v3427_v28 = vmin.f32 %v2403_v31, 6.0  ;;  %v3428_v35 = vmin.f32 %v2404_v25, 6.0  ;;  %v8700_v31 = vld [vmem:[%s7688_s30 + $0x740] sm:$0xff] }
 0x14c   : > { %v4449_v26 = vmul.f32 0.16666667, %v3425_v33  ;;  %v3429_v37 = vmin.f32 %v2405_v27, 6.0  ;;  %v3430_v29 = vmin.f32 %v2406_v36, 6.0  ;;  %v3431_v39 = vmin.f32 %v2407_v24, 6.0  ;;  %v8703_v25 = vld [vmem:[%s7688_s30 + $0x748] sm:$0xff] }
 0x14d   : > { %v5472_v43 = vmul.f32 %v4448_v34, %v8622_v48  ;;  %v4450_v50 = vmul.f32 0.16666667, %v3426_v38  ;;  %v4451_v40 = vmul.f32 0.16666667, %v3427_v28  ;;  %v4452_v46 = vmul.f32 0.16666667, %v3428_v35 }
 0x14e   : > { %v5473_v54 = vmul.f32 %v4449_v26, %v8625_v53  ;;  %v4453_v44 = vmul.f32 0.16666667, %v3429_v37  ;;  %v4454_v47 = vmul.f32 0.16666667, %v3430_v29  ;;  %v4455_v42 = vmul.f32 0.16666667, %v3431_v39 }
 0x14f   : > { %6496 = vst [vmem:[%s7716_s17 + $0x6b0] sm:$0xff] %v5472_v43  ;;  %v5474_v51 = vmul.f32 %v4450_v50, %v8628_v1  ;;  %v5475_v45 = vmul.f32 %v4451_v40, %v8631_v60  ;;  %v5476_v55 = vmul.f32 %v4452_v46, %v8634_v6  ;;  %v1384_v48 = vadd.f32 3.0, %v8658_v30  ;;  %v367_v53 = vld [vmem:[%s7688_s30 + $0x728] sm:$0xff]  ;;  %v8706_v33 = vld [vmem:[%s7688_s30 + $0x750] sm:$0xff]  ;;  %v373_v43 = vld [vmem:[%s7688_s30 + $0x758] sm:$0xff] }
 0x150   : > { %6497 = vst [vmem:[%s7716_s17 + $0x6b8] sm:$0xff] %v5473_v54  ;;  %v5477_v59 = vmul.f32 %v4453_v44, %v357_v7  ;;  %v5478_v62 = vmul.f32 %v4454_v47, %v358_v18  ;;  %v5479_v4 = vmul.f32 %v4455_v42, %v359_v9  ;;  %v1385_v57 = vadd.f32 3.0, %v8661_v32  ;;  %v374_v50 = vld [vmem:[%s7688_s30 + $0x760] sm:$0xff] }
 0x151   : > { %6498 = vst [vmem:[%s7716_s17 + $0x6c0] sm:$0xff] %v5474_v51  ;;  %6499 = vst [vmem:[%s7716_s17 + $0x6c8] sm:$0xff] %v5475_v45  ;;  %v2408_v1 = vmax.f32 %v1384_v48, 0.0  ;;  %v1386_v60 = vadd.f32 3.0, %v8664_v49  ;;  %v1387_v6 = vadd.f32 3.0, %v8667_v41  ;;  %v1388_v0 = vadd.f32 3.0, %v8670_v52 }
 0x152   : > { %6500 = vst [vmem:[%s7716_s17 + $0x6d0] sm:$0xff] %v5476_v55  ;;  %6501 = vst [vmem:[%s7716_s17 + $0x6d8] sm:$0xff] %v5477_v59  ;;  %v2409_v58 = vmax.f32 %v1385_v57, 0.0  ;;  %v1389_v3 = vadd.f32 3.0, %v365_v56  ;;  %v1390_v61 = vadd.f32 3.0, %v366_v2  ;;  %v1391_v5 = vadd.f32 3.0, %v367_v53 }
 0x153   : > { %6502 = vst [vmem:[%s7716_s17 + $0x6e0] sm:$0xff] %v5478_v62  ;;  %6503 = vst [vmem:[%s7716_s17 + $0x6e8] sm:$0xff] %v5479_v4  ;;  %v3432_v63 = vmin.f32 %v2408_v1, 6.0  ;;  %v2410_v7 = vmax.f32 %v1386_v60, 0.0  ;;  %v2411_v18 = vmax.f32 %v1387_v6, 0.0  ;;  %v2412_v9 = vmax.f32 %v1388_v0, 0.0 }
 0x154   : > { %v3433_v12 = vmin.f32 %v2409_v58, 6.0  ;;  %v2413_v11 = vmax.f32 %v1389_v3, 0.0  ;;  %v2414_v20 = vmax.f32 %v1390_v61, 0.0  ;;  %v2415_v8 = vmax.f32 %v1391_v5, 0.0  ;;  %v8730_v1 = vld [vmem:[%s7688_s30 + $0x770] sm:$0xff]  ;;  %v8733_v3 = vld [vmem:[%s7688_s30 + $0x778] sm:$0xff] }
 0x155   : > { %v4456_v13 = vmul.f32 0.16666667, %v3432_v63  ;;  %v3434_v22 = vmin.f32 %v2410_v7, 6.0  ;;  %v3435_v15 = vmin.f32 %v2411_v18, 6.0  ;;  %v3436_v14 = vmin.f32 %v2412_v9, 6.0  ;;  %v8736_v18 = vld [vmem:[%s7688_s30 + $0x780] sm:$0xff] }
 0x156   : > { %v4457_v10 = vmul.f32 0.16666667, %v3433_v12  ;;  %v3437_v21 = vmin.f32 %v2413_v11, 6.0  ;;  %v3438_v16 = vmin.f32 %v2414_v20, 6.0  ;;  %v3439_v23 = vmin.f32 %v2415_v8, 6.0  ;;  %v8739_v9 = vld [vmem:[%s7688_s30 + $0x788] sm:$0xff] }
 0x157   : > { %v5480_v27 = vmul.f32 %v4456_v13, %v8658_v30  ;;  %v4458_v36 = vmul.f32 0.16666667, %v3434_v22  ;;  %v4459_v24 = vmul.f32 0.16666667, %v3435_v15  ;;  %v4460_v34 = vmul.f32 0.16666667, %v3436_v14 }
 0x158   : > { %v5481_v38 = vmul.f32 %v4457_v10, %v8661_v32  ;;  %v4461_v28 = vmul.f32 0.16666667, %v3437_v21  ;;  %v4462_v35 = vmul.f32 0.16666667, %v3438_v16  ;;  %v4463_v26 = vmul.f32 0.16666667, %v3439_v23 }
 0x159   : > { %6504 = vst [vmem:[%s7716_s17 + $0x6f0] sm:$0xff] %v5480_v27  ;;  %v5482_v37 = vmul.f32 %v4458_v36, %v8664_v49  ;;  %v5483_v29 = vmul.f32 %v4459_v24, %v8667_v41  ;;  %v5484_v39 = vmul.f32 %v4460_v34, %v8670_v52  ;;  %v1392_v30 = vadd.f32 3.0, %v8694_v17  ;;  %v375_v32 = vld [vmem:[%s7688_s30 + $0x768] sm:$0xff]  ;;  %v8742_v12 = vld [vmem:[%s7688_s30 + $0x790] sm:$0xff]  ;;  %v381_v27 = vld [vmem:[%s7688_s30 + $0x798] sm:$0xff] }
 0x15a   : > { %6505 = vst [vmem:[%s7716_s17 + $0x6f8] sm:$0xff] %v5481_v38  ;;  %v5485_v40 = vmul.f32 %v4461_v28, %v365_v56  ;;  %v5486_v46 = vmul.f32 %v4462_v35, %v366_v2  ;;  %v5487_v54 = vmul.f32 %v4463_v26, %v367_v53  ;;  %v1393_v44 = vadd.f32 3.0, %v8697_v19  ;;  %v382_v36 = vld [vmem:[%s7688_s30 + $0x7a0] sm:$0xff] }
 0x15b   : > { %6506 = vst [vmem:[%s7716_s17 + $0x700] sm:$0xff] %v5482_v37  ;;  %6507 = vst [vmem:[%s7716_s17 + $0x708] sm:$0xff] %v5483_v29  ;;  %v2416_v49 = vmax.f32 %v1392_v30, 0.0  ;;  %v1394_v41 = vadd.f32 3.0, %v8700_v31  ;;  %v1395_v52 = vadd.f32 3.0, %v8703_v25  ;;  %v1396_v47 = vadd.f32 3.0, %v8706_v33 }
 0x15c   : > { %6508 = vst [vmem:[%s7716_s17 + $0x710] sm:$0xff] %v5484_v39  ;;  %6509 = vst [vmem:[%s7716_s17 + $0x718] sm:$0xff] %v5485_v40  ;;  %v2417_v42 = vmax.f32 %v1393_v44, 0.0  ;;  %v1397_v51 = vadd.f32 3.0, %v373_v43  ;;  %v1398_v45 = vadd.f32 3.0, %v374_v50  ;;  %v1399_v55 = vadd.f32 3.0, %v375_v32 }
 0x15d   : > { %6510 = vst [vmem:[%s7716_s17 + $0x720] sm:$0xff] %v5486_v46  ;;  %6511 = vst [vmem:[%s7716_s17 + $0x728] sm:$0xff] %v5487_v54  ;;  %v3440_v48 = vmin.f32 %v2416_v49, 6.0  ;;  %v2418_v56 = vmax.f32 %v1394_v41, 0.0  ;;  %v2419_v2 = vmax.f32 %v1395_v52, 0.0  ;;  %v2420_v53 = vmax.f32 %v1396_v47, 0.0 }
 0x15e   : > { %v3441_v59 = vmin.f32 %v2417_v42, 6.0  ;;  %v2421_v62 = vmax.f32 %v1397_v51, 0.0  ;;  %v2422_v4 = vmax.f32 %v1398_v45, 0.0  ;;  %v2423_v57 = vmax.f32 %v1399_v55, 0.0  ;;  %v8766_v49 = vld [vmem:[%s7688_s30 + $0x7b0] sm:$0xff]  ;;  %v8769_v51 = vld [vmem:[%s7688_s30 + $0x7b8] sm:$0xff] }
 0x15f   : > { %v4464_v60 = vmul.f32 0.16666667, %v3440_v48  ;;  %v3442_v6 = vmin.f32 %v2418_v56, 6.0  ;;  %v3443_v0 = vmin.f32 %v2419_v2, 6.0  ;;  %v3444_v58 = vmin.f32 %v2420_v53, 6.0  ;;  %v8772_v2 = vld [vmem:[%s7688_s30 + $0x7c0] sm:$0xff] }
 0x160   : > { %v4465_v61 = vmul.f32 0.16666667, %v3441_v59  ;;  %v3445_v5 = vmin.f32 %v2421_v62, 6.0  ;;  %v3446_v63 = vmin.f32 %v2422_v4, 6.0  ;;  %v3447_v7 = vmin.f32 %v2423_v57, 6.0  ;;  %v8775_v53 = vld [vmem:[%s7688_s30 + $0x7c8] sm:$0xff] }
 0x161   : > { %v5488_v11 = vmul.f32 %v4464_v60, %v8694_v17  ;;  %v4466_v20 = vmul.f32 0.16666667, %v3442_v6  ;;  %v4467_v8 = vmul.f32 0.16666667, %v3443_v0  ;;  %v4468_v13 = vmul.f32 0.16666667, %v3444_v58 }
 0x162   : > { %v5489_v22 = vmul.f32 %v4465_v61, %v8697_v19  ;;  %v4469_v15 = vmul.f32 0.16666667, %v3445_v5  ;;  %v4470_v14 = vmul.f32 0.16666667, %v3446_v63  ;;  %v4471_v10 = vmul.f32 0.16666667, %v3447_v7 }
 0x163   : > { %6512 = vst [vmem:[%s7716_s17 + $0x730] sm:$0xff] %v5488_v11  ;;  %v5490_v21 = vmul.f32 %v4466_v20, %v8700_v31  ;;  %v5491_v16 = vmul.f32 %v4467_v8, %v8703_v25  ;;  %v5492_v23 = vmul.f32 %v4468_v13, %v8706_v33  ;;  %v1400_v17 = vadd.f32 3.0, %v8730_v1  ;;  %v383_v19 = vld [vmem:[%s7688_s30 + $0x7a8] sm:$0xff]  ;;  %v8778_v59 = vld [vmem:[%s7688_s30 + $0x7d0] sm:$0xff]  ;;  %v389_v11 = vld [vmem:[%s7688_s30 + $0x7d8] sm:$0xff] }
 0x164   : > { %6513 = vst [vmem:[%s7716_s17 + $0x738] sm:$0xff] %v5489_v22  ;;  %v5493_v24 = vmul.f32 %v4469_v15, %v373_v43  ;;  %v5494_v34 = vmul.f32 %v4470_v14, %v374_v50  ;;  %v5495_v38 = vmul.f32 %v4471_v10, %v375_v32  ;;  %v1401_v28 = vadd.f32 3.0, %v8733_v3  ;;  %v390_v20 = vld [vmem:[%s7688_s30 + $0x7e0] sm:$0xff] }
 0x165   : > { %6514 = vst [vmem:[%s7716_s17 + $0x740] sm:$0xff] %v5490_v21  ;;  %6515 = vst [vmem:[%s7716_s17 + $0x748] sm:$0xff] %v5491_v16  ;;  %v2424_v31 = vmax.f32 %v1400_v17, 0.0  ;;  %v1402_v25 = vadd.f32 3.0, %v8736_v18  ;;  %v1403_v33 = vadd.f32 3.0, %v8739_v9  ;;  %v1404_v35 = vadd.f32 3.0, %v8742_v12 }
 0x166   : > { %6516 = vst [vmem:[%s7716_s17 + $0x750] sm:$0xff] %v5492_v23  ;;  %6517 = vst [vmem:[%s7716_s17 + $0x758] sm:$0xff] %v5493_v24  ;;  %v2425_v26 = vmax.f32 %v1401_v28, 0.0  ;;  %v1405_v37 = vadd.f32 3.0, %v381_v27  ;;  %v1406_v29 = vadd.f32 3.0, %v382_v36  ;;  %v1407_v39 = vadd.f32 3.0, %v383_v19 }
 0x167   : > { %6518 = vst [vmem:[%s7716_s17 + $0x760] sm:$0xff] %v5494_v34  ;;  %6519 = vst [vmem:[%s7716_s17 + $0x768] sm:$0xff] %v5495_v38  ;;  %v3448_v30 = vmin.f32 %v2424_v31, 6.0  ;;  %v2426_v43 = vmax.f32 %v1402_v25, 0.0  ;;  %v2427_v50 = vmax.f32 %v1403_v33, 0.0  ;;  %v2428_v32 = vmax.f32 %v1404_v35, 0.0 }
 0x168   : > { %v3449_v40 = vmin.f32 %v2425_v26, 6.0  ;;  %v2429_v46 = vmax.f32 %v1405_v37, 0.0  ;;  %v2430_v54 = vmax.f32 %v1406_v29, 0.0  ;;  %v2431_v44 = vmax.f32 %v1407_v39, 0.0  ;;  %v8802_v31 = vld [vmem:[%s7688_s30 + $0x7f0] sm:$0xff]  ;;  %v8805_v37 = vld [vmem:[%s7688_s30 + $0x7f8] sm:$0xff] }
 0x169   : > { %v4472_v41 = vmul.f32 0.16666667, %v3448_v30  ;;  %v3450_v52 = vmin.f32 %v2426_v43, 6.0  ;;  %v3451_v47 = vmin.f32 %v2427_v50, 6.0  ;;  %v3452_v42 = vmin.f32 %v2428_v32, 6.0  ;;  %v8808_v50 = vld [vmem:[%s7688_s30 + $0x800] sm:$0xff] }
 0x16a   : > { %v4473_v45 = vmul.f32 0.16666667, %v3449_v40  ;;  %v3453_v55 = vmin.f32 %v2429_v46, 6.0  ;;  %v3454_v48 = vmin.f32 %v2430_v54, 6.0  ;;  %v3455_v56 = vmin.f32 %v2431_v44, 6.0  ;;  %v8811_v32 = vld [vmem:[%s7688_s30 + $0x808] sm:$0xff] }
 0x16b   : > { %v5496_v62 = vmul.f32 %v4472_v41, %v8730_v1  ;;  %v4474_v4 = vmul.f32 0.16666667, %v3450_v52  ;;  %v4475_v57 = vmul.f32 0.16666667, %v3451_v47  ;;  %v4476_v60 = vmul.f32 0.16666667, %v3452_v42 }
 0x16c   : > { %v5497_v6 = vmul.f32 %v4473_v45, %v8733_v3  ;;  %v4477_v0 = vmul.f32 0.16666667, %v3453_v55  ;;  %v4478_v58 = vmul.f32 0.16666667, %v3454_v48  ;;  %v4479_v61 = vmul.f32 0.16666667, %v3455_v56 }
 0x16d   : > { %6520 = vst [vmem:[%s7716_s17 + $0x770] sm:$0xff] %v5496_v62  ;;  %v5498_v5 = vmul.f32 %v4474_v4, %v8736_v18  ;;  %v5499_v63 = vmul.f32 %v4475_v57, %v8739_v9  ;;  %v5500_v7 = vmul.f32 %v4476_v60, %v8742_v12  ;;  %v1408_v1 = vadd.f32 3.0, %v8766_v49  ;;  %v391_v3 = vld [vmem:[%s7688_s30 + $0x7e8] sm:$0xff]  ;;  %v8814_v40 = vld [vmem:[%s7688_s30 + $0x810] sm:$0xff]  ;;  %v397_v62 = vld [vmem:[%s7688_s30 + $0x818] sm:$0xff] }
 0x16e   : > { %6521 = vst [vmem:[%s7716_s17 + $0x778] sm:$0xff] %v5497_v6  ;;  %v5501_v8 = vmul.f32 %v4477_v0, %v381_v27  ;;  %v5502_v13 = vmul.f32 %v4478_v58, %v382_v36  ;;  %v5503_v22 = vmul.f32 %v4479_v61, %v383_v19  ;;  %v1409_v15 = vadd.f32 3.0, %v8769_v51  ;;  %v398_v4 = vld [vmem:[%s7688_s30 + $0x820] sm:$0xff] }
 0x16f   : > { %6522 = vst [vmem:[%s7716_s17 + $0x780] sm:$0xff] %v5498_v5  ;;  %6523 = vst [vmem:[%s7716_s17 + $0x788] sm:$0xff] %v5499_v63  ;;  %v2432_v18 = vmax.f32 %v1408_v1, 0.0  ;;  %v1410_v9 = vadd.f32 3.0, %v8772_v2  ;;  %v1411_v12 = vadd.f32 3.0, %v8775_v53  ;;  %v1412_v14 = vadd.f32 3.0, %v8778_v59 }
 0x170   : > { %6524 = vst [vmem:[%s7716_s17 + $0x790] sm:$0xff] %v5500_v7  ;;  %6525 = vst [vmem:[%s7716_s17 + $0x798] sm:$0xff] %v5501_v8  ;;  %v2433_v10 = vmax.f32 %v1409_v15, 0.0  ;;  %v1413_v21 = vadd.f32 3.0, %v389_v11  ;;  %v1414_v16 = vadd.f32 3.0, %v390_v20  ;;  %v1415_v23 = vadd.f32 3.0, %v391_v3 }
 0x171   : > { %6526 = vst [vmem:[%s7716_s17 + $0x7a0] sm:$0xff] %v5502_v13  ;;  %6527 = vst [vmem:[%s7716_s17 + $0x7a8] sm:$0xff] %v5503_v22  ;;  %v3456_v17 = vmin.f32 %v2432_v18, 6.0  ;;  %v2434_v27 = vmax.f32 %v1410_v9, 0.0  ;;  %v2435_v36 = vmax.f32 %v1411_v12, 0.0  ;;  %v2436_v19 = vmax.f32 %v1412_v14, 0.0 }
 0x172   : > { %v3457_v24 = vmin.f32 %v2433_v10, 6.0  ;;  %v2437_v34 = vmax.f32 %v1413_v21, 0.0  ;;  %v2438_v38 = vmax.f32 %v1414_v16, 0.0  ;;  %v2439_v28 = vmax.f32 %v1415_v23, 0.0  ;;  %v8838_v18 = vld [vmem:[%s7688_s30 + $0x830] sm:$0xff]  ;;  %v8841_v21 = vld [vmem:[%s7688_s30 + $0x838] sm:$0xff] }
 0x173   : > { %v4480_v25 = vmul.f32 0.16666667, %v3456_v17  ;;  %v3458_v33 = vmin.f32 %v2434_v27, 6.0  ;;  %v3459_v35 = vmin.f32 %v2435_v36, 6.0  ;;  %v3460_v26 = vmin.f32 %v2436_v19, 6.0  ;;  %v8844_v36 = vld [vmem:[%s7688_s30 + $0x840] sm:$0xff] }
 0x174   : > { %v4481_v29 = vmul.f32 0.16666667, %v3457_v24  ;;  %v3461_v39 = vmin.f32 %v2437_v34, 6.0  ;;  %v3462_v30 = vmin.f32 %v2438_v38, 6.0  ;;  %v3463_v43 = vmin.f32 %v2439_v28, 6.0  ;;  %v8847_v19 = vld [vmem:[%s7688_s30 + $0x848] sm:$0xff] }
 0x175   : > { %v5504_v46 = vmul.f32 %v4480_v25, %v8766_v49  ;;  %v4482_v54 = vmul.f32 0.16666667, %v3458_v33  ;;  %v4483_v44 = vmul.f32 0.16666667, %v3459_v35  ;;  %v4484_v41 = vmul.f32 0.16666667, %v3460_v26 }
 0x176   : > { %v5505_v52 = vmul.f32 %v4481_v29, %v8769_v51  ;;  %v4485_v47 = vmul.f32 0.16666667, %v3461_v39  ;;  %v4486_v42 = vmul.f32 0.16666667, %v3462_v30  ;;  %v4487_v45 = vmul.f32 0.16666667, %v3463_v43 }
 0x177   : > { %6528 = vst [vmem:[%s7716_s17 + $0x7b0] sm:$0xff] %v5504_v46  ;;  %v5506_v55 = vmul.f32 %v4482_v54, %v8772_v2  ;;  %v5507_v48 = vmul.f32 %v4483_v44, %v8775_v53  ;;  %v5508_v56 = vmul.f32 %v4484_v41, %v8778_v59  ;;  %v1416_v49 = vadd.f32 3.0, %v8802_v31  ;;  %v399_v51 = vld [vmem:[%s7688_s30 + $0x828] sm:$0xff]  ;;  %v8850_v24 = vld [vmem:[%s7688_s30 + $0x850] sm:$0xff]  ;;  %v405_v46 = vld [vmem:[%s7688_s30 + $0x858] sm:$0xff] }
 0x178   : > { %6529 = vst [vmem:[%s7716_s17 + $0x7b8] sm:$0xff] %v5505_v52  ;;  %v5509_v57 = vmul.f32 %v4485_v47, %v389_v11  ;;  %v5510_v60 = vmul.f32 %v4486_v42, %v390_v20  ;;  %v5511_v6 = vmul.f32 %v4487_v45, %v391_v3  ;;  %v1417_v0 = vadd.f32 3.0, %v8805_v37  ;;  %v406_v54 = vld [vmem:[%s7688_s30 + $0x860] sm:$0xff] }
 0x179   : > { %6530 = vst [vmem:[%s7716_s17 + $0x7c0] sm:$0xff] %v5506_v55  ;;  %6531 = vst [vmem:[%s7716_s17 + $0x7c8] sm:$0xff] %v5507_v48  ;;  %v2440_v2 = vmax.f32 %v1416_v49, 0.0  ;;  %v1418_v53 = vadd.f32 3.0, %v8808_v50  ;;  %v1419_v59 = vadd.f32 3.0, %v8811_v32  ;;  %v1420_v58 = vadd.f32 3.0, %v8814_v40 }
 0x17a   : > { %6532 = vst [vmem:[%s7716_s17 + $0x7d0] sm:$0xff] %v5508_v56  ;;  %6533 = vst [vmem:[%s7716_s17 + $0x7d8] sm:$0xff] %v5509_v57  ;;  %v2441_v61 = vmax.f32 %v1417_v0, 0.0  ;;  %v1421_v5 = vadd.f32 3.0, %v397_v62  ;;  %v1422_v63 = vadd.f32 3.0, %v398_v4  ;;  %v1423_v7 = vadd.f32 3.0, %v399_v51 }
 0x17b   : > { %6534 = vst [vmem:[%s7716_s17 + $0x7e0] sm:$0xff] %v5510_v60  ;;  %6535 = vst [vmem:[%s7716_s17 + $0x7e8] sm:$0xff] %v5511_v6  ;;  %v3464_v1 = vmin.f32 %v2440_v2, 6.0  ;;  %v2442_v11 = vmax.f32 %v1418_v53, 0.0  ;;  %v2443_v20 = vmax.f32 %v1419_v59, 0.0  ;;  %v2444_v3 = vmax.f32 %v1420_v58, 0.0 }
 0x17c   : > { %v3465_v8 = vmin.f32 %v2441_v61, 6.0  ;;  %v2445_v13 = vmax.f32 %v1421_v5, 0.0  ;;  %v2446_v22 = vmax.f32 %v1422_v63, 0.0  ;;  %v2447_v15 = vmax.f32 %v1423_v7, 0.0  ;;  %v8874_v2 = vld [vmem:[%s7688_s30 + $0x870] sm:$0xff]  ;;  %v8877_v5 = vld [vmem:[%s7688_s30 + $0x878] sm:$0xff] }
 0x17d   : > { %v4488_v9 = vmul.f32 0.16666667, %v3464_v1  ;;  %v3466_v12 = vmin.f32 %v2442_v11, 6.0  ;;  %v3467_v14 = vmin.f32 %v2443_v20, 6.0  ;;  %v3468_v10 = vmin.f32 %v2444_v3, 6.0  ;;  %v8880_v20 = vld [vmem:[%s7688_s30 + $0x880] sm:$0xff] }
 0x17e   : > { %v4489_v16 = vmul.f32 0.16666667, %v3465_v8  ;;  %v3469_v23 = vmin.f32 %v2445_v13, 6.0  ;;  %v3470_v17 = vmin.f32 %v2446_v22, 6.0  ;;  %v3471_v27 = vmin.f32 %v2447_v15, 6.0  ;;  %v8883_v3 = vld [vmem:[%s7688_s30 + $0x888] sm:$0xff] }
 0x17f   : > { %v5512_v34 = vmul.f32 %v4488_v9, %v8802_v31  ;;  %v4490_v38 = vmul.f32 0.16666667, %v3466_v12  ;;  %v4491_v28 = vmul.f32 0.16666667, %v3467_v14  ;;  %v4492_v25 = vmul.f32 0.16666667, %v3468_v10 }
 0x180   : > { %v5513_v33 = vmul.f32 %v4489_v16, %v8805_v37  ;;  %v4493_v35 = vmul.f32 0.16666667, %v3469_v23  ;;  %v4494_v26 = vmul.f32 0.16666667, %v3470_v17  ;;  %v4495_v29 = vmul.f32 0.16666667, %v3471_v27 }
 0x181   : > { %6536 = vst [vmem:[%s7716_s17 + $0x7f0] sm:$0xff] %v5512_v34  ;;  %v5514_v39 = vmul.f32 %v4490_v38, %v8808_v50  ;;  %v5515_v30 = vmul.f32 %v4491_v28, %v8811_v32  ;;  %v5516_v43 = vmul.f32 %v4492_v25, %v8814_v40  ;;  %v1424_v31 = vadd.f32 3.0, %v8838_v18  ;;  %v407_v37 = vld [vmem:[%s7688_s30 + $0x868] sm:$0xff]  ;;  %v8886_v8 = vld [vmem:[%s7688_s30 + $0x890] sm:$0xff]  ;;  %v413_v34 = vld [vmem:[%s7688_s30 + $0x898] sm:$0xff] }
 0x182   : > { %6537 = vst [vmem:[%s7716_s17 + $0x7f8] sm:$0xff] %v5513_v33  ;;  %v5517_v44 = vmul.f32 %v4493_v35, %v397_v62  ;;  %v5518_v41 = vmul.f32 %v4494_v26, %v398_v4  ;;  %v5519_v52 = vmul.f32 %v4495_v29, %v399_v51  ;;  %v1425_v47 = vadd.f32 3.0, %v8841_v21  ;;  %v414_v38 = vld [vmem:[%s7688_s30 + $0x8a0] sm:$0xff] }
 0x183   : > { %6538 = vst [vmem:[%s7716_s17 + $0x800] sm:$0xff] %v5514_v39  ;;  %6539 = vst [vmem:[%s7716_s17 + $0x808] sm:$0xff] %v5515_v30  ;;  %v2448_v50 = vmax.f32 %v1424_v31, 0.0  ;;  %v1426_v32 = vadd.f32 3.0, %v8844_v36  ;;  %v1427_v40 = vadd.f32 3.0, %v8847_v19  ;;  %v1428_v42 = vadd.f32 3.0, %v8850_v24 }
 0x184   : > { %6540 = vst [vmem:[%s7716_s17 + $0x810] sm:$0xff] %v5516_v43  ;;  %6541 = vst [vmem:[%s7716_s17 + $0x818] sm:$0xff] %v5517_v44  ;;  %v2449_v45 = vmax.f32 %v1425_v47, 0.0  ;;  %v1429_v55 = vadd.f32 3.0, %v405_v46  ;;  %v1430_v48 = vadd.f32 3.0, %v406_v54  ;;  %v1431_v56 = vadd.f32 3.0, %v407_v37 }
 0x185   : > { %6542 = vst [vmem:[%s7716_s17 + $0x820] sm:$0xff] %v5518_v41  ;;  %6543 = vst [vmem:[%s7716_s17 + $0x828] sm:$0xff] %v5519_v52  ;;  %v3472_v49 = vmin.f32 %v2448_v50, 6.0  ;;  %v2450_v62 = vmax.f32 %v1426_v32, 0.0  ;;  %v2451_v4 = vmax.f32 %v1427_v40, 0.0  ;;  %v2452_v51 = vmax.f32 %v1428_v42, 0.0 }
 0x186   : > { %v3473_v57 = vmin.f32 %v2449_v45, 6.0  ;;  %v2453_v60 = vmax.f32 %v1429_v55, 0.0  ;;  %v2454_v6 = vmax.f32 %v1430_v48, 0.0  ;;  %v2455_v0 = vmax.f32 %v1431_v56, 0.0  ;;  %v8910_v50 = vld [vmem:[%s7688_s30 + $0x8b0] sm:$0xff]  ;;  %v8913_v55 = vld [vmem:[%s7688_s30 + $0x8b8] sm:$0xff] }
 0x187   : > { %v4496_v53 = vmul.f32 0.16666667, %v3472_v49  ;;  %v3474_v59 = vmin.f32 %v2450_v62, 6.0  ;;  %v3475_v58 = vmin.f32 %v2451_v4, 6.0  ;;  %v3476_v61 = vmin.f32 %v2452_v51, 6.0  ;;  %v8916_v4 = vld [vmem:[%s7688_s30 + $0x8c0] sm:$0xff] }
 0x188   : > { %v4497_v63 = vmul.f32 0.16666667, %v3473_v57  ;;  %v3477_v7 = vmin.f32 %v2453_v60, 6.0  ;;  %v3478_v1 = vmin.f32 %v2454_v6, 6.0  ;;  %v3479_v11 = vmin.f32 %v2455_v0, 6.0  ;;  %v8919_v51 = vld [vmem:[%s7688_s30 + $0x8c8] sm:$0xff] }
 0x189   : > { %v5520_v13 = vmul.f32 %v4496_v53, %v8838_v18  ;;  %v4498_v22 = vmul.f32 0.16666667, %v3474_v59  ;;  %v4499_v15 = vmul.f32 0.16666667, %v3475_v58  ;;  %v4500_v9 = vmul.f32 0.16666667, %v3476_v61 }
 0x18a   : > { %v5521_v12 = vmul.f32 %v4497_v63, %v8841_v21  ;;  %v4501_v14 = vmul.f32 0.16666667, %v3477_v7  ;;  %v4502_v10 = vmul.f32 0.16666667, %v3478_v1  ;;  %v4503_v16 = vmul.f32 0.16666667, %v3479_v11 }
 0x18b   : > { %6544 = vst [vmem:[%s7716_s17 + $0x830] sm:$0xff] %v5520_v13  ;;  %v5522_v23 = vmul.f32 %v4498_v22, %v8844_v36  ;;  %v5523_v17 = vmul.f32 %v4499_v15, %v8847_v19  ;;  %v5524_v27 = vmul.f32 %v4500_v9, %v8850_v24  ;;  %v1432_v18 = vadd.f32 3.0, %v8874_v2  ;;  %v415_v21 = vld [vmem:[%s7688_s30 + $0x8a8] sm:$0xff]  ;;  %v8922_v57 = vld [vmem:[%s7688_s30 + $0x8d0] sm:$0xff]  ;;  %v421_v13 = vld [vmem:[%s7688_s30 + $0x8d8] sm:$0xff] }
 0x18c   : > { %6545 = vst [vmem:[%s7716_s17 + $0x838] sm:$0xff] %v5521_v12  ;;  %v5525_v28 = vmul.f32 %v4501_v14, %v405_v46  ;;  %v5526_v25 = vmul.f32 %v4502_v10, %v406_v54  ;;  %v5527_v33 = vmul.f32 %v4503_v16, %v407_v37  ;;  %v1433_v35 = vadd.f32 3.0, %v8877_v5  ;;  %v422_v22 = vld [vmem:[%s7688_s30 + $0x8e0] sm:$0xff] }
 0x18d   : > { %6546 = vst [vmem:[%s7716_s17 + $0x840] sm:$0xff] %v5522_v23  ;;  %6547 = vst [vmem:[%s7716_s17 + $0x848] sm:$0xff] %v5523_v17  ;;  %v2456_v36 = vmax.f32 %v1432_v18, 0.0  ;;  %v1434_v19 = vadd.f32 3.0, %v8880_v20  ;;  %v1435_v24 = vadd.f32 3.0, %v8883_v3  ;;  %v1436_v26 = vadd.f32 3.0, %v8886_v8 }
 0x18e   : > { %6548 = vst [vmem:[%s7716_s17 + $0x850] sm:$0xff] %v5524_v27  ;;  %6549 = vst [vmem:[%s7716_s17 + $0x858] sm:$0xff] %v5525_v28  ;;  %v2457_v29 = vmax.f32 %v1433_v35, 0.0  ;;  %v1437_v39 = vadd.f32 3.0, %v413_v34  ;;  %v1438_v30 = vadd.f32 3.0, %v414_v38  ;;  %v1439_v43 = vadd.f32 3.0, %v415_v21 }
 0x18f   : > { %6550 = vst [vmem:[%s7716_s17 + $0x860] sm:$0xff] %v5526_v25  ;;  %6551 = vst [vmem:[%s7716_s17 + $0x868] sm:$0xff] %v5527_v33  ;;  %v3480_v31 = vmin.f32 %v2456_v36, 6.0  ;;  %v2458_v46 = vmax.f32 %v1434_v19, 0.0  ;;  %v2459_v54 = vmax.f32 %v1435_v24, 0.0  ;;  %v2460_v37 = vmax.f32 %v1436_v26, 0.0 }
 0x190   : > { %v3481_v44 = vmin.f32 %v2457_v29, 6.0  ;;  %v2461_v41 = vmax.f32 %v1437_v39, 0.0  ;;  %v2462_v52 = vmax.f32 %v1438_v30, 0.0  ;;  %v2463_v47 = vmax.f32 %v1439_v43, 0.0  ;;  %v8946_v36 = vld [vmem:[%s7688_s30 + $0x8f0] sm:$0xff]  ;;  %v8949_v39 = vld [vmem:[%s7688_s30 + $0x8f8] sm:$0xff] }
 0x191   : > { %v4504_v32 = vmul.f32 0.16666667, %v3480_v31  ;;  %v3482_v40 = vmin.f32 %v2458_v46, 6.0  ;;  %v3483_v42 = vmin.f32 %v2459_v54, 6.0  ;;  %v3484_v45 = vmin.f32 %v2460_v37, 6.0  ;;  %v8952_v54 = vld [vmem:[%s7688_s30 + $0x900] sm:$0xff] }
 0x192   : > { %v4505_v48 = vmul.f32 0.16666667, %v3481_v44  ;;  %v3485_v56 = vmin.f32 %v2461_v41, 6.0  ;;  %v3486_v49 = vmin.f32 %v2462_v52, 6.0  ;;  %v3487_v62 = vmin.f32 %v2463_v47, 6.0  ;;  %v8955_v37 = vld [vmem:[%s7688_s30 + $0x908] sm:$0xff] }
 0x193   : > { %v5528_v60 = vmul.f32 %v4504_v32, %v8874_v2  ;;  %v4506_v6 = vmul.f32 0.16666667, %v3482_v40  ;;  %v4507_v0 = vmul.f32 0.16666667, %v3483_v42  ;;  %v4508_v53 = vmul.f32 0.16666667, %v3484_v45 }
 0x194   : > { %v5529_v59 = vmul.f32 %v4505_v48, %v8877_v5  ;;  %v4509_v58 = vmul.f32 0.16666667, %v3485_v56  ;;  %v4510_v61 = vmul.f32 0.16666667, %v3486_v49  ;;  %v4511_v63 = vmul.f32 0.16666667, %v3487_v62 }
 0x195   : > { %6552 = vst [vmem:[%s7716_s17 + $0x870] sm:$0xff] %v5528_v60  ;;  %v5530_v7 = vmul.f32 %v4506_v6, %v8880_v20  ;;  %v5531_v1 = vmul.f32 %v4507_v0, %v8883_v3  ;;  %v5532_v11 = vmul.f32 %v4508_v53, %v8886_v8  ;;  %v1440_v2 = vadd.f32 3.0, %v8910_v50  ;;  %v423_v5 = vld [vmem:[%s7688_s30 + $0x8e8] sm:$0xff]  ;;  %v8958_v44 = vld [vmem:[%s7688_s30 + $0x910] sm:$0xff]  ;;  %v429_v60 = vld [vmem:[%s7688_s30 + $0x918] sm:$0xff] }
 0x196   : > { %6553 = vst [vmem:[%s7716_s17 + $0x878] sm:$0xff] %v5529_v59  ;;  %v5533_v15 = vmul.f32 %v4509_v58, %v413_v34  ;;  %v5534_v9 = vmul.f32 %v4510_v61, %v414_v38  ;;  %v5535_v12 = vmul.f32 %v4511_v63, %v415_v21  ;;  %v1441_v14 = vadd.f32 3.0, %v8913_v55  ;;  %v430_v6 = vld [vmem:[%s7688_s30 + $0x920] sm:$0xff] }
 0x197   : > { %6554 = vst [vmem:[%s7716_s17 + $0x880] sm:$0xff] %v5530_v7  ;;  %6555 = vst [vmem:[%s7716_s17 + $0x888] sm:$0xff] %v5531_v1  ;;  %v2464_v20 = vmax.f32 %v1440_v2, 0.0  ;;  %v1442_v3 = vadd.f32 3.0, %v8916_v4  ;;  %v1443_v8 = vadd.f32 3.0, %v8919_v51  ;;  %v1444_v10 = vadd.f32 3.0, %v8922_v57 }
 0x198   : > { %6556 = vst [vmem:[%s7716_s17 + $0x890] sm:$0xff] %v5532_v11  ;;  %6557 = vst [vmem:[%s7716_s17 + $0x898] sm:$0xff] %v5533_v15  ;;  %v2465_v16 = vmax.f32 %v1441_v14, 0.0  ;;  %v1445_v23 = vadd.f32 3.0, %v421_v13  ;;  %v1446_v17 = vadd.f32 3.0, %v422_v22  ;;  %v1447_v27 = vadd.f32 3.0, %v423_v5 }
 0x199   : > { %6558 = vst [vmem:[%s7716_s17 + $0x8a0] sm:$0xff] %v5534_v9  ;;  %6559 = vst [vmem:[%s7716_s17 + $0x8a8] sm:$0xff] %v5535_v12  ;;  %v3488_v18 = vmin.f32 %v2464_v20, 6.0  ;;  %v2466_v34 = vmax.f32 %v1442_v3, 0.0  ;;  %v2467_v38 = vmax.f32 %v1443_v8, 0.0  ;;  %v2468_v21 = vmax.f32 %v1444_v10, 0.0 }
 0x19a   : > { %v3489_v28 = vmin.f32 %v2465_v16, 6.0  ;;  %v2469_v25 = vmax.f32 %v1445_v23, 0.0  ;;  %v2470_v33 = vmax.f32 %v1446_v17, 0.0  ;;  %v2471_v35 = vmax.f32 %v1447_v27, 0.0  ;;  %v8982_v20 = vld [vmem:[%s7688_s30 + $0x930] sm:$0xff]  ;;  %v8985_v23 = vld [vmem:[%s7688_s30 + $0x938] sm:$0xff] }
 0x19b   : > { %v4512_v19 = vmul.f32 0.16666667, %v3488_v18  ;;  %v3490_v24 = vmin.f32 %v2466_v34, 6.0  ;;  %v3491_v26 = vmin.f32 %v2467_v38, 6.0  ;;  %v3492_v29 = vmin.f32 %v2468_v21, 6.0  ;;  %v8988_v38 = vld [vmem:[%s7688_s30 + $0x940] sm:$0xff] }
 0x19c   : > { %v4513_v30 = vmul.f32 0.16666667, %v3489_v28  ;;  %v3493_v43 = vmin.f32 %v2469_v25, 6.0  ;;  %v3494_v31 = vmin.f32 %v2470_v33, 6.0  ;;  %v3495_v46 = vmin.f32 %v2471_v35, 6.0  ;;  %v8991_v21 = vld [vmem:[%s7688_s30 + $0x948] sm:$0xff] }
 0x19d   : > { %v5536_v41 = vmul.f32 %v4512_v19, %v8910_v50  ;;  %v4514_v52 = vmul.f32 0.16666667, %v3490_v24  ;;  %v4515_v47 = vmul.f32 0.16666667, %v3491_v26  ;;  %v4516_v32 = vmul.f32 0.16666667, %v3492_v29 }
 0x19e   : > { %v5537_v40 = vmul.f32 %v4513_v30, %v8913_v55  ;;  %v4517_v42 = vmul.f32 0.16666667, %v3493_v43  ;;  %v4518_v45 = vmul.f32 0.16666667, %v3494_v31  ;;  %v4519_v48 = vmul.f32 0.16666667, %v3495_v46 }
 0x19f   : > { %6560 = vst [vmem:[%s7716_s17 + $0x8b0] sm:$0xff] %v5536_v41  ;;  %v5538_v56 = vmul.f32 %v4514_v52, %v8916_v4  ;;  %v5539_v49 = vmul.f32 %v4515_v47, %v8919_v51  ;;  %v5540_v62 = vmul.f32 %v4516_v32, %v8922_v57  ;;  %v1448_v50 = vadd.f32 3.0, %v8946_v36  ;;  %v431_v55 = vld [vmem:[%s7688_s30 + $0x928] sm:$0xff]  ;;  %v8994_v28 = vld [vmem:[%s7688_s30 + $0x950] sm:$0xff]  ;;  %v437_v41 = vld [vmem:[%s7688_s30 + $0x958] sm:$0xff] }
 0x1a0   : > { %6561 = vst [vmem:[%s7716_s17 + $0x8b8] sm:$0xff] %v5537_v40  ;;  %v5541_v0 = vmul.f32 %v4517_v42, %v421_v13  ;;  %v5542_v53 = vmul.f32 %v4518_v45, %v422_v22  ;;  %v5543_v59 = vmul.f32 %v4519_v48, %v423_v5  ;;  %v1449_v58 = vadd.f32 3.0, %v8949_v39  ;;  %v438_v52 = vld [vmem:[%s7688_s30 + $0x960] sm:$0xff] }
 0x1a1   : > { %6562 = vst [vmem:[%s7716_s17 + $0x8c0] sm:$0xff] %v5538_v56  ;;  %6563 = vst [vmem:[%s7716_s17 + $0x8c8] sm:$0xff] %v5539_v49  ;;  %v2472_v4 = vmax.f32 %v1448_v50, 0.0  ;;  %v1450_v51 = vadd.f32 3.0, %v8952_v54  ;;  %v1451_v57 = vadd.f32 3.0, %v8955_v37  ;;  %v1452_v61 = vadd.f32 3.0, %v8958_v44 }
 0x1a2   : > { %6564 = vst [vmem:[%s7716_s17 + $0x8d0] sm:$0xff] %v5540_v62  ;;  %6565 = vst [vmem:[%s7716_s17 + $0x8d8] sm:$0xff] %v5541_v0  ;;  %v2473_v63 = vmax.f32 %v1449_v58, 0.0  ;;  %v1453_v7 = vadd.f32 3.0, %v429_v60  ;;  %v1454_v1 = vadd.f32 3.0, %v430_v6  ;;  %v1455_v11 = vadd.f32 3.0, %v431_v55 }
 0x1a3   : > { %6566 = vst [vmem:[%s7716_s17 + $0x8e0] sm:$0xff] %v5542_v53  ;;  %6567 = vst [vmem:[%s7716_s17 + $0x8e8] sm:$0xff] %v5543_v59  ;;  %v3496_v2 = vmin.f32 %v2472_v4, 6.0  ;;  %v2474_v13 = vmax.f32 %v1450_v51, 0.0  ;;  %v2475_v22 = vmax.f32 %v1451_v57, 0.0  ;;  %v2476_v5 = vmax.f32 %v1452_v61, 0.0 }
 0x1a4   : > { %v3497_v15 = vmin.f32 %v2473_v63, 6.0  ;;  %v2477_v9 = vmax.f32 %v1453_v7, 0.0  ;;  %v2478_v12 = vmax.f32 %v1454_v1, 0.0  ;;  %v2479_v14 = vmax.f32 %v1455_v11, 0.0  ;;  %v9018_v4 = vld [vmem:[%s7688_s30 + $0x970] sm:$0xff]  ;;  %v9021_v7 = vld [vmem:[%s7688_s30 + $0x978] sm:$0xff] }
 0x1a5   : > { %v4520_v3 = vmul.f32 0.16666667, %v3496_v2  ;;  %v3498_v8 = vmin.f32 %v2474_v13, 6.0  ;;  %v3499_v10 = vmin.f32 %v2475_v22, 6.0  ;;  %v3500_v16 = vmin.f32 %v2476_v5, 6.0  ;;  %v9024_v22 = vld [vmem:[%s7688_s30 + $0x980] sm:$0xff] }
 0x1a6   : > { %v4521_v17 = vmul.f32 0.16666667, %v3497_v15  ;;  %v3501_v27 = vmin.f32 %v2477_v9, 6.0  ;;  %v3502_v18 = vmin.f32 %v2478_v12, 6.0  ;;  %v3503_v34 = vmin.f32 %v2479_v14, 6.0  ;;  %v9027_v5 = vld [vmem:[%s7688_s30 + $0x988] sm:$0xff] }
 0x1a7   : > { %v5544_v25 = vmul.f32 %v4520_v3, %v8946_v36  ;;  %v4522_v33 = vmul.f32 0.16666667, %v3498_v8  ;;  %v4523_v35 = vmul.f32 0.16666667, %v3499_v10  ;;  %v4524_v19 = vmul.f32 0.16666667, %v3500_v16 }
 0x1a8   : > { %v5545_v24 = vmul.f32 %v4521_v17, %v8949_v39  ;;  %v4525_v26 = vmul.f32 0.16666667, %v3501_v27  ;;  %v4526_v29 = vmul.f32 0.16666667, %v3502_v18  ;;  %v4527_v30 = vmul.f32 0.16666667, %v3503_v34 }
 0x1a9   : > { %6568 = vst [vmem:[%s7716_s17 + $0x8f0] sm:$0xff] %v5544_v25  ;;  %v5546_v43 = vmul.f32 %v4522_v33, %v8952_v54  ;;  %v5547_v31 = vmul.f32 %v4523_v35, %v8955_v37  ;;  %v5548_v46 = vmul.f32 %v4524_v19, %v8958_v44  ;;  %v1456_v36 = vadd.f32 3.0, %v8982_v20  ;;  %v439_v39 = vld [vmem:[%s7688_s30 + $0x968] sm:$0xff]  ;;  %v9030_v15 = vld [vmem:[%s7688_s30 + $0x990] sm:$0xff]  ;;  %v445_v25 = vld [vmem:[%s7688_s30 + $0x998] sm:$0xff] }
 0x1aa   : > { %6569 = vst [vmem:[%s7716_s17 + $0x8f8] sm:$0xff] %v5545_v24  ;;  %v5549_v47 = vmul.f32 %v4525_v26, %v429_v60  ;;  %v5550_v32 = vmul.f32 %v4526_v29, %v430_v6  ;;  %v5551_v40 = vmul.f32 %v4527_v30, %v431_v55  ;;  %v1457_v42 = vadd.f32 3.0, %v8985_v23  ;;  %v446_v33 = vld [vmem:[%s7688_s30 + $0x9a0] sm:$0xff] }
 0x1ab   : > { %6570 = vst [vmem:[%s7716_s17 + $0x900] sm:$0xff] %v5546_v43  ;;  %6571 = vst [vmem:[%s7716_s17 + $0x908] sm:$0xff] %v5547_v31  ;;  %v2480_v54 = vmax.f32 %v1456_v36, 0.0  ;;  %v1458_v37 = vadd.f32 3.0, %v8988_v38  ;;  %v1459_v44 = vadd.f32 3.0, %v8991_v21  ;;  %v1460_v45 = vadd.f32 3.0, %v8994_v28 }
 0x1ac   : > { %6572 = vst [vmem:[%s7716_s17 + $0x910] sm:$0xff] %v5548_v46  ;;  %6573 = vst [vmem:[%s7716_s17 + $0x918] sm:$0xff] %v5549_v47  ;;  %v2481_v48 = vmax.f32 %v1457_v42, 0.0  ;;  %v1461_v56 = vadd.f32 3.0, %v437_v41  ;;  %v1462_v49 = vadd.f32 3.0, %v438_v52  ;;  %v1463_v62 = vadd.f32 3.0, %v439_v39 }
 0x1ad   : > { %6574 = vst [vmem:[%s7716_s17 + $0x920] sm:$0xff] %v5550_v32  ;;  %6575 = vst [vmem:[%s7716_s17 + $0x928] sm:$0xff] %v5551_v40  ;;  %v3504_v50 = vmin.f32 %v2480_v54, 6.0  ;;  %v2482_v60 = vmax.f32 %v1458_v37, 0.0  ;;  %v2483_v6 = vmax.f32 %v1459_v44, 0.0  ;;  %v2484_v55 = vmax.f32 %v1460_v45, 0.0 }
 0x1ae   : > { %v3505_v0 = vmin.f32 %v2481_v48, 6.0  ;;  %v2485_v53 = vmax.f32 %v1461_v56, 0.0  ;;  %v2486_v59 = vmax.f32 %v1462_v49, 0.0  ;;  %v2487_v58 = vmax.f32 %v1463_v62, 0.0  ;;  %v9054_v54 = vld [vmem:[%s7688_s30 + $0x9b0] sm:$0xff]  ;;  %v9057_v56 = vld [vmem:[%s7688_s30 + $0x9b8] sm:$0xff] }
 0x1af   : > { %v4528_v51 = vmul.f32 0.16666667, %v3504_v50  ;;  %v3506_v57 = vmin.f32 %v2482_v60, 6.0  ;;  %v3507_v61 = vmin.f32 %v2483_v6, 6.0  ;;  %v3508_v63 = vmin.f32 %v2484_v55, 6.0  ;;  %v9060_v6 = vld [vmem:[%s7688_s30 + $0x9c0] sm:$0xff] }
 0x1b0   : > { %v4529_v1 = vmul.f32 0.16666667, %v3505_v0  ;;  %v3509_v11 = vmin.f32 %v2485_v53, 6.0  ;;  %v3510_v2 = vmin.f32 %v2486_v59, 6.0  ;;  %v3511_v13 = vmin.f32 %v2487_v58, 6.0  ;;  %v9063_v55 = vld [vmem:[%s7688_s30 + $0x9c8] sm:$0xff] }
 0x1b1   : > { %v5552_v9 = vmul.f32 %v4528_v51, %v8982_v20  ;;  %v4530_v12 = vmul.f32 0.16666667, %v3506_v57  ;;  %v4531_v14 = vmul.f32 0.16666667, %v3507_v61  ;;  %v4532_v3 = vmul.f32 0.16666667, %v3508_v63 }
 0x1b2   : > { %v5553_v8 = vmul.f32 %v4529_v1, %v8985_v23  ;;  %v4533_v10 = vmul.f32 0.16666667, %v3509_v11  ;;  %v4534_v16 = vmul.f32 0.16666667, %v3510_v2  ;;  %v4535_v17 = vmul.f32 0.16666667, %v3511_v13 }
 0x1b3   : > { %6576 = vst [vmem:[%s7716_s17 + $0x930] sm:$0xff] %v5552_v9  ;;  %v5554_v27 = vmul.f32 %v4530_v12, %v8988_v38  ;;  %v5555_v18 = vmul.f32 %v4531_v14, %v8991_v21  ;;  %v5556_v34 = vmul.f32 %v4532_v3, %v8994_v28  ;;  %v1464_v20 = vadd.f32 3.0, %v9018_v4  ;;  %v447_v23 = vld [vmem:[%s7688_s30 + $0x9a8] sm:$0xff]  ;;  %v9066_v0 = vld [vmem:[%s7688_s30 + $0x9d0] sm:$0xff]  ;;  %v453_v9 = vld [vmem:[%s7688_s30 + $0x9d8] sm:$0xff] }
 0x1b4   : > { %6577 = vst [vmem:[%s7716_s17 + $0x938] sm:$0xff] %v5553_v8  ;;  %v5557_v35 = vmul.f32 %v4533_v10, %v437_v41  ;;  %v5558_v19 = vmul.f32 %v4534_v16, %v438_v52  ;;  %v5559_v24 = vmul.f32 %v4535_v17, %v439_v39  ;;  %v1465_v26 = vadd.f32 3.0, %v9021_v7  ;;  %v454_v12 = vld [vmem:[%s7688_s30 + $0x9e0] sm:$0xff] }
 0x1b5   : > { %6578 = vst [vmem:[%s7716_s17 + $0x940] sm:$0xff] %v5554_v27  ;;  %6579 = vst [vmem:[%s7716_s17 + $0x948] sm:$0xff] %v5555_v18  ;;  %v2488_v38 = vmax.f32 %v1464_v20, 0.0  ;;  %v1466_v21 = vadd.f32 3.0, %v9024_v22  ;;  %v1467_v28 = vadd.f32 3.0, %v9027_v5  ;;  %v1468_v29 = vadd.f32 3.0, %v9030_v15 }
 0x1b6   : > { %6580 = vst [vmem:[%s7716_s17 + $0x950] sm:$0xff] %v5556_v34  ;;  %6581 = vst [vmem:[%s7716_s17 + $0x958] sm:$0xff] %v5557_v35  ;;  %v2489_v30 = vmax.f32 %v1465_v26, 0.0  ;;  %v1469_v43 = vadd.f32 3.0, %v445_v25  ;;  %v1470_v31 = vadd.f32 3.0, %v446_v33  ;;  %v1471_v46 = vadd.f32 3.0, %v447_v23 }
 0x1b7   : > { %6582 = vst [vmem:[%s7716_s17 + $0x960] sm:$0xff] %v5558_v19  ;;  %6583 = vst [vmem:[%s7716_s17 + $0x968] sm:$0xff] %v5559_v24  ;;  %v3512_v36 = vmin.f32 %v2488_v38, 6.0  ;;  %v2490_v41 = vmax.f32 %v1466_v21, 0.0  ;;  %v2491_v52 = vmax.f32 %v1467_v28, 0.0  ;;  %v2492_v39 = vmax.f32 %v1468_v29, 0.0 }
 0x1b8   : > { %v3513_v47 = vmin.f32 %v2489_v30, 6.0  ;;  %v2493_v32 = vmax.f32 %v1469_v43, 0.0  ;;  %v2494_v40 = vmax.f32 %v1470_v31, 0.0  ;;  %v2495_v42 = vmax.f32 %v1471_v46, 0.0  ;;  %v9090_v38 = vld [vmem:[%s7688_s30 + $0x9f0] sm:$0xff]  ;;  %v9093_v43 = vld [vmem:[%s7688_s30 + $0x9f8] sm:$0xff] }
 0x1b9   : > { %v4536_v37 = vmul.f32 0.16666667, %v3512_v36  ;;  %v3514_v44 = vmin.f32 %v2490_v41, 6.0  ;;  %v3515_v45 = vmin.f32 %v2491_v52, 6.0  ;;  %v3516_v48 = vmin.f32 %v2492_v39, 6.0  ;;  %v9096_v52 = vld [vmem:[%s7688_s30 + $0xa00] sm:$0xff] }
 0x1ba   : > { %v4537_v49 = vmul.f32 0.16666667, %v3513_v47  ;;  %v3517_v62 = vmin.f32 %v2493_v32, 6.0  ;;  %v3518_v50 = vmin.f32 %v2494_v40, 6.0  ;;  %v3519_v60 = vmin.f32 %v2495_v42, 6.0  ;;  %v9099_v39 = vld [vmem:[%s7688_s30 + $0xa08] sm:$0xff] }
 0x1bb   : > { %v5560_v53 = vmul.f32 %v4536_v37, %v9018_v4  ;;  %v4538_v59 = vmul.f32 0.16666667, %v3514_v44  ;;  %v4539_v58 = vmul.f32 0.16666667, %v3515_v45  ;;  %v4540_v51 = vmul.f32 0.16666667, %v3516_v48 }
 0x1bc   : > { %v5561_v57 = vmul.f32 %v4537_v49, %v9021_v7  ;;  %v4541_v61 = vmul.f32 0.16666667, %v3517_v62  ;;  %v4542_v63 = vmul.f32 0.16666667, %v3518_v50  ;;  %v4543_v1 = vmul.f32 0.16666667, %v3519_v60 }
 0x1bd   : > { %6584 = vst [vmem:[%s7716_s17 + $0x970] sm:$0xff] %v5560_v53  ;;  %v5562_v11 = vmul.f32 %v4538_v59, %v9024_v22  ;;  %v5563_v2 = vmul.f32 %v4539_v58, %v9027_v5  ;;  %v5564_v13 = vmul.f32 %v4540_v51, %v9030_v15  ;;  %v1472_v4 = vadd.f32 3.0, %v9054_v54  ;;  %v455_v7 = vld [vmem:[%s7688_s30 + $0x9e8] sm:$0xff]  ;;  %v9102_v47 = vld [vmem:[%s7688_s30 + $0xa10] sm:$0xff]  ;;  %v461_v53 = vld [vmem:[%s7688_s30 + $0xa18] sm:$0xff] }
 0x1be   : > { %6585 = vst [vmem:[%s7716_s17 + $0x978] sm:$0xff] %v5561_v57  ;;  %v5565_v14 = vmul.f32 %v4541_v61, %v445_v25  ;;  %v5566_v3 = vmul.f32 %v4542_v63, %v446_v33  ;;  %v5567_v8 = vmul.f32 %v4543_v1, %v447_v23  ;;  %v1473_v10 = vadd.f32 3.0, %v9057_v56  ;;  %v462_v59 = vld [vmem:[%s7688_s30 + $0xa20] sm:$0xff] }
 0x1bf   : > { %6586 = vst [vmem:[%s7716_s17 + $0x980] sm:$0xff] %v5562_v11  ;;  %6587 = vst [vmem:[%s7716_s17 + $0x988] sm:$0xff] %v5563_v2  ;;  %v2496_v22 = vmax.f32 %v1472_v4, 0.0  ;;  %v1474_v5 = vadd.f32 3.0, %v9060_v6  ;;  %v1475_v15 = vadd.f32 3.0, %v9063_v55  ;;  %v1476_v16 = vadd.f32 3.0, %v9066_v0 }
 0x1c0   : > { %6588 = vst [vmem:[%s7716_s17 + $0x990] sm:$0xff] %v5564_v13  ;;  %6589 = vst [vmem:[%s7716_s17 + $0x998] sm:$0xff] %v5565_v14  ;;  %v2497_v17 = vmax.f32 %v1473_v10, 0.0  ;;  %v1477_v27 = vadd.f32 3.0, %v453_v9  ;;  %v1478_v18 = vadd.f32 3.0, %v454_v12  ;;  %v1479_v34 = vadd.f32 3.0, %v455_v7 }
 0x1c1   : > { %6590 = vst [vmem:[%s7716_s17 + $0x9a0] sm:$0xff] %v5566_v3  ;;  %6591 = vst [vmem:[%s7716_s17 + $0x9a8] sm:$0xff] %v5567_v8  ;;  %v3520_v20 = vmin.f32 %v2496_v22, 6.0  ;;  %v2498_v25 = vmax.f32 %v1474_v5, 0.0  ;;  %v2499_v33 = vmax.f32 %v1475_v15, 0.0  ;;  %v2500_v23 = vmax.f32 %v1476_v16, 0.0 }
 0x1c2   : > { %v3521_v35 = vmin.f32 %v2497_v17, 6.0  ;;  %v2501_v19 = vmax.f32 %v1477_v27, 0.0  ;;  %v2502_v24 = vmax.f32 %v1478_v18, 0.0  ;;  %v2503_v26 = vmax.f32 %v1479_v34, 0.0  ;;  %v9126_v22 = vld [vmem:[%s7688_s30 + $0xa30] sm:$0xff]  ;;  %v9129_v27 = vld [vmem:[%s7688_s30 + $0xa38] sm:$0xff] }
 0x1c3   : > { %v4544_v21 = vmul.f32 0.16666667, %v3520_v20  ;;  %v3522_v28 = vmin.f32 %v2498_v25, 6.0  ;;  %v3523_v29 = vmin.f32 %v2499_v33, 6.0  ;;  %v3524_v30 = vmin.f32 %v2500_v23, 6.0  ;;  %v9132_v33 = vld [vmem:[%s7688_s30 + $0xa40] sm:$0xff] }
 0x1c4   : > { %v4545_v31 = vmul.f32 0.16666667, %v3521_v35  ;;  %v3525_v46 = vmin.f32 %v2501_v19, 6.0  ;;  %v3526_v36 = vmin.f32 %v2502_v24, 6.0  ;;  %v3527_v41 = vmin.f32 %v2503_v26, 6.0  ;;  %v9135_v23 = vld [vmem:[%s7688_s30 + $0xa48] sm:$0xff] }
 0x1c5   : > { %v5568_v32 = vmul.f32 %v4544_v21, %v9054_v54  ;;  %v4546_v40 = vmul.f32 0.16666667, %v3522_v28  ;;  %v4547_v42 = vmul.f32 0.16666667, %v3523_v29  ;;  %v4548_v37 = vmul.f32 0.16666667, %v3524_v30 }
 0x1c6   : > { %v5569_v44 = vmul.f32 %v4545_v31, %v9057_v56  ;;  %v4549_v45 = vmul.f32 0.16666667, %v3525_v46  ;;  %v4550_v48 = vmul.f32 0.16666667, %v3526_v36  ;;  %v4551_v49 = vmul.f32 0.16666667, %v3527_v41 }
 0x1c7   : > { %6592 = vst [vmem:[%s7716_s17 + $0x9b0] sm:$0xff] %v5568_v32  ;;  %v5570_v62 = vmul.f32 %v4546_v40, %v9060_v6  ;;  %v5571_v50 = vmul.f32 %v4547_v42, %v9063_v55  ;;  %v5572_v60 = vmul.f32 %v4548_v37, %v9066_v0  ;;  %v1480_v54 = vadd.f32 3.0, %v9090_v38  ;;  %v463_v56 = vld [vmem:[%s7688_s30 + $0xa28] sm:$0xff]  ;;  %v9138_v35 = vld [vmem:[%s7688_s30 + $0xa50] sm:$0xff]  ;;  %v469_v32 = vld [vmem:[%s7688_s30 + $0xa58] sm:$0xff] }
 0x1c8   : > { %6593 = vst [vmem:[%s7716_s17 + $0x9b8] sm:$0xff] %v5569_v44  ;;  %v5573_v58 = vmul.f32 %v4549_v45, %v453_v9  ;;  %v5574_v51 = vmul.f32 %v4550_v48, %v454_v12  ;;  %v5575_v57 = vmul.f32 %v4551_v49, %v455_v7  ;;  %v1481_v61 = vadd.f32 3.0, %v9093_v43  ;;  %v470_v40 = vld [vmem:[%s7688_s30 + $0xa60] sm:$0xff] }
 0x1c9   : > { %6594 = vst [vmem:[%s7716_s17 + $0x9c0] sm:$0xff] %v5570_v62  ;;  %6595 = vst [vmem:[%s7716_s17 + $0x9c8] sm:$0xff] %v5571_v50  ;;  %v2504_v6 = vmax.f32 %v1480_v54, 0.0  ;;  %v1482_v55 = vadd.f32 3.0, %v9096_v52  ;;  %v1483_v0 = vadd.f32 3.0, %v9099_v39  ;;  %v1484_v63 = vadd.f32 3.0, %v9102_v47 }
 0x1ca   : > { %6596 = vst [vmem:[%s7716_s17 + $0x9d0] sm:$0xff] %v5572_v60  ;;  %6597 = vst [vmem:[%s7716_s17 + $0x9d8] sm:$0xff] %v5573_v58  ;;  %v2505_v1 = vmax.f32 %v1481_v61, 0.0  ;;  %v1485_v11 = vadd.f32 3.0, %v461_v53  ;;  %v1486_v2 = vadd.f32 3.0, %v462_v59  ;;  %v1487_v13 = vadd.f32 3.0, %v463_v56 }
 0x1cb   : > { %6598 = vst [vmem:[%s7716_s17 + $0x9e0] sm:$0xff] %v5574_v51  ;;  %6599 = vst [vmem:[%s7716_s17 + $0x9e8] sm:$0xff] %v5575_v57  ;;  %v3528_v4 = vmin.f32 %v2504_v6, 6.0  ;;  %v2506_v9 = vmax.f32 %v1482_v55, 0.0  ;;  %v2507_v12 = vmax.f32 %v1483_v0, 0.0  ;;  %v2508_v7 = vmax.f32 %v1484_v63, 0.0 }
 0x1cc   : > { %v3529_v14 = vmin.f32 %v2505_v1, 6.0  ;;  %v2509_v3 = vmax.f32 %v1485_v11, 0.0  ;;  %v2510_v8 = vmax.f32 %v1486_v2, 0.0  ;;  %v2511_v10 = vmax.f32 %v1487_v13, 0.0  ;;  %v9162_v6 = vld [vmem:[%s7688_s30 + $0xa70] sm:$0xff]  ;;  %v9165_v11 = vld [vmem:[%s7688_s30 + $0xa78] sm:$0xff] }
 0x1cd   : > { %v4552_v5 = vmul.f32 0.16666667, %v3528_v4  ;;  %v3530_v15 = vmin.f32 %v2506_v9, 6.0  ;;  %v3531_v16 = vmin.f32 %v2507_v12, 6.0  ;;  %v3532_v17 = vmin.f32 %v2508_v7, 6.0  ;;  %v9168_v12 = vld [vmem:[%s7688_s30 + $0xa80] sm:$0xff] }
 0x1ce   : > { %v4553_v18 = vmul.f32 0.16666667, %v3529_v14  ;;  %v3533_v34 = vmin.f32 %v2509_v3, 6.0  ;;  %v3534_v20 = vmin.f32 %v2510_v8, 6.0  ;;  %v3535_v25 = vmin.f32 %v2511_v10, 6.0  ;;  %v9171_v7 = vld [vmem:[%s7688_s30 + $0xa88] sm:$0xff] }
 0x1cf   : > { %v5576_v19 = vmul.f32 %v4552_v5, %v9090_v38  ;;  %v4554_v24 = vmul.f32 0.16666667, %v3530_v15  ;;  %v4555_v26 = vmul.f32 0.16666667, %v3531_v16  ;;  %v4556_v21 = vmul.f32 0.16666667, %v3532_v17 }
 0x1d0   : > { %v5577_v28 = vmul.f32 %v4553_v18, %v9093_v43  ;;  %v4557_v29 = vmul.f32 0.16666667, %v3533_v34  ;;  %v4558_v30 = vmul.f32 0.16666667, %v3534_v20  ;;  %v4559_v31 = vmul.f32 0.16666667, %v3535_v25 }
 0x1d1   : > { %6600 = vst [vmem:[%s7716_s17 + $0x9f0] sm:$0xff] %v5576_v19  ;;  %v5578_v46 = vmul.f32 %v4554_v24, %v9096_v52  ;;  %v5579_v36 = vmul.f32 %v4555_v26, %v9099_v39  ;;  %v5580_v41 = vmul.f32 %v4556_v21, %v9102_v47  ;;  %v1488_v38 = vadd.f32 3.0, %v9126_v22  ;;  %v471_v43 = vld [vmem:[%s7688_s30 + $0xa68] sm:$0xff]  ;;  %v9174_v14 = vld [vmem:[%s7688_s30 + $0xa90] sm:$0xff]  ;;  %v477_v19 = vld [vmem:[%s7688_s30 + $0xa98] sm:$0xff] }
 0x1d2   : > { %6601 = vst [vmem:[%s7716_s17 + $0x9f8] sm:$0xff] %v5577_v28  ;;  %v5581_v42 = vmul.f32 %v4557_v29, %v461_v53  ;;  %v5582_v37 = vmul.f32 %v4558_v30, %v462_v59  ;;  %v5583_v44 = vmul.f32 %v4559_v31, %v463_v56  ;;  %v1489_v45 = vadd.f32 3.0, %v9129_v27  ;;  %v478_v24 = vld [vmem:[%s7688_s30 + $0xaa0] sm:$0xff] }
 0x1d3   : > { %6602 = vst [vmem:[%s7716_s17 + $0xa00] sm:$0xff] %v5578_v46  ;;  %6603 = vst [vmem:[%s7716_s17 + $0xa08] sm:$0xff] %v5579_v36  ;;  %v2512_v52 = vmax.f32 %v1488_v38, 0.0  ;;  %v1490_v39 = vadd.f32 3.0, %v9132_v33  ;;  %v1491_v47 = vadd.f32 3.0, %v9135_v23  ;;  %v1492_v48 = vadd.f32 3.0, %v9138_v35 }
 0x1d4   : > { %6604 = vst [vmem:[%s7716_s17 + $0xa10] sm:$0xff] %v5580_v41  ;;  %6605 = vst [vmem:[%s7716_s17 + $0xa18] sm:$0xff] %v5581_v42  ;;  %v2513_v49 = vmax.f32 %v1489_v45, 0.0  ;;  %v1493_v62 = vadd.f32 3.0, %v469_v32  ;;  %v1494_v50 = vadd.f32 3.0, %v470_v40  ;;  %v1495_v60 = vadd.f32 3.0, %v471_v43 }
 0x1d5   : > { %6606 = vst [vmem:[%s7716_s17 + $0xa20] sm:$0xff] %v5582_v37  ;;  %6607 = vst [vmem:[%s7716_s17 + $0xa28] sm:$0xff] %v5583_v44  ;;  %v3536_v54 = vmin.f32 %v2512_v52, 6.0  ;;  %v2514_v53 = vmax.f32 %v1490_v39, 0.0  ;;  %v2515_v59 = vmax.f32 %v1491_v47, 0.0  ;;  %v2516_v56 = vmax.f32 %v1492_v48, 0.0 }
 0x1d6   : > { %v3537_v58 = vmin.f32 %v2513_v49, 6.0  ;;  %v2517_v51 = vmax.f32 %v1493_v62, 0.0  ;;  %v2518_v57 = vmax.f32 %v1494_v50, 0.0  ;;  %v2519_v61 = vmax.f32 %v1495_v60, 0.0  ;;  %v9198_v52 = vld [vmem:[%s7688_s30 + $0xab0] sm:$0xff]  ;;  %v9201_v62 = vld [vmem:[%s7688_s30 + $0xab8] sm:$0xff] }
 0x1d7   : > { %v4560_v55 = vmul.f32 0.16666667, %v3536_v54  ;;  %v3538_v0 = vmin.f32 %v2514_v53, 6.0  ;;  %v3539_v63 = vmin.f32 %v2515_v59, 6.0  ;;  %v3540_v1 = vmin.f32 %v2516_v56, 6.0  ;;  %v9204_v59 = vld [vmem:[%s7688_s30 + $0xac0] sm:$0xff] }
 0x1d8   : > { %v4561_v2 = vmul.f32 0.16666667, %v3537_v58  ;;  %v3541_v13 = vmin.f32 %v2517_v51, 6.0  ;;  %v3542_v4 = vmin.f32 %v2518_v57, 6.0  ;;  %v3543_v9 = vmin.f32 %v2519_v61, 6.0  ;;  %v9207_v56 = vld [vmem:[%s7688_s30 + $0xac8] sm:$0xff] }
 0x1d9   : > { %v5584_v3 = vmul.f32 %v4560_v55, %v9126_v22  ;;  %v4562_v8 = vmul.f32 0.16666667, %v3538_v0  ;;  %v4563_v10 = vmul.f32 0.16666667, %v3539_v63  ;;  %v4564_v5 = vmul.f32 0.16666667, %v3540_v1 }
 0x1da   : > { %v5585_v15 = vmul.f32 %v4561_v2, %v9129_v27  ;;  %v4565_v16 = vmul.f32 0.16666667, %v3541_v13  ;;  %v4566_v17 = vmul.f32 0.16666667, %v3542_v4  ;;  %v4567_v18 = vmul.f32 0.16666667, %v3543_v9 }
 0x1db   : > { %6608 = vst [vmem:[%s7716_s17 + $0xa30] sm:$0xff] %v5584_v3  ;;  %v5586_v34 = vmul.f32 %v4562_v8, %v9132_v33  ;;  %v5587_v20 = vmul.f32 %v4563_v10, %v9135_v23  ;;  %v5588_v25 = vmul.f32 %v4564_v5, %v9138_v35  ;;  %v1496_v22 = vadd.f32 3.0, %v9162_v6  ;;  %v479_v27 = vld [vmem:[%s7688_s30 + $0xaa8] sm:$0xff]  ;;  %v9210_v58 = vld [vmem:[%s7688_s30 + $0xad0] sm:$0xff]  ;;  %v485_v3 = vld [vmem:[%s7688_s30 + $0xad8] sm:$0xff] }
 0x1dc   : > { %6609 = vst [vmem:[%s7716_s17 + $0xa38] sm:$0xff] %v5585_v15  ;;  %v5589_v26 = vmul.f32 %v4565_v16, %v469_v32  ;;  %v5590_v21 = vmul.f32 %v4566_v17, %v470_v40  ;;  %v5591_v28 = vmul.f32 %v4567_v18, %v471_v43  ;;  %v1497_v29 = vadd.f32 3.0, %v9165_v11  ;;  %v486_v8 = vld [vmem:[%s7688_s30 + $0xae0] sm:$0xff] }
 0x1dd   : > { %6610 = vst [vmem:[%s7716_s17 + $0xa40] sm:$0xff] %v5586_v34  ;;  %6611 = vst [vmem:[%s7716_s17 + $0xa48] sm:$0xff] %v5587_v20  ;;  %v2520_v33 = vmax.f32 %v1496_v22, 0.0  ;;  %v1498_v23 = vadd.f32 3.0, %v9168_v12  ;;  %v1499_v35 = vadd.f32 3.0, %v9171_v7  ;;  %v1500_v30 = vadd.f32 3.0, %v9174_v14 }
 0x1de   : > { %6612 = vst [vmem:[%s7716_s17 + $0xa50] sm:$0xff] %v5588_v25  ;;  %6613 = vst [vmem:[%s7716_s17 + $0xa58] sm:$0xff] %v5589_v26  ;;  %v2521_v31 = vmax.f32 %v1497_v29, 0.0  ;;  %v1501_v46 = vadd.f32 3.0, %v477_v19  ;;  %v1502_v36 = vadd.f32 3.0, %v478_v24  ;;  %v1503_v41 = vadd.f32 3.0, %v479_v27 }
 0x1df   : > { %6614 = vst [vmem:[%s7716_s17 + $0xa60] sm:$0xff] %v5590_v21  ;;  %6615 = vst [vmem:[%s7716_s17 + $0xa68] sm:$0xff] %v5591_v28  ;;  %v3544_v38 = vmin.f32 %v2520_v33, 6.0  ;;  %v2522_v32 = vmax.f32 %v1498_v23, 0.0  ;;  %v2523_v40 = vmax.f32 %v1499_v35, 0.0  ;;  %v2524_v43 = vmax.f32 %v1500_v30, 0.0 }
 0x1e0   : > { %v3545_v42 = vmin.f32 %v2521_v31, 6.0  ;;  %v2525_v37 = vmax.f32 %v1501_v46, 0.0  ;;  %v2526_v44 = vmax.f32 %v1502_v36, 0.0  ;;  %v2527_v45 = vmax.f32 %v1503_v41, 0.0  ;;  %v9234_v33 = vld [vmem:[%s7688_s30 + $0xaf0] sm:$0xff]  ;;  %v9237_v46 = vld [vmem:[%s7688_s30 + $0xaf8] sm:$0xff] }
 0x1e1   : > { %v4568_v39 = vmul.f32 0.16666667, %v3544_v38  ;;  %v3546_v47 = vmin.f32 %v2522_v32, 6.0  ;;  %v3547_v48 = vmin.f32 %v2523_v40, 6.0  ;;  %v3548_v49 = vmin.f32 %v2524_v43, 6.0  ;;  %v9240_v40 = vld [vmem:[%s7688_s30 + $0xb00] sm:$0xff] }
 0x1e2   : > { %v4569_v50 = vmul.f32 0.16666667, %v3545_v42  ;;  %v3549_v60 = vmin.f32 %v2525_v37, 6.0  ;;  %v3550_v54 = vmin.f32 %v2526_v44, 6.0  ;;  %v3551_v53 = vmin.f32 %v2527_v45, 6.0  ;;  %v9243_v43 = vld [vmem:[%s7688_s30 + $0xb08] sm:$0xff] }
 0x1e3   : > { %v5592_v51 = vmul.f32 %v4568_v39, %v9162_v6  ;;  %v4570_v57 = vmul.f32 0.16666667, %v3546_v47  ;;  %v4571_v61 = vmul.f32 0.16666667, %v3547_v48  ;;  %v4572_v55 = vmul.f32 0.16666667, %v3548_v49 }
 0x1e4   : > { %v5593_v0 = vmul.f32 %v4569_v50, %v9165_v11  ;;  %v4573_v63 = vmul.f32 0.16666667, %v3549_v60  ;;  %v4574_v1 = vmul.f32 0.16666667, %v3550_v54  ;;  %v4575_v2 = vmul.f32 0.16666667, %v3551_v53 }
 0x1e5   : > { %6616 = vst [vmem:[%s7716_s17 + $0xa70] sm:$0xff] %v5592_v51  ;;  %v5594_v13 = vmul.f32 %v4570_v57, %v9168_v12  ;;  %v5595_v4 = vmul.f32 %v4571_v61, %v9171_v7  ;;  %v5596_v9 = vmul.f32 %v4572_v55, %v9174_v14  ;;  %v1504_v6 = vadd.f32 3.0, %v9198_v52  ;;  %v487_v11 = vld [vmem:[%s7688_s30 + $0xae8] sm:$0xff]  ;;  %v9246_v42 = vld [vmem:[%s7688_s30 + $0xb10] sm:$0xff]  ;;  %v493_v51 = vld [vmem:[%s7688_s30 + $0xb18] sm:$0xff] }
 0x1e6   : > { %6617 = vst [vmem:[%s7716_s17 + $0xa78] sm:$0xff] %v5593_v0  ;;  %v5597_v10 = vmul.f32 %v4573_v63, %v477_v19  ;;  %v5598_v5 = vmul.f32 %v4574_v1, %v478_v24  ;;  %v5599_v15 = vmul.f32 %v4575_v2, %v479_v27  ;;  %v1505_v16 = vadd.f32 3.0, %v9201_v62  ;;  %v494_v57 = vld [vmem:[%s7688_s30 + $0xb20] sm:$0xff] }
 0x1e7   : > { %6618 = vst [vmem:[%s7716_s17 + $0xa80] sm:$0xff] %v5594_v13  ;;  %6619 = vst [vmem:[%s7716_s17 + $0xa88] sm:$0xff] %v5595_v4  ;;  %v2528_v12 = vmax.f32 %v1504_v6, 0.0  ;;  %v1506_v7 = vadd.f32 3.0, %v9204_v59  ;;  %v1507_v14 = vadd.f32 3.0, %v9207_v56  ;;  %v1508_v17 = vadd.f32 3.0, %v9210_v58 }
 0x1e8   : > { %6620 = vst [vmem:[%s7716_s17 + $0xa90] sm:$0xff] %v5596_v9  ;;  %6621 = vst [vmem:[%s7716_s17 + $0xa98] sm:$0xff] %v5597_v10  ;;  %v2529_v18 = vmax.f32 %v1505_v16, 0.0  ;;  %v1509_v34 = vadd.f32 3.0, %v485_v3  ;;  %v1510_v20 = vadd.f32 3.0, %v486_v8  ;;  %v1511_v25 = vadd.f32 3.0, %v487_v11 }
 0x1e9   : > { %6622 = vst [vmem:[%s7716_s17 + $0xaa0] sm:$0xff] %v5598_v5  ;;  %6623 = vst [vmem:[%s7716_s17 + $0xaa8] sm:$0xff] %v5599_v15  ;;  %v3552_v22 = vmin.f32 %v2528_v12, 6.0  ;;  %v2530_v19 = vmax.f32 %v1506_v7, 0.0  ;;  %v2531_v24 = vmax.f32 %v1507_v14, 0.0  ;;  %v2532_v27 = vmax.f32 %v1508_v17, 0.0 }
 0x1ea   : > { %v3553_v26 = vmin.f32 %v2529_v18, 6.0  ;;  %v2533_v21 = vmax.f32 %v1509_v34, 0.0  ;;  %v2534_v28 = vmax.f32 %v1510_v20, 0.0  ;;  %v2535_v29 = vmax.f32 %v1511_v25, 0.0  ;;  %v9270_v12 = vld [vmem:[%s7688_s30 + $0xb30] sm:$0xff]  ;;  %v9273_v34 = vld [vmem:[%s7688_s30 + $0xb38] sm:$0xff] }
 0x1eb   : > { %v4576_v23 = vmul.f32 0.16666667, %v3552_v22  ;;  %v3554_v35 = vmin.f32 %v2530_v19, 6.0  ;;  %v3555_v30 = vmin.f32 %v2531_v24, 6.0  ;;  %v3556_v31 = vmin.f32 %v2532_v27, 6.0  ;;  %v9276_v24 = vld [vmem:[%s7688_s30 + $0xb40] sm:$0xff] }
 0x1ec   : > { %v4577_v36 = vmul.f32 0.16666667, %v3553_v26  ;;  %v3557_v41 = vmin.f32 %v2533_v21, 6.0  ;;  %v3558_v38 = vmin.f32 %v2534_v28, 6.0  ;;  %v3559_v32 = vmin.f32 %v2535_v29, 6.0  ;;  %v9279_v27 = vld [vmem:[%s7688_s30 + $0xb48] sm:$0xff] }
 0x1ed   : > { %v5600_v37 = vmul.f32 %v4576_v23, %v9198_v52  ;;  %v4578_v44 = vmul.f32 0.16666667, %v3554_v35  ;;  %v4579_v45 = vmul.f32 0.16666667, %v3555_v30  ;;  %v4580_v39 = vmul.f32 0.16666667, %v3556_v31 }
 0x1ee   : > { %v5601_v47 = vmul.f32 %v4577_v36, %v9201_v62  ;;  %v4581_v48 = vmul.f32 0.16666667, %v3557_v41  ;;  %v4582_v49 = vmul.f32 0.16666667, %v3558_v38  ;;  %v4583_v50 = vmul.f32 0.16666667, %v3559_v32 }
 0x1ef   : > { %6624 = vst [vmem:[%s7716_s17 + $0xab0] sm:$0xff] %v5600_v37  ;;  %v5602_v60 = vmul.f32 %v4578_v44, %v9204_v59  ;;  %v5603_v54 = vmul.f32 %v4579_v45, %v9207_v56  ;;  %v5604_v53 = vmul.f32 %v4580_v39, %v9210_v58  ;;  %v1512_v52 = vadd.f32 3.0, %v9234_v33  ;;  %v495_v62 = vld [vmem:[%s7688_s30 + $0xb28] sm:$0xff]  ;;  %v9282_v26 = vld [vmem:[%s7688_s30 + $0xb50] sm:$0xff]  ;;  %v501_v37 = vld [vmem:[%s7688_s30 + $0xb58] sm:$0xff] }
 0x1f0   : > { %6625 = vst [vmem:[%s7716_s17 + $0xab8] sm:$0xff] %v5601_v47  ;;  %v5605_v61 = vmul.f32 %v4581_v48, %v485_v3  ;;  %v5606_v55 = vmul.f32 %v4582_v49, %v486_v8  ;;  %v5607_v0 = vmul.f32 %v4583_v50, %v487_v11  ;;  %v1513_v63 = vadd.f32 3.0, %v9237_v46  ;;  %v502_v44 = vld [vmem:[%s7688_s30 + $0xb60] sm:$0xff] }
 0x1f1   : > { %6626 = vst [vmem:[%s7716_s17 + $0xac0] sm:$0xff] %v5602_v60  ;;  %6627 = vst [vmem:[%s7716_s17 + $0xac8] sm:$0xff] %v5603_v54  ;;  %v2536_v59 = vmax.f32 %v1512_v52, 0.0  ;;  %v1514_v56 = vadd.f32 3.0, %v9240_v40  ;;  %v1515_v58 = vadd.f32 3.0, %v9243_v43  ;;  %v1516_v1 = vadd.f32 3.0, %v9246_v42 }
 0x1f2   : > { %6628 = vst [vmem:[%s7716_s17 + $0xad0] sm:$0xff] %v5604_v53  ;;  %6629 = vst [vmem:[%s7716_s17 + $0xad8] sm:$0xff] %v5605_v61  ;;  %v2537_v2 = vmax.f32 %v1513_v63, 0.0  ;;  %v1517_v13 = vadd.f32 3.0, %v493_v51  ;;  %v1518_v4 = vadd.f32 3.0, %v494_v57  ;;  %v1519_v9 = vadd.f32 3.0, %v495_v62 }
 0x1f3   : > { %6630 = vst [vmem:[%s7716_s17 + $0xae0] sm:$0xff] %v5606_v55  ;;  %6631 = vst [vmem:[%s7716_s17 + $0xae8] sm:$0xff] %v5607_v0  ;;  %v3560_v6 = vmin.f32 %v2536_v59, 6.0  ;;  %v2538_v3 = vmax.f32 %v1514_v56, 0.0  ;;  %v2539_v8 = vmax.f32 %v1515_v58, 0.0  ;;  %v2540_v11 = vmax.f32 %v1516_v1, 0.0 }
 0x1f4   : > { %v3561_v10 = vmin.f32 %v2537_v2, 6.0  ;;  %v2541_v5 = vmax.f32 %v1517_v13, 0.0  ;;  %v2542_v15 = vmax.f32 %v1518_v4, 0.0  ;;  %v2543_v16 = vmax.f32 %v1519_v9, 0.0  ;;  %v9306_v59 = vld [vmem:[%s7688_s30 + $0xb70] sm:$0xff]  ;;  %v9309_v13 = vld [vmem:[%s7688_s30 + $0xb78] sm:$0xff] }
 0x1f5   : > { %v4584_v7 = vmul.f32 0.16666667, %v3560_v6  ;;  %v3562_v14 = vmin.f32 %v2538_v3, 6.0  ;;  %v3563_v17 = vmin.f32 %v2539_v8, 6.0  ;;  %v3564_v18 = vmin.f32 %v2540_v11, 6.0  ;;  %v9312_v8 = vld [vmem:[%s7688_s30 + $0xb80] sm:$0xff] }
 0x1f6   : > { %v4585_v20 = vmul.f32 0.16666667, %v3561_v10  ;;  %v3565_v25 = vmin.f32 %v2541_v5, 6.0  ;;  %v3566_v22 = vmin.f32 %v2542_v15, 6.0  ;;  %v3567_v19 = vmin.f32 %v2543_v16, 6.0  ;;  %v9315_v11 = vld [vmem:[%s7688_s30 + $0xb88] sm:$0xff] }
 0x1f7   : > { %v5608_v21 = vmul.f32 %v4584_v7, %v9234_v33  ;;  %v4586_v28 = vmul.f32 0.16666667, %v3562_v14  ;;  %v4587_v29 = vmul.f32 0.16666667, %v3563_v17  ;;  %v4588_v23 = vmul.f32 0.16666667, %v3564_v18 }
 0x1f8   : > { %v5609_v35 = vmul.f32 %v4585_v20, %v9237_v46  ;;  %v4589_v30 = vmul.f32 0.16666667, %v3565_v25  ;;  %v4590_v31 = vmul.f32 0.16666667, %v3566_v22  ;;  %v4591_v36 = vmul.f32 0.16666667, %v3567_v19 }
 0x1f9   : > { %6632 = vst [vmem:[%s7716_s17 + $0xaf0] sm:$0xff] %v5608_v21  ;;  %v5610_v41 = vmul.f32 %v4586_v28, %v9240_v40  ;;  %v5611_v38 = vmul.f32 %v4587_v29, %v9243_v43  ;;  %v5612_v32 = vmul.f32 %v4588_v23, %v9246_v42  ;;  %v1520_v33 = vadd.f32 3.0, %v9270_v12  ;;  %v503_v46 = vld [vmem:[%s7688_s30 + $0xb68] sm:$0xff]  ;;  %v9318_v10 = vld [vmem:[%s7688_s30 + $0xb90] sm:$0xff]  ;;  %v509_v21 = vld [vmem:[%s7688_s30 + $0xb98] sm:$0xff] }
 0x1fa   : > { %6633 = vst [vmem:[%s7716_s17 + $0xaf8] sm:$0xff] %v5609_v35  ;;  %v5613_v45 = vmul.f32 %v4589_v30, %v493_v51  ;;  %v5614_v39 = vmul.f32 %v4590_v31, %v494_v57  ;;  %v5615_v47 = vmul.f32 %v4591_v36, %v495_v62  ;;  %v1521_v48 = vadd.f32 3.0, %v9273_v34  ;;  %v510_v28 = vld [vmem:[%s7688_s30 + $0xba0] sm:$0xff] }
 0x1fb   : > { %6634 = vst [vmem:[%s7716_s17 + $0xb00] sm:$0xff] %v5610_v41  ;;  %6635 = vst [vmem:[%s7716_s17 + $0xb08] sm:$0xff] %v5611_v38  ;;  %v2544_v40 = vmax.f32 %v1520_v33, 0.0  ;;  %v1522_v43 = vadd.f32 3.0, %v9276_v24  ;;  %v1523_v42 = vadd.f32 3.0, %v9279_v27  ;;  %v1524_v49 = vadd.f32 3.0, %v9282_v26 }
 0x1fc   : > { %6636 = vst [vmem:[%s7716_s17 + $0xb10] sm:$0xff] %v5612_v32  ;;  %6637 = vst [vmem:[%s7716_s17 + $0xb18] sm:$0xff] %v5613_v45  ;;  %v2545_v50 = vmax.f32 %v1521_v48, 0.0  ;;  %v1525_v60 = vadd.f32 3.0, %v501_v37  ;;  %v1526_v54 = vadd.f32 3.0, %v502_v44  ;;  %v1527_v53 = vadd.f32 3.0, %v503_v46 }
 0x1fd   : > { %6638 = vst [vmem:[%s7716_s17 + $0xb20] sm:$0xff] %v5614_v39  ;;  %6639 = vst [vmem:[%s7716_s17 + $0xb28] sm:$0xff] %v5615_v47  ;;  %v3568_v52 = vmin.f32 %v2544_v40, 6.0  ;;  %v2546_v51 = vmax.f32 %v1522_v43, 0.0  ;;  %v2547_v57 = vmax.f32 %v1523_v42, 0.0  ;;  %v2548_v62 = vmax.f32 %v1524_v49, 0.0 }
 0x1fe   : > { %v3569_v61 = vmin.f32 %v2545_v50, 6.0  ;;  %v2549_v55 = vmax.f32 %v1525_v60, 0.0  ;;  %v2550_v0 = vmax.f32 %v1526_v54, 0.0  ;;  %v2551_v63 = vmax.f32 %v1527_v53, 0.0  ;;  %v9342_v40 = vld [vmem:[%s7688_s30 + $0xbb0] sm:$0xff]  ;;  %v9345_v60 = vld [vmem:[%s7688_s30 + $0xbb8] sm:$0xff] }
 0x1ff   : > { %v4592_v56 = vmul.f32 0.16666667, %v3568_v52  ;;  %v3570_v58 = vmin.f32 %v2546_v51, 6.0  ;;  %v3571_v1 = vmin.f32 %v2547_v57, 6.0  ;;  %v3572_v2 = vmin.f32 %v2548_v62, 6.0  ;;  %v9348_v57 = vld [vmem:[%s7688_s30 + $0xbc0] sm:$0xff] }
 0x200   : > { %v4593_v4 = vmul.f32 0.16666667, %v3569_v61  ;;  %v3573_v9 = vmin.f32 %v2549_v55, 6.0  ;;  %v3574_v6 = vmin.f32 %v2550_v0, 6.0  ;;  %v3575_v3 = vmin.f32 %v2551_v63, 6.0  ;;  %v9351_v62 = vld [vmem:[%s7688_s30 + $0xbc8] sm:$0xff] }
 0x201   : > { %v5616_v5 = vmul.f32 %v4592_v56, %v9270_v12  ;;  %v4594_v15 = vmul.f32 0.16666667, %v3570_v58  ;;  %v4595_v16 = vmul.f32 0.16666667, %v3571_v1  ;;  %v4596_v7 = vmul.f32 0.16666667, %v3572_v2 }
 0x202   : > { %v5617_v14 = vmul.f32 %v4593_v4, %v9273_v34  ;;  %v4597_v17 = vmul.f32 0.16666667, %v3573_v9  ;;  %v4598_v18 = vmul.f32 0.16666667, %v3574_v6  ;;  %v4599_v20 = vmul.f32 0.16666667, %v3575_v3 }
 0x203   : > { %6640 = vst [vmem:[%s7716_s17 + $0xb30] sm:$0xff] %v5616_v5  ;;  %v5618_v25 = vmul.f32 %v4594_v15, %v9276_v24  ;;  %v5619_v22 = vmul.f32 %v4595_v16, %v9279_v27  ;;  %v5620_v19 = vmul.f32 %v4596_v7, %v9282_v26  ;;  %v1528_v12 = vadd.f32 3.0, %v9306_v59  ;;  %v511_v34 = vld [vmem:[%s7688_s30 + $0xba8] sm:$0xff]  ;;  %v9354_v61 = vld [vmem:[%s7688_s30 + $0xbd0] sm:$0xff]  ;;  %v517_v5 = vld [vmem:[%s7688_s30 + $0xbd8] sm:$0xff] }
 0x204   : > { %6641 = vst [vmem:[%s7716_s17 + $0xb38] sm:$0xff] %v5617_v14  ;;  %v5621_v29 = vmul.f32 %v4597_v17, %v501_v37  ;;  %v5622_v23 = vmul.f32 %v4598_v18, %v502_v44  ;;  %v5623_v35 = vmul.f32 %v4599_v20, %v503_v46  ;;  %v1529_v30 = vadd.f32 3.0, %v9309_v13  ;;  %v518_v15 = vld [vmem:[%s7688_s30 + $0xbe0] sm:$0xff] }
 0x205   : > { %6642 = vst [vmem:[%s7716_s17 + $0xb40] sm:$0xff] %v5618_v25  ;;  %6643 = vst [vmem:[%s7716_s17 + $0xb48] sm:$0xff] %v5619_v22  ;;  %v2552_v24 = vmax.f32 %v1528_v12, 0.0  ;;  %v1530_v27 = vadd.f32 3.0, %v9312_v8  ;;  %v1531_v26 = vadd.f32 3.0, %v9315_v11  ;;  %v1532_v31 = vadd.f32 3.0, %v9318_v10 }
 0x206   : > { %6644 = vst [vmem:[%s7716_s17 + $0xb50] sm:$0xff] %v5620_v19  ;;  %6645 = vst [vmem:[%s7716_s17 + $0xb58] sm:$0xff] %v5621_v29  ;;  %v2553_v36 = vmax.f32 %v1529_v30, 0.0  ;;  %v1533_v41 = vadd.f32 3.0, %v509_v21  ;;  %v1534_v38 = vadd.f32 3.0, %v510_v28  ;;  %v1535_v32 = vadd.f32 3.0, %v511_v34 }
 0x207   : > { %6646 = vst [vmem:[%s7716_s17 + $0xb60] sm:$0xff] %v5622_v23  ;;  %6647 = vst [vmem:[%s7716_s17 + $0xb68] sm:$0xff] %v5623_v35  ;;  %v3576_v33 = vmin.f32 %v2552_v24, 6.0  ;;  %v2554_v37 = vmax.f32 %v1530_v27, 0.0  ;;  %v2555_v44 = vmax.f32 %v1531_v26, 0.0  ;;  %v2556_v46 = vmax.f32 %v1532_v31, 0.0 }
 0x208   : > { %v3577_v45 = vmin.f32 %v2553_v36, 6.0  ;;  %v2557_v39 = vmax.f32 %v1533_v41, 0.0  ;;  %v2558_v47 = vmax.f32 %v1534_v38, 0.0  ;;  %v2559_v48 = vmax.f32 %v1535_v32, 0.0  ;;  %v9378_v24 = vld [vmem:[%s7688_s30 + $0xbf0] sm:$0xff]  ;;  %v9381_v41 = vld [vmem:[%s7688_s30 + $0xbf8] sm:$0xff] }
 0x209   : > { %v4600_v43 = vmul.f32 0.16666667, %v3576_v33  ;;  %v3578_v42 = vmin.f32 %v2554_v37, 6.0  ;;  %v3579_v49 = vmin.f32 %v2555_v44, 6.0  ;;  %v3580_v50 = vmin.f32 %v2556_v46, 6.0  ;;  %v9384_v44 = vld [vmem:[%s7688_s30 + $0xc00] sm:$0xff] }
 0x20a   : > { %v4601_v54 = vmul.f32 0.16666667, %v3577_v45  ;;  %v3581_v53 = vmin.f32 %v2557_v39, 6.0  ;;  %v3582_v52 = vmin.f32 %v2558_v47, 6.0  ;;  %v3583_v51 = vmin.f32 %v2559_v48, 6.0  ;;  %v9387_v46 = vld [vmem:[%s7688_s30 + $0xc08] sm:$0xff] }
 0x20b   : > { %v5624_v55 = vmul.f32 %v4600_v43, %v9306_v59  ;;  %v4602_v0 = vmul.f32 0.16666667, %v3578_v42  ;;  %v4603_v63 = vmul.f32 0.16666667, %v3579_v49  ;;  %v4604_v56 = vmul.f32 0.16666667, %v3580_v50 }
 0x20c   : > { %v5625_v58 = vmul.f32 %v4601_v54, %v9309_v13  ;;  %v4605_v1 = vmul.f32 0.16666667, %v3581_v53  ;;  %v4606_v2 = vmul.f32 0.16666667, %v3582_v52  ;;  %v4607_v4 = vmul.f32 0.16666667, %v3583_v51 }
 0x20d   : > { %6648 = vst [vmem:[%s7716_s17 + $0xb70] sm:$0xff] %v5624_v55  ;;  %v5626_v9 = vmul.f32 %v4602_v0, %v9312_v8  ;;  %v5627_v6 = vmul.f32 %v4603_v63, %v9315_v11  ;;  %v5628_v3 = vmul.f32 %v4604_v56, %v9318_v10  ;;  %v1536_v59 = vadd.f32 3.0, %v9342_v40  ;;  %v519_v13 = vld [vmem:[%s7688_s30 + $0xbe8] sm:$0xff]  ;;  %v9390_v45 = vld [vmem:[%s7688_s30 + $0xc10] sm:$0xff]  ;;  %v525_v55 = vld [vmem:[%s7688_s30 + $0xc18] sm:$0xff] }
 0x20e   : > { %6649 = vst [vmem:[%s7716_s17 + $0xb78] sm:$0xff] %v5625_v58  ;;  %v5629_v16 = vmul.f32 %v4605_v1, %v509_v21  ;;  %v5630_v7 = vmul.f32 %v4606_v2, %v510_v28  ;;  %v5631_v14 = vmul.f32 %v4607_v4, %v511_v34  ;;  %v1537_v17 = vadd.f32 3.0, %v9345_v60  ;;  %v526_v0 = vld [vmem:[%s7688_s30 + $0xc20] sm:$0xff] }
 0x20f   : > { %6650 = vst [vmem:[%s7716_s17 + $0xb80] sm:$0xff] %v5626_v9  ;;  %6651 = vst [vmem:[%s7716_s17 + $0xb88] sm:$0xff] %v5627_v6  ;;  %v2560_v8 = vmax.f32 %v1536_v59, 0.0  ;;  %v1538_v11 = vadd.f32 3.0, %v9348_v57  ;;  %v1539_v10 = vadd.f32 3.0, %v9351_v62  ;;  %v1540_v18 = vadd.f32 3.0, %v9354_v61 }
 0x210   : > { %6652 = vst [vmem:[%s7716_s17 + $0xb90] sm:$0xff] %v5628_v3  ;;  %6653 = vst [vmem:[%s7716_s17 + $0xb98] sm:$0xff] %v5629_v16  ;;  %v2561_v20 = vmax.f32 %v1537_v17, 0.0  ;;  %v1541_v25 = vadd.f32 3.0, %v517_v5  ;;  %v1542_v22 = vadd.f32 3.0, %v518_v15  ;;  %v1543_v19 = vadd.f32 3.0, %v519_v13 }
 0x211   : > { %6654 = vst [vmem:[%s7716_s17 + $0xba0] sm:$0xff] %v5630_v7  ;;  %6655 = vst [vmem:[%s7716_s17 + $0xba8] sm:$0xff] %v5631_v14  ;;  %v3584_v12 = vmin.f32 %v2560_v8, 6.0  ;;  %v2562_v21 = vmax.f32 %v1538_v11, 0.0  ;;  %v2563_v28 = vmax.f32 %v1539_v10, 0.0  ;;  %v2564_v34 = vmax.f32 %v1540_v18, 0.0 }
 0x212   : > { %v3585_v29 = vmin.f32 %v2561_v20, 6.0  ;;  %v2565_v23 = vmax.f32 %v1541_v25, 0.0  ;;  %v2566_v35 = vmax.f32 %v1542_v22, 0.0  ;;  %v2567_v30 = vmax.f32 %v1543_v19, 0.0  ;;  %v9414_v8 = vld [vmem:[%s7688_s30 + $0xc30] sm:$0xff]  ;;  %v9417_v25 = vld [vmem:[%s7688_s30 + $0xc38] sm:$0xff] }
 0x213   : > { %v4608_v27 = vmul.f32 0.16666667, %v3584_v12  ;;  %v3586_v26 = vmin.f32 %v2562_v21, 6.0  ;;  %v3587_v31 = vmin.f32 %v2563_v28, 6.0  ;;  %v3588_v36 = vmin.f32 %v2564_v34, 6.0  ;;  %v9420_v28 = vld [vmem:[%s7688_s30 + $0xc40] sm:$0xff] }
 0x214   : > { %v4609_v38 = vmul.f32 0.16666667, %v3585_v29  ;;  %v3589_v32 = vmin.f32 %v2565_v23, 6.0  ;;  %v3590_v33 = vmin.f32 %v2566_v35, 6.0  ;;  %v3591_v37 = vmin.f32 %v2567_v30, 6.0  ;;  %v9423_v34 = vld [vmem:[%s7688_s30 + $0xc48] sm:$0xff] }
 0x215   : > { %v5632_v39 = vmul.f32 %v4608_v27, %v9342_v40  ;;  %v4610_v47 = vmul.f32 0.16666667, %v3586_v26  ;;  %v4611_v48 = vmul.f32 0.16666667, %v3587_v31  ;;  %v4612_v43 = vmul.f32 0.16666667, %v3588_v36 }
 0x216   : > { %v5633_v42 = vmul.f32 %v4609_v38, %v9345_v60  ;;  %v4613_v49 = vmul.f32 0.16666667, %v3589_v32  ;;  %v4614_v50 = vmul.f32 0.16666667, %v3590_v33  ;;  %v4615_v54 = vmul.f32 0.16666667, %v3591_v37 }
 0x217   : > { %6656 = vst [vmem:[%s7716_s17 + $0xbb0] sm:$0xff] %v5632_v39  ;;  %v5634_v53 = vmul.f32 %v4610_v47, %v9348_v57  ;;  %v5635_v52 = vmul.f32 %v4611_v48, %v9351_v62  ;;  %v5636_v51 = vmul.f32 %v4612_v43, %v9354_v61  ;;  %v1544_v40 = vadd.f32 3.0, %v9378_v24  ;;  %v527_v60 = vld [vmem:[%s7688_s30 + $0xc28] sm:$0xff]  ;;  %v9426_v29 = vld [vmem:[%s7688_s30 + $0xc50] sm:$0xff]  ;;  %v533_v39 = vld [vmem:[%s7688_s30 + $0xc58] sm:$0xff] }
 0x218   : > { %6657 = vst [vmem:[%s7716_s17 + $0xbb8] sm:$0xff] %v5633_v42  ;;  %v5637_v63 = vmul.f32 %v4613_v49, %v517_v5  ;;  %v5638_v56 = vmul.f32 %v4614_v50, %v518_v15  ;;  %v5639_v58 = vmul.f32 %v4615_v54, %v519_v13  ;;  %v1545_v1 = vadd.f32 3.0, %v9381_v41  ;;  %v534_v47 = vld [vmem:[%s7688_s30 + $0xc60] sm:$0xff] }
 0x219   : > { %6658 = vst [vmem:[%s7716_s17 + $0xbc0] sm:$0xff] %v5634_v53  ;;  %6659 = vst [vmem:[%s7716_s17 + $0xbc8] sm:$0xff] %v5635_v52  ;;  %v2568_v57 = vmax.f32 %v1544_v40, 0.0  ;;  %v1546_v62 = vadd.f32 3.0, %v9384_v44  ;;  %v1547_v61 = vadd.f32 3.0, %v9387_v46  ;;  %v1548_v2 = vadd.f32 3.0, %v9390_v45 }
 0x21a   : > { %6660 = vst [vmem:[%s7716_s17 + $0xbd0] sm:$0xff] %v5636_v51  ;;  %6661 = vst [vmem:[%s7716_s17 + $0xbd8] sm:$0xff] %v5637_v63  ;;  %v2569_v4 = vmax.f32 %v1545_v1, 0.0  ;;  %v1549_v9 = vadd.f32 3.0, %v525_v55  ;;  %v1550_v6 = vadd.f32 3.0, %v526_v0  ;;  %v1551_v3 = vadd.f32 3.0, %v527_v60 }
 0x21b   : > { %6662 = vst [vmem:[%s7716_s17 + $0xbe0] sm:$0xff] %v5638_v56  ;;  %6663 = vst [vmem:[%s7716_s17 + $0xbe8] sm:$0xff] %v5639_v58  ;;  %v3592_v59 = vmin.f32 %v2568_v57, 6.0  ;;  %v2570_v5 = vmax.f32 %v1546_v62, 0.0  ;;  %v2571_v15 = vmax.f32 %v1547_v61, 0.0  ;;  %v2572_v13 = vmax.f32 %v1548_v2, 0.0 }
 0x21c   : > { %v3593_v16 = vmin.f32 %v2569_v4, 6.0  ;;  %v2573_v7 = vmax.f32 %v1549_v9, 0.0  ;;  %v2574_v14 = vmax.f32 %v1550_v6, 0.0  ;;  %v2575_v17 = vmax.f32 %v1551_v3, 0.0  ;;  %v9450_v57 = vld [vmem:[%s7688_s30 + $0xc70] sm:$0xff]  ;;  %v9453_v9 = vld [vmem:[%s7688_s30 + $0xc78] sm:$0xff] }
 0x21d   : > { %v4616_v11 = vmul.f32 0.16666667, %v3592_v59  ;;  %v3594_v10 = vmin.f32 %v2570_v5, 6.0  ;;  %v3595_v18 = vmin.f32 %v2571_v15, 6.0  ;;  %v3596_v20 = vmin.f32 %v2572_v13, 6.0  ;;  %v9456_v15 = vld [vmem:[%s7688_s30 + $0xc80] sm:$0xff] }
 0x21e   : > { %v4617_v22 = vmul.f32 0.16666667, %v3593_v16  ;;  %v3597_v19 = vmin.f32 %v2573_v7, 6.0  ;;  %v3598_v12 = vmin.f32 %v2574_v14, 6.0  ;;  %v3599_v21 = vmin.f32 %v2575_v17, 6.0  ;;  %v9459_v13 = vld [vmem:[%s7688_s30 + $0xc88] sm:$0xff] }
 0x21f   : > { %v5640_v23 = vmul.f32 %v4616_v11, %v9378_v24  ;;  %v4618_v35 = vmul.f32 0.16666667, %v3594_v10  ;;  %v4619_v30 = vmul.f32 0.16666667, %v3595_v18  ;;  %v4620_v27 = vmul.f32 0.16666667, %v3596_v20 }
 0x220   : > { %v5641_v26 = vmul.f32 %v4617_v22, %v9381_v41  ;;  %v4621_v31 = vmul.f32 0.16666667, %v3597_v19  ;;  %v4622_v36 = vmul.f32 0.16666667, %v3598_v12  ;;  %v4623_v38 = vmul.f32 0.16666667, %v3599_v21 }
 0x221   : > { %6664 = vst [vmem:[%s7716_s17 + $0xbf0] sm:$0xff] %v5640_v23  ;;  %v5642_v32 = vmul.f32 %v4618_v35, %v9384_v44  ;;  %v5643_v33 = vmul.f32 %v4619_v30, %v9387_v46  ;;  %v5644_v37 = vmul.f32 %v4620_v27, %v9390_v45  ;;  %v1552_v24 = vadd.f32 3.0, %v9414_v8  ;;  %v535_v41 = vld [vmem:[%s7688_s30 + $0xc68] sm:$0xff]  ;;  %v9462_v16 = vld [vmem:[%s7688_s30 + $0xc90] sm:$0xff]  ;;  %v541_v23 = vld [vmem:[%s7688_s30 + $0xc98] sm:$0xff] }
 0x222   : > { %6665 = vst [vmem:[%s7716_s17 + $0xbf8] sm:$0xff] %v5641_v26  ;;  %v5645_v48 = vmul.f32 %v4621_v31, %v525_v55  ;;  %v5646_v43 = vmul.f32 %v4622_v36, %v526_v0  ;;  %v5647_v42 = vmul.f32 %v4623_v38, %v527_v60  ;;  %v1553_v49 = vadd.f32 3.0, %v9417_v25  ;;  %v542_v35 = vld [vmem:[%s7688_s30 + $0xca0] sm:$0xff] }
 0x223   : > { %6666 = vst [vmem:[%s7716_s17 + $0xc00] sm:$0xff] %v5642_v32  ;;  %6667 = vst [vmem:[%s7716_s17 + $0xc08] sm:$0xff] %v5643_v33  ;;  %v2576_v44 = vmax.f32 %v1552_v24, 0.0  ;;  %v1554_v46 = vadd.f32 3.0, %v9420_v28  ;;  %v1555_v45 = vadd.f32 3.0, %v9423_v34  ;;  %v1556_v50 = vadd.f32 3.0, %v9426_v29 }
 0x224   : > { %6668 = vst [vmem:[%s7716_s17 + $0xc10] sm:$0xff] %v5644_v37  ;;  %6669 = vst [vmem:[%s7716_s17 + $0xc18] sm:$0xff] %v5645_v48  ;;  %v2577_v54 = vmax.f32 %v1553_v49, 0.0  ;;  %v1557_v53 = vadd.f32 3.0, %v533_v39  ;;  %v1558_v52 = vadd.f32 3.0, %v534_v47  ;;  %v1559_v51 = vadd.f32 3.0, %v535_v41 }
 0x225   : > { %6670 = vst [vmem:[%s7716_s17 + $0xc20] sm:$0xff] %v5646_v43  ;;  %6671 = vst [vmem:[%s7716_s17 + $0xc28] sm:$0xff] %v5647_v42  ;;  %v3600_v40 = vmin.f32 %v2576_v44, 6.0  ;;  %v2578_v55 = vmax.f32 %v1554_v46, 0.0  ;;  %v2579_v0 = vmax.f32 %v1555_v45, 0.0  ;;  %v2580_v60 = vmax.f32 %v1556_v50, 0.0 }
 0x226   : > { %v3601_v63 = vmin.f32 %v2577_v54, 6.0  ;;  %v2581_v56 = vmax.f32 %v1557_v53, 0.0  ;;  %v2582_v58 = vmax.f32 %v1558_v52, 0.0  ;;  %v2583_v1 = vmax.f32 %v1559_v51, 0.0  ;;  %v9486_v44 = vld [vmem:[%s7688_s30 + $0xcb0] sm:$0xff]  ;;  %v9489_v53 = vld [vmem:[%s7688_s30 + $0xcb8] sm:$0xff] }
 0x227   : > { %v4624_v62 = vmul.f32 0.16666667, %v3600_v40  ;;  %v3602_v61 = vmin.f32 %v2578_v55, 6.0  ;;  %v3603_v2 = vmin.f32 %v2579_v0, 6.0  ;;  %v3604_v4 = vmin.f32 %v2580_v60, 6.0  ;;  %v9492_v0 = vld [vmem:[%s7688_s30 + $0xcc0] sm:$0xff] }
 0x228   : > { %v4625_v6 = vmul.f32 0.16666667, %v3601_v63  ;;  %v3605_v3 = vmin.f32 %v2581_v56, 6.0  ;;  %v3606_v59 = vmin.f32 %v2582_v58, 6.0  ;;  %v3607_v5 = vmin.f32 %v2583_v1, 6.0  ;;  %v9495_v60 = vld [vmem:[%s7688_s30 + $0xcc8] sm:$0xff] }
 0x229   : > { %v5648_v7 = vmul.f32 %v4624_v62, %v9414_v8  ;;  %v4626_v14 = vmul.f32 0.16666667, %v3602_v61  ;;  %v4627_v17 = vmul.f32 0.16666667, %v3603_v2  ;;  %v4628_v11 = vmul.f32 0.16666667, %v3604_v4 }
 0x22a   : > { %v5649_v10 = vmul.f32 %v4625_v6, %v9417_v25  ;;  %v4629_v18 = vmul.f32 0.16666667, %v3605_v3  ;;  %v4630_v20 = vmul.f32 0.16666667, %v3606_v59  ;;  %v4631_v22 = vmul.f32 0.16666667, %v3607_v5 }
 0x22b   : > { %6672 = vst [vmem:[%s7716_s17 + $0xc30] sm:$0xff] %v5648_v7  ;;  %v5650_v19 = vmul.f32 %v4626_v14, %v9420_v28  ;;  %v5651_v12 = vmul.f32 %v4627_v17, %v9423_v34  ;;  %v5652_v21 = vmul.f32 %v4628_v11, %v9426_v29  ;;  %v1560_v8 = vadd.f32 3.0, %v9450_v57  ;;  %v543_v25 = vld [vmem:[%s7688_s30 + $0xca8] sm:$0xff]  ;;  %v9498_v63 = vld [vmem:[%s7688_s30 + $0xcd0] sm:$0xff]  ;;  %v549_v7 = vld [vmem:[%s7688_s30 + $0xcd8] sm:$0xff] }
 0x22c   : > { %6673 = vst [vmem:[%s7716_s17 + $0xc38] sm:$0xff] %v5649_v10  ;;  %v5653_v30 = vmul.f32 %v4629_v18, %v533_v39  ;;  %v5654_v27 = vmul.f32 %v4630_v20, %v534_v47  ;;  %v5655_v26 = vmul.f32 %v4631_v22, %v535_v41  ;;  %v1561_v31 = vadd.f32 3.0, %v9453_v9  ;;  %v550_v14 = vld [vmem:[%s7688_s30 + $0xce0] sm:$0xff] }
 0x22d   : > { %6674 = vst [vmem:[%s7716_s17 + $0xc40] sm:$0xff] %v5650_v19  ;;  %6675 = vst [vmem:[%s7716_s17 + $0xc48] sm:$0xff] %v5651_v12  ;;  %v2584_v28 = vmax.f32 %v1560_v8, 0.0  ;;  %v1562_v34 = vadd.f32 3.0, %v9456_v15  ;;  %v1563_v29 = vadd.f32 3.0, %v9459_v13  ;;  %v1564_v36 = vadd.f32 3.0, %v9462_v16 }
 0x22e   : > { %6676 = vst [vmem:[%s7716_s17 + $0xc50] sm:$0xff] %v5652_v21  ;;  %6677 = vst [vmem:[%s7716_s17 + $0xc58] sm:$0xff] %v5653_v30  ;;  %v2585_v38 = vmax.f32 %v1561_v31, 0.0  ;;  %v1565_v32 = vadd.f32 3.0, %v541_v23  ;;  %v1566_v33 = vadd.f32 3.0, %v542_v35  ;;  %v1567_v37 = vadd.f32 3.0, %v543_v25 }
 0x22f   : > { %6678 = vst [vmem:[%s7716_s17 + $0xc60] sm:$0xff] %v5654_v27  ;;  %6679 = vst [vmem:[%s7716_s17 + $0xc68] sm:$0xff] %v5655_v26  ;;  %v3608_v24 = vmin.f32 %v2584_v28, 6.0  ;;  %v2586_v39 = vmax.f32 %v1562_v34, 0.0  ;;  %v2587_v47 = vmax.f32 %v1563_v29, 0.0  ;;  %v2588_v41 = vmax.f32 %v1564_v36, 0.0 }
 0x230   : > { %v3609_v48 = vmin.f32 %v2585_v38, 6.0  ;;  %v2589_v43 = vmax.f32 %v1565_v32, 0.0  ;;  %v2590_v42 = vmax.f32 %v1566_v33, 0.0  ;;  %v2591_v49 = vmax.f32 %v1567_v37, 0.0  ;;  %v9522_v28 = vld [vmem:[%s7688_s30 + $0xcf0] sm:$0xff]  ;;  %v9525_v32 = vld [vmem:[%s7688_s30 + $0xcf8] sm:$0xff] }
 0x231   : > { %v4632_v46 = vmul.f32 0.16666667, %v3608_v24  ;;  %v3610_v45 = vmin.f32 %v2586_v39, 6.0  ;;  %v3611_v50 = vmin.f32 %v2587_v47, 6.0  ;;  %v3612_v54 = vmin.f32 %v2588_v41, 6.0  ;;  %v9528_v47 = vld [vmem:[%s7688_s30 + $0xd00] sm:$0xff] }
 0x232   : > { %v4633_v52 = vmul.f32 0.16666667, %v3609_v48  ;;  %v3613_v51 = vmin.f32 %v2589_v43, 6.0  ;;  %v3614_v40 = vmin.f32 %v2590_v42, 6.0  ;;  %v3615_v55 = vmin.f32 %v2591_v49, 6.0  ;;  %v9531_v41 = vld [vmem:[%s7688_s30 + $0xd08] sm:$0xff] }
 0x233   : > { %v5656_v56 = vmul.f32 %v4632_v46, %v9450_v57  ;;  %v4634_v58 = vmul.f32 0.16666667, %v3610_v45  ;;  %v4635_v1 = vmul.f32 0.16666667, %v3611_v50  ;;  %v4636_v62 = vmul.f32 0.16666667, %v3612_v54 }
 0x234   : > { %v5657_v61 = vmul.f32 %v4633_v52, %v9453_v9  ;;  %v4637_v2 = vmul.f32 0.16666667, %v3613_v51  ;;  %v4638_v4 = vmul.f32 0.16666667, %v3614_v40  ;;  %v4639_v6 = vmul.f32 0.16666667, %v3615_v55 }
 0x235   : > { %6680 = vst [vmem:[%s7716_s17 + $0xc70] sm:$0xff] %v5656_v56  ;;  %v5658_v3 = vmul.f32 %v4634_v58, %v9456_v15  ;;  %v5659_v59 = vmul.f32 %v4635_v1, %v9459_v13  ;;  %v5660_v5 = vmul.f32 %v4636_v62, %v9462_v16  ;;  %v1568_v57 = vadd.f32 3.0, %v9486_v44  ;;  %v551_v9 = vld [vmem:[%s7688_s30 + $0xce8] sm:$0xff]  ;;  %v9534_v48 = vld [vmem:[%s7688_s30 + $0xd10] sm:$0xff]  ;;  %v557_v56 = vld [vmem:[%s7688_s30 + $0xd18] sm:$0xff] }
 0x236   : > { %6681 = vst [vmem:[%s7716_s17 + $0xc78] sm:$0xff] %v5657_v61  ;;  %v5661_v17 = vmul.f32 %v4637_v2, %v541_v23  ;;  %v5662_v11 = vmul.f32 %v4638_v4, %v542_v35  ;;  %v5663_v10 = vmul.f32 %v4639_v6, %v543_v25  ;;  %v1569_v18 = vadd.f32 3.0, %v9489_v53  ;;  %v558_v58 = vld [vmem:[%s7688_s30 + $0xd20] sm:$0xff] }
 0x237   : > { %6682 = vst [vmem:[%s7716_s17 + $0xc80] sm:$0xff] %v5658_v3  ;;  %6683 = vst [vmem:[%s7716_s17 + $0xc88] sm:$0xff] %v5659_v59  ;;  %v2592_v15 = vmax.f32 %v1568_v57, 0.0  ;;  %v1570_v13 = vadd.f32 3.0, %v9492_v0  ;;  %v1571_v16 = vadd.f32 3.0, %v9495_v60  ;;  %v1572_v20 = vadd.f32 3.0, %v9498_v63 }
 0x238   : > { %6684 = vst [vmem:[%s7716_s17 + $0xc90] sm:$0xff] %v5660_v5  ;;  %6685 = vst [vmem:[%s7716_s17 + $0xc98] sm:$0xff] %v5661_v17  ;;  %v2593_v22 = vmax.f32 %v1569_v18, 0.0  ;;  %v1573_v19 = vadd.f32 3.0, %v549_v7  ;;  %v1574_v12 = vadd.f32 3.0, %v550_v14  ;;  %v1575_v21 = vadd.f32 3.0, %v551_v9 }
 0x239   : > { %6686 = vst [vmem:[%s7716_s17 + $0xca0] sm:$0xff] %v5662_v11  ;;  %6687 = vst [vmem:[%s7716_s17 + $0xca8] sm:$0xff] %v5663_v10  ;;  %v3616_v8 = vmin.f32 %v2592_v15, 6.0  ;;  %v2594_v23 = vmax.f32 %v1570_v13, 0.0  ;;  %v2595_v35 = vmax.f32 %v1571_v16, 0.0  ;;  %v2596_v25 = vmax.f32 %v1572_v20, 0.0 }
 0x23a   : > { %v3617_v30 = vmin.f32 %v2593_v22, 6.0  ;;  %v2597_v27 = vmax.f32 %v1573_v19, 0.0  ;;  %v2598_v26 = vmax.f32 %v1574_v12, 0.0  ;;  %v2599_v31 = vmax.f32 %v1575_v21, 0.0  ;;  %v9558_v15 = vld [vmem:[%s7688_s30 + $0xd30] sm:$0xff]  ;;  %v9561_v19 = vld [vmem:[%s7688_s30 + $0xd38] sm:$0xff] }
 0x23b   : > { %v4640_v34 = vmul.f32 0.16666667, %v3616_v8  ;;  %v3618_v29 = vmin.f32 %v2594_v23, 6.0  ;;  %v3619_v36 = vmin.f32 %v2595_v35, 6.0  ;;  %v3620_v38 = vmin.f32 %v2596_v25, 6.0  ;;  %v9564_v35 = vld [vmem:[%s7688_s30 + $0xd40] sm:$0xff] }
 0x23c   : > { %v4641_v33 = vmul.f32 0.16666667, %v3617_v30  ;;  %v3621_v37 = vmin.f32 %v2597_v27, 6.0  ;;  %v3622_v24 = vmin.f32 %v2598_v26, 6.0  ;;  %v3623_v39 = vmin.f32 %v2599_v31, 6.0  ;;  %v9567_v25 = vld [vmem:[%s7688_s30 + $0xd48] sm:$0xff] }
 0x23d   : > { %v5664_v43 = vmul.f32 %v4640_v34, %v9486_v44  ;;  %v4642_v42 = vmul.f32 0.16666667, %v3618_v29  ;;  %v4643_v49 = vmul.f32 0.16666667, %v3619_v36  ;;  %v4644_v46 = vmul.f32 0.16666667, %v3620_v38 }
 0x23e   : > { %v5665_v45 = vmul.f32 %v4641_v33, %v9489_v53  ;;  %v4645_v50 = vmul.f32 0.16666667, %v3621_v37  ;;  %v4646_v54 = vmul.f32 0.16666667, %v3622_v24  ;;  %v4647_v52 = vmul.f32 0.16666667, %v3623_v39 }
 0x23f   : > { %6688 = vst [vmem:[%s7716_s17 + $0xcb0] sm:$0xff] %v5664_v43  ;;  %v5666_v51 = vmul.f32 %v4642_v42, %v9492_v0  ;;  %v5667_v40 = vmul.f32 %v4643_v49, %v9495_v60  ;;  %v5668_v55 = vmul.f32 %v4644_v46, %v9498_v63  ;;  %v1576_v44 = vadd.f32 3.0, %v9522_v28  ;;  %v559_v53 = vld [vmem:[%s7688_s30 + $0xd28] sm:$0xff]  ;;  %v9570_v30 = vld [vmem:[%s7688_s30 + $0xd50] sm:$0xff]  ;;  %v565_v43 = vld [vmem:[%s7688_s30 + $0xd58] sm:$0xff] }
 0x240   : > { %6689 = vst [vmem:[%s7716_s17 + $0xcb8] sm:$0xff] %v5665_v45  ;;  %v5669_v1 = vmul.f32 %v4645_v50, %v549_v7  ;;  %v5670_v62 = vmul.f32 %v4646_v54, %v550_v14  ;;  %v5671_v61 = vmul.f32 %v4647_v52, %v551_v9  ;;  %v1577_v2 = vadd.f32 3.0, %v9525_v32  ;;  %v566_v42 = vld [vmem:[%s7688_s30 + $0xd60] sm:$0xff] }
 0x241   : > { %6690 = vst [vmem:[%s7716_s17 + $0xcc0] sm:$0xff] %v5666_v51  ;;  %6691 = vst [vmem:[%s7716_s17 + $0xcc8] sm:$0xff] %v5667_v40  ;;  %v2600_v0 = vmax.f32 %v1576_v44, 0.0  ;;  %v1578_v60 = vadd.f32 3.0, %v9528_v47  ;;  %v1579_v63 = vadd.f32 3.0, %v9531_v41  ;;  %v1580_v4 = vadd.f32 3.0, %v9534_v48 }
 0x242   : > { %6692 = vst [vmem:[%s7716_s17 + $0xcd0] sm:$0xff] %v5668_v55  ;;  %6693 = vst [vmem:[%s7716_s17 + $0xcd8] sm:$0xff] %v5669_v1  ;;  %v2601_v6 = vmax.f32 %v1577_v2, 0.0  ;;  %v1581_v3 = vadd.f32 3.0, %v557_v56  ;;  %v1582_v59 = vadd.f32 3.0, %v558_v58  ;;  %v1583_v5 = vadd.f32 3.0, %v559_v53 }
 0x243   : > { %6694 = vst [vmem:[%s7716_s17 + $0xce0] sm:$0xff] %v5670_v62  ;;  %6695 = vst [vmem:[%s7716_s17 + $0xce8] sm:$0xff] %v5671_v61  ;;  %v3624_v57 = vmin.f32 %v2600_v0, 6.0  ;;  %v2602_v7 = vmax.f32 %v1578_v60, 0.0  ;;  %v2603_v14 = vmax.f32 %v1579_v63, 0.0  ;;  %v2604_v9 = vmax.f32 %v1580_v4, 0.0 }
 0x244   : > { %v3625_v17 = vmin.f32 %v2601_v6, 6.0  ;;  %v2605_v11 = vmax.f32 %v1581_v3, 0.0  ;;  %v2606_v10 = vmax.f32 %v1582_v59, 0.0  ;;  %v2607_v18 = vmax.f32 %v1583_v5, 0.0  ;;  %v9594_v0 = vld [vmem:[%s7688_s30 + $0xd70] sm:$0xff]  ;;  %v9597_v3 = vld [vmem:[%s7688_s30 + $0xd78] sm:$0xff] }
 0x245   : > { %v4648_v13 = vmul.f32 0.16666667, %v3624_v57  ;;  %v3626_v16 = vmin.f32 %v2602_v7, 6.0  ;;  %v3627_v20 = vmin.f32 %v2603_v14, 6.0  ;;  %v3628_v22 = vmin.f32 %v2604_v9, 6.0  ;;  %v9600_v14 = vld [vmem:[%s7688_s30 + $0xd80] sm:$0xff] }
 0x246   : > { %v4649_v12 = vmul.f32 0.16666667, %v3625_v17  ;;  %v3629_v21 = vmin.f32 %v2605_v11, 6.0  ;;  %v3630_v8 = vmin.f32 %v2606_v10, 6.0  ;;  %v3631_v23 = vmin.f32 %v2607_v18, 6.0  ;;  %v9603_v9 = vld [vmem:[%s7688_s30 + $0xd88] sm:$0xff] }
 0x247   : > { %v5672_v27 = vmul.f32 %v4648_v13, %v9522_v28  ;;  %v4650_v26 = vmul.f32 0.16666667, %v3626_v16  ;;  %v4651_v31 = vmul.f32 0.16666667, %v3627_v20  ;;  %v4652_v34 = vmul.f32 0.16666667, %v3628_v22 }
 0x248   : > { %v5673_v29 = vmul.f32 %v4649_v12, %v9525_v32  ;;  %v4653_v36 = vmul.f32 0.16666667, %v3629_v21  ;;  %v4654_v38 = vmul.f32 0.16666667, %v3630_v8  ;;  %v4655_v33 = vmul.f32 0.16666667, %v3631_v23 }
 0x249   : > { %6696 = vst [vmem:[%s7716_s17 + $0xcf0] sm:$0xff] %v5672_v27  ;;  %v5674_v37 = vmul.f32 %v4650_v26, %v9528_v47  ;;  %v5675_v24 = vmul.f32 %v4651_v31, %v9531_v41  ;;  %v5676_v39 = vmul.f32 %v4652_v34, %v9534_v48  ;;  %v1584_v28 = vadd.f32 3.0, %v9558_v15  ;;  %v567_v32 = vld [vmem:[%s7688_s30 + $0xd68] sm:$0xff]  ;;  %v9606_v17 = vld [vmem:[%s7688_s30 + $0xd90] sm:$0xff]  ;;  %v573_v27 = vld [vmem:[%s7688_s30 + $0xd98] sm:$0xff] }
 0x24a   : > { %6697 = vst [vmem:[%s7716_s17 + $0xcf8] sm:$0xff] %v5673_v29  ;;  %v5677_v49 = vmul.f32 %v4653_v36, %v557_v56  ;;  %v5678_v46 = vmul.f32 %v4654_v38, %v558_v58  ;;  %v5679_v45 = vmul.f32 %v4655_v33, %v559_v53  ;;  %v1585_v50 = vadd.f32 3.0, %v9561_v19  ;;  %v574_v26 = vld [vmem:[%s7688_s30 + $0xda0] sm:$0xff] }
 0x24b   : > { %6698 = vst [vmem:[%s7716_s17 + $0xd00] sm:$0xff] %v5674_v37  ;;  %6699 = vst [vmem:[%s7716_s17 + $0xd08] sm:$0xff] %v5675_v24  ;;  %v2608_v47 = vmax.f32 %v1584_v28, 0.0  ;;  %v1586_v41 = vadd.f32 3.0, %v9564_v35  ;;  %v1587_v48 = vadd.f32 3.0, %v9567_v25  ;;  %v1588_v54 = vadd.f32 3.0, %v9570_v30 }
 0x24c   : > { %6700 = vst [vmem:[%s7716_s17 + $0xd10] sm:$0xff] %v5676_v39  ;;  %6701 = vst [vmem:[%s7716_s17 + $0xd18] sm:$0xff] %v5677_v49  ;;  %v2609_v52 = vmax.f32 %v1585_v50, 0.0  ;;  %v1589_v51 = vadd.f32 3.0, %v565_v43  ;;  %v1590_v40 = vadd.f32 3.0, %v566_v42  ;;  %v1591_v55 = vadd.f32 3.0, %v567_v32 }
 0x24d   : > { %6702 = vst [vmem:[%s7716_s17 + $0xd20] sm:$0xff] %v5678_v46  ;;  %6703 = vst [vmem:[%s7716_s17 + $0xd28] sm:$0xff] %v5679_v45  ;;  %v3632_v44 = vmin.f32 %v2608_v47, 6.0  ;;  %v2610_v56 = vmax.f32 %v1586_v41, 0.0  ;;  %v2611_v58 = vmax.f32 %v1587_v48, 0.0  ;;  %v2612_v53 = vmax.f32 %v1588_v54, 0.0 }
 0x24e   : > { %v3633_v1 = vmin.f32 %v2609_v52, 6.0  ;;  %v2613_v62 = vmax.f32 %v1589_v51, 0.0  ;;  %v2614_v61 = vmax.f32 %v1590_v40, 0.0  ;;  %v2615_v2 = vmax.f32 %v1591_v55, 0.0  ;;  %v9630_v47 = vld [vmem:[%s7688_s30 + $0xdb0] sm:$0xff]  ;;  %v9633_v51 = vld [vmem:[%s7688_s30 + $0xdb8] sm:$0xff] }
 0x24f   : > { %v4656_v60 = vmul.f32 0.16666667, %v3632_v44  ;;  %v3634_v63 = vmin.f32 %v2610_v56, 6.0  ;;  %v3635_v4 = vmin.f32 %v2611_v58, 6.0  ;;  %v3636_v6 = vmin.f32 %v2612_v53, 6.0  ;;  %v9636_v58 = vld [vmem:[%s7688_s30 + $0xdc0] sm:$0xff] }
 0x250   : > { %v4657_v59 = vmul.f32 0.16666667, %v3633_v1  ;;  %v3637_v5 = vmin.f32 %v2613_v62, 6.0  ;;  %v3638_v57 = vmin.f32 %v2614_v61, 6.0  ;;  %v3639_v7 = vmin.f32 %v2615_v2, 6.0  ;;  %v9639_v53 = vld [vmem:[%s7688_s30 + $0xdc8] sm:$0xff] }
 0x251   : > { %v5680_v11 = vmul.f32 %v4656_v60, %v9558_v15  ;;  %v4658_v10 = vmul.f32 0.16666667, %v3634_v63  ;;  %v4659_v18 = vmul.f32 0.16666667, %v3635_v4  ;;  %v4660_v13 = vmul.f32 0.16666667, %v3636_v6 }
 0x252   : > { %v5681_v16 = vmul.f32 %v4657_v59, %v9561_v19  ;;  %v4661_v20 = vmul.f32 0.16666667, %v3637_v5  ;;  %v4662_v22 = vmul.f32 0.16666667, %v3638_v57  ;;  %v4663_v12 = vmul.f32 0.16666667, %v3639_v7 }
 0x253   : > { %6704 = vst [vmem:[%s7716_s17 + $0xd30] sm:$0xff] %v5680_v11  ;;  %v5682_v21 = vmul.f32 %v4658_v10, %v9564_v35  ;;  %v5683_v8 = vmul.f32 %v4659_v18, %v9567_v25  ;;  %v5684_v23 = vmul.f32 %v4660_v13, %v9570_v30  ;;  %v1592_v15 = vadd.f32 3.0, %v9594_v0  ;;  %v575_v19 = vld [vmem:[%s7688_s30 + $0xda8] sm:$0xff]  ;;  %v9642_v1 = vld [vmem:[%s7688_s30 + $0xdd0] sm:$0xff]  ;;  %v581_v11 = vld [vmem:[%s7688_s30 + $0xdd8] sm:$0xff] }
 0x254   : > { %6705 = vst [vmem:[%s7716_s17 + $0xd38] sm:$0xff] %v5681_v16  ;;  %v5685_v31 = vmul.f32 %v4661_v20, %v565_v43  ;;  %v5686_v34 = vmul.f32 %v4662_v22, %v566_v42  ;;  %v5687_v29 = vmul.f32 %v4663_v12, %v567_v32  ;;  %v1593_v36 = vadd.f32 3.0, %v9597_v3  ;;  %v582_v10 = vld [vmem:[%s7688_s30 + $0xde0] sm:$0xff] }
 0x255   : > { %6706 = vst [vmem:[%s7716_s17 + $0xd40] sm:$0xff] %v5682_v21  ;;  %6707 = vst [vmem:[%s7716_s17 + $0xd48] sm:$0xff] %v5683_v8  ;;  %v2616_v35 = vmax.f32 %v1592_v15, 0.0  ;;  %v1594_v25 = vadd.f32 3.0, %v9600_v14  ;;  %v1595_v30 = vadd.f32 3.0, %v9603_v9  ;;  %v1596_v38 = vadd.f32 3.0, %v9606_v17 }
 0x256   : > { %6708 = vst [vmem:[%s7716_s17 + $0xd50] sm:$0xff] %v5684_v23  ;;  %6709 = vst [vmem:[%s7716_s17 + $0xd58] sm:$0xff] %v5685_v31  ;;  %v2617_v33 = vmax.f32 %v1593_v36, 0.0  ;;  %v1597_v37 = vadd.f32 3.0, %v573_v27  ;;  %v1598_v24 = vadd.f32 3.0, %v574_v26  ;;  %v1599_v39 = vadd.f32 3.0, %v575_v19 }
 0x257   : > { %6710 = vst [vmem:[%s7716_s17 + $0xd60] sm:$0xff] %v5686_v34  ;;  %6711 = vst [vmem:[%s7716_s17 + $0xd68] sm:$0xff] %v5687_v29  ;;  %v3640_v28 = vmin.f32 %v2616_v35, 6.0  ;;  %v2618_v43 = vmax.f32 %v1594_v25, 0.0  ;;  %v2619_v42 = vmax.f32 %v1595_v30, 0.0  ;;  %v2620_v32 = vmax.f32 %v1596_v38, 0.0 }
 0x258   : > { %v3641_v49 = vmin.f32 %v2617_v33, 6.0  ;;  %v2621_v46 = vmax.f32 %v1597_v37, 0.0  ;;  %v2622_v45 = vmax.f32 %v1598_v24, 0.0  ;;  %v2623_v50 = vmax.f32 %v1599_v39, 0.0  ;;  %v9666_v35 = vld [vmem:[%s7688_s30 + $0xdf0] sm:$0xff]  ;;  %v9669_v37 = vld [vmem:[%s7688_s30 + $0xdf8] sm:$0xff] }
 0x259   : > { %v4664_v41 = vmul.f32 0.16666667, %v3640_v28  ;;  %v3642_v48 = vmin.f32 %v2618_v43, 6.0  ;;  %v3643_v54 = vmin.f32 %v2619_v42, 6.0  ;;  %v3644_v52 = vmin.f32 %v2620_v32, 6.0  ;;  %v9672_v42 = vld [vmem:[%s7688_s30 + $0xe00] sm:$0xff] }
 0x25a   : > { %v4665_v40 = vmul.f32 0.16666667, %v3641_v49  ;;  %v3645_v55 = vmin.f32 %v2621_v46, 6.0  ;;  %v3646_v44 = vmin.f32 %v2622_v45, 6.0  ;;  %v3647_v56 = vmin.f32 %v2623_v50, 6.0  ;;  %v9675_v32 = vld [vmem:[%s7688_s30 + $0xe08] sm:$0xff] }
 0x25b   : > { %v5688_v62 = vmul.f32 %v4664_v41, %v9594_v0  ;;  %v4666_v61 = vmul.f32 0.16666667, %v3642_v48  ;;  %v4667_v2 = vmul.f32 0.16666667, %v3643_v54  ;;  %v4668_v60 = vmul.f32 0.16666667, %v3644_v52 }
 0x25c   : > { %v5689_v63 = vmul.f32 %v4665_v40, %v9597_v3  ;;  %v4669_v4 = vmul.f32 0.16666667, %v3645_v55  ;;  %v4670_v6 = vmul.f32 0.16666667, %v3646_v44  ;;  %v4671_v59 = vmul.f32 0.16666667, %v3647_v56 }
 0x25d   : > { %6712 = vst [vmem:[%s7716_s17 + $0xd70] sm:$0xff] %v5688_v62  ;;  %v5690_v5 = vmul.f32 %v4666_v61, %v9600_v14  ;;  %v5691_v57 = vmul.f32 %v4667_v2, %v9603_v9  ;;  %v5692_v7 = vmul.f32 %v4668_v60, %v9606_v17  ;;  %v1600_v0 = vadd.f32 3.0, %v9630_v47  ;;  %v583_v3 = vld [vmem:[%s7688_s30 + $0xde8] sm:$0xff]  ;;  %v9678_v49 = vld [vmem:[%s7688_s30 + $0xe10] sm:$0xff]  ;;  %v589_v62 = vld [vmem:[%s7688_s30 + $0xe18] sm:$0xff] }
 0x25e   : > { %6713 = vst [vmem:[%s7716_s17 + $0xd78] sm:$0xff] %v5689_v63  ;;  %v5693_v18 = vmul.f32 %v4669_v4, %v573_v27  ;;  %v5694_v13 = vmul.f32 %v4670_v6, %v574_v26  ;;  %v5695_v16 = vmul.f32 %v4671_v59, %v575_v19  ;;  %v1601_v20 = vadd.f32 3.0, %v9633_v51  ;;  %v590_v61 = vld [vmem:[%s7688_s30 + $0xe20] sm:$0xff] }
 0x25f   : > { %6714 = vst [vmem:[%s7716_s17 + $0xd80] sm:$0xff] %v5690_v5  ;;  %6715 = vst [vmem:[%s7716_s17 + $0xd88] sm:$0xff] %v5691_v57  ;;  %v2624_v14 = vmax.f32 %v1600_v0, 0.0  ;;  %v1602_v9 = vadd.f32 3.0, %v9636_v58  ;;  %v1603_v17 = vadd.f32 3.0, %v9639_v53  ;;  %v1604_v22 = vadd.f32 3.0, %v9642_v1 }
 0x260   : > { %6716 = vst [vmem:[%s7716_s17 + $0xd90] sm:$0xff] %v5692_v7  ;;  %6717 = vst [vmem:[%s7716_s17 + $0xd98] sm:$0xff] %v5693_v18  ;;  %v2625_v12 = vmax.f32 %v1601_v20, 0.0  ;;  %v1605_v21 = vadd.f32 3.0, %v581_v11  ;;  %v1606_v8 = vadd.f32 3.0, %v582_v10  ;;  %v1607_v23 = vadd.f32 3.0, %v583_v3 }
 0x261   : > { %6718 = vst [vmem:[%s7716_s17 + $0xda0] sm:$0xff] %v5694_v13  ;;  %6719 = vst [vmem:[%s7716_s17 + $0xda8] sm:$0xff] %v5695_v16  ;;  %v3648_v15 = vmin.f32 %v2624_v14, 6.0  ;;  %v2626_v27 = vmax.f32 %v1602_v9, 0.0  ;;  %v2627_v26 = vmax.f32 %v1603_v17, 0.0  ;;  %v2628_v19 = vmax.f32 %v1604_v22, 0.0 }
 0x262   : > { %v3649_v31 = vmin.f32 %v2625_v12, 6.0  ;;  %v2629_v34 = vmax.f32 %v1605_v21, 0.0  ;;  %v2630_v29 = vmax.f32 %v1606_v8, 0.0  ;;  %v2631_v36 = vmax.f32 %v1607_v23, 0.0  ;;  %v9702_v14 = vld [vmem:[%s7688_s30 + $0xe30] sm:$0xff]  ;;  %v9705_v21 = vld [vmem:[%s7688_s30 + $0xe38] sm:$0xff] }
 0x263   : > { %v4672_v25 = vmul.f32 0.16666667, %v3648_v15  ;;  %v3650_v30 = vmin.f32 %v2626_v27, 6.0  ;;  %v3651_v38 = vmin.f32 %v2627_v26, 6.0  ;;  %v3652_v33 = vmin.f32 %v2628_v19, 6.0  ;;  %v9708_v26 = vld [vmem:[%s7688_s30 + $0xe40] sm:$0xff] }
 0x264   : > { %v4673_v24 = vmul.f32 0.16666667, %v3649_v31  ;;  %v3653_v39 = vmin.f32 %v2629_v34, 6.0  ;;  %v3654_v28 = vmin.f32 %v2630_v29, 6.0  ;;  %v3655_v43 = vmin.f32 %v2631_v36, 6.0  ;;  %v9711_v19 = vld [vmem:[%s7688_s30 + $0xe48] sm:$0xff] }
 0x265   : > { %v5696_v46 = vmul.f32 %v4672_v25, %v9630_v47  ;;  %v4674_v45 = vmul.f32 0.16666667, %v3650_v30  ;;  %v4675_v50 = vmul.f32 0.16666667, %v3651_v38  ;;  %v4676_v41 = vmul.f32 0.16666667, %v3652_v33 }
 0x266   : > { %v5697_v48 = vmul.f32 %v4673_v24, %v9633_v51  ;;  %v4677_v54 = vmul.f32 0.16666667, %v3653_v39  ;;  %v4678_v52 = vmul.f32 0.16666667, %v3654_v28  ;;  %v4679_v40 = vmul.f32 0.16666667, %v3655_v43 }
 0x267   : > { %6720 = vst [vmem:[%s7716_s17 + $0xdb0] sm:$0xff] %v5696_v46  ;;  %v5698_v55 = vmul.f32 %v4674_v45, %v9636_v58  ;;  %v5699_v44 = vmul.f32 %v4675_v50, %v9639_v53  ;;  %v5700_v56 = vmul.f32 %v4676_v41, %v9642_v1  ;;  %v1608_v47 = vadd.f32 3.0, %v9666_v35  ;;  %v591_v51 = vld [vmem:[%s7688_s30 + $0xe28] sm:$0xff]  ;;  %v9714_v31 = vld [vmem:[%s7688_s30 + $0xe50] sm:$0xff]  ;;  %v597_v46 = vld [vmem:[%s7688_s30 + $0xe58] sm:$0xff] }
 0x268   : > { %6721 = vst [vmem:[%s7716_s17 + $0xdb8] sm:$0xff] %v5697_v48  ;;  %v5701_v2 = vmul.f32 %v4677_v54, %v581_v11  ;;  %v5702_v60 = vmul.f32 %v4678_v52, %v582_v10  ;;  %v5703_v63 = vmul.f32 %v4679_v40, %v583_v3  ;;  %v1609_v4 = vadd.f32 3.0, %v9669_v37  ;;  %v598_v45 = vld [vmem:[%s7688_s30 + $0xe60] sm:$0xff] }
 0x269   : > { %6722 = vst [vmem:[%s7716_s17 + $0xdc0] sm:$0xff] %v5698_v55  ;;  %6723 = vst [vmem:[%s7716_s17 + $0xdc8] sm:$0xff] %v5699_v44  ;;  %v2632_v58 = vmax.f32 %v1608_v47, 0.0  ;;  %v1610_v53 = vadd.f32 3.0, %v9672_v42  ;;  %v1611_v1 = vadd.f32 3.0, %v9675_v32  ;;  %v1612_v6 = vadd.f32 3.0, %v9678_v49 }
 0x26a   : > { %6724 = vst [vmem:[%s7716_s17 + $0xdd0] sm:$0xff] %v5700_v56  ;;  %6725 = vst [vmem:[%s7716_s17 + $0xdd8] sm:$0xff] %v5701_v2  ;;  %v2633_v59 = vmax.f32 %v1609_v4, 0.0  ;;  %v1613_v5 = vadd.f32 3.0, %v589_v62  ;;  %v1614_v57 = vadd.f32 3.0, %v590_v61  ;;  %v1615_v7 = vadd.f32 3.0, %v591_v51 }
 0x26b   : > { %6726 = vst [vmem:[%s7716_s17 + $0xde0] sm:$0xff] %v5702_v60  ;;  %6727 = vst [vmem:[%s7716_s17 + $0xde8] sm:$0xff] %v5703_v63  ;;  %v3656_v0 = vmin.f32 %v2632_v58, 6.0  ;;  %v2634_v11 = vmax.f32 %v1610_v53, 0.0  ;;  %v2635_v10 = vmax.f32 %v1611_v1, 0.0  ;;  %v2636_v3 = vmax.f32 %v1612_v6, 0.0 }
 0x26c   : > { %v3657_v18 = vmin.f32 %v2633_v59, 6.0  ;;  %v2637_v13 = vmax.f32 %v1613_v5, 0.0  ;;  %v2638_v16 = vmax.f32 %v1614_v57, 0.0  ;;  %v2639_v20 = vmax.f32 %v1615_v7, 0.0  ;;  %v9738_v58 = vld [vmem:[%s7688_s30 + $0xe70] sm:$0xff]  ;;  %v9741_v5 = vld [vmem:[%s7688_s30 + $0xe78] sm:$0xff] }
 0x26d   : > { %v4680_v9 = vmul.f32 0.16666667, %v3656_v0  ;;  %v3658_v17 = vmin.f32 %v2634_v11, 6.0  ;;  %v3659_v22 = vmin.f32 %v2635_v10, 6.0  ;;  %v3660_v12 = vmin.f32 %v2636_v3, 6.0  ;;  %v9744_v10 = vld [vmem:[%s7688_s30 + $0xe80] sm:$0xff] }
 0x26e   : > { %v4681_v8 = vmul.f32 0.16666667, %v3657_v18  ;;  %v3661_v23 = vmin.f32 %v2637_v13, 6.0  ;;  %v3662_v15 = vmin.f32 %v2638_v16, 6.0  ;;  %v3663_v27 = vmin.f32 %v2639_v20, 6.0  ;;  %v9747_v3 = vld [vmem:[%s7688_s30 + $0xe88] sm:$0xff] }
 0x26f   : > { %v5704_v34 = vmul.f32 %v4680_v9, %v9666_v35  ;;  %v4682_v29 = vmul.f32 0.16666667, %v3658_v17  ;;  %v4683_v36 = vmul.f32 0.16666667, %v3659_v22  ;;  %v4684_v25 = vmul.f32 0.16666667, %v3660_v12 }
 0x270   : > { %v5705_v30 = vmul.f32 %v4681_v8, %v9669_v37  ;;  %v4685_v38 = vmul.f32 0.16666667, %v3661_v23  ;;  %v4686_v33 = vmul.f32 0.16666667, %v3662_v15  ;;  %v4687_v24 = vmul.f32 0.16666667, %v3663_v27 }
 0x271   : > { %6728 = vst [vmem:[%s7716_s17 + $0xdf0] sm:$0xff] %v5704_v34  ;;  %v5706_v39 = vmul.f32 %v4682_v29, %v9672_v42  ;;  %v5707_v28 = vmul.f32 %v4683_v36, %v9675_v32  ;;  %v5708_v43 = vmul.f32 %v4684_v25, %v9678_v49  ;;  %v1616_v35 = vadd.f32 3.0, %v9702_v14  ;;  %v599_v37 = vld [vmem:[%s7688_s30 + $0xe68] sm:$0xff]  ;;  %v9750_v18 = vld [vmem:[%s7688_s30 + $0xe90] sm:$0xff]  ;;  %v605_v34 = vld [vmem:[%s7688_s30 + $0xe98] sm:$0xff] }
 0x272   : > { %6729 = vst [vmem:[%s7716_s17 + $0xdf8] sm:$0xff] %v5705_v30  ;;  %v5709_v50 = vmul.f32 %v4685_v38, %v589_v62  ;;  %v5710_v41 = vmul.f32 %v4686_v33, %v590_v61  ;;  %v5711_v48 = vmul.f32 %v4687_v24, %v591_v51  ;;  %v1617_v54 = vadd.f32 3.0, %v9705_v21  ;;  %v606_v29 = vld [vmem:[%s7688_s30 + $0xea0] sm:$0xff] }
 0x273   : > { %6730 = vst [vmem:[%s7716_s17 + $0xe00] sm:$0xff] %v5706_v39  ;;  %6731 = vst [vmem:[%s7716_s17 + $0xe08] sm:$0xff] %v5707_v28  ;;  %v2640_v42 = vmax.f32 %v1616_v35, 0.0  ;;  %v1618_v32 = vadd.f32 3.0, %v9708_v26  ;;  %v1619_v49 = vadd.f32 3.0, %v9711_v19  ;;  %v1620_v52 = vadd.f32 3.0, %v9714_v31 }
 0x274   : > { %6732 = vst [vmem:[%s7716_s17 + $0xe10] sm:$0xff] %v5708_v43  ;;  %6733 = vst [vmem:[%s7716_s17 + $0xe18] sm:$0xff] %v5709_v50  ;;  %v2641_v40 = vmax.f32 %v1617_v54, 0.0  ;;  %v1621_v55 = vadd.f32 3.0, %v597_v46  ;;  %v1622_v44 = vadd.f32 3.0, %v598_v45  ;;  %v1623_v56 = vadd.f32 3.0, %v599_v37 }
 0x275   : > { %6734 = vst [vmem:[%s7716_s17 + $0xe20] sm:$0xff] %v5710_v41  ;;  %6735 = vst [vmem:[%s7716_s17 + $0xe28] sm:$0xff] %v5711_v48  ;;  %v3664_v47 = vmin.f32 %v2640_v42, 6.0  ;;  %v2642_v62 = vmax.f32 %v1618_v32, 0.0  ;;  %v2643_v61 = vmax.f32 %v1619_v49, 0.0  ;;  %v2644_v51 = vmax.f32 %v1620_v52, 0.0 }
 0x276   : > { %v3665_v2 = vmin.f32 %v2641_v40, 6.0  ;;  %v2645_v60 = vmax.f32 %v1621_v55, 0.0  ;;  %v2646_v63 = vmax.f32 %v1622_v44, 0.0  ;;  %v2647_v4 = vmax.f32 %v1623_v56, 0.0  ;;  %v9774_v42 = vld [vmem:[%s7688_s30 + $0xeb0] sm:$0xff]  ;;  %v9777_v55 = vld [vmem:[%s7688_s30 + $0xeb8] sm:$0xff] }
 0x277   : > { %v4688_v53 = vmul.f32 0.16666667, %v3664_v47  ;;  %v3666_v1 = vmin.f32 %v2642_v62, 6.0  ;;  %v3667_v6 = vmin.f32 %v2643_v61, 6.0  ;;  %v3668_v59 = vmin.f32 %v2644_v51, 6.0  ;;  %v9780_v61 = vld [vmem:[%s7688_s30 + $0xec0] sm:$0xff] }
 0x278   : > { %v4689_v57 = vmul.f32 0.16666667, %v3665_v2  ;;  %v3669_v7 = vmin.f32 %v2645_v60, 6.0  ;;  %v3670_v0 = vmin.f32 %v2646_v63, 6.0  ;;  %v3671_v11 = vmin.f32 %v2647_v4, 6.0  ;;  %v9783_v51 = vld [vmem:[%s7688_s30 + $0xec8] sm:$0xff] }
 0x279   : > { %v5712_v13 = vmul.f32 %v4688_v53, %v9702_v14  ;;  %v4690_v16 = vmul.f32 0.16666667, %v3666_v1  ;;  %v4691_v20 = vmul.f32 0.16666667, %v3667_v6  ;;  %v4692_v9 = vmul.f32 0.16666667, %v3668_v59 }
 0x27a   : > { %v5713_v17 = vmul.f32 %v4689_v57, %v9705_v21  ;;  %v4693_v22 = vmul.f32 0.16666667, %v3669_v7  ;;  %v4694_v12 = vmul.f32 0.16666667, %v3670_v0  ;;  %v4695_v8 = vmul.f32 0.16666667, %v3671_v11 }
 0x27b   : > { %6736 = vst [vmem:[%s7716_s17 + $0xe30] sm:$0xff] %v5712_v13  ;;  %v5714_v23 = vmul.f32 %v4690_v16, %v9708_v26  ;;  %v5715_v15 = vmul.f32 %v4691_v20, %v9711_v19  ;;  %v5716_v27 = vmul.f32 %v4692_v9, %v9714_v31  ;;  %v1624_v14 = vadd.f32 3.0, %v9738_v58  ;;  %v607_v21 = vld [vmem:[%s7688_s30 + $0xea8] sm:$0xff]  ;;  %v9786_v2 = vld [vmem:[%s7688_s30 + $0xed0] sm:$0xff]  ;;  %v613_v13 = vld [vmem:[%s7688_s30 + $0xed8] sm:$0xff] }
 0x27c   : > { %6737 = vst [vmem:[%s7716_s17 + $0xe38] sm:$0xff] %v5713_v17  ;;  %v5717_v36 = vmul.f32 %v4693_v22, %v597_v46  ;;  %v5718_v25 = vmul.f32 %v4694_v12, %v598_v45  ;;  %v5719_v30 = vmul.f32 %v4695_v8, %v599_v37  ;;  %v1625_v38 = vadd.f32 3.0, %v9741_v5  ;;  %v614_v16 = vld [vmem:[%s7688_s30 + $0xee0] sm:$0xff] }
 0x27d   : > { %6738 = vst [vmem:[%s7716_s17 + $0xe40] sm:$0xff] %v5714_v23  ;;  %6739 = vst [vmem:[%s7716_s17 + $0xe48] sm:$0xff] %v5715_v15  ;;  %v2648_v26 = vmax.f32 %v1624_v14, 0.0  ;;  %v1626_v19 = vadd.f32 3.0, %v9744_v10  ;;  %v1627_v31 = vadd.f32 3.0, %v9747_v3  ;;  %v1628_v33 = vadd.f32 3.0, %v9750_v18 }
 0x27e   : > { %6740 = vst [vmem:[%s7716_s17 + $0xe50] sm:$0xff] %v5716_v27  ;;  %6741 = vst [vmem:[%s7716_s17 + $0xe58] sm:$0xff] %v5717_v36  ;;  %v2649_v24 = vmax.f32 %v1625_v38, 0.0  ;;  %v1629_v39 = vadd.f32 3.0, %v605_v34  ;;  %v1630_v28 = vadd.f32 3.0, %v606_v29  ;;  %v1631_v43 = vadd.f32 3.0, %v607_v21 }
 0x27f   : > { %6742 = vst [vmem:[%s7716_s17 + $0xe60] sm:$0xff] %v5718_v25  ;;  %6743 = vst [vmem:[%s7716_s17 + $0xe68] sm:$0xff] %v5719_v30  ;;  %v3672_v35 = vmin.f32 %v2648_v26, 6.0  ;;  %v2650_v46 = vmax.f32 %v1626_v19, 0.0  ;;  %v2651_v45 = vmax.f32 %v1627_v31, 0.0  ;;  %v2652_v37 = vmax.f32 %v1628_v33, 0.0 }
 0x280   : > { %v3673_v50 = vmin.f32 %v2649_v24, 6.0  ;;  %v2653_v41 = vmax.f32 %v1629_v39, 0.0  ;;  %v2654_v48 = vmax.f32 %v1630_v28, 0.0  ;;  %v2655_v54 = vmax.f32 %v1631_v43, 0.0  ;;  %v9810_v26 = vld [vmem:[%s7688_s30 + $0xef0] sm:$0xff]  ;;  %v9813_v39 = vld [vmem:[%s7688_s30 + $0xef8] sm:$0xff] }
 0x281   : > { %v4696_v32 = vmul.f32 0.16666667, %v3672_v35  ;;  %v3674_v49 = vmin.f32 %v2650_v46, 6.0  ;;  %v3675_v52 = vmin.f32 %v2651_v45, 6.0  ;;  %v3676_v40 = vmin.f32 %v2652_v37, 6.0  ;;  %v9816_v45 = vld [vmem:[%s7688_s30 + $0xf00] sm:$0xff] }
 0x282   : > { %v4697_v44 = vmul.f32 0.16666667, %v3673_v50  ;;  %v3677_v56 = vmin.f32 %v2653_v41, 6.0  ;;  %v3678_v47 = vmin.f32 %v2654_v48, 6.0  ;;  %v3679_v62 = vmin.f32 %v2655_v54, 6.0  ;;  %v9819_v37 = vld [vmem:[%s7688_s30 + $0xf08] sm:$0xff] }
 0x283   : > { %v5720_v60 = vmul.f32 %v4696_v32, %v9738_v58  ;;  %v4698_v63 = vmul.f32 0.16666667, %v3674_v49  ;;  %v4699_v4 = vmul.f32 0.16666667, %v3675_v52  ;;  %v4700_v53 = vmul.f32 0.16666667, %v3676_v40 }
 0x284   : > { %v5721_v1 = vmul.f32 %v4697_v44, %v9741_v5  ;;  %v4701_v6 = vmul.f32 0.16666667, %v3677_v56  ;;  %v4702_v59 = vmul.f32 0.16666667, %v3678_v47  ;;  %v4703_v57 = vmul.f32 0.16666667, %v3679_v62 }
 0x285   : > { %6744 = vst [vmem:[%s7716_s17 + $0xe70] sm:$0xff] %v5720_v60  ;;  %v5722_v7 = vmul.f32 %v4698_v63, %v9744_v10  ;;  %v5723_v0 = vmul.f32 %v4699_v4, %v9747_v3  ;;  %v5724_v11 = vmul.f32 %v4700_v53, %v9750_v18  ;;  %v1632_v58 = vadd.f32 3.0, %v9774_v42  ;;  %v615_v5 = vld [vmem:[%s7688_s30 + $0xee8] sm:$0xff]  ;;  %v9822_v50 = vld [vmem:[%s7688_s30 + $0xf10] sm:$0xff]  ;;  %v621_v60 = vld [vmem:[%s7688_s30 + $0xf18] sm:$0xff] }
 0x286   : > { %6745 = vst [vmem:[%s7716_s17 + $0xe78] sm:$0xff] %v5721_v1  ;;  %v5725_v20 = vmul.f32 %v4701_v6, %v605_v34  ;;  %v5726_v9 = vmul.f32 %v4702_v59, %v606_v29  ;;  %v5727_v17 = vmul.f32 %v4703_v57, %v607_v21  ;;  %v1633_v22 = vadd.f32 3.0, %v9777_v55  ;;  %v622_v63 = vld [vmem:[%s7688_s30 + $0xf20] sm:$0xff] }
 0x287   : > { %6746 = vst [vmem:[%s7716_s17 + $0xe80] sm:$0xff] %v5722_v7  ;;  %6747 = vst [vmem:[%s7716_s17 + $0xe88] sm:$0xff] %v5723_v0  ;;  %v2656_v10 = vmax.f32 %v1632_v58, 0.0  ;;  %v1634_v3 = vadd.f32 3.0, %v9780_v61  ;;  %v1635_v18 = vadd.f32 3.0, %v9783_v51  ;;  %v1636_v12 = vadd.f32 3.0, %v9786_v2 }
 0x288   : > { %6748 = vst [vmem:[%s7716_s17 + $0xe90] sm:$0xff] %v5724_v11  ;;  %6749 = vst [vmem:[%s7716_s17 + $0xe98] sm:$0xff] %v5725_v20  ;;  %v2657_v8 = vmax.f32 %v1633_v22, 0.0  ;;  %v1637_v23 = vadd.f32 3.0, %v613_v13  ;;  %v1638_v15 = vadd.f32 3.0, %v614_v16  ;;  %v1639_v27 = vadd.f32 3.0, %v615_v5 }
 0x289   : > { %6750 = vst [vmem:[%s7716_s17 + $0xea0] sm:$0xff] %v5726_v9  ;;  %6751 = vst [vmem:[%s7716_s17 + $0xea8] sm:$0xff] %v5727_v17  ;;  %v3680_v14 = vmin.f32 %v2656_v10, 6.0  ;;  %v2658_v34 = vmax.f32 %v1634_v3, 0.0  ;;  %v2659_v29 = vmax.f32 %v1635_v18, 0.0  ;;  %v2660_v21 = vmax.f32 %v1636_v12, 0.0 }
 0x28a   : > { %v3681_v36 = vmin.f32 %v2657_v8, 6.0  ;;  %v2661_v25 = vmax.f32 %v1637_v23, 0.0  ;;  %v2662_v30 = vmax.f32 %v1638_v15, 0.0  ;;  %v2663_v38 = vmax.f32 %v1639_v27, 0.0  ;;  %v9846_v10 = vld [vmem:[%s7688_s30 + $0xf30] sm:$0xff]  ;;  %v9849_v23 = vld [vmem:[%s7688_s30 + $0xf38] sm:$0xff] }
 0x28b   : > { %v4704_v19 = vmul.f32 0.16666667, %v3680_v14  ;;  %v3682_v31 = vmin.f32 %v2658_v34, 6.0  ;;  %v3683_v33 = vmin.f32 %v2659_v29, 6.0  ;;  %v3684_v24 = vmin.f32 %v2660_v21, 6.0  ;;  %v9852_v29 = vld [vmem:[%s7688_s30 + $0xf40] sm:$0xff] }
 0x28c   : > { %v4705_v28 = vmul.f32 0.16666667, %v3681_v36  ;;  %v3685_v43 = vmin.f32 %v2661_v25, 6.0  ;;  %v3686_v35 = vmin.f32 %v2662_v30, 6.0  ;;  %v3687_v46 = vmin.f32 %v2663_v38, 6.0  ;;  %v9855_v21 = vld [vmem:[%s7688_s30 + $0xf48] sm:$0xff] }
 0x28d   : > { %v5728_v41 = vmul.f32 %v4704_v19, %v9774_v42  ;;  %v4706_v48 = vmul.f32 0.16666667, %v3682_v31  ;;  %v4707_v54 = vmul.f32 0.16666667, %v3683_v33  ;;  %v4708_v32 = vmul.f32 0.16666667, %v3684_v24 }
 0x28e   : > { %v5729_v49 = vmul.f32 %v4705_v28, %v9777_v55  ;;  %v4709_v52 = vmul.f32 0.16666667, %v3685_v43  ;;  %v4710_v40 = vmul.f32 0.16666667, %v3686_v35  ;;  %v4711_v44 = vmul.f32 0.16666667, %v3687_v46 }
 0x28f   : > { %6752 = vst [vmem:[%s7716_s17 + $0xeb0] sm:$0xff] %v5728_v41  ;;  %v5730_v56 = vmul.f32 %v4706_v48, %v9780_v61  ;;  %v5731_v47 = vmul.f32 %v4707_v54, %v9783_v51  ;;  %v5732_v62 = vmul.f32 %v4708_v32, %v9786_v2  ;;  %v1640_v42 = vadd.f32 3.0, %v9810_v26  ;;  %v623_v55 = vld [vmem:[%s7688_s30 + $0xf28] sm:$0xff]  ;;  %v9858_v36 = vld [vmem:[%s7688_s30 + $0xf50] sm:$0xff]  ;;  %v629_v41 = vld [vmem:[%s7688_s30 + $0xf58] sm:$0xff] }
 0x290   : > { %6753 = vst [vmem:[%s7716_s17 + $0xeb8] sm:$0xff] %v5729_v49  ;;  %v5733_v4 = vmul.f32 %v4709_v52, %v613_v13  ;;  %v5734_v53 = vmul.f32 %v4710_v40, %v614_v16  ;;  %v5735_v1 = vmul.f32 %v4711_v44, %v615_v5  ;;  %v1641_v6 = vadd.f32 3.0, %v9813_v39  ;;  %v630_v48 = vld [vmem:[%s7688_s30 + $0xf60] sm:$0xff] }
 0x291   : > { %6754 = vst [vmem:[%s7716_s17 + $0xec0] sm:$0xff] %v5730_v56  ;;  %6755 = vst [vmem:[%s7716_s17 + $0xec8] sm:$0xff] %v5731_v47  ;;  %v2664_v61 = vmax.f32 %v1640_v42, 0.0  ;;  %v1642_v51 = vadd.f32 3.0, %v9816_v45  ;;  %v1643_v2 = vadd.f32 3.0, %v9819_v37  ;;  %v1644_v59 = vadd.f32 3.0, %v9822_v50 }
 0x292   : > { %6756 = vst [vmem:[%s7716_s17 + $0xed0] sm:$0xff] %v5732_v62  ;;  %6757 = vst [vmem:[%s7716_s17 + $0xed8] sm:$0xff] %v5733_v4  ;;  %v2665_v57 = vmax.f32 %v1641_v6, 0.0  ;;  %v1645_v7 = vadd.f32 3.0, %v621_v60  ;;  %v1646_v0 = vadd.f32 3.0, %v622_v63  ;;  %v1647_v11 = vadd.f32 3.0, %v623_v55 }
 0x293   : > { %6758 = vst [vmem:[%s7716_s17 + $0xee0] sm:$0xff] %v5734_v53  ;;  %6759 = vst [vmem:[%s7716_s17 + $0xee8] sm:$0xff] %v5735_v1  ;;  %v3688_v58 = vmin.f32 %v2664_v61, 6.0  ;;  %v2666_v13 = vmax.f32 %v1642_v51, 0.0  ;;  %v2667_v16 = vmax.f32 %v1643_v2, 0.0  ;;  %v2668_v5 = vmax.f32 %v1644_v59, 0.0 }
 0x294   : > { %v3689_v20 = vmin.f32 %v2665_v57, 6.0  ;;  %v2669_v9 = vmax.f32 %v1645_v7, 0.0  ;;  %v2670_v17 = vmax.f32 %v1646_v0, 0.0  ;;  %v2671_v22 = vmax.f32 %v1647_v11, 0.0  ;;  %v9882_v61 = vld [vmem:[%s7688_s30 + $0xf70] sm:$0xff]  ;;  %v9885_v7 = vld [vmem:[%s7688_s30 + $0xf78] sm:$0xff] }
 0x295   : > { %v4712_v3 = vmul.f32 0.16666667, %v3688_v58  ;;  %v3690_v18 = vmin.f32 %v2666_v13, 6.0  ;;  %v3691_v12 = vmin.f32 %v2667_v16, 6.0  ;;  %v3692_v8 = vmin.f32 %v2668_v5, 6.0  ;;  %v9888_v16 = vld [vmem:[%s7688_s30 + $0xf80] sm:$0xff] }
 0x296   : > { %v4713_v15 = vmul.f32 0.16666667, %v3689_v20  ;;  %v3693_v27 = vmin.f32 %v2669_v9, 6.0  ;;  %v3694_v14 = vmin.f32 %v2670_v17, 6.0  ;;  %v3695_v34 = vmin.f32 %v2671_v22, 6.0  ;;  %v9891_v5 = vld [vmem:[%s7688_s30 + $0xf88] sm:$0xff] }
 0x297   : > { %v5736_v25 = vmul.f32 %v4712_v3, %v9810_v26  ;;  %v4714_v30 = vmul.f32 0.16666667, %v3690_v18  ;;  %v4715_v38 = vmul.f32 0.16666667, %v3691_v12  ;;  %v4716_v19 = vmul.f32 0.16666667, %v3692_v8 }
 0x298   : > { %v5737_v31 = vmul.f32 %v4713_v15, %v9813_v39  ;;  %v4717_v33 = vmul.f32 0.16666667, %v3693_v27  ;;  %v4718_v24 = vmul.f32 0.16666667, %v3694_v14  ;;  %v4719_v28 = vmul.f32 0.16666667, %v3695_v34 }
 0x299   : > { %6760 = vst [vmem:[%s7716_s17 + $0xef0] sm:$0xff] %v5736_v25  ;;  %v5738_v43 = vmul.f32 %v4714_v30, %v9816_v45  ;;  %v5739_v35 = vmul.f32 %v4715_v38, %v9819_v37  ;;  %v5740_v46 = vmul.f32 %v4716_v19, %v9822_v50  ;;  %v1648_v26 = vadd.f32 3.0, %v9846_v10  ;;  %v631_v39 = vld [vmem:[%s7688_s30 + $0xf68] sm:$0xff]  ;;  %v9894_v20 = vld [vmem:[%s7688_s30 + $0xf90] sm:$0xff]  ;;  %v637_v25 = vld [vmem:[%s7688_s30 + $0xf98] sm:$0xff] }
 0x29a   : > { %6761 = vst [vmem:[%s7716_s17 + $0xef8] sm:$0xff] %v5737_v31  ;;  %v5741_v54 = vmul.f32 %v4717_v33, %v621_v60  ;;  %v5742_v32 = vmul.f32 %v4718_v24, %v622_v63  ;;  %v5743_v49 = vmul.f32 %v4719_v28, %v623_v55  ;;  %v1649_v52 = vadd.f32 3.0, %v9849_v23  ;;  %v638_v30 = vld [vmem:[%s7688_s30 + $0xfa0] sm:$0xff] }
 0x29b   : > { %6762 = vst [vmem:[%s7716_s17 + $0xf00] sm:$0xff] %v5738_v43  ;;  %6763 = vst [vmem:[%s7716_s17 + $0xf08] sm:$0xff] %v5739_v35  ;;  %v2672_v45 = vmax.f32 %v1648_v26, 0.0  ;;  %v1650_v37 = vadd.f32 3.0, %v9852_v29  ;;  %v1651_v50 = vadd.f32 3.0, %v9855_v21  ;;  %v1652_v40 = vadd.f32 3.0, %v9858_v36 }
 0x29c   : > { %6764 = vst [vmem:[%s7716_s17 + $0xf10] sm:$0xff] %v5740_v46  ;;  %6765 = vst [vmem:[%s7716_s17 + $0xf18] sm:$0xff] %v5741_v54  ;;  %v2673_v44 = vmax.f32 %v1649_v52, 0.0  ;;  %v1653_v56 = vadd.f32 3.0, %v629_v41  ;;  %v1654_v47 = vadd.f32 3.0, %v630_v48  ;;  %v1655_v62 = vadd.f32 3.0, %v631_v39 }
 0x29d   : > { %6766 = vst [vmem:[%s7716_s17 + $0xf20] sm:$0xff] %v5742_v32  ;;  %6767 = vst [vmem:[%s7716_s17 + $0xf28] sm:$0xff] %v5743_v49  ;;  %v3696_v42 = vmin.f32 %v2672_v45, 6.0  ;;  %v2674_v60 = vmax.f32 %v1650_v37, 0.0  ;;  %v2675_v63 = vmax.f32 %v1651_v50, 0.0  ;;  %v2676_v55 = vmax.f32 %v1652_v40, 0.0 }
 0x29e   : > { %v3697_v4 = vmin.f32 %v2673_v44, 6.0  ;;  %v2677_v53 = vmax.f32 %v1653_v56, 0.0  ;;  %v2678_v1 = vmax.f32 %v1654_v47, 0.0  ;;  %v2679_v6 = vmax.f32 %v1655_v62, 0.0  ;;  %v9918_v45 = vld [vmem:[%s7688_s30 + $0xfb0] sm:$0xff]  ;;  %v9921_v56 = vld [vmem:[%s7688_s30 + $0xfb8] sm:$0xff] }
 0x29f   : > { %v4720_v51 = vmul.f32 0.16666667, %v3696_v42  ;;  %v3698_v2 = vmin.f32 %v2674_v60, 6.0  ;;  %v3699_v59 = vmin.f32 %v2675_v63, 6.0  ;;  %v3700_v57 = vmin.f32 %v2676_v55, 6.0  ;;  %v9924_v63 = vld [vmem:[%s7688_s30 + $0xfc0] sm:$0xff] }
 0x2a0   : > { %v4721_v0 = vmul.f32 0.16666667, %v3697_v4  ;;  %v3701_v11 = vmin.f32 %v2677_v53, 6.0  ;;  %v3702_v58 = vmin.f32 %v2678_v1, 6.0  ;;  %v3703_v13 = vmin.f32 %v2679_v6, 6.0  ;;  %v9927_v55 = vld [vmem:[%s7688_s30 + $0xfc8] sm:$0xff] }
 0x2a1   : > { %v5744_v9 = vmul.f32 %v4720_v51, %v9846_v10  ;;  %v4722_v17 = vmul.f32 0.16666667, %v3698_v2  ;;  %v4723_v22 = vmul.f32 0.16666667, %v3699_v59  ;;  %v4724_v3 = vmul.f32 0.16666667, %v3700_v57 }
 0x2a2   : > { %v5745_v18 = vmul.f32 %v4721_v0, %v9849_v23  ;;  %v4725_v12 = vmul.f32 0.16666667, %v3701_v11  ;;  %v4726_v8 = vmul.f32 0.16666667, %v3702_v58  ;;  %v4727_v15 = vmul.f32 0.16666667, %v3703_v13 }
 0x2a3   : > { %6768 = vst [vmem:[%s7716_s17 + $0xf30] sm:$0xff] %v5744_v9  ;;  %v5746_v27 = vmul.f32 %v4722_v17, %v9852_v29  ;;  %v5747_v14 = vmul.f32 %v4723_v22, %v9855_v21  ;;  %v5748_v34 = vmul.f32 %v4724_v3, %v9858_v36  ;;  %v1656_v10 = vadd.f32 3.0, %v9882_v61  ;;  %v639_v23 = vld [vmem:[%s7688_s30 + $0xfa8] sm:$0xff]  ;;  %v9930_v4 = vld [vmem:[%s7688_s30 + $0xfd0] sm:$0xff]  ;;  %v645_v9 = vld [vmem:[%s7688_s30 + $0xfd8] sm:$0xff] }
 0x2a4   : > { %6769 = vst [vmem:[%s7716_s17 + $0xf38] sm:$0xff] %v5745_v18  ;;  %v5749_v38 = vmul.f32 %v4725_v12, %v629_v41  ;;  %v5750_v19 = vmul.f32 %v4726_v8, %v630_v48  ;;  %v5751_v31 = vmul.f32 %v4727_v15, %v631_v39  ;;  %v1657_v33 = vadd.f32 3.0, %v9885_v7  ;;  %v646_v17 = vld [vmem:[%s7688_s30 + $0xfe0] sm:$0xff] }
 0x2a5   : > { %6770 = vst [vmem:[%s7716_s17 + $0xf40] sm:$0xff] %v5746_v27  ;;  %6771 = vst [vmem:[%s7716_s17 + $0xf48] sm:$0xff] %v5747_v14  ;;  %v2680_v29 = vmax.f32 %v1656_v10, 0.0  ;;  %v1658_v21 = vadd.f32 3.0, %v9888_v16  ;;  %v1659_v36 = vadd.f32 3.0, %v9891_v5  ;;  %v1660_v24 = vadd.f32 3.0, %v9894_v20 }
 0x2a6   : > { %6772 = vst [vmem:[%s7716_s17 + $0xf50] sm:$0xff] %v5748_v34  ;;  %6773 = vst [vmem:[%s7716_s17 + $0xf58] sm:$0xff] %v5749_v38  ;;  %v2681_v28 = vmax.f32 %v1657_v33, 0.0  ;;  %v1661_v43 = vadd.f32 3.0, %v637_v25  ;;  %v1662_v35 = vadd.f32 3.0, %v638_v30  ;;  %v1663_v46 = vadd.f32 3.0, %v639_v23 }
 0x2a7   : > { %6774 = vst [vmem:[%s7716_s17 + $0xf60] sm:$0xff] %v5750_v19  ;;  %6775 = vst [vmem:[%s7716_s17 + $0xf68] sm:$0xff] %v5751_v31  ;;  %v3704_v26 = vmin.f32 %v2680_v29, 6.0  ;;  %v2682_v41 = vmax.f32 %v1658_v21, 0.0  ;;  %v2683_v48 = vmax.f32 %v1659_v36, 0.0  ;;  %v2684_v39 = vmax.f32 %v1660_v24, 0.0 }
 0x2a8   : > { %v3705_v54 = vmin.f32 %v2681_v28, 6.0  ;;  %v2685_v32 = vmax.f32 %v1661_v43, 0.0  ;;  %v2686_v49 = vmax.f32 %v1662_v35, 0.0  ;;  %v2687_v52 = vmax.f32 %v1663_v46, 0.0  ;;  %v9954_v29 = vld [vmem:[%s7688_s30 + $0xff0] sm:$0xff]  ;;  %v9957_v43 = vld [vmem:[%s7688_s30 + $0xff8] sm:$0xff] }
 0x2a9   : > { %v4728_v37 = vmul.f32 0.16666667, %v3704_v26  ;;  %v3706_v50 = vmin.f32 %v2682_v41, 6.0  ;;  %v3707_v40 = vmin.f32 %v2683_v48, 6.0  ;;  %v3708_v44 = vmin.f32 %v2684_v39, 6.0  ;;  %v9960_v48 = vld [vmem:[%s7688_s30 + $0x1000] sm:$0xff] }
 0x2aa   : > { %v4729_v47 = vmul.f32 0.16666667, %v3705_v54  ;;  %v3709_v62 = vmin.f32 %v2685_v32, 6.0  ;;  %v3710_v42 = vmin.f32 %v2686_v49, 6.0  ;;  %v3711_v60 = vmin.f32 %v2687_v52, 6.0  ;;  %v9963_v39 = vld [vmem:[%s7688_s30 + $0x1008] sm:$0xff] }
 0x2ab   : > { %v5752_v53 = vmul.f32 %v4728_v37, %v9882_v61  ;;  %v4730_v1 = vmul.f32 0.16666667, %v3706_v50  ;;  %v4731_v6 = vmul.f32 0.16666667, %v3707_v40  ;;  %v4732_v51 = vmul.f32 0.16666667, %v3708_v44 }
 0x2ac   : > { %v5753_v2 = vmul.f32 %v4729_v47, %v9885_v7  ;;  %v4733_v59 = vmul.f32 0.16666667, %v3709_v62  ;;  %v4734_v57 = vmul.f32 0.16666667, %v3710_v42  ;;  %v4735_v0 = vmul.f32 0.16666667, %v3711_v60 }
 0x2ad   : > { %6776 = vst [vmem:[%s7716_s17 + $0xf70] sm:$0xff] %v5752_v53  ;;  %v5754_v11 = vmul.f32 %v4730_v1, %v9888_v16  ;;  %v5755_v58 = vmul.f32 %v4731_v6, %v9891_v5  ;;  %v5756_v13 = vmul.f32 %v4732_v51, %v9894_v20  ;;  %v1664_v61 = vadd.f32 3.0, %v9918_v45  ;;  %v647_v7 = vld [vmem:[%s7688_s30 + $0xfe8] sm:$0xff]  ;;  %v9966_v54 = vld [vmem:[%s7688_s30 + $0x1010] sm:$0xff]  ;;  %v653_v53 = vld [vmem:[%s7688_s30 + $0x1018] sm:$0xff] }
 0x2ae   : > { %6777 = vst [vmem:[%s7716_s17 + $0xf78] sm:$0xff] %v5753_v2  ;;  %v5757_v22 = vmul.f32 %v4733_v59, %v637_v25  ;;  %v5758_v3 = vmul.f32 %v4734_v57, %v638_v30  ;;  %v5759_v18 = vmul.f32 %v4735_v0, %v639_v23  ;;  %v1665_v12 = vadd.f32 3.0, %v9921_v56  ;;  %v654_v1 = vld [vmem:[%s7688_s30 + $0x1020] sm:$0xff] }
 0x2af   : > { %6778 = vst [vmem:[%s7716_s17 + $0xf80] sm:$0xff] %v5754_v11  ;;  %6779 = vst [vmem:[%s7716_s17 + $0xf88] sm:$0xff] %v5755_v58  ;;  %v2688_v16 = vmax.f32 %v1664_v61, 0.0  ;;  %v1666_v5 = vadd.f32 3.0, %v9924_v63  ;;  %v1667_v20 = vadd.f32 3.0, %v9927_v55  ;;  %v1668_v8 = vadd.f32 3.0, %v9930_v4 }
 0x2b0   : > { %6780 = vst [vmem:[%s7716_s17 + $0xf90] sm:$0xff] %v5756_v13  ;;  %6781 = vst [vmem:[%s7716_s17 + $0xf98] sm:$0xff] %v5757_v22  ;;  %v2689_v15 = vmax.f32 %v1665_v12, 0.0  ;;  %v1669_v27 = vadd.f32 3.0, %v645_v9  ;;  %v1670_v14 = vadd.f32 3.0, %v646_v17  ;;  %v1671_v34 = vadd.f32 3.0, %v647_v7 }
 0x2b1   : > { %6782 = vst [vmem:[%s7716_s17 + $0xfa0] sm:$0xff] %v5758_v3  ;;  %6783 = vst [vmem:[%s7716_s17 + $0xfa8] sm:$0xff] %v5759_v18  ;;  %v3712_v10 = vmin.f32 %v2688_v16, 6.0  ;;  %v2690_v25 = vmax.f32 %v1666_v5, 0.0  ;;  %v2691_v30 = vmax.f32 %v1667_v20, 0.0  ;;  %v2692_v23 = vmax.f32 %v1668_v8, 0.0 }
 0x2b2   : > { %v3713_v38 = vmin.f32 %v2689_v15, 6.0  ;;  %v2693_v19 = vmax.f32 %v1669_v27, 0.0  ;;  %v2694_v31 = vmax.f32 %v1670_v14, 0.0  ;;  %v2695_v33 = vmax.f32 %v1671_v34, 0.0  ;;  %v9990_v16 = vld [vmem:[%s7688_s30 + $0x1030] sm:$0xff]  ;;  %v9993_v27 = vld [vmem:[%s7688_s30 + $0x1038] sm:$0xff] }
 0x2b3   : > { %v4736_v21 = vmul.f32 0.16666667, %v3712_v10  ;;  %v3714_v36 = vmin.f32 %v2690_v25, 6.0  ;;  %v3715_v24 = vmin.f32 %v2691_v30, 6.0  ;;  %v3716_v28 = vmin.f32 %v2692_v23, 6.0  ;;  %v9996_v30 = vld [vmem:[%s7688_s30 + $0x1040] sm:$0xff] }
 0x2b4   : > { %v4737_v35 = vmul.f32 0.16666667, %v3713_v38  ;;  %v3717_v46 = vmin.f32 %v2693_v19, 6.0  ;;  %v3718_v26 = vmin.f32 %v2694_v31, 6.0  ;;  %v3719_v41 = vmin.f32 %v2695_v33, 6.0  ;;  %v9999_v23 = vld [vmem:[%s7688_s30 + $0x1048] sm:$0xff] }
 0x2b5   : > { %v5760_v32 = vmul.f32 %v4736_v21, %v9918_v45  ;;  %v4738_v49 = vmul.f32 0.16666667, %v3714_v36  ;;  %v4739_v52 = vmul.f32 0.16666667, %v3715_v24  ;;  %v4740_v37 = vmul.f32 0.16666667, %v3716_v28 }
 0x2b6   : > { %v5761_v50 = vmul.f32 %v4737_v35, %v9921_v56  ;;  %v4741_v40 = vmul.f32 0.16666667, %v3717_v46  ;;  %v4742_v44 = vmul.f32 0.16666667, %v3718_v26  ;;  %v4743_v47 = vmul.f32 0.16666667, %v3719_v41 }
 0x2b7   : > { %6784 = vst [vmem:[%s7716_s17 + $0xfb0] sm:$0xff] %v5760_v32  ;;  %v5762_v62 = vmul.f32 %v4738_v49, %v9924_v63  ;;  %v5763_v42 = vmul.f32 %v4739_v52, %v9927_v55  ;;  %v5764_v60 = vmul.f32 %v4740_v37, %v9930_v4  ;;  %v1672_v45 = vadd.f32 3.0, %v9954_v29  ;;  %v655_v56 = vld [vmem:[%s7688_s30 + $0x1028] sm:$0xff]  ;;  %v10002_v38 = vld [vmem:[%s7688_s30 + $0x1050] sm:$0xff]  ;;  %v661_v32 = vld [vmem:[%s7688_s30 + $0x1058] sm:$0xff] }
 0x2b8   : > { %6785 = vst [vmem:[%s7716_s17 + $0xfb8] sm:$0xff] %v5761_v50  ;;  %v5765_v6 = vmul.f32 %v4741_v40, %v645_v9  ;;  %v5766_v51 = vmul.f32 %v4742_v44, %v646_v17  ;;  %v5767_v2 = vmul.f32 %v4743_v47, %v647_v7  ;;  %v1673_v59 = vadd.f32 3.0, %v9957_v43  ;;  %v662_v49 = vld [vmem:[%s7688_s30 + $0x1060] sm:$0xff] }
 0x2b9   : > { %6786 = vst [vmem:[%s7716_s17 + $0xfc0] sm:$0xff] %v5762_v62  ;;  %6787 = vst [vmem:[%s7716_s17 + $0xfc8] sm:$0xff] %v5763_v42  ;;  %v2696_v63 = vmax.f32 %v1672_v45, 0.0  ;;  %v1674_v55 = vadd.f32 3.0, %v9960_v48  ;;  %v1675_v4 = vadd.f32 3.0, %v9963_v39  ;;  %v1676_v57 = vadd.f32 3.0, %v9966_v54 }
 0x2ba   : > { %6788 = vst [vmem:[%s7716_s17 + $0xfd0] sm:$0xff] %v5764_v60  ;;  %6789 = vst [vmem:[%s7716_s17 + $0xfd8] sm:$0xff] %v5765_v6  ;;  %v2697_v0 = vmax.f32 %v1673_v59, 0.0  ;;  %v1677_v11 = vadd.f32 3.0, %v653_v53  ;;  %v1678_v58 = vadd.f32 3.0, %v654_v1  ;;  %v1679_v13 = vadd.f32 3.0, %v655_v56 }
 0x2bb   : > { %6790 = vst [vmem:[%s7716_s17 + $0xfe0] sm:$0xff] %v5766_v51  ;;  %6791 = vst [vmem:[%s7716_s17 + $0xfe8] sm:$0xff] %v5767_v2  ;;  %v3720_v61 = vmin.f32 %v2696_v63, 6.0  ;;  %v2698_v9 = vmax.f32 %v1674_v55, 0.0  ;;  %v2699_v17 = vmax.f32 %v1675_v4, 0.0  ;;  %v2700_v7 = vmax.f32 %v1676_v57, 0.0 }
 0x2bc   : > { %v3721_v22 = vmin.f32 %v2697_v0, 6.0  ;;  %v2701_v3 = vmax.f32 %v1677_v11, 0.0  ;;  %v2702_v18 = vmax.f32 %v1678_v58, 0.0  ;;  %v2703_v12 = vmax.f32 %v1679_v13, 0.0  ;;  %v10026_v63 = vld [vmem:[%s7688_s30 + $0x1070] sm:$0xff]  ;;  %v10029_v11 = vld [vmem:[%s7688_s30 + $0x1078] sm:$0xff] }
 0x2bd   : > { %v4744_v5 = vmul.f32 0.16666667, %v3720_v61  ;;  %v3722_v20 = vmin.f32 %v2698_v9, 6.0  ;;  %v3723_v8 = vmin.f32 %v2699_v17, 6.0  ;;  %v3724_v15 = vmin.f32 %v2700_v7, 6.0  ;;  %v10032_v17 = vld [vmem:[%s7688_s30 + $0x1080] sm:$0xff] }
 0x2be   : > { %v4745_v14 = vmul.f32 0.16666667, %v3721_v22  ;;  %v3725_v34 = vmin.f32 %v2701_v3, 6.0  ;;  %v3726_v10 = vmin.f32 %v2702_v18, 6.0  ;;  %v3727_v25 = vmin.f32 %v2703_v12, 6.0  ;;  %v10035_v7 = vld [vmem:[%s7688_s30 + $0x1088] sm:$0xff] }
 0x2bf   : > { %v5768_v19 = vmul.f32 %v4744_v5, %v9954_v29  ;;  %v4746_v31 = vmul.f32 0.16666667, %v3722_v20  ;;  %v4747_v33 = vmul.f32 0.16666667, %v3723_v8  ;;  %v4748_v21 = vmul.f32 0.16666667, %v3724_v15 }
 0x2c0   : > { %v5769_v36 = vmul.f32 %v4745_v14, %v9957_v43  ;;  %v4749_v24 = vmul.f32 0.16666667, %v3725_v34  ;;  %v4750_v28 = vmul.f32 0.16666667, %v3726_v10  ;;  %v4751_v35 = vmul.f32 0.16666667, %v3727_v25 }
 0x2c1   : > { %6792 = vst [vmem:[%s7716_s17 + $0xff0] sm:$0xff] %v5768_v19  ;;  %v5770_v46 = vmul.f32 %v4746_v31, %v9960_v48  ;;  %v5771_v26 = vmul.f32 %v4747_v33, %v9963_v39  ;;  %v5772_v41 = vmul.f32 %v4748_v21, %v9966_v54  ;;  %v1680_v29 = vadd.f32 3.0, %v9990_v16  ;;  %v663_v43 = vld [vmem:[%s7688_s30 + $0x1068] sm:$0xff]  ;;  %v10038_v22 = vld [vmem:[%s7688_s30 + $0x1090] sm:$0xff]  ;;  %v669_v19 = vld [vmem:[%s7688_s30 + $0x1098] sm:$0xff] }
 0x2c2   : > { %6793 = vst [vmem:[%s7716_s17 + $0xff8] sm:$0xff] %v5769_v36  ;;  %v5773_v52 = vmul.f32 %v4749_v24, %v653_v53  ;;  %v5774_v37 = vmul.f32 %v4750_v28, %v654_v1  ;;  %v5775_v50 = vmul.f32 %v4751_v35, %v655_v56  ;;  %v1681_v40 = vadd.f32 3.0, %v9993_v27  ;;  %v670_v31 = vld [vmem:[%s7688_s30 + $0x10a0] sm:$0xff] }
 0x2c3   : > { %6794 = vst [vmem:[%s7716_s17 + $0x1000] sm:$0xff] %v5770_v46  ;;  %6795 = vst [vmem:[%s7716_s17 + $0x1008] sm:$0xff] %v5771_v26  ;;  %v2704_v48 = vmax.f32 %v1680_v29, 0.0  ;;  %v1682_v39 = vadd.f32 3.0, %v9996_v30  ;;  %v1683_v54 = vadd.f32 3.0, %v9999_v23  ;;  %v1684_v44 = vadd.f32 3.0, %v10002_v38 }
 0x2c4   : > { %6796 = vst [vmem:[%s7716_s17 + $0x1010] sm:$0xff] %v5772_v41  ;;  %6797 = vst [vmem:[%s7716_s17 + $0x1018] sm:$0xff] %v5773_v52  ;;  %v2705_v47 = vmax.f32 %v1681_v40, 0.0  ;;  %v1685_v62 = vadd.f32 3.0, %v661_v32  ;;  %v1686_v42 = vadd.f32 3.0, %v662_v49  ;;  %v1687_v60 = vadd.f32 3.0, %v663_v43 }
 0x2c5   : > { %6798 = vst [vmem:[%s7716_s17 + $0x1020] sm:$0xff] %v5774_v37  ;;  %6799 = vst [vmem:[%s7716_s17 + $0x1028] sm:$0xff] %v5775_v50  ;;  %v3728_v45 = vmin.f32 %v2704_v48, 6.0  ;;  %v2706_v53 = vmax.f32 %v1682_v39, 0.0  ;;  %v2707_v1 = vmax.f32 %v1683_v54, 0.0  ;;  %v2708_v56 = vmax.f32 %v1684_v44, 0.0 }
 0x2c6   : > { %v3729_v6 = vmin.f32 %v2705_v47, 6.0  ;;  %v2709_v51 = vmax.f32 %v1685_v62, 0.0  ;;  %v2710_v2 = vmax.f32 %v1686_v42, 0.0  ;;  %v2711_v59 = vmax.f32 %v1687_v60, 0.0  ;;  %v10062_v48 = vld [vmem:[%s7688_s30 + $0x10b0] sm:$0xff]  ;;  %v10065_v62 = vld [vmem:[%s7688_s30 + $0x10b8] sm:$0xff] }
 0x2c7   : > { %v4752_v55 = vmul.f32 0.16666667, %v3728_v45  ;;  %v3730_v4 = vmin.f32 %v2706_v53, 6.0  ;;  %v3731_v57 = vmin.f32 %v2707_v1, 6.0  ;;  %v3732_v0 = vmin.f32 %v2708_v56, 6.0  ;;  %v10068_v1 = vld [vmem:[%s7688_s30 + $0x10c0] sm:$0xff] }
 0x2c8   : > { %v4753_v58 = vmul.f32 0.16666667, %v3729_v6  ;;  %v3733_v13 = vmin.f32 %v2709_v51, 6.0  ;;  %v3734_v61 = vmin.f32 %v2710_v2, 6.0  ;;  %v3735_v9 = vmin.f32 %v2711_v59, 6.0  ;;  %v10071_v56 = vld [vmem:[%s7688_s30 + $0x10c8] sm:$0xff] }
 0x2c9   : > { %v5776_v3 = vmul.f32 %v4752_v55, %v9990_v16  ;;  %v4754_v18 = vmul.f32 0.16666667, %v3730_v4  ;;  %v4755_v12 = vmul.f32 0.16666667, %v3731_v57  ;;  %v4756_v5 = vmul.f32 0.16666667, %v3732_v0 }
 0x2ca   : > { %v5777_v20 = vmul.f32 %v4753_v58, %v9993_v27  ;;  %v4757_v8 = vmul.f32 0.16666667, %v3733_v13  ;;  %v4758_v15 = vmul.f32 0.16666667, %v3734_v61  ;;  %v4759_v14 = vmul.f32 0.16666667, %v3735_v9 }
 0x2cb   : > { %6800 = vst [vmem:[%s7716_s17 + $0x1030] sm:$0xff] %v5776_v3  ;;  %v5778_v34 = vmul.f32 %v4754_v18, %v9996_v30  ;;  %v5779_v10 = vmul.f32 %v4755_v12, %v9999_v23  ;;  %v5780_v25 = vmul.f32 %v4756_v5, %v10002_v38  ;;  %v1688_v16 = vadd.f32 3.0, %v10026_v63  ;;  %v671_v27 = vld [vmem:[%s7688_s30 + $0x10a8] sm:$0xff]  ;;  %v10074_v6 = vld [vmem:[%s7688_s30 + $0x10d0] sm:$0xff]  ;;  %v677_v3 = vld [vmem:[%s7688_s30 + $0x10d8] sm:$0xff] }
 0x2cc   : > { %6801 = vst [vmem:[%s7716_s17 + $0x1038] sm:$0xff] %v5777_v20  ;;  %v5781_v33 = vmul.f32 %v4757_v8, %v661_v32  ;;  %v5782_v21 = vmul.f32 %v4758_v15, %v662_v49  ;;  %v5783_v36 = vmul.f32 %v4759_v14, %v663_v43  ;;  %v1689_v24 = vadd.f32 3.0, %v10029_v11  ;;  %v678_v18 = vld [vmem:[%s7688_s30 + $0x10e0] sm:$0xff] }
 0x2cd   : > { %6802 = vst [vmem:[%s7716_s17 + $0x1040] sm:$0xff] %v5778_v34  ;;  %6803 = vst [vmem:[%s7716_s17 + $0x1048] sm:$0xff] %v5779_v10  ;;  %v2712_v30 = vmax.f32 %v1688_v16, 0.0  ;;  %v1690_v23 = vadd.f32 3.0, %v10032_v17  ;;  %v1691_v38 = vadd.f32 3.0, %v10035_v7  ;;  %v1692_v28 = vadd.f32 3.0, %v10038_v22 }
 0x2ce   : > { %6804 = vst [vmem:[%s7716_s17 + $0x1050] sm:$0xff] %v5780_v25  ;;  %6805 = vst [vmem:[%s7716_s17 + $0x1058] sm:$0xff] %v5781_v33  ;;  %v2713_v35 = vmax.f32 %v1689_v24, 0.0  ;;  %v1693_v46 = vadd.f32 3.0, %v669_v19  ;;  %v1694_v26 = vadd.f32 3.0, %v670_v31  ;;  %v1695_v41 = vadd.f32 3.0, %v671_v27 }
 0x2cf   : > { %6806 = vst [vmem:[%s7716_s17 + $0x1060] sm:$0xff] %v5782_v21  ;;  %6807 = vst [vmem:[%s7716_s17 + $0x1068] sm:$0xff] %v5783_v36  ;;  %v3736_v29 = vmin.f32 %v2712_v30, 6.0  ;;  %v2714_v32 = vmax.f32 %v1690_v23, 0.0  ;;  %v2715_v49 = vmax.f32 %v1691_v38, 0.0  ;;  %v2716_v43 = vmax.f32 %v1692_v28, 0.0 }
 0x2d0   : > { %v3737_v52 = vmin.f32 %v2713_v35, 6.0  ;;  %v2717_v37 = vmax.f32 %v1693_v46, 0.0  ;;  %v2718_v50 = vmax.f32 %v1694_v26, 0.0  ;;  %v2719_v40 = vmax.f32 %v1695_v41, 0.0  ;;  %v10098_v30 = vld [vmem:[%s7688_s30 + $0x10f0] sm:$0xff]  ;;  %v10101_v46 = vld [vmem:[%s7688_s30 + $0x10f8] sm:$0xff] }
 0x2d1   : > { %v4760_v39 = vmul.f32 0.16666667, %v3736_v29  ;;  %v3738_v54 = vmin.f32 %v2714_v32, 6.0  ;;  %v3739_v44 = vmin.f32 %v2715_v49, 6.0  ;;  %v3740_v47 = vmin.f32 %v2716_v43, 6.0  ;;  %v10104_v49 = vld [vmem:[%s7688_s30 + $0x1100] sm:$0xff] }
 0x2d2   : > { %v4761_v42 = vmul.f32 0.16666667, %v3737_v52  ;;  %v3741_v60 = vmin.f32 %v2717_v37, 6.0  ;;  %v3742_v45 = vmin.f32 %v2718_v50, 6.0  ;;  %v3743_v53 = vmin.f32 %v2719_v40, 6.0  ;;  %v10107_v43 = vld [vmem:[%s7688_s30 + $0x1108] sm:$0xff] }
 0x2d3   : > { %v5784_v51 = vmul.f32 %v4760_v39, %v10026_v63  ;;  %v4762_v2 = vmul.f32 0.16666667, %v3738_v54  ;;  %v4763_v59 = vmul.f32 0.16666667, %v3739_v44  ;;  %v4764_v55 = vmul.f32 0.16666667, %v3740_v47 }
 0x2d4   : > { %v5785_v4 = vmul.f32 %v4761_v42, %v10029_v11  ;;  %v4765_v57 = vmul.f32 0.16666667, %v3741_v60  ;;  %v4766_v0 = vmul.f32 0.16666667, %v3742_v45  ;;  %v4767_v58 = vmul.f32 0.16666667, %v3743_v53 }
 0x2d5   : > { %6808 = vst [vmem:[%s7716_s17 + $0x1070] sm:$0xff] %v5784_v51  ;;  %v5786_v13 = vmul.f32 %v4762_v2, %v10032_v17  ;;  %v5787_v61 = vmul.f32 %v4763_v59, %v10035_v7  ;;  %v5788_v9 = vmul.f32 %v4764_v55, %v10038_v22  ;;  %v1696_v63 = vadd.f32 3.0, %v10062_v48  ;;  %v679_v11 = vld [vmem:[%s7688_s30 + $0x10e8] sm:$0xff]  ;;  %v10110_v52 = vld [vmem:[%s7688_s30 + $0x1110] sm:$0xff]  ;;  %v685_v51 = vld [vmem:[%s7688_s30 + $0x1118] sm:$0xff] }
 0x2d6   : > { %6809 = vst [vmem:[%s7716_s17 + $0x1078] sm:$0xff] %v5785_v4  ;;  %v5789_v12 = vmul.f32 %v4765_v57, %v669_v19  ;;  %v5790_v5 = vmul.f32 %v4766_v0, %v670_v31  ;;  %v5791_v20 = vmul.f32 %v4767_v58, %v671_v27  ;;  %v1697_v8 = vadd.f32 3.0, %v10065_v62  ;;  %v686_v2 = vld [vmem:[%s7688_s30 + $0x1120] sm:$0xff] }
 0x2d7   : > { %6810 = vst [vmem:[%s7716_s17 + $0x1080] sm:$0xff] %v5786_v13  ;;  %6811 = vst [vmem:[%s7716_s17 + $0x1088] sm:$0xff] %v5787_v61  ;;  %v2720_v17 = vmax.f32 %v1696_v63, 0.0  ;;  %v1698_v7 = vadd.f32 3.0, %v10068_v1  ;;  %v1699_v22 = vadd.f32 3.0, %v10071_v56  ;;  %v1700_v15 = vadd.f32 3.0, %v10074_v6 }
 0x2d8   : > { %6812 = vst [vmem:[%s7716_s17 + $0x1090] sm:$0xff] %v5788_v9  ;;  %6813 = vst [vmem:[%s7716_s17 + $0x1098] sm:$0xff] %v5789_v12  ;;  %v2721_v14 = vmax.f32 %v1697_v8, 0.0  ;;  %v1701_v34 = vadd.f32 3.0, %v677_v3  ;;  %v1702_v10 = vadd.f32 3.0, %v678_v18  ;;  %v1703_v25 = vadd.f32 3.0, %v679_v11 }
 0x2d9   : > { %6814 = vst [vmem:[%s7716_s17 + $0x10a0] sm:$0xff] %v5790_v5  ;;  %6815 = vst [vmem:[%s7716_s17 + $0x10a8] sm:$0xff] %v5791_v20  ;;  %v3744_v16 = vmin.f32 %v2720_v17, 6.0  ;;  %v2722_v19 = vmax.f32 %v1698_v7, 0.0  ;;  %v2723_v31 = vmax.f32 %v1699_v22, 0.0  ;;  %v2724_v27 = vmax.f32 %v1700_v15, 0.0 }
 0x2da   : > { %v3745_v33 = vmin.f32 %v2721_v14, 6.0  ;;  %v2725_v21 = vmax.f32 %v1701_v34, 0.0  ;;  %v2726_v36 = vmax.f32 %v1702_v10, 0.0  ;;  %v2727_v24 = vmax.f32 %v1703_v25, 0.0  ;;  %v10134_v17 = vld [vmem:[%s7688_s30 + $0x1130] sm:$0xff]  ;;  %v10137_v34 = vld [vmem:[%s7688_s30 + $0x1138] sm:$0xff] }
 0x2db   : > { %v4768_v23 = vmul.f32 0.16666667, %v3744_v16  ;;  %v3746_v38 = vmin.f32 %v2722_v19, 6.0  ;;  %v3747_v28 = vmin.f32 %v2723_v31, 6.0  ;;  %v3748_v35 = vmin.f32 %v2724_v27, 6.0  ;;  %v10140_v31 = vld [vmem:[%s7688_s30 + $0x1140] sm:$0xff] }
 0x2dc   : > { %v4769_v26 = vmul.f32 0.16666667, %v3745_v33  ;;  %v3749_v41 = vmin.f32 %v2725_v21, 6.0  ;;  %v3750_v29 = vmin.f32 %v2726_v36, 6.0  ;;  %v3751_v32 = vmin.f32 %v2727_v24, 6.0  ;;  %v10143_v27 = vld [vmem:[%s7688_s30 + $0x1148] sm:$0xff] }
 0x2dd   : > { %v5792_v37 = vmul.f32 %v4768_v23, %v10062_v48  ;;  %v4770_v50 = vmul.f32 0.16666667, %v3746_v38  ;;  %v4771_v40 = vmul.f32 0.16666667, %v3747_v28  ;;  %v4772_v39 = vmul.f32 0.16666667, %v3748_v35 }
 0x2de   : > { %v5793_v54 = vmul.f32 %v4769_v26, %v10065_v62  ;;  %v4773_v44 = vmul.f32 0.16666667, %v3749_v41  ;;  %v4774_v47 = vmul.f32 0.16666667, %v3750_v29  ;;  %v4775_v42 = vmul.f32 0.16666667, %v3751_v32 }
 0x2df   : > { %6816 = vst [vmem:[%s7716_s17 + $0x10b0] sm:$0xff] %v5792_v37  ;;  %v5794_v60 = vmul.f32 %v4770_v50, %v10068_v1  ;;  %v5795_v45 = vmul.f32 %v4771_v40, %v10071_v56  ;;  %v5796_v53 = vmul.f32 %v4772_v39, %v10074_v6  ;;  %v1704_v48 = vadd.f32 3.0, %v10098_v30  ;;  %v687_v62 = vld [vmem:[%s7688_s30 + $0x1128] sm:$0xff]  ;;  %v10146_v33 = vld [vmem:[%s7688_s30 + $0x1150] sm:$0xff]  ;;  %v693_v37 = vld [vmem:[%s7688_s30 + $0x1158] sm:$0xff] }
 0x2e0   : > { %6817 = vst [vmem:[%s7716_s17 + $0x10b8] sm:$0xff] %v5793_v54  ;;  %v5797_v59 = vmul.f32 %v4773_v44, %v677_v3  ;;  %v5798_v55 = vmul.f32 %v4774_v47, %v678_v18  ;;  %v5799_v4 = vmul.f32 %v4775_v42, %v679_v11  ;;  %v1705_v57 = vadd.f32 3.0, %v10101_v46  ;;  %v694_v50 = vld [vmem:[%s7688_s30 + $0x1160] sm:$0xff] }
 0x2e1   : > { %6818 = vst [vmem:[%s7716_s17 + $0x10c0] sm:$0xff] %v5794_v60  ;;  %6819 = vst [vmem:[%s7716_s17 + $0x10c8] sm:$0xff] %v5795_v45  ;;  %v2728_v1 = vmax.f32 %v1704_v48, 0.0  ;;  %v1706_v56 = vadd.f32 3.0, %v10104_v49  ;;  %v1707_v6 = vadd.f32 3.0, %v10107_v43  ;;  %v1708_v0 = vadd.f32 3.0, %v10110_v52 }
 0x2e2   : > { %6820 = vst [vmem:[%s7716_s17 + $0x10d0] sm:$0xff] %v5796_v53  ;;  %6821 = vst [vmem:[%s7716_s17 + $0x10d8] sm:$0xff] %v5797_v59  ;;  %v2729_v58 = vmax.f32 %v1705_v57, 0.0  ;;  %v1709_v13 = vadd.f32 3.0, %v685_v51  ;;  %v1710_v61 = vadd.f32 3.0, %v686_v2  ;;  %v1711_v9 = vadd.f32 3.0, %v687_v62 }
 0x2e3   : > { %6822 = vst [vmem:[%s7716_s17 + $0x10e0] sm:$0xff] %v5798_v55  ;;  %6823 = vst [vmem:[%s7716_s17 + $0x10e8] sm:$0xff] %v5799_v4  ;;  %v3752_v63 = vmin.f32 %v2728_v1, 6.0  ;;  %v2730_v3 = vmax.f32 %v1706_v56, 0.0  ;;  %v2731_v18 = vmax.f32 %v1707_v6, 0.0  ;;  %v2732_v11 = vmax.f32 %v1708_v0, 0.0 }
 0x2e4   : > { %v3753_v12 = vmin.f32 %v2729_v58, 6.0  ;;  %v2733_v5 = vmax.f32 %v1709_v13, 0.0  ;;  %v2734_v20 = vmax.f32 %v1710_v61, 0.0  ;;  %v2735_v8 = vmax.f32 %v1711_v9, 0.0  ;;  %v10170_v1 = vld [vmem:[%s7688_s30 + $0x1170] sm:$0xff]  ;;  %v10173_v13 = vld [vmem:[%s7688_s30 + $0x1178] sm:$0xff] }
 0x2e5   : > { %v4776_v7 = vmul.f32 0.16666667, %v3752_v63  ;;  %v3754_v22 = vmin.f32 %v2730_v3, 6.0  ;;  %v3755_v15 = vmin.f32 %v2731_v18, 6.0  ;;  %v3756_v14 = vmin.f32 %v2732_v11, 6.0  ;;  %v10176_v18 = vld [vmem:[%s7688_s30 + $0x1180] sm:$0xff] }
 0x2e6   : > { %v4777_v10 = vmul.f32 0.16666667, %v3753_v12  ;;  %v3757_v25 = vmin.f32 %v2733_v5, 6.0  ;;  %v3758_v16 = vmin.f32 %v2734_v20, 6.0  ;;  %v3759_v19 = vmin.f32 %v2735_v8, 6.0  ;;  %v10179_v11 = vld [vmem:[%s7688_s30 + $0x1188] sm:$0xff] }
 0x2e7   : > { %v5800_v21 = vmul.f32 %v4776_v7, %v10098_v30  ;;  %v4778_v36 = vmul.f32 0.16666667, %v3754_v22  ;;  %v4779_v24 = vmul.f32 0.16666667, %v3755_v15  ;;  %v4780_v23 = vmul.f32 0.16666667, %v3756_v14 }
 0x2e8   : > { %v5801_v38 = vmul.f32 %v4777_v10, %v10101_v46  ;;  %v4781_v28 = vmul.f32 0.16666667, %v3757_v25  ;;  %v4782_v35 = vmul.f32 0.16666667, %v3758_v16  ;;  %v4783_v26 = vmul.f32 0.16666667, %v3759_v19 }
 0x2e9   : > { %6824 = vst [vmem:[%s7716_s17 + $0x10f0] sm:$0xff] %v5800_v21  ;;  %v5802_v41 = vmul.f32 %v4778_v36, %v10104_v49  ;;  %v5803_v29 = vmul.f32 %v4779_v24, %v10107_v43  ;;  %v5804_v32 = vmul.f32 %v4780_v23, %v10110_v52  ;;  %v1712_v30 = vadd.f32 3.0, %v10134_v17  ;;  %v695_v46 = vld [vmem:[%s7688_s30 + $0x1168] sm:$0xff]  ;;  %v10182_v12 = vld [vmem:[%s7688_s30 + $0x1190] sm:$0xff]  ;;  %v701_v21 = vld [vmem:[%s7688_s30 + $0x1198] sm:$0xff] }
 0x2ea   : > { %6825 = vst [vmem:[%s7716_s17 + $0x10f8] sm:$0xff] %v5801_v38  ;;  %v5805_v40 = vmul.f32 %v4781_v28, %v685_v51  ;;  %v5806_v39 = vmul.f32 %v4782_v35, %v686_v2  ;;  %v5807_v54 = vmul.f32 %v4783_v26, %v687_v62  ;;  %v1713_v44 = vadd.f32 3.0, %v10137_v34  ;;  %v702_v36 = vld [vmem:[%s7688_s30 + $0x11a0] sm:$0xff] }
 0x2eb   : > { %6826 = vst [vmem:[%s7716_s17 + $0x1100] sm:$0xff] %v5802_v41  ;;  %6827 = vst [vmem:[%s7716_s17 + $0x1108] sm:$0xff] %v5803_v29  ;;  %v2736_v49 = vmax.f32 %v1712_v30, 0.0  ;;  %v1714_v43 = vadd.f32 3.0, %v10140_v31  ;;  %v1715_v52 = vadd.f32 3.0, %v10143_v27  ;;  %v1716_v47 = vadd.f32 3.0, %v10146_v33 }
 0x2ec   : > { %6828 = vst [vmem:[%s7716_s17 + $0x1110] sm:$0xff] %v5804_v32  ;;  %6829 = vst [vmem:[%s7716_s17 + $0x1118] sm:$0xff] %v5805_v40  ;;  %v2737_v42 = vmax.f32 %v1713_v44, 0.0  ;;  %v1717_v60 = vadd.f32 3.0, %v693_v37  ;;  %v1718_v45 = vadd.f32 3.0, %v694_v50  ;;  %v1719_v53 = vadd.f32 3.0, %v695_v46 }
 0x2ed   : > { %6830 = vst [vmem:[%s7716_s17 + $0x1120] sm:$0xff] %v5806_v39  ;;  %6831 = vst [vmem:[%s7716_s17 + $0x1128] sm:$0xff] %v5807_v54  ;;  %v3760_v48 = vmin.f32 %v2736_v49, 6.0  ;;  %v2738_v51 = vmax.f32 %v1714_v43, 0.0  ;;  %v2739_v2 = vmax.f32 %v1715_v52, 0.0  ;;  %v2740_v62 = vmax.f32 %v1716_v47, 0.0 }
 0x2ee   : > { %v3761_v59 = vmin.f32 %v2737_v42, 6.0  ;;  %v2741_v55 = vmax.f32 %v1717_v60, 0.0  ;;  %v2742_v4 = vmax.f32 %v1718_v45, 0.0  ;;  %v2743_v57 = vmax.f32 %v1719_v53, 0.0  ;;  %v10206_v49 = vld [vmem:[%s7688_s30 + $0x11b0] sm:$0xff]  ;;  %v10209_v60 = vld [vmem:[%s7688_s30 + $0x11b8] sm:$0xff] }
 0x2ef   : > { %v4784_v56 = vmul.f32 0.16666667, %v3760_v48  ;;  %v3762_v6 = vmin.f32 %v2738_v51, 6.0  ;;  %v3763_v0 = vmin.f32 %v2739_v2, 6.0  ;;  %v3764_v58 = vmin.f32 %v2740_v62, 6.0  ;;  %v10212_v2 = vld [vmem:[%s7688_s30 + $0x11c0] sm:$0xff] }
 0x2f0   : > { %v4785_v61 = vmul.f32 0.16666667, %v3761_v59  ;;  %v3765_v9 = vmin.f32 %v2741_v55, 6.0  ;;  %v3766_v63 = vmin.f32 %v2742_v4, 6.0  ;;  %v3767_v3 = vmin.f32 %v2743_v57, 6.0  ;;  %v10215_v62 = vld [vmem:[%s7688_s30 + $0x11c8] sm:$0xff] }
 0x2f1   : > { %v5808_v5 = vmul.f32 %v4784_v56, %v10134_v17  ;;  %v4786_v20 = vmul.f32 0.16666667, %v3762_v6  ;;  %v4787_v8 = vmul.f32 0.16666667, %v3763_v0  ;;  %v4788_v7 = vmul.f32 0.16666667, %v3764_v58 }
 0x2f2   : > { %v5809_v22 = vmul.f32 %v4785_v61, %v10137_v34  ;;  %v4789_v15 = vmul.f32 0.16666667, %v3765_v9  ;;  %v4790_v14 = vmul.f32 0.16666667, %v3766_v63  ;;  %v4791_v10 = vmul.f32 0.16666667, %v3767_v3 }
 0x2f3   : > { %6832 = vst [vmem:[%s7716_s17 + $0x1130] sm:$0xff] %v5808_v5  ;;  %v5810_v25 = vmul.f32 %v4786_v20, %v10140_v31  ;;  %v5811_v16 = vmul.f32 %v4787_v8, %v10143_v27  ;;  %v5812_v19 = vmul.f32 %v4788_v7, %v10146_v33  ;;  %v1720_v17 = vadd.f32 3.0, %v10170_v1  ;;  %v703_v34 = vld [vmem:[%s7688_s30 + $0x11a8] sm:$0xff]  ;;  %v10218_v59 = vld [vmem:[%s7688_s30 + $0x11d0] sm:$0xff]  ;;  %v709_v5 = vld [vmem:[%s7688_s30 + $0x11d8] sm:$0xff] }
 0x2f4   : > { %6833 = vst [vmem:[%s7716_s17 + $0x1138] sm:$0xff] %v5809_v22  ;;  %v5813_v24 = vmul.f32 %v4789_v15, %v693_v37  ;;  %v5814_v23 = vmul.f32 %v4790_v14, %v694_v50  ;;  %v5815_v38 = vmul.f32 %v4791_v10, %v695_v46  ;;  %v1721_v28 = vadd.f32 3.0, %v10173_v13  ;;  %v710_v20 = vld [vmem:[%s7688_s30 + $0x11e0] sm:$0xff] }
 0x2f5   : > { %6834 = vst [vmem:[%s7716_s17 + $0x1140] sm:$0xff] %v5810_v25  ;;  %6835 = vst [vmem:[%s7716_s17 + $0x1148] sm:$0xff] %v5811_v16  ;;  %v2744_v31 = vmax.f32 %v1720_v17, 0.0  ;;  %v1722_v27 = vadd.f32 3.0, %v10176_v18  ;;  %v1723_v33 = vadd.f32 3.0, %v10179_v11  ;;  %v1724_v35 = vadd.f32 3.0, %v10182_v12 }
 0x2f6   : > { %6836 = vst [vmem:[%s7716_s17 + $0x1150] sm:$0xff] %v5812_v19  ;;  %6837 = vst [vmem:[%s7716_s17 + $0x1158] sm:$0xff] %v5813_v24  ;;  %v2745_v26 = vmax.f32 %v1721_v28, 0.0  ;;  %v1725_v41 = vadd.f32 3.0, %v701_v21  ;;  %v1726_v29 = vadd.f32 3.0, %v702_v36  ;;  %v1727_v32 = vadd.f32 3.0, %v703_v34 }
 0x2f7   : > { %6838 = vst [vmem:[%s7716_s17 + $0x1160] sm:$0xff] %v5814_v23  ;;  %6839 = vst [vmem:[%s7716_s17 + $0x1168] sm:$0xff] %v5815_v38  ;;  %v3768_v30 = vmin.f32 %v2744_v31, 6.0  ;;  %v2746_v37 = vmax.f32 %v1722_v27, 0.0  ;;  %v2747_v50 = vmax.f32 %v1723_v33, 0.0  ;;  %v2748_v46 = vmax.f32 %v1724_v35, 0.0 }
 0x2f8   : > { %v3769_v40 = vmin.f32 %v2745_v26, 6.0  ;;  %v2749_v39 = vmax.f32 %v1725_v41, 0.0  ;;  %v2750_v54 = vmax.f32 %v1726_v29, 0.0  ;;  %v2751_v44 = vmax.f32 %v1727_v32, 0.0  ;;  %v10242_v31 = vld [vmem:[%s7688_s30 + $0x11f0] sm:$0xff]  ;;  %v10245_v41 = vld [vmem:[%s7688_s30 + $0x11f8] sm:$0xff] }
 0x2f9   : > { %v4792_v43 = vmul.f32 0.16666667, %v3768_v30  ;;  %v3770_v52 = vmin.f32 %v2746_v37, 6.0  ;;  %v3771_v47 = vmin.f32 %v2747_v50, 6.0  ;;  %v3772_v42 = vmin.f32 %v2748_v46, 6.0  ;;  %v10248_v50 = vld [vmem:[%s7688_s30 + $0x1200] sm:$0xff] }
 0x2fa   : > { %v4793_v45 = vmul.f32 0.16666667, %v3769_v40  ;;  %v3773_v53 = vmin.f32 %v2749_v39, 6.0  ;;  %v3774_v48 = vmin.f32 %v2750_v54, 6.0  ;;  %v3775_v51 = vmin.f32 %v2751_v44, 6.0  ;;  %v10251_v46 = vld [vmem:[%s7688_s30 + $0x1208] sm:$0xff] }
 0x2fb   : > { %v5816_v55 = vmul.f32 %v4792_v43, %v10170_v1  ;;  %v4794_v4 = vmul.f32 0.16666667, %v3770_v52  ;;  %v4795_v57 = vmul.f32 0.16666667, %v3771_v47  ;;  %v4796_v56 = vmul.f32 0.16666667, %v3772_v42 }
 0x2fc   : > { %v5817_v6 = vmul.f32 %v4793_v45, %v10173_v13  ;;  %v4797_v0 = vmul.f32 0.16666667, %v3773_v53  ;;  %v4798_v58 = vmul.f32 0.16666667, %v3774_v48  ;;  %v4799_v61 = vmul.f32 0.16666667, %v3775_v51 }
 0x2fd   : > { %6840 = vst [vmem:[%s7716_s17 + $0x1170] sm:$0xff] %v5816_v55  ;;  %v5818_v9 = vmul.f32 %v4794_v4, %v10176_v18  ;;  %v5819_v63 = vmul.f32 %v4795_v57, %v10179_v11  ;;  %v5820_v3 = vmul.f32 %v4796_v56, %v10182_v12  ;;  %v1728_v1 = vadd.f32 3.0, %v10206_v49  ;;  %v711_v13 = vld [vmem:[%s7688_s30 + $0x11e8] sm:$0xff]  ;;  %v10254_v40 = vld [vmem:[%s7688_s30 + $0x1210] sm:$0xff]  ;;  %v717_v55 = vld [vmem:[%s7688_s30 + $0x1218] sm:$0xff] }
 0x2fe   : > { %6841 = vst [vmem:[%s7716_s17 + $0x1178] sm:$0xff] %v5817_v6  ;;  %v5821_v8 = vmul.f32 %v4797_v0, %v701_v21  ;;  %v5822_v7 = vmul.f32 %v4798_v58, %v702_v36  ;;  %v5823_v22 = vmul.f32 %v4799_v61, %v703_v34  ;;  %v1729_v15 = vadd.f32 3.0, %v10209_v60  ;;  %v718_v4 = vld [vmem:[%s7688_s30 + $0x1220] sm:$0xff] }
 0x2ff   : > { %6842 = vst [vmem:[%s7716_s17 + $0x1180] sm:$0xff] %v5818_v9  ;;  %6843 = vst [vmem:[%s7716_s17 + $0x1188] sm:$0xff] %v5819_v63  ;;  %v2752_v18 = vmax.f32 %v1728_v1, 0.0  ;;  %v1730_v11 = vadd.f32 3.0, %v10212_v2  ;;  %v1731_v12 = vadd.f32 3.0, %v10215_v62  ;;  %v1732_v14 = vadd.f32 3.0, %v10218_v59 }
 0x300   : > { %6844 = vst [vmem:[%s7716_s17 + $0x1190] sm:$0xff] %v5820_v3  ;;  %6845 = vst [vmem:[%s7716_s17 + $0x1198] sm:$0xff] %v5821_v8  ;;  %v2753_v10 = vmax.f32 %v1729_v15, 0.0  ;;  %v1733_v25 = vadd.f32 3.0, %v709_v5  ;;  %v1734_v16 = vadd.f32 3.0, %v710_v20  ;;  %v1735_v19 = vadd.f32 3.0, %v711_v13 }
 0x301   : > { %6846 = vst [vmem:[%s7716_s17 + $0x11a0] sm:$0xff] %v5822_v7  ;;  %6847 = vst [vmem:[%s7716_s17 + $0x11a8] sm:$0xff] %v5823_v22  ;;  %v3776_v17 = vmin.f32 %v2752_v18, 6.0  ;;  %v2754_v21 = vmax.f32 %v1730_v11, 0.0  ;;  %v2755_v36 = vmax.f32 %v1731_v12, 0.0  ;;  %v2756_v34 = vmax.f32 %v1732_v14, 0.0 }
 0x302   : > { %v3777_v24 = vmin.f32 %v2753_v10, 6.0  ;;  %v2757_v23 = vmax.f32 %v1733_v25, 0.0  ;;  %v2758_v38 = vmax.f32 %v1734_v16, 0.0  ;;  %v2759_v28 = vmax.f32 %v1735_v19, 0.0  ;;  %v10278_v18 = vld [vmem:[%s7688_s30 + $0x1230] sm:$0xff]  ;;  %v10281_v25 = vld [vmem:[%s7688_s30 + $0x1238] sm:$0xff] }
 0x303   : > { %v4800_v27 = vmul.f32 0.16666667, %v3776_v17  ;;  %v3778_v33 = vmin.f32 %v2754_v21, 6.0  ;;  %v3779_v35 = vmin.f32 %v2755_v36, 6.0  ;;  %v3780_v26 = vmin.f32 %v2756_v34, 6.0  ;;  %v10284_v36 = vld [vmem:[%s7688_s30 + $0x1240] sm:$0xff] }
 0x304   : > { %v4801_v29 = vmul.f32 0.16666667, %v3777_v24  ;;  %v3781_v32 = vmin.f32 %v2757_v23, 6.0  ;;  %v3782_v30 = vmin.f32 %v2758_v38, 6.0  ;;  %v3783_v37 = vmin.f32 %v2759_v28, 6.0  ;;  %v10287_v34 = vld [vmem:[%s7688_s30 + $0x1248] sm:$0xff] }
 0x305   : > { %v5824_v39 = vmul.f32 %v4800_v27, %v10206_v49  ;;  %v4802_v54 = vmul.f32 0.16666667, %v3778_v33  ;;  %v4803_v44 = vmul.f32 0.16666667, %v3779_v35  ;;  %v4804_v43 = vmul.f32 0.16666667, %v3780_v26 }
 0x306   : > { %v5825_v52 = vmul.f32 %v4801_v29, %v10209_v60  ;;  %v4805_v47 = vmul.f32 0.16666667, %v3781_v32  ;;  %v4806_v42 = vmul.f32 0.16666667, %v3782_v30  ;;  %v4807_v45 = vmul.f32 0.16666667, %v3783_v37 }
 0x307   : > { %6848 = vst [vmem:[%s7716_s17 + $0x11b0] sm:$0xff] %v5824_v39  ;;  %v5826_v53 = vmul.f32 %v4802_v54, %v10212_v2  ;;  %v5827_v48 = vmul.f32 %v4803_v44, %v10215_v62  ;;  %v5828_v51 = vmul.f32 %v4804_v43, %v10218_v59  ;;  %v1736_v49 = vadd.f32 3.0, %v10242_v31  ;;  %v719_v60 = vld [vmem:[%s7688_s30 + $0x1228] sm:$0xff]  ;;  %v10290_v24 = vld [vmem:[%s7688_s30 + $0x1250] sm:$0xff]  ;;  %v725_v39 = vld [vmem:[%s7688_s30 + $0x1258] sm:$0xff] }
 0x308   : > { %6849 = vst [vmem:[%s7716_s17 + $0x11b8] sm:$0xff] %v5825_v52  ;;  %v5829_v57 = vmul.f32 %v4805_v47, %v709_v5  ;;  %v5830_v56 = vmul.f32 %v4806_v42, %v710_v20  ;;  %v5831_v6 = vmul.f32 %v4807_v45, %v711_v13  ;;  %v1737_v0 = vadd.f32 3.0, %v10245_v41  ;;  %v726_v54 = vld [vmem:[%s7688_s30 + $0x1260] sm:$0xff] }
 0x309   : > { %6850 = vst [vmem:[%s7716_s17 + $0x11c0] sm:$0xff] %v5826_v53  ;;  %6851 = vst [vmem:[%s7716_s17 + $0x11c8] sm:$0xff] %v5827_v48  ;;  %v2760_v2 = vmax.f32 %v1736_v49, 0.0  ;;  %v1738_v62 = vadd.f32 3.0, %v10248_v50  ;;  %v1739_v59 = vadd.f32 3.0, %v10251_v46  ;;  %v1740_v58 = vadd.f32 3.0, %v10254_v40 }
 0x30a   : > { %6852 = vst [vmem:[%s7716_s17 + $0x11d0] sm:$0xff] %v5828_v51  ;;  %6853 = vst [vmem:[%s7716_s17 + $0x11d8] sm:$0xff] %v5829_v57  ;;  %v2761_v61 = vmax.f32 %v1737_v0, 0.0  ;;  %v1741_v9 = vadd.f32 3.0, %v717_v55  ;;  %v1742_v63 = vadd.f32 3.0, %v718_v4  ;;  %v1743_v3 = vadd.f32 3.0, %v719_v60 }
 0x30b   : > { %6854 = vst [vmem:[%s7716_s17 + $0x11e0] sm:$0xff] %v5830_v56  ;;  %6855 = vst [vmem:[%s7716_s17 + $0x11e8] sm:$0xff] %v5831_v6  ;;  %v3784_v1 = vmin.f32 %v2760_v2, 6.0  ;;  %v2762_v5 = vmax.f32 %v1738_v62, 0.0  ;;  %v2763_v20 = vmax.f32 %v1739_v59, 0.0  ;;  %v2764_v13 = vmax.f32 %v1740_v58, 0.0 }
 0x30c   : > { %v3785_v8 = vmin.f32 %v2761_v61, 6.0  ;;  %v2765_v7 = vmax.f32 %v1741_v9, 0.0  ;;  %v2766_v22 = vmax.f32 %v1742_v63, 0.0  ;;  %v2767_v15 = vmax.f32 %v1743_v3, 0.0  ;;  %v10314_v2 = vld [vmem:[%s7688_s30 + $0x1270] sm:$0xff]  ;;  %v10317_v9 = vld [vmem:[%s7688_s30 + $0x1278] sm:$0xff] }
 0x30d   : > { %v4808_v11 = vmul.f32 0.16666667, %v3784_v1  ;;  %v3786_v12 = vmin.f32 %v2762_v5, 6.0  ;;  %v3787_v14 = vmin.f32 %v2763_v20, 6.0  ;;  %v3788_v10 = vmin.f32 %v2764_v13, 6.0  ;;  %v10320_v20 = vld [vmem:[%s7688_s30 + $0x1280] sm:$0xff] }
 0x30e   : > { %v4809_v16 = vmul.f32 0.16666667, %v3785_v8  ;;  %v3789_v19 = vmin.f32 %v2765_v7, 6.0  ;;  %v3790_v17 = vmin.f32 %v2766_v22, 6.0  ;;  %v3791_v21 = vmin.f32 %v2767_v15, 6.0  ;;  %v10323_v13 = vld [vmem:[%s7688_s30 + $0x1288] sm:$0xff] }
 0x30f   : > { %v5832_v23 = vmul.f32 %v4808_v11, %v10242_v31  ;;  %v4810_v38 = vmul.f32 0.16666667, %v3786_v12  ;;  %v4811_v28 = vmul.f32 0.16666667, %v3787_v14  ;;  %v4812_v27 = vmul.f32 0.16666667, %v3788_v10 }
 0x310   : > { %v5833_v33 = vmul.f32 %v4809_v16, %v10245_v41  ;;  %v4813_v35 = vmul.f32 0.16666667, %v3789_v19  ;;  %v4814_v26 = vmul.f32 0.16666667, %v3790_v17  ;;  %v4815_v29 = vmul.f32 0.16666667, %v3791_v21 }
 0x311   : > { %6856 = vst [vmem:[%s7716_s17 + $0x11f0] sm:$0xff] %v5832_v23  ;;  %v5834_v32 = vmul.f32 %v4810_v38, %v10248_v50  ;;  %v5835_v30 = vmul.f32 %v4811_v28, %v10251_v46  ;;  %v5836_v37 = vmul.f32 %v4812_v27, %v10254_v40  ;;  %v1744_v31 = vadd.f32 3.0, %v10278_v18  ;;  %v727_v41 = vld [vmem:[%s7688_s30 + $0x1268] sm:$0xff]  ;;  %v10326_v8 = vld [vmem:[%s7688_s30 + $0x1290] sm:$0xff]  ;;  %v733_v23 = vld [vmem:[%s7688_s30 + $0x1298] sm:$0xff] }
 0x312   : > { %6857 = vst [vmem:[%s7716_s17 + $0x11f8] sm:$0xff] %v5833_v33  ;;  %v5837_v44 = vmul.f32 %v4813_v35, %v717_v55  ;;  %v5838_v43 = vmul.f32 %v4814_v26, %v718_v4  ;;  %v5839_v52 = vmul.f32 %v4815_v29, %v719_v60  ;;  %v1745_v47 = vadd.f32 3.0, %v10281_v25  ;;  %v734_v38 = vld [vmem:[%s7688_s30 + $0x12a0] sm:$0xff] }
 0x313   : > { %6858 = vst [vmem:[%s7716_s17 + $0x1200] sm:$0xff] %v5834_v32  ;;  %6859 = vst [vmem:[%s7716_s17 + $0x1208] sm:$0xff] %v5835_v30  ;;  %v2768_v50 = vmax.f32 %v1744_v31, 0.0  ;;  %v1746_v46 = vadd.f32 3.0, %v10284_v36  ;;  %v1747_v40 = vadd.f32 3.0, %v10287_v34  ;;  %v1748_v42 = vadd.f32 3.0, %v10290_v24 }
 0x314   : > { %6860 = vst [vmem:[%s7716_s17 + $0x1210] sm:$0xff] %v5836_v37  ;;  %6861 = vst [vmem:[%s7716_s17 + $0x1218] sm:$0xff] %v5837_v44  ;;  %v2769_v45 = vmax.f32 %v1745_v47, 0.0  ;;  %v1749_v53 = vadd.f32 3.0, %v725_v39  ;;  %v1750_v48 = vadd.f32 3.0, %v726_v54  ;;  %v1751_v51 = vadd.f32 3.0, %v727_v41 }
 0x315   : > { %6862 = vst [vmem:[%s7716_s17 + $0x1220] sm:$0xff] %v5838_v43  ;;  %6863 = vst [vmem:[%s7716_s17 + $0x1228] sm:$0xff] %v5839_v52  ;;  %v3792_v49 = vmin.f32 %v2768_v50, 6.0  ;;  %v2770_v55 = vmax.f32 %v1746_v46, 0.0  ;;  %v2771_v4 = vmax.f32 %v1747_v40, 0.0  ;;  %v2772_v60 = vmax.f32 %v1748_v42, 0.0 }
 0x316   : > { %v3793_v57 = vmin.f32 %v2769_v45, 6.0  ;;  %v2773_v56 = vmax.f32 %v1749_v53, 0.0  ;;  %v2774_v6 = vmax.f32 %v1750_v48, 0.0  ;;  %v2775_v0 = vmax.f32 %v1751_v51, 0.0  ;;  %v10350_v50 = vld [vmem:[%s7688_s30 + $0x12b0] sm:$0xff]  ;;  %v10353_v53 = vld [vmem:[%s7688_s30 + $0x12b8] sm:$0xff] }
 0x317   : > { %v4816_v62 = vmul.f32 0.16666667, %v3792_v49  ;;  %v3794_v59 = vmin.f32 %v2770_v55, 6.0  ;;  %v3795_v58 = vmin.f32 %v2771_v4, 6.0  ;;  %v3796_v61 = vmin.f32 %v2772_v60, 6.0  ;;  %v10356_v4 = vld [vmem:[%s7688_s30 + $0x12c0] sm:$0xff] }
 0x318   : > { %v4817_v63 = vmul.f32 0.16666667, %v3793_v57  ;;  %v3797_v3 = vmin.f32 %v2773_v56, 6.0  ;;  %v3798_v1 = vmin.f32 %v2774_v6, 6.0  ;;  %v3799_v5 = vmin.f32 %v2775_v0, 6.0  ;;  %v10359_v60 = vld [vmem:[%s7688_s30 + $0x12c8] sm:$0xff] }
 0x319   : > { %v5840_v7 = vmul.f32 %v4816_v62, %v10278_v18  ;;  %v4818_v22 = vmul.f32 0.16666667, %v3794_v59  ;;  %v4819_v15 = vmul.f32 0.16666667, %v3795_v58  ;;  %v4820_v11 = vmul.f32 0.16666667, %v3796_v61 }
 0x31a   : > { %v5841_v12 = vmul.f32 %v4817_v63, %v10281_v25  ;;  %v4821_v14 = vmul.f32 0.16666667, %v3797_v3  ;;  %v4822_v10 = vmul.f32 0.16666667, %v3798_v1  ;;  %v4823_v16 = vmul.f32 0.16666667, %v3799_v5 }
 0x31b   : > { %6864 = vst [vmem:[%s7716_s17 + $0x1230] sm:$0xff] %v5840_v7  ;;  %v5842_v19 = vmul.f32 %v4818_v22, %v10284_v36  ;;  %v5843_v17 = vmul.f32 %v4819_v15, %v10287_v34  ;;  %v5844_v21 = vmul.f32 %v4820_v11, %v10290_v24  ;;  %v1752_v18 = vadd.f32 3.0, %v10314_v2  ;;  %v735_v25 = vld [vmem:[%s7688_s30 + $0x12a8] sm:$0xff]  ;;  %v10362_v57 = vld [vmem:[%s7688_s30 + $0x12d0] sm:$0xff]  ;;  %v741_v7 = vld [vmem:[%s7688_s30 + $0x12d8] sm:$0xff] }
 0x31c   : > { %6865 = vst [vmem:[%s7716_s17 + $0x1238] sm:$0xff] %v5841_v12  ;;  %v5845_v28 = vmul.f32 %v4821_v14, %v725_v39  ;;  %v5846_v27 = vmul.f32 %v4822_v10, %v726_v54  ;;  %v5847_v33 = vmul.f32 %v4823_v16, %v727_v41  ;;  %v1753_v35 = vadd.f32 3.0, %v10317_v9  ;;  %v742_v22 = vld [vmem:[%s7688_s30 + $0x12e0] sm:$0xff] }
 0x31d   : > { %6866 = vst [vmem:[%s7716_s17 + $0x1240] sm:$0xff] %v5842_v19  ;;  %6867 = vst [vmem:[%s7716_s17 + $0x1248] sm:$0xff] %v5843_v17  ;;  %v2776_v36 = vmax.f32 %v1752_v18, 0.0  ;;  %v1754_v34 = vadd.f32 3.0, %v10320_v20  ;;  %v1755_v24 = vadd.f32 3.0, %v10323_v13  ;;  %v1756_v26 = vadd.f32 3.0, %v10326_v8 }
 0x31e   : > { %6868 = vst [vmem:[%s7716_s17 + $0x1250] sm:$0xff] %v5844_v21  ;;  %6869 = vst [vmem:[%s7716_s17 + $0x1258] sm:$0xff] %v5845_v28  ;;  %v2777_v29 = vmax.f32 %v1753_v35, 0.0  ;;  %v1757_v32 = vadd.f32 3.0, %v733_v23  ;;  %v1758_v30 = vadd.f32 3.0, %v734_v38  ;;  %v1759_v37 = vadd.f32 3.0, %v735_v25 }
 0x31f   : > { %6870 = vst [vmem:[%s7716_s17 + $0x1260] sm:$0xff] %v5846_v27  ;;  %6871 = vst [vmem:[%s7716_s17 + $0x1268] sm:$0xff] %v5847_v33  ;;  %v3800_v31 = vmin.f32 %v2776_v36, 6.0  ;;  %v2778_v39 = vmax.f32 %v1754_v34, 0.0  ;;  %v2779_v54 = vmax.f32 %v1755_v24, 0.0  ;;  %v2780_v41 = vmax.f32 %v1756_v26, 0.0 }
 0x320   : > { %v3801_v44 = vmin.f32 %v2777_v29, 6.0  ;;  %v2781_v43 = vmax.f32 %v1757_v32, 0.0  ;;  %v2782_v52 = vmax.f32 %v1758_v30, 0.0  ;;  %v2783_v47 = vmax.f32 %v1759_v37, 0.0  ;;  %v10386_v36 = vld [vmem:[%s7688_s30 + $0x12f0] sm:$0xff]  ;;  %v10389_v32 = vld [vmem:[%s7688_s30 + $0x12f8] sm:$0xff] }
 0x321   : > { %v4824_v46 = vmul.f32 0.16666667, %v3800_v31  ;;  %v3802_v40 = vmin.f32 %v2778_v39, 6.0  ;;  %v3803_v42 = vmin.f32 %v2779_v54, 6.0  ;;  %v3804_v45 = vmin.f32 %v2780_v41, 6.0  ;;  %v10392_v54 = vld [vmem:[%s7688_s30 + $0x1300] sm:$0xff] }
 0x322   : > { %v4825_v48 = vmul.f32 0.16666667, %v3801_v44  ;;  %v3805_v51 = vmin.f32 %v2781_v43, 6.0  ;;  %v3806_v49 = vmin.f32 %v2782_v52, 6.0  ;;  %v3807_v55 = vmin.f32 %v2783_v47, 6.0  ;;  %v10395_v41 = vld [vmem:[%s7688_s30 + $0x1308] sm:$0xff] }
 0x323   : > { %v5848_v56 = vmul.f32 %v4824_v46, %v10314_v2  ;;  %v4826_v6 = vmul.f32 0.16666667, %v3802_v40  ;;  %v4827_v0 = vmul.f32 0.16666667, %v3803_v42  ;;  %v4828_v62 = vmul.f32 0.16666667, %v3804_v45 }
 0x324   : > { %v5849_v59 = vmul.f32 %v4825_v48, %v10317_v9  ;;  %v4829_v58 = vmul.f32 0.16666667, %v3805_v51  ;;  %v4830_v61 = vmul.f32 0.16666667, %v3806_v49  ;;  %v4831_v63 = vmul.f32 0.16666667, %v3807_v55 }
 0x325   : > { %6872 = vst [vmem:[%s7716_s17 + $0x1270] sm:$0xff] %v5848_v56  ;;  %v5850_v3 = vmul.f32 %v4826_v6, %v10320_v20  ;;  %v5851_v1 = vmul.f32 %v4827_v0, %v10323_v13  ;;  %v5852_v5 = vmul.f32 %v4828_v62, %v10326_v8  ;;  %v1760_v2 = vadd.f32 3.0, %v10350_v50  ;;  %v743_v9 = vld [vmem:[%s7688_s30 + $0x12e8] sm:$0xff]  ;;  %v10398_v44 = vld [vmem:[%s7688_s30 + $0x1310] sm:$0xff]  ;;  %v749_v56 = vld [vmem:[%s7688_s30 + $0x1318] sm:$0xff] }
 0x326   : > { %6873 = vst [vmem:[%s7716_s17 + $0x1278] sm:$0xff] %v5849_v59  ;;  %v5853_v15 = vmul.f32 %v4829_v58, %v733_v23  ;;  %v5854_v11 = vmul.f32 %v4830_v61, %v734_v38  ;;  %v5855_v12 = vmul.f32 %v4831_v63, %v735_v25  ;;  %v1761_v14 = vadd.f32 3.0, %v10353_v53  ;;  %v750_v6 = vld [vmem:[%s7688_s30 + $0x1320] sm:$0xff] }
 0x327   : > { %6874 = vst [vmem:[%s7716_s17 + $0x1280] sm:$0xff] %v5850_v3  ;;  %6875 = vst [vmem:[%s7716_s17 + $0x1288] sm:$0xff] %v5851_v1  ;;  %v2784_v20 = vmax.f32 %v1760_v2, 0.0  ;;  %v1762_v13 = vadd.f32 3.0, %v10356_v4  ;;  %v1763_v8 = vadd.f32 3.0, %v10359_v60  ;;  %v1764_v10 = vadd.f32 3.0, %v10362_v57 }
 0x328   : > { %6876 = vst [vmem:[%s7716_s17 + $0x1290] sm:$0xff] %v5852_v5  ;;  %6877 = vst [vmem:[%s7716_s17 + $0x1298] sm:$0xff] %v5853_v15  ;;  %v2785_v16 = vmax.f32 %v1761_v14, 0.0  ;;  %v1765_v19 = vadd.f32 3.0, %v741_v7  ;;  %v1766_v17 = vadd.f32 3.0, %v742_v22  ;;  %v1767_v21 = vadd.f32 3.0, %v743_v9 }
 0x329   : > { %6878 = vst [vmem:[%s7716_s17 + $0x12a0] sm:$0xff] %v5854_v11  ;;  %6879 = vst [vmem:[%s7716_s17 + $0x12a8] sm:$0xff] %v5855_v12  ;;  %v3808_v18 = vmin.f32 %v2784_v20, 6.0  ;;  %v2786_v23 = vmax.f32 %v1762_v13, 0.0  ;;  %v2787_v38 = vmax.f32 %v1763_v8, 0.0  ;;  %v2788_v25 = vmax.f32 %v1764_v10, 0.0 }
 0x32a   : > { %v3809_v28 = vmin.f32 %v2785_v16, 6.0  ;;  %v2789_v27 = vmax.f32 %v1765_v19, 0.0  ;;  %v2790_v33 = vmax.f32 %v1766_v17, 0.0  ;;  %v2791_v35 = vmax.f32 %v1767_v21, 0.0  ;;  %v10422_v20 = vld [vmem:[%s7688_s30 + $0x1330] sm:$0xff]  ;;  %v10425_v19 = vld [vmem:[%s7688_s30 + $0x1338] sm:$0xff] }
 0x32b   : > { %v4832_v34 = vmul.f32 0.16666667, %v3808_v18  ;;  %v3810_v24 = vmin.f32 %v2786_v23, 6.0  ;;  %v3811_v26 = vmin.f32 %v2787_v38, 6.0  ;;  %v3812_v29 = vmin.f32 %v2788_v25, 6.0  ;;  %v10428_v38 = vld [vmem:[%s7688_s30 + $0x1340] sm:$0xff] }
 0x32c   : > { %v4833_v30 = vmul.f32 0.16666667, %v3809_v28  ;;  %v3813_v37 = vmin.f32 %v2789_v27, 6.0  ;;  %v3814_v31 = vmin.f32 %v2790_v33, 6.0  ;;  %v3815_v39 = vmin.f32 %v2791_v35, 6.0  ;;  %v10431_v25 = vld [vmem:[%s7688_s30 + $0x1348] sm:$0xff] }
 0x32d   : > { %v5856_v43 = vmul.f32 %v4832_v34, %v10350_v50  ;;  %v4834_v52 = vmul.f32 0.16666667, %v3810_v24  ;;  %v4835_v47 = vmul.f32 0.16666667, %v3811_v26  ;;  %v4836_v46 = vmul.f32 0.16666667, %v3812_v29 }
 0x32e   : > { %v5857_v40 = vmul.f32 %v4833_v30, %v10353_v53  ;;  %v4837_v42 = vmul.f32 0.16666667, %v3813_v37  ;;  %v4838_v45 = vmul.f32 0.16666667, %v3814_v31  ;;  %v4839_v48 = vmul.f32 0.16666667, %v3815_v39 }
 0x32f   : > { %6880 = vst [vmem:[%s7716_s17 + $0x12b0] sm:$0xff] %v5856_v43  ;;  %v5858_v51 = vmul.f32 %v4834_v52, %v10356_v4  ;;  %v5859_v49 = vmul.f32 %v4835_v47, %v10359_v60  ;;  %v5860_v55 = vmul.f32 %v4836_v46, %v10362_v57  ;;  %v1768_v50 = vadd.f32 3.0, %v10386_v36  ;;  %v751_v53 = vld [vmem:[%s7688_s30 + $0x1328] sm:$0xff]  ;;  %v10434_v28 = vld [vmem:[%s7688_s30 + $0x1350] sm:$0xff]  ;;  %v757_v43 = vld [vmem:[%s7688_s30 + $0x1358] sm:$0xff] }
 0x330   : > { %6881 = vst [vmem:[%s7716_s17 + $0x12b8] sm:$0xff] %v5857_v40  ;;  %v5861_v0 = vmul.f32 %v4837_v42, %v741_v7  ;;  %v5862_v62 = vmul.f32 %v4838_v45, %v742_v22  ;;  %v5863_v59 = vmul.f32 %v4839_v48, %v743_v9  ;;  %v1769_v58 = vadd.f32 3.0, %v10389_v32  ;;  %v758_v52 = vld [vmem:[%s7688_s30 + $0x1360] sm:$0xff] }
 0x331   : > { %6882 = vst [vmem:[%s7716_s17 + $0x12c0] sm:$0xff] %v5858_v51  ;;  %6883 = vst [vmem:[%s7716_s17 + $0x12c8] sm:$0xff] %v5859_v49  ;;  %v2792_v4 = vmax.f32 %v1768_v50, 0.0  ;;  %v1770_v60 = vadd.f32 3.0, %v10392_v54  ;;  %v1771_v57 = vadd.f32 3.0, %v10395_v41  ;;  %v1772_v61 = vadd.f32 3.0, %v10398_v44 }
 0x332   : > { %6884 = vst [vmem:[%s7716_s17 + $0x12d0] sm:$0xff] %v5860_v55  ;;  %6885 = vst [vmem:[%s7716_s17 + $0x12d8] sm:$0xff] %v5861_v0  ;;  %v2793_v63 = vmax.f32 %v1769_v58, 0.0  ;;  %v1773_v3 = vadd.f32 3.0, %v749_v56  ;;  %v1774_v1 = vadd.f32 3.0, %v750_v6  ;;  %v1775_v5 = vadd.f32 3.0, %v751_v53 }
 0x333   : > { %6886 = vst [vmem:[%s7716_s17 + $0x12e0] sm:$0xff] %v5862_v62  ;;  %6887 = vst [vmem:[%s7716_s17 + $0x12e8] sm:$0xff] %v5863_v59  ;;  %v3816_v2 = vmin.f32 %v2792_v4, 6.0  ;;  %v2794_v7 = vmax.f32 %v1770_v60, 0.0  ;;  %v2795_v22 = vmax.f32 %v1771_v57, 0.0  ;;  %v2796_v9 = vmax.f32 %v1772_v61, 0.0 }
 0x334   : > { %v3817_v15 = vmin.f32 %v2793_v63, 6.0  ;;  %v2797_v11 = vmax.f32 %v1773_v3, 0.0  ;;  %v2798_v12 = vmax.f32 %v1774_v1, 0.0  ;;  %v2799_v14 = vmax.f32 %v1775_v5, 0.0  ;;  %v10458_v4 = vld [vmem:[%s7688_s30 + $0x1370] sm:$0xff]  ;;  %v10461_v3 = vld [vmem:[%s7688_s30 + $0x1378] sm:$0xff] }
 0x335   : > { %v4840_v13 = vmul.f32 0.16666667, %v3816_v2  ;;  %v3818_v8 = vmin.f32 %v2794_v7, 6.0  ;;  %v3819_v10 = vmin.f32 %v2795_v22, 6.0  ;;  %v3820_v16 = vmin.f32 %v2796_v9, 6.0  ;;  %v10464_v22 = vld [vmem:[%s7688_s30 + $0x1380] sm:$0xff] }
 0x336   : > { %v4841_v17 = vmul.f32 0.16666667, %v3817_v15  ;;  %v3821_v21 = vmin.f32 %v2797_v11, 6.0  ;;  %v3822_v18 = vmin.f32 %v2798_v12, 6.0  ;;  %v3823_v23 = vmin.f32 %v2799_v14, 6.0  ;;  %v10467_v9 = vld [vmem:[%s7688_s30 + $0x1388] sm:$0xff] }
 0x337   : > { %v5864_v27 = vmul.f32 %v4840_v13, %v10386_v36  ;;  %v4842_v33 = vmul.f32 0.16666667, %v3818_v8  ;;  %v4843_v35 = vmul.f32 0.16666667, %v3819_v10  ;;  %v4844_v34 = vmul.f32 0.16666667, %v3820_v16 }
 0x338   : > { %v5865_v24 = vmul.f32 %v4841_v17, %v10389_v32  ;;  %v4845_v26 = vmul.f32 0.16666667, %v3821_v21  ;;  %v4846_v29 = vmul.f32 0.16666667, %v3822_v18  ;;  %v4847_v30 = vmul.f32 0.16666667, %v3823_v23 }
 0x339   : > { %6888 = vst [vmem:[%s7716_s17 + $0x12f0] sm:$0xff] %v5864_v27  ;;  %v5866_v37 = vmul.f32 %v4842_v33, %v10392_v54  ;;  %v5867_v31 = vmul.f32 %v4843_v35, %v10395_v41  ;;  %v5868_v39 = vmul.f32 %v4844_v34, %v10398_v44  ;;  %v1776_v36 = vadd.f32 3.0, %v10422_v20  ;;  %v759_v32 = vld [vmem:[%s7688_s30 + $0x1368] sm:$0xff]  ;;  %v10470_v15 = vld [vmem:[%s7688_s30 + $0x1390] sm:$0xff]  ;;  %v765_v27 = vld [vmem:[%s7688_s30 + $0x1398] sm:$0xff] }
 0x33a   : > { %6889 = vst [vmem:[%s7716_s17 + $0x12f8] sm:$0xff] %v5865_v24  ;;  %v5869_v47 = vmul.f32 %v4845_v26, %v749_v56  ;;  %v5870_v46 = vmul.f32 %v4846_v29, %v750_v6  ;;  %v5871_v40 = vmul.f32 %v4847_v30, %v751_v53  ;;  %v1777_v42 = vadd.f32 3.0, %v10425_v19  ;;  %v766_v33 = vld [vmem:[%s7688_s30 + $0x13a0] sm:$0xff] }
 0x33b   : > { %6890 = vst [vmem:[%s7716_s17 + $0x1300] sm:$0xff] %v5866_v37  ;;  %6891 = vst [vmem:[%s7716_s17 + $0x1308] sm:$0xff] %v5867_v31  ;;  %v2800_v54 = vmax.f32 %v1776_v36, 0.0  ;;  %v1778_v41 = vadd.f32 3.0, %v10428_v38  ;;  %v1779_v44 = vadd.f32 3.0, %v10431_v25  ;;  %v1780_v45 = vadd.f32 3.0, %v10434_v28 }
 0x33c   : > { %6892 = vst [vmem:[%s7716_s17 + $0x1310] sm:$0xff] %v5868_v39  ;;  %6893 = vst [vmem:[%s7716_s17 + $0x1318] sm:$0xff] %v5869_v47  ;;  %v2801_v48 = vmax.f32 %v1777_v42, 0.0  ;;  %v1781_v51 = vadd.f32 3.0, %v757_v43  ;;  %v1782_v49 = vadd.f32 3.0, %v758_v52  ;;  %v1783_v55 = vadd.f32 3.0, %v759_v32 }
 0x33d   : > { %6894 = vst [vmem:[%s7716_s17 + $0x1320] sm:$0xff] %v5870_v46  ;;  %6895 = vst [vmem:[%s7716_s17 + $0x1328] sm:$0xff] %v5871_v40  ;;  %v3824_v50 = vmin.f32 %v2800_v54, 6.0  ;;  %v2802_v56 = vmax.f32 %v1778_v41, 0.0  ;;  %v2803_v6 = vmax.f32 %v1779_v44, 0.0  ;;  %v2804_v53 = vmax.f32 %v1780_v45, 0.0 }
 0x33e   : > { %v3825_v0 = vmin.f32 %v2801_v48, 6.0  ;;  %v2805_v62 = vmax.f32 %v1781_v51, 0.0  ;;  %v2806_v59 = vmax.f32 %v1782_v49, 0.0  ;;  %v2807_v58 = vmax.f32 %v1783_v55, 0.0  ;;  %v10494_v54 = vld [vmem:[%s7688_s30 + $0x13b0] sm:$0xff]  ;;  %v10497_v51 = vld [vmem:[%s7688_s30 + $0x13b8] sm:$0xff] }
 0x33f   : > { %v4848_v60 = vmul.f32 0.16666667, %v3824_v50  ;;  %v3826_v57 = vmin.f32 %v2802_v56, 6.0  ;;  %v3827_v61 = vmin.f32 %v2803_v6, 6.0  ;;  %v3828_v63 = vmin.f32 %v2804_v53, 6.0  ;;  %v10500_v6 = vld [vmem:[%s7688_s30 + $0x13c0] sm:$0xff] }
 0x340   : > { %v4849_v1 = vmul.f32 0.16666667, %v3825_v0  ;;  %v3829_v5 = vmin.f32 %v2805_v62, 6.0  ;;  %v3830_v2 = vmin.f32 %v2806_v59, 6.0  ;;  %v3831_v7 = vmin.f32 %v2807_v58, 6.0  ;;  %v10503_v53 = vld [vmem:[%s7688_s30 + $0x13c8] sm:$0xff] }
 0x341   : > { %v5872_v11 = vmul.f32 %v4848_v60, %v10422_v20  ;;  %v4850_v12 = vmul.f32 0.16666667, %v3826_v57  ;;  %v4851_v14 = vmul.f32 0.16666667, %v3827_v61  ;;  %v4852_v13 = vmul.f32 0.16666667, %v3828_v63 }
 0x342   : > { %v5873_v8 = vmul.f32 %v4849_v1, %v10425_v19  ;;  %v4853_v10 = vmul.f32 0.16666667, %v3829_v5  ;;  %v4854_v16 = vmul.f32 0.16666667, %v3830_v2  ;;  %v4855_v17 = vmul.f32 0.16666667, %v3831_v7 }
 0x343   : > { %6896 = vst [vmem:[%s7716_s17 + $0x1330] sm:$0xff] %v5872_v11  ;;  %v5874_v21 = vmul.f32 %v4850_v12, %v10428_v38  ;;  %v5875_v18 = vmul.f32 %v4851_v14, %v10431_v25  ;;  %v5876_v23 = vmul.f32 %v4852_v13, %v10434_v28  ;;  %v1784_v20 = vadd.f32 3.0, %v10458_v4  ;;  %v767_v19 = vld [vmem:[%s7688_s30 + $0x13a8] sm:$0xff]  ;;  %v10506_v0 = vld [vmem:[%s7688_s30 + $0x13d0] sm:$0xff]  ;;  %v773_v11 = vld [vmem:[%s7688_s30 + $0x13d8] sm:$0xff] }
 0x344   : > { %6897 = vst [vmem:[%s7716_s17 + $0x1338] sm:$0xff] %v5873_v8  ;;  %v5877_v35 = vmul.f32 %v4853_v10, %v757_v43  ;;  %v5878_v34 = vmul.f32 %v4854_v16, %v758_v52  ;;  %v5879_v24 = vmul.f32 %v4855_v17, %v759_v32  ;;  %v1785_v26 = vadd.f32 3.0, %v10461_v3  ;;  %v774_v12 = vld [vmem:[%s7688_s30 + $0x13e0] sm:$0xff] }
 0x345   : > { %6898 = vst [vmem:[%s7716_s17 + $0x1340] sm:$0xff] %v5874_v21  ;;  %6899 = vst [vmem:[%s7716_s17 + $0x1348] sm:$0xff] %v5875_v18  ;;  %v2808_v38 = vmax.f32 %v1784_v20, 0.0  ;;  %v1786_v25 = vadd.f32 3.0, %v10464_v22  ;;  %v1787_v28 = vadd.f32 3.0, %v10467_v9  ;;  %v1788_v29 = vadd.f32 3.0, %v10470_v15 }
 0x346   : > { %6900 = vst [vmem:[%s7716_s17 + $0x1350] sm:$0xff] %v5876_v23  ;;  %6901 = vst [vmem:[%s7716_s17 + $0x1358] sm:$0xff] %v5877_v35  ;;  %v2809_v30 = vmax.f32 %v1785_v26, 0.0  ;;  %v1789_v37 = vadd.f32 3.0, %v765_v27  ;;  %v1790_v31 = vadd.f32 3.0, %v766_v33  ;;  %v1791_v39 = vadd.f32 3.0, %v767_v19 }
 0x347   : > { %6902 = vst [vmem:[%s7716_s17 + $0x1360] sm:$0xff] %v5878_v34  ;;  %6903 = vst [vmem:[%s7716_s17 + $0x1368] sm:$0xff] %v5879_v24  ;;  %v3832_v36 = vmin.f32 %v2808_v38, 6.0  ;;  %v2810_v43 = vmax.f32 %v1786_v25, 0.0  ;;  %v2811_v52 = vmax.f32 %v1787_v28, 0.0  ;;  %v2812_v32 = vmax.f32 %v1788_v29, 0.0 }
 0x348   : > { %v3833_v47 = vmin.f32 %v2809_v30, 6.0  ;;  %v2813_v46 = vmax.f32 %v1789_v37, 0.0  ;;  %v2814_v40 = vmax.f32 %v1790_v31, 0.0  ;;  %v2815_v42 = vmax.f32 %v1791_v39, 0.0  ;;  %v10530_v38 = vld [vmem:[%s7688_s30 + $0x13f0] sm:$0xff]  ;;  %v10533_v37 = vld [vmem:[%s7688_s30 + $0x13f8] sm:$0xff] }
 0x349   : > { %v4856_v41 = vmul.f32 0.16666667, %v3832_v36  ;;  %v3834_v44 = vmin.f32 %v2810_v43, 6.0  ;;  %v3835_v45 = vmin.f32 %v2811_v52, 6.0  ;;  %v3836_v48 = vmin.f32 %v2812_v32, 6.0  ;;  %v10536_v52 = vld [vmem:[%s7688_s30 + $0x1400] sm:$0xff] }
 0x34a   : > { %v4857_v49 = vmul.f32 0.16666667, %v3833_v47  ;;  %v3837_v55 = vmin.f32 %v2813_v46, 6.0  ;;  %v3838_v50 = vmin.f32 %v2814_v40, 6.0  ;;  %v3839_v56 = vmin.f32 %v2815_v42, 6.0  ;;  %v10539_v32 = vld [vmem:[%s7688_s30 + $0x1408] sm:$0xff] }
 0x34b   : > { %v5880_v62 = vmul.f32 %v4856_v41, %v10458_v4  ;;  %v4858_v59 = vmul.f32 0.16666667, %v3834_v44  ;;  %v4859_v58 = vmul.f32 0.16666667, %v3835_v45  ;;  %v4860_v60 = vmul.f32 0.16666667, %v3836_v48 }
 0x34c   : > { %v5881_v57 = vmul.f32 %v4857_v49, %v10461_v3  ;;  %v4861_v61 = vmul.f32 0.16666667, %v3837_v55  ;;  %v4862_v63 = vmul.f32 0.16666667, %v3838_v50  ;;  %v4863_v1 = vmul.f32 0.16666667, %v3839_v56 }
 0x34d   : > { %6904 = vst [vmem:[%s7716_s17 + $0x1370] sm:$0xff] %v5880_v62  ;;  %v5882_v5 = vmul.f32 %v4858_v59, %v10464_v22  ;;  %v5883_v2 = vmul.f32 %v4859_v58, %v10467_v9  ;;  %v5884_v7 = vmul.f32 %v4860_v60, %v10470_v15  ;;  %v1792_v4 = vadd.f32 3.0, %v10494_v54  ;;  %v775_v3 = vld [vmem:[%s7688_s30 + $0x13e8] sm:$0xff]  ;;  %v10542_v47 = vld [vmem:[%s7688_s30 + $0x1410] sm:$0xff]  ;;  %v781_v62 = vld [vmem:[%s7688_s30 + $0x1418] sm:$0xff] }
 0x34e   : > { %6905 = vst [vmem:[%s7716_s17 + $0x1378] sm:$0xff] %v5881_v57  ;;  %v5885_v14 = vmul.f32 %v4861_v61, %v765_v27  ;;  %v5886_v13 = vmul.f32 %v4862_v63, %v766_v33  ;;  %v5887_v8 = vmul.f32 %v4863_v1, %v767_v19  ;;  %v1793_v10 = vadd.f32 3.0, %v10497_v51  ;;  %v782_v59 = vld [vmem:[%s7688_s30 + $0x1420] sm:$0xff] }
 0x34f   : > { %6906 = vst [vmem:[%s7716_s17 + $0x1380] sm:$0xff] %v5882_v5  ;;  %6907 = vst [vmem:[%s7716_s17 + $0x1388] sm:$0xff] %v5883_v2  ;;  %v2816_v22 = vmax.f32 %v1792_v4, 0.0  ;;  %v1794_v9 = vadd.f32 3.0, %v10500_v6  ;;  %v1795_v15 = vadd.f32 3.0, %v10503_v53  ;;  %v1796_v16 = vadd.f32 3.0, %v10506_v0 }
 0x350   : > { %6908 = vst [vmem:[%s7716_s17 + $0x1390] sm:$0xff] %v5884_v7  ;;  %6909 = vst [vmem:[%s7716_s17 + $0x1398] sm:$0xff] %v5885_v14  ;;  %v2817_v17 = vmax.f32 %v1793_v10, 0.0  ;;  %v1797_v21 = vadd.f32 3.0, %v773_v11  ;;  %v1798_v18 = vadd.f32 3.0, %v774_v12  ;;  %v1799_v23 = vadd.f32 3.0, %v775_v3 }
 0x351   : > { %6910 = vst [vmem:[%s7716_s17 + $0x13a0] sm:$0xff] %v5886_v13  ;;  %6911 = vst [vmem:[%s7716_s17 + $0x13a8] sm:$0xff] %v5887_v8  ;;  %v3840_v20 = vmin.f32 %v2816_v22, 6.0  ;;  %v2818_v27 = vmax.f32 %v1794_v9, 0.0  ;;  %v2819_v33 = vmax.f32 %v1795_v15, 0.0  ;;  %v2820_v19 = vmax.f32 %v1796_v16, 0.0 }
 0x352   : > { %v3841_v35 = vmin.f32 %v2817_v17, 6.0  ;;  %v2821_v34 = vmax.f32 %v1797_v21, 0.0  ;;  %v2822_v24 = vmax.f32 %v1798_v18, 0.0  ;;  %v2823_v26 = vmax.f32 %v1799_v23, 0.0  ;;  %v10566_v22 = vld [vmem:[%s7688_s30 + $0x1430] sm:$0xff]  ;;  %v10569_v21 = vld [vmem:[%s7688_s30 + $0x1438] sm:$0xff] }
 0x353   : > { %v4864_v25 = vmul.f32 0.16666667, %v3840_v20  ;;  %v3842_v28 = vmin.f32 %v2818_v27, 6.0  ;;  %v3843_v29 = vmin.f32 %v2819_v33, 6.0  ;;  %v3844_v30 = vmin.f32 %v2820_v19, 6.0  ;;  %v10572_v33 = vld [vmem:[%s7688_s30 + $0x1440] sm:$0xff] }
 0x354   : > { %v4865_v31 = vmul.f32 0.16666667, %v3841_v35  ;;  %v3845_v39 = vmin.f32 %v2821_v34, 6.0  ;;  %v3846_v36 = vmin.f32 %v2822_v24, 6.0  ;;  %v3847_v43 = vmin.f32 %v2823_v26, 6.0  ;;  %v10575_v19 = vld [vmem:[%s7688_s30 + $0x1448] sm:$0xff] }
 0x355   : > { %v5888_v46 = vmul.f32 %v4864_v25, %v10494_v54  ;;  %v4866_v40 = vmul.f32 0.16666667, %v3842_v28  ;;  %v4867_v42 = vmul.f32 0.16666667, %v3843_v29  ;;  %v4868_v41 = vmul.f32 0.16666667, %v3844_v30 }
 0x356   : > { %v5889_v44 = vmul.f32 %v4865_v31, %v10497_v51  ;;  %v4869_v45 = vmul.f32 0.16666667, %v3845_v39  ;;  %v4870_v48 = vmul.f32 0.16666667, %v3846_v36  ;;  %v4871_v49 = vmul.f32 0.16666667, %v3847_v43 }
 0x357   : > { %6912 = vst [vmem:[%s7716_s17 + $0x13b0] sm:$0xff] %v5888_v46  ;;  %v5890_v55 = vmul.f32 %v4866_v40, %v10500_v6  ;;  %v5891_v50 = vmul.f32 %v4867_v42, %v10503_v53  ;;  %v5892_v56 = vmul.f32 %v4868_v41, %v10506_v0  ;;  %v1800_v54 = vadd.f32 3.0, %v10530_v38  ;;  %v783_v51 = vld [vmem:[%s7688_s30 + $0x1428] sm:$0xff]  ;;  %v10578_v35 = vld [vmem:[%s7688_s30 + $0x1450] sm:$0xff]  ;;  %v789_v46 = vld [vmem:[%s7688_s30 + $0x1458] sm:$0xff] }
 0x358   : > { %6913 = vst [vmem:[%s7716_s17 + $0x13b8] sm:$0xff] %v5889_v44  ;;  %v5893_v58 = vmul.f32 %v4869_v45, %v773_v11  ;;  %v5894_v60 = vmul.f32 %v4870_v48, %v774_v12  ;;  %v5895_v57 = vmul.f32 %v4871_v49, %v775_v3  ;;  %v1801_v61 = vadd.f32 3.0, %v10533_v37  ;;  %v790_v40 = vld [vmem:[%s7688_s30 + $0x1460] sm:$0xff] }
 0x359   : > { %6914 = vst [vmem:[%s7716_s17 + $0x13c0] sm:$0xff] %v5890_v55  ;;  %6915 = vst [vmem:[%s7716_s17 + $0x13c8] sm:$0xff] %v5891_v50  ;;  %v2824_v6 = vmax.f32 %v1800_v54, 0.0  ;;  %v1802_v53 = vadd.f32 3.0, %v10536_v52  ;;  %v1803_v0 = vadd.f32 3.0, %v10539_v32  ;;  %v1804_v63 = vadd.f32 3.0, %v10542_v47 }
 0x35a   : > { %6916 = vst [vmem:[%s7716_s17 + $0x13d0] sm:$0xff] %v5892_v56  ;;  %6917 = vst [vmem:[%s7716_s17 + $0x13d8] sm:$0xff] %v5893_v58  ;;  %v2825_v1 = vmax.f32 %v1801_v61, 0.0  ;;  %v1805_v5 = vadd.f32 3.0, %v781_v62  ;;  %v1806_v2 = vadd.f32 3.0, %v782_v59  ;;  %v1807_v7 = vadd.f32 3.0, %v783_v51 }
 0x35b   : > { %6918 = vst [vmem:[%s7716_s17 + $0x13e0] sm:$0xff] %v5894_v60  ;;  %6919 = vst [vmem:[%s7716_s17 + $0x13e8] sm:$0xff] %v5895_v57  ;;  %v3848_v4 = vmin.f32 %v2824_v6, 6.0  ;;  %v2826_v11 = vmax.f32 %v1802_v53, 0.0  ;;  %v2827_v12 = vmax.f32 %v1803_v0, 0.0  ;;  %v2828_v3 = vmax.f32 %v1804_v63, 0.0 }
 0x35c   : > { %v3849_v14 = vmin.f32 %v2825_v1, 6.0  ;;  %v2829_v13 = vmax.f32 %v1805_v5, 0.0  ;;  %v2830_v8 = vmax.f32 %v1806_v2, 0.0  ;;  %v2831_v10 = vmax.f32 %v1807_v7, 0.0  ;;  %v10602_v6 = vld [vmem:[%s7688_s30 + $0x1470] sm:$0xff]  ;;  %v10605_v5 = vld [vmem:[%s7688_s30 + $0x1478] sm:$0xff] }
 0x35d   : > { %v4872_v9 = vmul.f32 0.16666667, %v3848_v4  ;;  %v3850_v15 = vmin.f32 %v2826_v11, 6.0  ;;  %v3851_v16 = vmin.f32 %v2827_v12, 6.0  ;;  %v3852_v17 = vmin.f32 %v2828_v3, 6.0  ;;  %v10608_v12 = vld [vmem:[%s7688_s30 + $0x1480] sm:$0xff] }
 0x35e   : > { %v4873_v18 = vmul.f32 0.16666667, %v3849_v14  ;;  %v3853_v23 = vmin.f32 %v2829_v13, 6.0  ;;  %v3854_v20 = vmin.f32 %v2830_v8, 6.0  ;;  %v3855_v27 = vmin.f32 %v2831_v10, 6.0  ;;  %v10611_v3 = vld [vmem:[%s7688_s30 + $0x1488] sm:$0xff] }
 0x35f   : > { %v5896_v34 = vmul.f32 %v4872_v9, %v10530_v38  ;;  %v4874_v24 = vmul.f32 0.16666667, %v3850_v15  ;;  %v4875_v26 = vmul.f32 0.16666667, %v3851_v16  ;;  %v4876_v25 = vmul.f32 0.16666667, %v3852_v17 }
 0x360   : > { %v5897_v28 = vmul.f32 %v4873_v18, %v10533_v37  ;;  %v4877_v29 = vmul.f32 0.16666667, %v3853_v23  ;;  %v4878_v30 = vmul.f32 0.16666667, %v3854_v20  ;;  %v4879_v31 = vmul.f32 0.16666667, %v3855_v27 }
 0x361   : > { %6920 = vst [vmem:[%s7716_s17 + $0x13f0] sm:$0xff] %v5896_v34  ;;  %v5898_v39 = vmul.f32 %v4874_v24, %v10536_v52  ;;  %v5899_v36 = vmul.f32 %v4875_v26, %v10539_v32  ;;  %v5900_v43 = vmul.f32 %v4876_v25, %v10542_v47  ;;  %v1808_v38 = vadd.f32 3.0, %v10566_v22  ;;  %v791_v37 = vld [vmem:[%s7688_s30 + $0x1468] sm:$0xff]  ;;  %v10614_v14 = vld [vmem:[%s7688_s30 + $0x1490] sm:$0xff]  ;;  %v797_v34 = vld [vmem:[%s7688_s30 + $0x1498] sm:$0xff] }
 0x362   : > { %6921 = vst [vmem:[%s7716_s17 + $0x13f8] sm:$0xff] %v5897_v28  ;;  %v5901_v42 = vmul.f32 %v4877_v29, %v781_v62  ;;  %v5902_v41 = vmul.f32 %v4878_v30, %v782_v59  ;;  %v5903_v44 = vmul.f32 %v4879_v31, %v783_v51  ;;  %v1809_v45 = vadd.f32 3.0, %v10569_v21  ;;  %v798_v24 = vld [vmem:[%s7688_s30 + $0x14a0] sm:$0xff] }
 0x363   : > { %6922 = vst [vmem:[%s7716_s17 + $0x1400] sm:$0xff] %v5898_v39  ;;  %6923 = vst [vmem:[%s7716_s17 + $0x1408] sm:$0xff] %v5899_v36  ;;  %v2832_v52 = vmax.f32 %v1808_v38, 0.0  ;;  %v1810_v32 = vadd.f32 3.0, %v10572_v33  ;;  %v1811_v47 = vadd.f32 3.0, %v10575_v19  ;;  %v1812_v48 = vadd.f32 3.0, %v10578_v35 }
 0x364   : > { %6924 = vst [vmem:[%s7716_s17 + $0x1410] sm:$0xff] %v5900_v43  ;;  %6925 = vst [vmem:[%s7716_s17 + $0x1418] sm:$0xff] %v5901_v42  ;;  %v2833_v49 = vmax.f32 %v1809_v45, 0.0  ;;  %v1813_v55 = vadd.f32 3.0, %v789_v46  ;;  %v1814_v50 = vadd.f32 3.0, %v790_v40  ;;  %v1815_v56 = vadd.f32 3.0, %v791_v37 }
 0x365   : > { %6926 = vst [vmem:[%s7716_s17 + $0x1420] sm:$0xff] %v5902_v41  ;;  %6927 = vst [vmem:[%s7716_s17 + $0x1428] sm:$0xff] %v5903_v44  ;;  %v3856_v54 = vmin.f32 %v2832_v52, 6.0  ;;  %v2834_v62 = vmax.f32 %v1810_v32, 0.0  ;;  %v2835_v59 = vmax.f32 %v1811_v47, 0.0  ;;  %v2836_v51 = vmax.f32 %v1812_v48, 0.0 }
 0x366   : > { %v3857_v58 = vmin.f32 %v2833_v49, 6.0  ;;  %v2837_v60 = vmax.f32 %v1813_v55, 0.0  ;;  %v2838_v57 = vmax.f32 %v1814_v50, 0.0  ;;  %v2839_v61 = vmax.f32 %v1815_v56, 0.0  ;;  %v10638_v52 = vld [vmem:[%s7688_s30 + $0x14b0] sm:$0xff]  ;;  %v10641_v55 = vld [vmem:[%s7688_s30 + $0x14b8] sm:$0xff] }
 0x367   : > { %v4880_v53 = vmul.f32 0.16666667, %v3856_v54  ;;  %v3858_v0 = vmin.f32 %v2834_v62, 6.0  ;;  %v3859_v63 = vmin.f32 %v2835_v59, 6.0  ;;  %v3860_v1 = vmin.f32 %v2836_v51, 6.0  ;;  %v10644_v59 = vld [vmem:[%s7688_s30 + $0x14c0] sm:$0xff] }
 0x368   : > { %v4881_v2 = vmul.f32 0.16666667, %v3857_v58  ;;  %v3861_v7 = vmin.f32 %v2837_v60, 6.0  ;;  %v3862_v4 = vmin.f32 %v2838_v57, 6.0  ;;  %v3863_v11 = vmin.f32 %v2839_v61, 6.0  ;;  %v10647_v51 = vld [vmem:[%s7688_s30 + $0x14c8] sm:$0xff] }
 0x369   : > { %v5904_v13 = vmul.f32 %v4880_v53, %v10566_v22  ;;  %v4882_v8 = vmul.f32 0.16666667, %v3858_v0  ;;  %v4883_v10 = vmul.f32 0.16666667, %v3859_v63  ;;  %v4884_v9 = vmul.f32 0.16666667, %v3860_v1 }
 0x36a   : > { %v5905_v15 = vmul.f32 %v4881_v2, %v10569_v21  ;;  %v4885_v16 = vmul.f32 0.16666667, %v3861_v7  ;;  %v4886_v17 = vmul.f32 0.16666667, %v3862_v4  ;;  %v4887_v18 = vmul.f32 0.16666667, %v3863_v11 }
 0x36b   : > { %6928 = vst [vmem:[%s7716_s17 + $0x1430] sm:$0xff] %v5904_v13  ;;  %v5906_v23 = vmul.f32 %v4882_v8, %v10572_v33  ;;  %v5907_v20 = vmul.f32 %v4883_v10, %v10575_v19  ;;  %v5908_v27 = vmul.f32 %v4884_v9, %v10578_v35  ;;  %v1816_v22 = vadd.f32 3.0, %v10602_v6  ;;  %v799_v21 = vld [vmem:[%s7688_s30 + $0x14a8] sm:$0xff]  ;;  %v10650_v58 = vld [vmem:[%s7688_s30 + $0x14d0] sm:$0xff]  ;;  %v805_v13 = vld [vmem:[%s7688_s30 + $0x14d8] sm:$0xff] }
 0x36c   : > { %6929 = vst [vmem:[%s7716_s17 + $0x1438] sm:$0xff] %v5905_v15  ;;  %v5909_v26 = vmul.f32 %v4885_v16, %v789_v46  ;;  %v5910_v25 = vmul.f32 %v4886_v17, %v790_v40  ;;  %v5911_v28 = vmul.f32 %v4887_v18, %v791_v37  ;;  %v1817_v29 = vadd.f32 3.0, %v10605_v5  ;;  %v806_v8 = vld [vmem:[%s7688_s30 + $0x14e0] sm:$0xff] }
 0x36d   : > { %6930 = vst [vmem:[%s7716_s17 + $0x1440] sm:$0xff] %v5906_v23  ;;  %6931 = vst [vmem:[%s7716_s17 + $0x1448] sm:$0xff] %v5907_v20  ;;  %v2840_v33 = vmax.f32 %v1816_v22, 0.0  ;;  %v1818_v19 = vadd.f32 3.0, %v10608_v12  ;;  %v1819_v35 = vadd.f32 3.0, %v10611_v3  ;;  %v1820_v30 = vadd.f32 3.0, %v10614_v14 }
 0x36e   : > { %6932 = vst [vmem:[%s7716_s17 + $0x1450] sm:$0xff] %v5908_v27  ;;  %6933 = vst [vmem:[%s7716_s17 + $0x1458] sm:$0xff] %v5909_v26  ;;  %v2841_v31 = vmax.f32 %v1817_v29, 0.0  ;;  %v1821_v39 = vadd.f32 3.0, %v797_v34  ;;  %v1822_v36 = vadd.f32 3.0, %v798_v24  ;;  %v1823_v43 = vadd.f32 3.0, %v799_v21 }
 0x36f   : > { %6934 = vst [vmem:[%s7716_s17 + $0x1460] sm:$0xff] %v5910_v25  ;;  %6935 = vst [vmem:[%s7716_s17 + $0x1468] sm:$0xff] %v5911_v28  ;;  %v3864_v38 = vmin.f32 %v2840_v33, 6.0  ;;  %v2842_v46 = vmax.f32 %v1818_v19, 0.0  ;;  %v2843_v40 = vmax.f32 %v1819_v35, 0.0  ;;  %v2844_v37 = vmax.f32 %v1820_v30, 0.0 }
 0x370   : > { %v3865_v42 = vmin.f32 %v2841_v31, 6.0  ;;  %v2845_v41 = vmax.f32 %v1821_v39, 0.0  ;;  %v2846_v44 = vmax.f32 %v1822_v36, 0.0  ;;  %v2847_v45 = vmax.f32 %v1823_v43, 0.0  ;;  %v10674_v33 = vld [vmem:[%s7688_s30 + $0x14f0] sm:$0xff]  ;;  %v10677_v39 = vld [vmem:[%s7688_s30 + $0x14f8] sm:$0xff] }
 0x371   : > { %v4888_v32 = vmul.f32 0.16666667, %v3864_v38  ;;  %v3866_v47 = vmin.f32 %v2842_v46, 6.0  ;;  %v3867_v48 = vmin.f32 %v2843_v40, 6.0  ;;  %v3868_v49 = vmin.f32 %v2844_v37, 6.0  ;;  %v10680_v40 = vld [vmem:[%s7688_s30 + $0x1500] sm:$0xff] }
 0x372   : > { %v4889_v50 = vmul.f32 0.16666667, %v3865_v42  ;;  %v3869_v56 = vmin.f32 %v2845_v41, 6.0  ;;  %v3870_v54 = vmin.f32 %v2846_v44, 6.0  ;;  %v3871_v62 = vmin.f32 %v2847_v45, 6.0  ;;  %v10683_v37 = vld [vmem:[%s7688_s30 + $0x1508] sm:$0xff] }
 0x373   : > { %v5912_v60 = vmul.f32 %v4888_v32, %v10602_v6  ;;  %v4890_v57 = vmul.f32 0.16666667, %v3866_v47  ;;  %v4891_v61 = vmul.f32 0.16666667, %v3867_v48  ;;  %v4892_v53 = vmul.f32 0.16666667, %v3868_v49 }
 0x374   : > { %v5913_v0 = vmul.f32 %v4889_v50, %v10605_v5  ;;  %v4893_v63 = vmul.f32 0.16666667, %v3869_v56  ;;  %v4894_v1 = vmul.f32 0.16666667, %v3870_v54  ;;  %v4895_v2 = vmul.f32 0.16666667, %v3871_v62 }
 0x375   : > { %6936 = vst [vmem:[%s7716_s17 + $0x1470] sm:$0xff] %v5912_v60  ;;  %v5914_v7 = vmul.f32 %v4890_v57, %v10608_v12  ;;  %v5915_v4 = vmul.f32 %v4891_v61, %v10611_v3  ;;  %v5916_v11 = vmul.f32 %v4892_v53, %v10614_v14  ;;  %v1824_v6 = vadd.f32 3.0, %v10638_v52  ;;  %v807_v5 = vld [vmem:[%s7688_s30 + $0x14e8] sm:$0xff]  ;;  %v10686_v42 = vld [vmem:[%s7688_s30 + $0x1510] sm:$0xff]  ;;  %v813_v60 = vld [vmem:[%s7688_s30 + $0x1518] sm:$0xff] }
 0x376   : > { %6937 = vst [vmem:[%s7716_s17 + $0x1478] sm:$0xff] %v5913_v0  ;;  %v5917_v10 = vmul.f32 %v4893_v63, %v797_v34  ;;  %v5918_v9 = vmul.f32 %v4894_v1, %v798_v24  ;;  %v5919_v15 = vmul.f32 %v4895_v2, %v799_v21  ;;  %v1825_v16 = vadd.f32 3.0, %v10641_v55  ;;  %v814_v57 = vld [vmem:[%s7688_s30 + $0x1520] sm:$0xff] }
 0x377   : > { %6938 = vst [vmem:[%s7716_s17 + $0x1480] sm:$0xff] %v5914_v7  ;;  %6939 = vst [vmem:[%s7716_s17 + $0x1488] sm:$0xff] %v5915_v4  ;;  %v2848_v12 = vmax.f32 %v1824_v6, 0.0  ;;  %v1826_v3 = vadd.f32 3.0, %v10644_v59  ;;  %v1827_v14 = vadd.f32 3.0, %v10647_v51  ;;  %v1828_v17 = vadd.f32 3.0, %v10650_v58 }
 0x378   : > { %6940 = vst [vmem:[%s7716_s17 + $0x1490] sm:$0xff] %v5916_v11  ;;  %6941 = vst [vmem:[%s7716_s17 + $0x1498] sm:$0xff] %v5917_v10  ;;  %v2849_v18 = vmax.f32 %v1825_v16, 0.0  ;;  %v1829_v23 = vadd.f32 3.0, %v805_v13  ;;  %v1830_v20 = vadd.f32 3.0, %v806_v8  ;;  %v1831_v27 = vadd.f32 3.0, %v807_v5 }
 0x379   : > { %6942 = vst [vmem:[%s7716_s17 + $0x14a0] sm:$0xff] %v5918_v9  ;;  %6943 = vst [vmem:[%s7716_s17 + $0x14a8] sm:$0xff] %v5919_v15  ;;  %v3872_v22 = vmin.f32 %v2848_v12, 6.0  ;;  %v2850_v34 = vmax.f32 %v1826_v3, 0.0  ;;  %v2851_v24 = vmax.f32 %v1827_v14, 0.0  ;;  %v2852_v21 = vmax.f32 %v1828_v17, 0.0 }
 0x37a   : > { %v3873_v26 = vmin.f32 %v2849_v18, 6.0  ;;  %v2853_v25 = vmax.f32 %v1829_v23, 0.0  ;;  %v2854_v28 = vmax.f32 %v1830_v20, 0.0  ;;  %v2855_v29 = vmax.f32 %v1831_v27, 0.0  ;;  %v10710_v12 = vld [vmem:[%s7688_s30 + $0x1530] sm:$0xff]  ;;  %v10713_v23 = vld [vmem:[%s7688_s30 + $0x1538] sm:$0xff] }
 0x37b   : > { %v4896_v19 = vmul.f32 0.16666667, %v3872_v22  ;;  %v3874_v35 = vmin.f32 %v2850_v34, 6.0  ;;  %v3875_v30 = vmin.f32 %v2851_v24, 6.0  ;;  %v3876_v31 = vmin.f32 %v2852_v21, 6.0  ;;  %v10716_v24 = vld [vmem:[%s7688_s30 + $0x1540] sm:$0xff] }
 0x37c   : > { %v4897_v36 = vmul.f32 0.16666667, %v3873_v26  ;;  %v3877_v43 = vmin.f32 %v2853_v25, 6.0  ;;  %v3878_v38 = vmin.f32 %v2854_v28, 6.0  ;;  %v3879_v46 = vmin.f32 %v2855_v29, 6.0  ;;  %v10719_v21 = vld [vmem:[%s7688_s30 + $0x1548] sm:$0xff] }
 0x37d   : > { %v5920_v41 = vmul.f32 %v4896_v19, %v10638_v52  ;;  %v4898_v44 = vmul.f32 0.16666667, %v3874_v35  ;;  %v4899_v45 = vmul.f32 0.16666667, %v3875_v30  ;;  %v4900_v32 = vmul.f32 0.16666667, %v3876_v31 }
 0x37e   : > { %v5921_v47 = vmul.f32 %v4897_v36, %v10641_v55  ;;  %v4901_v48 = vmul.f32 0.16666667, %v3877_v43  ;;  %v4902_v49 = vmul.f32 0.16666667, %v3878_v38  ;;  %v4903_v50 = vmul.f32 0.16666667, %v3879_v46 }
 0x37f   : > { %6944 = vst [vmem:[%s7716_s17 + $0x14b0] sm:$0xff] %v5920_v41  ;;  %v5922_v56 = vmul.f32 %v4898_v44, %v10644_v59  ;;  %v5923_v54 = vmul.f32 %v4899_v45, %v10647_v51  ;;  %v5924_v62 = vmul.f32 %v4900_v32, %v10650_v58  ;;  %v1832_v52 = vadd.f32 3.0, %v10674_v33  ;;  %v815_v55 = vld [vmem:[%s7688_s30 + $0x1528] sm:$0xff]  ;;  %v10722_v26 = vld [vmem:[%s7688_s30 + $0x1550] sm:$0xff]  ;;  %v821_v41 = vld [vmem:[%s7688_s30 + $0x1558] sm:$0xff] }
 0x380   : > { %6945 = vst [vmem:[%s7716_s17 + $0x14b8] sm:$0xff] %v5921_v47  ;;  %v5925_v61 = vmul.f32 %v4901_v48, %v805_v13  ;;  %v5926_v53 = vmul.f32 %v4902_v49, %v806_v8  ;;  %v5927_v0 = vmul.f32 %v4903_v50, %v807_v5  ;;  %v1833_v63 = vadd.f32 3.0, %v10677_v39  ;;  %v822_v44 = vld [vmem:[%s7688_s30 + $0x1560] sm:$0xff] }
 0x381   : > { %6946 = vst [vmem:[%s7716_s17 + $0x14c0] sm:$0xff] %v5922_v56  ;;  %6947 = vst [vmem:[%s7716_s17 + $0x14c8] sm:$0xff] %v5923_v54  ;;  %v2856_v59 = vmax.f32 %v1832_v52, 0.0  ;;  %v1834_v51 = vadd.f32 3.0, %v10680_v40  ;;  %v1835_v58 = vadd.f32 3.0, %v10683_v37  ;;  %v1836_v1 = vadd.f32 3.0, %v10686_v42 }
 0x382   : > { %6948 = vst [vmem:[%s7716_s17 + $0x14d0] sm:$0xff] %v5924_v62  ;;  %6949 = vst [vmem:[%s7716_s17 + $0x14d8] sm:$0xff] %v5925_v61  ;;  %v2857_v2 = vmax.f32 %v1833_v63, 0.0  ;;  %v1837_v7 = vadd.f32 3.0, %v813_v60  ;;  %v1838_v4 = vadd.f32 3.0, %v814_v57  ;;  %v1839_v11 = vadd.f32 3.0, %v815_v55 }
 0x383   : > { %6950 = vst [vmem:[%s7716_s17 + $0x14e0] sm:$0xff] %v5926_v53  ;;  %6951 = vst [vmem:[%s7716_s17 + $0x14e8] sm:$0xff] %v5927_v0  ;;  %v3880_v6 = vmin.f32 %v2856_v59, 6.0  ;;  %v2858_v13 = vmax.f32 %v1834_v51, 0.0  ;;  %v2859_v8 = vmax.f32 %v1835_v58, 0.0  ;;  %v2860_v5 = vmax.f32 %v1836_v1, 0.0 }
 0x384   : > { %v3881_v10 = vmin.f32 %v2857_v2, 6.0  ;;  %v2861_v9 = vmax.f32 %v1837_v7, 0.0  ;;  %v2862_v15 = vmax.f32 %v1838_v4, 0.0  ;;  %v2863_v16 = vmax.f32 %v1839_v11, 0.0  ;;  %v10746_v59 = vld [vmem:[%s7688_s30 + $0x1570] sm:$0xff]  ;;  %v10749_v7 = vld [vmem:[%s7688_s30 + $0x1578] sm:$0xff] }
 0x385   : > { %v4904_v3 = vmul.f32 0.16666667, %v3880_v6  ;;  %v3882_v14 = vmin.f32 %v2858_v13, 6.0  ;;  %v3883_v17 = vmin.f32 %v2859_v8, 6.0  ;;  %v3884_v18 = vmin.f32 %v2860_v5, 6.0  ;;  %v10752_v8 = vld [vmem:[%s7688_s30 + $0x1580] sm:$0xff] }
 0x386   : > { %v4905_v20 = vmul.f32 0.16666667, %v3881_v10  ;;  %v3885_v27 = vmin.f32 %v2861_v9, 6.0  ;;  %v3886_v22 = vmin.f32 %v2862_v15, 6.0  ;;  %v3887_v34 = vmin.f32 %v2863_v16, 6.0  ;;  %v10755_v5 = vld [vmem:[%s7688_s30 + $0x1588] sm:$0xff] }
 0x387   : > { %v5928_v25 = vmul.f32 %v4904_v3, %v10674_v33  ;;  %v4906_v28 = vmul.f32 0.16666667, %v3882_v14  ;;  %v4907_v29 = vmul.f32 0.16666667, %v3883_v17  ;;  %v4908_v19 = vmul.f32 0.16666667, %v3884_v18 }
 0x388   : > { %v5929_v35 = vmul.f32 %v4905_v20, %v10677_v39  ;;  %v4909_v30 = vmul.f32 0.16666667, %v3885_v27  ;;  %v4910_v31 = vmul.f32 0.16666667, %v3886_v22  ;;  %v4911_v36 = vmul.f32 0.16666667, %v3887_v34 }
 0x389   : > { %6952 = vst [vmem:[%s7716_s17 + $0x14f0] sm:$0xff] %v5928_v25  ;;  %v5930_v43 = vmul.f32 %v4906_v28, %v10680_v40  ;;  %v5931_v38 = vmul.f32 %v4907_v29, %v10683_v37  ;;  %v5932_v46 = vmul.f32 %v4908_v19, %v10686_v42  ;;  %v1840_v33 = vadd.f32 3.0, %v10710_v12  ;;  %v823_v39 = vld [vmem:[%s7688_s30 + $0x1568] sm:$0xff]  ;;  %v10758_v10 = vld [vmem:[%s7688_s30 + $0x1590] sm:$0xff]  ;;  %v829_v25 = vld [vmem:[%s7688_s30 + $0x1598] sm:$0xff] }
 0x38a   : > { %6953 = vst [vmem:[%s7716_s17 + $0x14f8] sm:$0xff] %v5929_v35  ;;  %v5933_v45 = vmul.f32 %v4909_v30, %v813_v60  ;;  %v5934_v32 = vmul.f32 %v4910_v31, %v814_v57  ;;  %v5935_v47 = vmul.f32 %v4911_v36, %v815_v55  ;;  %v1841_v48 = vadd.f32 3.0, %v10713_v23  ;;  %v830_v28 = vld [vmem:[%s7688_s30 + $0x15a0] sm:$0xff] }
 0x38b   : > { %6954 = vst [vmem:[%s7716_s17 + $0x1500] sm:$0xff] %v5930_v43  ;;  %6955 = vst [vmem:[%s7716_s17 + $0x1508] sm:$0xff] %v5931_v38  ;;  %v2864_v40 = vmax.f32 %v1840_v33, 0.0  ;;  %v1842_v37 = vadd.f32 3.0, %v10716_v24  ;;  %v1843_v42 = vadd.f32 3.0, %v10719_v21  ;;  %v1844_v49 = vadd.f32 3.0, %v10722_v26 }
 0x38c   : > { %6956 = vst [vmem:[%s7716_s17 + $0x1510] sm:$0xff] %v5932_v46  ;;  %6957 = vst [vmem:[%s7716_s17 + $0x1518] sm:$0xff] %v5933_v45  ;;  %v2865_v50 = vmax.f32 %v1841_v48, 0.0  ;;  %v1845_v56 = vadd.f32 3.0, %v821_v41  ;;  %v1846_v54 = vadd.f32 3.0, %v822_v44  ;;  %v1847_v62 = vadd.f32 3.0, %v823_v39 }
 0x38d   : > { %6958 = vst [vmem:[%s7716_s17 + $0x1520] sm:$0xff] %v5934_v32  ;;  %6959 = vst [vmem:[%s7716_s17 + $0x1528] sm:$0xff] %v5935_v47  ;;  %v3888_v52 = vmin.f32 %v2864_v40, 6.0  ;;  %v2866_v60 = vmax.f32 %v1842_v37, 0.0  ;;  %v2867_v57 = vmax.f32 %v1843_v42, 0.0  ;;  %v2868_v55 = vmax.f32 %v1844_v49, 0.0 }
 0x38e   : > { %v3889_v61 = vmin.f32 %v2865_v50, 6.0  ;;  %v2869_v53 = vmax.f32 %v1845_v56, 0.0  ;;  %v2870_v0 = vmax.f32 %v1846_v54, 0.0  ;;  %v2871_v63 = vmax.f32 %v1847_v62, 0.0  ;;  %v10782_v40 = vld [vmem:[%s7688_s30 + $0x15b0] sm:$0xff]  ;;  %v10785_v56 = vld [vmem:[%s7688_s30 + $0x15b8] sm:$0xff] }
 0x38f   : > { %v4912_v51 = vmul.f32 0.16666667, %v3888_v52  ;;  %v3890_v58 = vmin.f32 %v2866_v60, 6.0  ;;  %v3891_v1 = vmin.f32 %v2867_v57, 6.0  ;;  %v3892_v2 = vmin.f32 %v2868_v55, 6.0  ;;  %v10788_v57 = vld [vmem:[%s7688_s30 + $0x15c0] sm:$0xff] }
 0x390   : > { %v4913_v4 = vmul.f32 0.16666667, %v3889_v61  ;;  %v3893_v11 = vmin.f32 %v2869_v53, 6.0  ;;  %v3894_v6 = vmin.f32 %v2870_v0, 6.0  ;;  %v3895_v13 = vmin.f32 %v2871_v63, 6.0  ;;  %v10791_v55 = vld [vmem:[%s7688_s30 + $0x15c8] sm:$0xff] }
 0x391   : > { %v5936_v9 = vmul.f32 %v4912_v51, %v10710_v12  ;;  %v4914_v15 = vmul.f32 0.16666667, %v3890_v58  ;;  %v4915_v16 = vmul.f32 0.16666667, %v3891_v1  ;;  %v4916_v3 = vmul.f32 0.16666667, %v3892_v2 }
 0x392   : > { %v5937_v14 = vmul.f32 %v4913_v4, %v10713_v23  ;;  %v4917_v17 = vmul.f32 0.16666667, %v3893_v11  ;;  %v4918_v18 = vmul.f32 0.16666667, %v3894_v6  ;;  %v4919_v20 = vmul.f32 0.16666667, %v3895_v13 }
 0x393   : > { %6960 = vst [vmem:[%s7716_s17 + $0x1530] sm:$0xff] %v5936_v9  ;;  %v5938_v27 = vmul.f32 %v4914_v15, %v10716_v24  ;;  %v5939_v22 = vmul.f32 %v4915_v16, %v10719_v21  ;;  %v5940_v34 = vmul.f32 %v4916_v3, %v10722_v26  ;;  %v1848_v12 = vadd.f32 3.0, %v10746_v59  ;;  %v831_v23 = vld [vmem:[%s7688_s30 + $0x15a8] sm:$0xff]  ;;  %v10794_v61 = vld [vmem:[%s7688_s30 + $0x15d0] sm:$0xff]  ;;  %v837_v9 = vld [vmem:[%s7688_s30 + $0x15d8] sm:$0xff] }
 0x394   : > { %6961 = vst [vmem:[%s7716_s17 + $0x1538] sm:$0xff] %v5937_v14  ;;  %v5941_v29 = vmul.f32 %v4917_v17, %v821_v41  ;;  %v5942_v19 = vmul.f32 %v4918_v18, %v822_v44  ;;  %v5943_v35 = vmul.f32 %v4919_v20, %v823_v39  ;;  %v1849_v30 = vadd.f32 3.0, %v10749_v7  ;;  %v838_v15 = vld [vmem:[%s7688_s30 + $0x15e0] sm:$0xff] }
 0x395   : > { %6962 = vst [vmem:[%s7716_s17 + $0x1540] sm:$0xff] %v5938_v27  ;;  %6963 = vst [vmem:[%s7716_s17 + $0x1548] sm:$0xff] %v5939_v22  ;;  %v2872_v24 = vmax.f32 %v1848_v12, 0.0  ;;  %v1850_v21 = vadd.f32 3.0, %v10752_v8  ;;  %v1851_v26 = vadd.f32 3.0, %v10755_v5  ;;  %v1852_v31 = vadd.f32 3.0, %v10758_v10 }
 0x396   : > { %6964 = vst [vmem:[%s7716_s17 + $0x1550] sm:$0xff] %v5940_v34  ;;  %6965 = vst [vmem:[%s7716_s17 + $0x1558] sm:$0xff] %v5941_v29  ;;  %v2873_v36 = vmax.f32 %v1849_v30, 0.0  ;;  %v1853_v43 = vadd.f32 3.0, %v829_v25  ;;  %v1854_v38 = vadd.f32 3.0, %v830_v28  ;;  %v1855_v46 = vadd.f32 3.0, %v831_v23 }
 0x397   : > { %6966 = vst [vmem:[%s7716_s17 + $0x1560] sm:$0xff] %v5942_v19  ;;  %6967 = vst [vmem:[%s7716_s17 + $0x1568] sm:$0xff] %v5943_v35  ;;  %v3896_v33 = vmin.f32 %v2872_v24, 6.0  ;;  %v2874_v41 = vmax.f32 %v1850_v21, 0.0  ;;  %v2875_v44 = vmax.f32 %v1851_v26, 0.0  ;;  %v2876_v39 = vmax.f32 %v1852_v31, 0.0 }
 0x398   : > { %v3897_v45 = vmin.f32 %v2873_v36, 6.0  ;;  %v2877_v32 = vmax.f32 %v1853_v43, 0.0  ;;  %v2878_v47 = vmax.f32 %v1854_v38, 0.0  ;;  %v2879_v48 = vmax.f32 %v1855_v46, 0.0  ;;  %v10818_v24 = vld [vmem:[%s7688_s30 + $0x15f0] sm:$0xff]  ;;  %v10821_v43 = vld [vmem:[%s7688_s30 + $0x15f8] sm:$0xff] }
 0x399   : > { %v4920_v37 = vmul.f32 0.16666667, %v3896_v33  ;;  %v3898_v42 = vmin.f32 %v2874_v41, 6.0  ;;  %v3899_v49 = vmin.f32 %v2875_v44, 6.0  ;;  %v3900_v50 = vmin.f32 %v2876_v39, 6.0  ;;  %v10824_v44 = vld [vmem:[%s7688_s30 + $0x1600] sm:$0xff] }
 0x39a   : > { %v4921_v54 = vmul.f32 0.16666667, %v3897_v45  ;;  %v3901_v62 = vmin.f32 %v2877_v32, 6.0  ;;  %v3902_v52 = vmin.f32 %v2878_v47, 6.0  ;;  %v3903_v60 = vmin.f32 %v2879_v48, 6.0  ;;  %v10827_v39 = vld [vmem:[%s7688_s30 + $0x1608] sm:$0xff] }
 0x39b   : > { %v5944_v53 = vmul.f32 %v4920_v37, %v10746_v59  ;;  %v4922_v0 = vmul.f32 0.16666667, %v3898_v42  ;;  %v4923_v63 = vmul.f32 0.16666667, %v3899_v49  ;;  %v4924_v51 = vmul.f32 0.16666667, %v3900_v50 }
 0x39c   : > { %v5945_v58 = vmul.f32 %v4921_v54, %v10749_v7  ;;  %v4925_v1 = vmul.f32 0.16666667, %v3901_v62  ;;  %v4926_v2 = vmul.f32 0.16666667, %v3902_v52  ;;  %v4927_v4 = vmul.f32 0.16666667, %v3903_v60 }
 0x39d   : > { %6968 = vst [vmem:[%s7716_s17 + $0x1570] sm:$0xff] %v5944_v53  ;;  %v5946_v11 = vmul.f32 %v4922_v0, %v10752_v8  ;;  %v5947_v6 = vmul.f32 %v4923_v63, %v10755_v5  ;;  %v5948_v13 = vmul.f32 %v4924_v51, %v10758_v10  ;;  %v1856_v59 = vadd.f32 3.0, %v10782_v40  ;;  %v839_v7 = vld [vmem:[%s7688_s30 + $0x15e8] sm:$0xff]  ;;  %v10830_v45 = vld [vmem:[%s7688_s30 + $0x1610] sm:$0xff]  ;;  %v845_v53 = vld [vmem:[%s7688_s30 + $0x1618] sm:$0xff] }
 0x39e   : > { %6969 = vst [vmem:[%s7716_s17 + $0x1578] sm:$0xff] %v5945_v58  ;;  %v5949_v16 = vmul.f32 %v4925_v1, %v829_v25  ;;  %v5950_v3 = vmul.f32 %v4926_v2, %v830_v28  ;;  %v5951_v14 = vmul.f32 %v4927_v4, %v831_v23  ;;  %v1857_v17 = vadd.f32 3.0, %v10785_v56  ;;  %v846_v0 = vld [vmem:[%s7688_s30 + $0x1620] sm:$0xff] }
 0x39f   : > { %6970 = vst [vmem:[%s7716_s17 + $0x1580] sm:$0xff] %v5946_v11  ;;  %6971 = vst [vmem:[%s7716_s17 + $0x1588] sm:$0xff] %v5947_v6  ;;  %v2880_v8 = vmax.f32 %v1856_v59, 0.0  ;;  %v1858_v5 = vadd.f32 3.0, %v10788_v57  ;;  %v1859_v10 = vadd.f32 3.0, %v10791_v55  ;;  %v1860_v18 = vadd.f32 3.0, %v10794_v61 }
 0x3a0   : > { %6972 = vst [vmem:[%s7716_s17 + $0x1590] sm:$0xff] %v5948_v13  ;;  %6973 = vst [vmem:[%s7716_s17 + $0x1598] sm:$0xff] %v5949_v16  ;;  %v2881_v20 = vmax.f32 %v1857_v17, 0.0  ;;  %v1861_v27 = vadd.f32 3.0, %v837_v9  ;;  %v1862_v22 = vadd.f32 3.0, %v838_v15  ;;  %v1863_v34 = vadd.f32 3.0, %v839_v7 }
 0x3a1   : > { %6974 = vst [vmem:[%s7716_s17 + $0x15a0] sm:$0xff] %v5950_v3  ;;  %6975 = vst [vmem:[%s7716_s17 + $0x15a8] sm:$0xff] %v5951_v14  ;;  %v3904_v12 = vmin.f32 %v2880_v8, 6.0  ;;  %v2882_v25 = vmax.f32 %v1858_v5, 0.0  ;;  %v2883_v28 = vmax.f32 %v1859_v10, 0.0  ;;  %v2884_v23 = vmax.f32 %v1860_v18, 0.0 }
 0x3a2   : > { %v3905_v29 = vmin.f32 %v2881_v20, 6.0  ;;  %v2885_v19 = vmax.f32 %v1861_v27, 0.0  ;;  %v2886_v35 = vmax.f32 %v1862_v22, 0.0  ;;  %v2887_v30 = vmax.f32 %v1863_v34, 0.0  ;;  %v10854_v8 = vld [vmem:[%s7688_s30 + $0x1630] sm:$0xff]  ;;  %v10857_v27 = vld [vmem:[%s7688_s30 + $0x1638] sm:$0xff] }
 0x3a3   : > { %v4928_v21 = vmul.f32 0.16666667, %v3904_v12  ;;  %v3906_v26 = vmin.f32 %v2882_v25, 6.0  ;;  %v3907_v31 = vmin.f32 %v2883_v28, 6.0  ;;  %v3908_v36 = vmin.f32 %v2884_v23, 6.0  ;;  %v10860_v28 = vld [vmem:[%s7688_s30 + $0x1640] sm:$0xff] }
 0x3a4   : > { %v4929_v38 = vmul.f32 0.16666667, %v3905_v29  ;;  %v3909_v46 = vmin.f32 %v2885_v19, 6.0  ;;  %v3910_v33 = vmin.f32 %v2886_v35, 6.0  ;;  %v3911_v41 = vmin.f32 %v2887_v30, 6.0  ;;  %v10863_v23 = vld [vmem:[%s7688_s30 + $0x1648] sm:$0xff] }
 0x3a5   : > { %v5952_v32 = vmul.f32 %v4928_v21, %v10782_v40  ;;  %v4930_v47 = vmul.f32 0.16666667, %v3906_v26  ;;  %v4931_v48 = vmul.f32 0.16666667, %v3907_v31  ;;  %v4932_v37 = vmul.f32 0.16666667, %v3908_v36 }
 0x3a6   : > { %v5953_v42 = vmul.f32 %v4929_v38, %v10785_v56  ;;  %v4933_v49 = vmul.f32 0.16666667, %v3909_v46  ;;  %v4934_v50 = vmul.f32 0.16666667, %v3910_v33  ;;  %v4935_v54 = vmul.f32 0.16666667, %v3911_v41 }
 0x3a7   : > { %6976 = vst [vmem:[%s7716_s17 + $0x15b0] sm:$0xff] %v5952_v32  ;;  %v5954_v62 = vmul.f32 %v4930_v47, %v10788_v57  ;;  %v5955_v52 = vmul.f32 %v4931_v48, %v10791_v55  ;;  %v5956_v60 = vmul.f32 %v4932_v37, %v10794_v61  ;;  %v1864_v40 = vadd.f32 3.0, %v10818_v24  ;;  %v847_v56 = vld [vmem:[%s7688_s30 + $0x1628] sm:$0xff]  ;;  %v10866_v29 = vld [vmem:[%s7688_s30 + $0x1650] sm:$0xff]  ;;  %v853_v32 = vld [vmem:[%s7688_s30 + $0x1658] sm:$0xff] }
 0x3a8   : > { %6977 = vst [vmem:[%s7716_s17 + $0x15b8] sm:$0xff] %v5953_v42  ;;  %v5957_v63 = vmul.f32 %v4933_v49, %v837_v9  ;;  %v5958_v51 = vmul.f32 %v4934_v50, %v838_v15  ;;  %v5959_v58 = vmul.f32 %v4935_v54, %v839_v7  ;;  %v1865_v1 = vadd.f32 3.0, %v10821_v43  ;;  %v854_v47 = vld [vmem:[%s7688_s30 + $0x1660] sm:$0xff] }
 0x3a9   : > { %6978 = vst [vmem:[%s7716_s17 + $0x15c0] sm:$0xff] %v5954_v62  ;;  %6979 = vst [vmem:[%s7716_s17 + $0x15c8] sm:$0xff] %v5955_v52  ;;  %v2888_v57 = vmax.f32 %v1864_v40, 0.0  ;;  %v1866_v55 = vadd.f32 3.0, %v10824_v44  ;;  %v1867_v61 = vadd.f32 3.0, %v10827_v39  ;;  %v1868_v2 = vadd.f32 3.0, %v10830_v45 }
 0x3aa   : > { %6980 = vst [vmem:[%s7716_s17 + $0x15d0] sm:$0xff] %v5956_v60  ;;  %6981 = vst [vmem:[%s7716_s17 + $0x15d8] sm:$0xff] %v5957_v63  ;;  %v2889_v4 = vmax.f32 %v1865_v1, 0.0  ;;  %v1869_v11 = vadd.f32 3.0, %v845_v53  ;;  %v1870_v6 = vadd.f32 3.0, %v846_v0  ;;  %v1871_v13 = vadd.f32 3.0, %v847_v56 }
 0x3ab   : > { %6982 = vst [vmem:[%s7716_s17 + $0x15e0] sm:$0xff] %v5958_v51  ;;  %6983 = vst [vmem:[%s7716_s17 + $0x15e8] sm:$0xff] %v5959_v58  ;;  %v3912_v59 = vmin.f32 %v2888_v57, 6.0  ;;  %v2890_v9 = vmax.f32 %v1866_v55, 0.0  ;;  %v2891_v15 = vmax.f32 %v1867_v61, 0.0  ;;  %v2892_v7 = vmax.f32 %v1868_v2, 0.0 }
 0x3ac   : > { %v3913_v16 = vmin.f32 %v2889_v4, 6.0  ;;  %v2893_v3 = vmax.f32 %v1869_v11, 0.0  ;;  %v2894_v14 = vmax.f32 %v1870_v6, 0.0  ;;  %v2895_v17 = vmax.f32 %v1871_v13, 0.0  ;;  %v10890_v57 = vld [vmem:[%s7688_s30 + $0x1670] sm:$0xff]  ;;  %v10893_v11 = vld [vmem:[%s7688_s30 + $0x1678] sm:$0xff] }
 0x3ad   : > { %v4936_v5 = vmul.f32 0.16666667, %v3912_v59  ;;  %v3914_v10 = vmin.f32 %v2890_v9, 6.0  ;;  %v3915_v18 = vmin.f32 %v2891_v15, 6.0  ;;  %v3916_v20 = vmin.f32 %v2892_v7, 6.0  ;;  %v10896_v15 = vld [vmem:[%s7688_s30 + $0x1680] sm:$0xff] }
 0x3ae   : > { %v4937_v22 = vmul.f32 0.16666667, %v3913_v16  ;;  %v3917_v34 = vmin.f32 %v2893_v3, 6.0  ;;  %v3918_v12 = vmin.f32 %v2894_v14, 6.0  ;;  %v3919_v25 = vmin.f32 %v2895_v17, 6.0  ;;  %v10899_v7 = vld [vmem:[%s7688_s30 + $0x1688] sm:$0xff] }
 0x3af   : > { %v5960_v19 = vmul.f32 %v4936_v5, %v10818_v24  ;;  %v4938_v35 = vmul.f32 0.16666667, %v3914_v10  ;;  %v4939_v30 = vmul.f32 0.16666667, %v3915_v18  ;;  %v4940_v21 = vmul.f32 0.16666667, %v3916_v20 }
 0x3b0   : > { %v5961_v26 = vmul.f32 %v4937_v22, %v10821_v43  ;;  %v4941_v31 = vmul.f32 0.16666667, %v3917_v34  ;;  %v4942_v36 = vmul.f32 0.16666667, %v3918_v12  ;;  %v4943_v38 = vmul.f32 0.16666667, %v3919_v25 }
 0x3b1   : > { %6984 = vst [vmem:[%s7716_s17 + $0x15f0] sm:$0xff] %v5960_v19  ;;  %v5962_v46 = vmul.f32 %v4938_v35, %v10824_v44  ;;  %v5963_v33 = vmul.f32 %v4939_v30, %v10827_v39  ;;  %v5964_v41 = vmul.f32 %v4940_v21, %v10830_v45  ;;  %v1872_v24 = vadd.f32 3.0, %v10854_v8  ;;  %v855_v43 = vld [vmem:[%s7688_s30 + $0x1668] sm:$0xff]  ;;  %v10902_v16 = vld [vmem:[%s7688_s30 + $0x1690] sm:$0xff]  ;;  %v861_v19 = vld [vmem:[%s7688_s30 + $0x1698] sm:$0xff] }
 0x3b2   : > { %6985 = vst [vmem:[%s7716_s17 + $0x15f8] sm:$0xff] %v5961_v26  ;;  %v5965_v48 = vmul.f32 %v4941_v31, %v845_v53  ;;  %v5966_v37 = vmul.f32 %v4942_v36, %v846_v0  ;;  %v5967_v42 = vmul.f32 %v4943_v38, %v847_v56  ;;  %v1873_v49 = vadd.f32 3.0, %v10857_v27  ;;  %v862_v35 = vld [vmem:[%s7688_s30 + $0x16a0] sm:$0xff] }
 0x3b3   : > { %6986 = vst [vmem:[%s7716_s17 + $0x1600] sm:$0xff] %v5962_v46  ;;  %6987 = vst [vmem:[%s7716_s17 + $0x1608] sm:$0xff] %v5963_v33  ;;  %v2896_v44 = vmax.f32 %v1872_v24, 0.0  ;;  %v1874_v39 = vadd.f32 3.0, %v10860_v28  ;;  %v1875_v45 = vadd.f32 3.0, %v10863_v23  ;;  %v1876_v50 = vadd.f32 3.0, %v10866_v29 }
 0x3b4   : > { %6988 = vst [vmem:[%s7716_s17 + $0x1610] sm:$0xff] %v5964_v41  ;;  %6989 = vst [vmem:[%s7716_s17 + $0x1618] sm:$0xff] %v5965_v48  ;;  %v2897_v54 = vmax.f32 %v1873_v49, 0.0  ;;  %v1877_v62 = vadd.f32 3.0, %v853_v32  ;;  %v1878_v52 = vadd.f32 3.0, %v854_v47  ;;  %v1879_v60 = vadd.f32 3.0, %v855_v43 }
 0x3b5   : > { %6990 = vst [vmem:[%s7716_s17 + $0x1620] sm:$0xff] %v5966_v37  ;;  %6991 = vst [vmem:[%s7716_s17 + $0x1628] sm:$0xff] %v5967_v42  ;;  %v3920_v40 = vmin.f32 %v2896_v44, 6.0  ;;  %v2898_v53 = vmax.f32 %v1874_v39, 0.0  ;;  %v2899_v0 = vmax.f32 %v1875_v45, 0.0  ;;  %v2900_v56 = vmax.f32 %v1876_v50, 0.0 }
 0x3b6   : > { %v3921_v63 = vmin.f32 %v2897_v54, 6.0  ;;  %v2901_v51 = vmax.f32 %v1877_v62, 0.0  ;;  %v2902_v58 = vmax.f32 %v1878_v52, 0.0  ;;  %v2903_v1 = vmax.f32 %v1879_v60, 0.0  ;;  %v10926_v44 = vld [vmem:[%s7688_s30 + $0x16b0] sm:$0xff]  ;;  %v10929_v62 = vld [vmem:[%s7688_s30 + $0x16b8] sm:$0xff] }
 0x3b7   : > { %v4944_v55 = vmul.f32 0.16666667, %v3920_v40  ;;  %v3922_v61 = vmin.f32 %v2898_v53, 6.0  ;;  %v3923_v2 = vmin.f32 %v2899_v0, 6.0  ;;  %v3924_v4 = vmin.f32 %v2900_v56, 6.0  ;;  %v10932_v0 = vld [vmem:[%s7688_s30 + $0x16c0] sm:$0xff] }
 0x3b8   : > { %v4945_v6 = vmul.f32 0.16666667, %v3921_v63  ;;  %v3925_v13 = vmin.f32 %v2901_v51, 6.0  ;;  %v3926_v59 = vmin.f32 %v2902_v58, 6.0  ;;  %v3927_v9 = vmin.f32 %v2903_v1, 6.0  ;;  %v10935_v56 = vld [vmem:[%s7688_s30 + $0x16c8] sm:$0xff] }
 0x3b9   : > { %v5968_v3 = vmul.f32 %v4944_v55, %v10854_v8  ;;  %v4946_v14 = vmul.f32 0.16666667, %v3922_v61  ;;  %v4947_v17 = vmul.f32 0.16666667, %v3923_v2  ;;  %v4948_v5 = vmul.f32 0.16666667, %v3924_v4 }
 0x3ba   : > { %v5969_v10 = vmul.f32 %v4945_v6, %v10857_v27  ;;  %v4949_v18 = vmul.f32 0.16666667, %v3925_v13  ;;  %v4950_v20 = vmul.f32 0.16666667, %v3926_v59  ;;  %v4951_v22 = vmul.f32 0.16666667, %v3927_v9 }
 0x3bb   : > { %6992 = vst [vmem:[%s7716_s17 + $0x1630] sm:$0xff] %v5968_v3  ;;  %v5970_v34 = vmul.f32 %v4946_v14, %v10860_v28  ;;  %v5971_v12 = vmul.f32 %v4947_v17, %v10863_v23  ;;  %v5972_v25 = vmul.f32 %v4948_v5, %v10866_v29  ;;  %v1880_v8 = vadd.f32 3.0, %v10890_v57  ;;  %v863_v27 = vld [vmem:[%s7688_s30 + $0x16a8] sm:$0xff]  ;;  %v10938_v63 = vld [vmem:[%s7688_s30 + $0x16d0] sm:$0xff]  ;;  %v869_v3 = vld [vmem:[%s7688_s30 + $0x16d8] sm:$0xff] }
 0x3bc   : > { %6993 = vst [vmem:[%s7716_s17 + $0x1638] sm:$0xff] %v5969_v10  ;;  %v5973_v30 = vmul.f32 %v4949_v18, %v853_v32  ;;  %v5974_v21 = vmul.f32 %v4950_v20, %v854_v47  ;;  %v5975_v26 = vmul.f32 %v4951_v22, %v855_v43  ;;  %v1881_v31 = vadd.f32 3.0, %v10893_v11  ;;  %v870_v14 = vld [vmem:[%s7688_s30 + $0x16e0] sm:$0xff] }
 0x3bd   : > { %6994 = vst [vmem:[%s7716_s17 + $0x1640] sm:$0xff] %v5970_v34  ;;  %6995 = vst [vmem:[%s7716_s17 + $0x1648] sm:$0xff] %v5971_v12  ;;  %v2904_v28 = vmax.f32 %v1880_v8, 0.0  ;;  %v1882_v23 = vadd.f32 3.0, %v10896_v15  ;;  %v1883_v29 = vadd.f32 3.0, %v10899_v7  ;;  %v1884_v36 = vadd.f32 3.0, %v10902_v16 }
 0x3be   : > { %6996 = vst [vmem:[%s7716_s17 + $0x1650] sm:$0xff] %v5972_v25  ;;  %6997 = vst [vmem:[%s7716_s17 + $0x1658] sm:$0xff] %v5973_v30  ;;  %v2905_v38 = vmax.f32 %v1881_v31, 0.0  ;;  %v1885_v46 = vadd.f32 3.0, %v861_v19  ;;  %v1886_v33 = vadd.f32 3.0, %v862_v35  ;;  %v1887_v41 = vadd.f32 3.0, %v863_v27 }
 0x3bf   : > { %6998 = vst [vmem:[%s7716_s17 + $0x1660] sm:$0xff] %v5974_v21  ;;  %6999 = vst [vmem:[%s7716_s17 + $0x1668] sm:$0xff] %v5975_v26  ;;  %v3928_v24 = vmin.f32 %v2904_v28, 6.0  ;;  %v2906_v32 = vmax.f32 %v1882_v23, 0.0  ;;  %v2907_v47 = vmax.f32 %v1883_v29, 0.0  ;;  %v2908_v43 = vmax.f32 %v1884_v36, 0.0 }
 0x3c0   : > { %v3929_v48 = vmin.f32 %v2905_v38, 6.0  ;;  %v2909_v37 = vmax.f32 %v1885_v46, 0.0  ;;  %v2910_v42 = vmax.f32 %v1886_v33, 0.0  ;;  %v2911_v49 = vmax.f32 %v1887_v41, 0.0  ;;  %v10962_v28 = vld [vmem:[%s7688_s30 + $0x16f0] sm:$0xff]  ;;  %v10965_v46 = vld [vmem:[%s7688_s30 + $0x16f8] sm:$0xff] }
 0x3c1   : > { %v4952_v39 = vmul.f32 0.16666667, %v3928_v24  ;;  %v3930_v45 = vmin.f32 %v2906_v32, 6.0  ;;  %v3931_v50 = vmin.f32 %v2907_v47, 6.0  ;;  %v3932_v54 = vmin.f32 %v2908_v43, 6.0  ;;  %v10968_v47 = vld [vmem:[%s7688_s30 + $0x1700] sm:$0xff] }
 0x3c2   : > { %v4953_v52 = vmul.f32 0.16666667, %v3929_v48  ;;  %v3933_v60 = vmin.f32 %v2909_v37, 6.0  ;;  %v3934_v40 = vmin.f32 %v2910_v42, 6.0  ;;  %v3935_v53 = vmin.f32 %v2911_v49, 6.0  ;;  %v10971_v43 = vld [vmem:[%s7688_s30 + $0x1708] sm:$0xff] }
 0x3c3   : > { %v5976_v51 = vmul.f32 %v4952_v39, %v10890_v57  ;;  %v4954_v58 = vmul.f32 0.16666667, %v3930_v45  ;;  %v4955_v1 = vmul.f32 0.16666667, %v3931_v50  ;;  %v4956_v55 = vmul.f32 0.16666667, %v3932_v54 }
 0x3c4   : > { %v5977_v61 = vmul.f32 %v4953_v52, %v10893_v11  ;;  %v4957_v2 = vmul.f32 0.16666667, %v3933_v60  ;;  %v4958_v4 = vmul.f32 0.16666667, %v3934_v40  ;;  %v4959_v6 = vmul.f32 0.16666667, %v3935_v53 }
 0x3c5   : > { %7000 = vst [vmem:[%s7716_s17 + $0x1670] sm:$0xff] %v5976_v51  ;;  %v5978_v13 = vmul.f32 %v4954_v58, %v10896_v15  ;;  %v5979_v59 = vmul.f32 %v4955_v1, %v10899_v7  ;;  %v5980_v9 = vmul.f32 %v4956_v55, %v10902_v16  ;;  %v1888_v57 = vadd.f32 3.0, %v10926_v44  ;;  %v871_v11 = vld [vmem:[%s7688_s30 + $0x16e8] sm:$0xff]  ;;  %v10974_v48 = vld [vmem:[%s7688_s30 + $0x1710] sm:$0xff]  ;;  %v877_v51 = vld [vmem:[%s7688_s30 + $0x1718] sm:$0xff] }
 0x3c6   : > { %7001 = vst [vmem:[%s7716_s17 + $0x1678] sm:$0xff] %v5977_v61  ;;  %v5981_v17 = vmul.f32 %v4957_v2, %v861_v19  ;;  %v5982_v5 = vmul.f32 %v4958_v4, %v862_v35  ;;  %v5983_v10 = vmul.f32 %v4959_v6, %v863_v27  ;;  %v1889_v18 = vadd.f32 3.0, %v10929_v62  ;;  %v878_v58 = vld [vmem:[%s7688_s30 + $0x1720] sm:$0xff] }
 0x3c7   : > { %7002 = vst [vmem:[%s7716_s17 + $0x1680] sm:$0xff] %v5978_v13  ;;  %7003 = vst [vmem:[%s7716_s17 + $0x1688] sm:$0xff] %v5979_v59  ;;  %v2912_v15 = vmax.f32 %v1888_v57, 0.0  ;;  %v1890_v7 = vadd.f32 3.0, %v10932_v0  ;;  %v1891_v16 = vadd.f32 3.0, %v10935_v56  ;;  %v1892_v20 = vadd.f32 3.0, %v10938_v63 }
 0x3c8   : > { %7004 = vst [vmem:[%s7716_s17 + $0x1690] sm:$0xff] %v5980_v9  ;;  %7005 = vst [vmem:[%s7716_s17 + $0x1698] sm:$0xff] %v5981_v17  ;;  %v2913_v22 = vmax.f32 %v1889_v18, 0.0  ;;  %v1893_v34 = vadd.f32 3.0, %v869_v3  ;;  %v1894_v12 = vadd.f32 3.0, %v870_v14  ;;  %v1895_v25 = vadd.f32 3.0, %v871_v11 }
 0x3c9   : > { %7006 = vst [vmem:[%s7716_s17 + $0x16a0] sm:$0xff] %v5982_v5  ;;  %7007 = vst [vmem:[%s7716_s17 + $0x16a8] sm:$0xff] %v5983_v10  ;;  %v3936_v8 = vmin.f32 %v2912_v15, 6.0  ;;  %v2914_v19 = vmax.f32 %v1890_v7, 0.0  ;;  %v2915_v35 = vmax.f32 %v1891_v16, 0.0  ;;  %v2916_v27 = vmax.f32 %v1892_v20, 0.0 }
 0x3ca   : > { %v3937_v30 = vmin.f32 %v2913_v22, 6.0  ;;  %v2917_v21 = vmax.f32 %v1893_v34, 0.0  ;;  %v2918_v26 = vmax.f32 %v1894_v12, 0.0  ;;  %v2919_v31 = vmax.f32 %v1895_v25, 0.0  ;;  %v10998_v15 = vld [vmem:[%s7688_s30 + $0x1730] sm:$0xff]  ;;  %v11001_v34 = vld [vmem:[%s7688_s30 + $0x1738] sm:$0xff] }
 0x3cb   : > { %v4960_v23 = vmul.f32 0.16666667, %v3936_v8  ;;  %v3938_v29 = vmin.f32 %v2914_v19, 6.0  ;;  %v3939_v36 = vmin.f32 %v2915_v35, 6.0  ;;  %v3940_v38 = vmin.f32 %v2916_v27, 6.0  ;;  %v11004_v35 = vld [vmem:[%s7688_s30 + $0x1740] sm:$0xff] }
 0x3cc   : > { %v4961_v33 = vmul.f32 0.16666667, %v3937_v30  ;;  %v3941_v41 = vmin.f32 %v2917_v21, 6.0  ;;  %v3942_v24 = vmin.f32 %v2918_v26, 6.0  ;;  %v3943_v32 = vmin.f32 %v2919_v31, 6.0  ;;  %v11007_v27 = vld [vmem:[%s7688_s30 + $0x1748] sm:$0xff] }
 0x3cd   : > { %v5984_v37 = vmul.f32 %v4960_v23, %v10926_v44  ;;  %v4962_v42 = vmul.f32 0.16666667, %v3938_v29  ;;  %v4963_v49 = vmul.f32 0.16666667, %v3939_v36  ;;  %v4964_v39 = vmul.f32 0.16666667, %v3940_v38 }
 0x3ce   : > { %v5985_v45 = vmul.f32 %v4961_v33, %v10929_v62  ;;  %v4965_v50 = vmul.f32 0.16666667, %v3941_v41  ;;  %v4966_v54 = vmul.f32 0.16666667, %v3942_v24  ;;  %v4967_v52 = vmul.f32 0.16666667, %v3943_v32 }
 0x3cf   : > { %7008 = vst [vmem:[%s7716_s17 + $0x16b0] sm:$0xff] %v5984_v37  ;;  %v5986_v60 = vmul.f32 %v4962_v42, %v10932_v0  ;;  %v5987_v40 = vmul.f32 %v4963_v49, %v10935_v56  ;;  %v5988_v53 = vmul.f32 %v4964_v39, %v10938_v63  ;;  %v1896_v44 = vadd.f32 3.0, %v10962_v28  ;;  %v879_v62 = vld [vmem:[%s7688_s30 + $0x1728] sm:$0xff]  ;;  %v11010_v30 = vld [vmem:[%s7688_s30 + $0x1750] sm:$0xff]  ;;  %v885_v37 = vld [vmem:[%s7688_s30 + $0x1758] sm:$0xff] }
 0x3d0   : > { %7009 = vst [vmem:[%s7716_s17 + $0x16b8] sm:$0xff] %v5985_v45  ;;  %v5989_v1 = vmul.f32 %v4965_v50, %v869_v3  ;;  %v5990_v55 = vmul.f32 %v4966_v54, %v870_v14  ;;  %v5991_v61 = vmul.f32 %v4967_v52, %v871_v11  ;;  %v1897_v2 = vadd.f32 3.0, %v10965_v46  ;;  %v886_v42 = vld [vmem:[%s7688_s30 + $0x1760] sm:$0xff] }
 0x3d1   : > { %7010 = vst [vmem:[%s7716_s17 + $0x16c0] sm:$0xff] %v5986_v60  ;;  %7011 = vst [vmem:[%s7716_s17 + $0x16c8] sm:$0xff] %v5987_v40  ;;  %v2920_v0 = vmax.f32 %v1896_v44, 0.0  ;;  %v1898_v56 = vadd.f32 3.0, %v10968_v47  ;;  %v1899_v63 = vadd.f32 3.0, %v10971_v43  ;;  %v1900_v4 = vadd.f32 3.0, %v10974_v48 }
 0x3d2   : > { %7012 = vst [vmem:[%s7716_s17 + $0x16d0] sm:$0xff] %v5988_v53  ;;  %7013 = vst [vmem:[%s7716_s17 + $0x16d8] sm:$0xff] %v5989_v1  ;;  %v2921_v6 = vmax.f32 %v1897_v2, 0.0  ;;  %v1901_v13 = vadd.f32 3.0, %v877_v51  ;;  %v1902_v59 = vadd.f32 3.0, %v878_v58  ;;  %v1903_v9 = vadd.f32 3.0, %v879_v62 }
 0x3d3   : > { %7014 = vst [vmem:[%s7716_s17 + $0x16e0] sm:$0xff] %v5990_v55  ;;  %7015 = vst [vmem:[%s7716_s17 + $0x16e8] sm:$0xff] %v5991_v61  ;;  %v3944_v57 = vmin.f32 %v2920_v0, 6.0  ;;  %v2922_v3 = vmax.f32 %v1898_v56, 0.0  ;;  %v2923_v14 = vmax.f32 %v1899_v63, 0.0  ;;  %v2924_v11 = vmax.f32 %v1900_v4, 0.0 }
 0x3d4   : > { %v3945_v17 = vmin.f32 %v2921_v6, 6.0  ;;  %v2925_v5 = vmax.f32 %v1901_v13, 0.0  ;;  %v2926_v10 = vmax.f32 %v1902_v59, 0.0  ;;  %v2927_v18 = vmax.f32 %v1903_v9, 0.0  ;;  %v11034_v0 = vld [vmem:[%s7688_s30 + $0x1770] sm:$0xff]  ;;  %v11037_v13 = vld [vmem:[%s7688_s30 + $0x1778] sm:$0xff] }
 0x3d5   : > { %v4968_v7 = vmul.f32 0.16666667, %v3944_v57  ;;  %v3946_v16 = vmin.f32 %v2922_v3, 6.0  ;;  %v3947_v20 = vmin.f32 %v2923_v14, 6.0  ;;  %v3948_v22 = vmin.f32 %v2924_v11, 6.0  ;;  %v11040_v14 = vld [vmem:[%s7688_s30 + $0x1780] sm:$0xff] }
 0x3d6   : > { %v4969_v12 = vmul.f32 0.16666667, %v3945_v17  ;;  %v3949_v25 = vmin.f32 %v2925_v5, 6.0  ;;  %v3950_v8 = vmin.f32 %v2926_v10, 6.0  ;;  %v3951_v19 = vmin.f32 %v2927_v18, 6.0  ;;  %v11043_v11 = vld [vmem:[%s7688_s30 + $0x1788] sm:$0xff] }
 0x3d7   : > { %v5992_v21 = vmul.f32 %v4968_v7, %v10962_v28  ;;  %v4970_v26 = vmul.f32 0.16666667, %v3946_v16  ;;  %v4971_v31 = vmul.f32 0.16666667, %v3947_v20  ;;  %v4972_v23 = vmul.f32 0.16666667, %v3948_v22 }
 0x3d8   : > { %v5993_v29 = vmul.f32 %v4969_v12, %v10965_v46  ;;  %v4973_v36 = vmul.f32 0.16666667, %v3949_v25  ;;  %v4974_v38 = vmul.f32 0.16666667, %v3950_v8  ;;  %v4975_v33 = vmul.f32 0.16666667, %v3951_v19 }
 0x3d9   : > { %7016 = vst [vmem:[%s7716_s17 + $0x16f0] sm:$0xff] %v5992_v21  ;;  %v5994_v41 = vmul.f32 %v4970_v26, %v10968_v47  ;;  %v5995_v24 = vmul.f32 %v4971_v31, %v10971_v43  ;;  %v5996_v32 = vmul.f32 %v4972_v23, %v10974_v48  ;;  %v1904_v28 = vadd.f32 3.0, %v10998_v15  ;;  %v887_v46 = vld [vmem:[%s7688_s30 + $0x1768] sm:$0xff]  ;;  %v11046_v17 = vld [vmem:[%s7688_s30 + $0x1790] sm:$0xff]  ;;  %v893_v21 = vld [vmem:[%s7688_s30 + $0x1798] sm:$0xff] }
 0x3da   : > { %7017 = vst [vmem:[%s7716_s17 + $0x16f8] sm:$0xff] %v5993_v29  ;;  %v5997_v49 = vmul.f32 %v4973_v36, %v877_v51  ;;  %v5998_v39 = vmul.f32 %v4974_v38, %v878_v58  ;;  %v5999_v45 = vmul.f32 %v4975_v33, %v879_v62  ;;  %v1905_v50 = vadd.f32 3.0, %v11001_v34  ;;  %v894_v26 = vld [vmem:[%s7688_s30 + $0x17a0] sm:$0xff] }
 0x3db   : > { %7018 = vst [vmem:[%s7716_s17 + $0x1700] sm:$0xff] %v5994_v41  ;;  %7019 = vst [vmem:[%s7716_s17 + $0x1708] sm:$0xff] %v5995_v24  ;;  %v2928_v47 = vmax.f32 %v1904_v28, 0.0  ;;  %v1906_v43 = vadd.f32 3.0, %v11004_v35  ;;  %v1907_v48 = vadd.f32 3.0, %v11007_v27  ;;  %v1908_v54 = vadd.f32 3.0, %v11010_v30 }
 0x3dc   : > { %7020 = vst [vmem:[%s7716_s17 + $0x1710] sm:$0xff] %v5996_v32  ;;  %7021 = vst [vmem:[%s7716_s17 + $0x1718] sm:$0xff] %v5997_v49  ;;  %v2929_v52 = vmax.f32 %v1905_v50, 0.0  ;;  %v1909_v60 = vadd.f32 3.0, %v885_v37  ;;  %v1910_v40 = vadd.f32 3.0, %v886_v42  ;;  %v1911_v53 = vadd.f32 3.0, %v887_v46 }
 0x3dd   : > { %7022 = vst [vmem:[%s7716_s17 + $0x1720] sm:$0xff] %v5998_v39  ;;  %7023 = vst [vmem:[%s7716_s17 + $0x1728] sm:$0xff] %v5999_v45  ;;  %v3952_v44 = vmin.f32 %v2928_v47, 6.0  ;;  %v2930_v51 = vmax.f32 %v1906_v43, 0.0  ;;  %v2931_v58 = vmax.f32 %v1907_v48, 0.0  ;;  %v2932_v62 = vmax.f32 %v1908_v54, 0.0 }
 0x3de   : > { %v3953_v1 = vmin.f32 %v2929_v52, 6.0  ;;  %v2933_v55 = vmax.f32 %v1909_v60, 0.0  ;;  %v2934_v61 = vmax.f32 %v1910_v40, 0.0  ;;  %v2935_v2 = vmax.f32 %v1911_v53, 0.0  ;;  %v11070_v47 = vld [vmem:[%s7688_s30 + $0x17b0] sm:$0xff]  ;;  %v11073_v60 = vld [vmem:[%s7688_s30 + $0x17b8] sm:$0xff] }
 0x3df   : > { %v4976_v56 = vmul.f32 0.16666667, %v3952_v44  ;;  %v3954_v63 = vmin.f32 %v2930_v51, 6.0  ;;  %v3955_v4 = vmin.f32 %v2931_v58, 6.0  ;;  %v3956_v6 = vmin.f32 %v2932_v62, 6.0  ;;  %v11076_v58 = vld [vmem:[%s7688_s30 + $0x17c0] sm:$0xff] }
 0x3e0   : > { %v4977_v59 = vmul.f32 0.16666667, %v3953_v1  ;;  %v3957_v9 = vmin.f32 %v2933_v55, 6.0  ;;  %v3958_v57 = vmin.f32 %v2934_v61, 6.0  ;;  %v3959_v3 = vmin.f32 %v2935_v2, 6.0  ;;  %v11079_v62 = vld [vmem:[%s7688_s30 + $0x17c8] sm:$0xff] }
 0x3e1   : > { %v6000_v5 = vmul.f32 %v4976_v56, %v10998_v15  ;;  %v4978_v10 = vmul.f32 0.16666667, %v3954_v63  ;;  %v4979_v18 = vmul.f32 0.16666667, %v3955_v4  ;;  %v4980_v7 = vmul.f32 0.16666667, %v3956_v6 }
 0x3e2   : > { %v6001_v16 = vmul.f32 %v4977_v59, %v11001_v34  ;;  %v4981_v20 = vmul.f32 0.16666667, %v3957_v9  ;;  %v4982_v22 = vmul.f32 0.16666667, %v3958_v57  ;;  %v4983_v12 = vmul.f32 0.16666667, %v3959_v3 }
 0x3e3   : > { %7024 = vst [vmem:[%s7716_s17 + $0x1730] sm:$0xff] %v6000_v5  ;;  %v6002_v25 = vmul.f32 %v4978_v10, %v11004_v35  ;;  %v6003_v8 = vmul.f32 %v4979_v18, %v11007_v27  ;;  %v6004_v19 = vmul.f32 %v4980_v7, %v11010_v30  ;;  %v1912_v15 = vadd.f32 3.0, %v11034_v0  ;;  %v895_v34 = vld [vmem:[%s7688_s30 + $0x17a8] sm:$0xff]  ;;  %v11082_v1 = vld [vmem:[%s7688_s30 + $0x17d0] sm:$0xff]  ;;  %v901_v5 = vld [vmem:[%s7688_s30 + $0x17d8] sm:$0xff] }
 0x3e4   : > { %7025 = vst [vmem:[%s7716_s17 + $0x1738] sm:$0xff] %v6001_v16  ;;  %v6005_v31 = vmul.f32 %v4981_v20, %v885_v37  ;;  %v6006_v23 = vmul.f32 %v4982_v22, %v886_v42  ;;  %v6007_v29 = vmul.f32 %v4983_v12, %v887_v46  ;;  %v1913_v36 = vadd.f32 3.0, %v11037_v13  ;;  %v902_v10 = vld [vmem:[%s7688_s30 + $0x17e0] sm:$0xff] }
 0x3e5   : > { %7026 = vst [vmem:[%s7716_s17 + $0x1740] sm:$0xff] %v6002_v25  ;;  %7027 = vst [vmem:[%s7716_s17 + $0x1748] sm:$0xff] %v6003_v8  ;;  %v2936_v35 = vmax.f32 %v1912_v15, 0.0  ;;  %v1914_v27 = vadd.f32 3.0, %v11040_v14  ;;  %v1915_v30 = vadd.f32 3.0, %v11043_v11  ;;  %v1916_v38 = vadd.f32 3.0, %v11046_v17 }
 0x3e6   : > { %7028 = vst [vmem:[%s7716_s17 + $0x1750] sm:$0xff] %v6004_v19  ;;  %7029 = vst [vmem:[%s7716_s17 + $0x1758] sm:$0xff] %v6005_v31  ;;  %v2937_v33 = vmax.f32 %v1913_v36, 0.0  ;;  %v1917_v41 = vadd.f32 3.0, %v893_v21  ;;  %v1918_v24 = vadd.f32 3.0, %v894_v26  ;;  %v1919_v32 = vadd.f32 3.0, %v895_v34 }
 0x3e7   : > { %7030 = vst [vmem:[%s7716_s17 + $0x1760] sm:$0xff] %v6006_v23  ;;  %7031 = vst [vmem:[%s7716_s17 + $0x1768] sm:$0xff] %v6007_v29  ;;  %v3960_v28 = vmin.f32 %v2936_v35, 6.0  ;;  %v2938_v37 = vmax.f32 %v1914_v27, 0.0  ;;  %v2939_v42 = vmax.f32 %v1915_v30, 0.0  ;;  %v2940_v46 = vmax.f32 %v1916_v38, 0.0 }
 0x3e8   : > { %v3961_v49 = vmin.f32 %v2937_v33, 6.0  ;;  %v2941_v39 = vmax.f32 %v1917_v41, 0.0  ;;  %v2942_v45 = vmax.f32 %v1918_v24, 0.0  ;;  %v2943_v50 = vmax.f32 %v1919_v32, 0.0  ;;  %v11106_v35 = vld [vmem:[%s7688_s30 + $0x17f0] sm:$0xff]  ;;  %v11109_v41 = vld [vmem:[%s7688_s30 + $0x17f8] sm:$0xff] }
 0x3e9   : > { %v4984_v43 = vmul.f32 0.16666667, %v3960_v28  ;;  %v3962_v48 = vmin.f32 %v2938_v37, 6.0  ;;  %v3963_v54 = vmin.f32 %v2939_v42, 6.0  ;;  %v3964_v52 = vmin.f32 %v2940_v46, 6.0  ;;  %v11112_v42 = vld [vmem:[%s7688_s30 + $0x1800] sm:$0xff] }
 0x3ea   : > { %v4985_v40 = vmul.f32 0.16666667, %v3961_v49  ;;  %v3965_v53 = vmin.f32 %v2941_v39, 6.0  ;;  %v3966_v44 = vmin.f32 %v2942_v45, 6.0  ;;  %v3967_v51 = vmin.f32 %v2943_v50, 6.0  ;;  %v11115_v46 = vld [vmem:[%s7688_s30 + $0x1808] sm:$0xff] }
 0x3eb   : > { %v6008_v55 = vmul.f32 %v4984_v43, %v11034_v0  ;;  %v4986_v61 = vmul.f32 0.16666667, %v3962_v48  ;;  %v4987_v2 = vmul.f32 0.16666667, %v3963_v54  ;;  %v4988_v56 = vmul.f32 0.16666667, %v3964_v52 }
 0x3ec   : > { %v6009_v63 = vmul.f32 %v4985_v40, %v11037_v13  ;;  %v4989_v4 = vmul.f32 0.16666667, %v3965_v53  ;;  %v4990_v6 = vmul.f32 0.16666667, %v3966_v44  ;;  %v4991_v59 = vmul.f32 0.16666667, %v3967_v51 }
 0x3ed   : > { %7032 = vst [vmem:[%s7716_s17 + $0x1770] sm:$0xff] %v6008_v55  ;;  %v6010_v9 = vmul.f32 %v4986_v61, %v11040_v14  ;;  %v6011_v57 = vmul.f32 %v4987_v2, %v11043_v11  ;;  %v6012_v3 = vmul.f32 %v4988_v56, %v11046_v17  ;;  %v1920_v0 = vadd.f32 3.0, %v11070_v47  ;;  %v903_v13 = vld [vmem:[%s7688_s30 + $0x17e8] sm:$0xff]  ;;  %v11118_v49 = vld [vmem:[%s7688_s30 + $0x1810] sm:$0xff]  ;;  %v909_v55 = vld [vmem:[%s7688_s30 + $0x1818] sm:$0xff] }
 0x3ee   : > { %7033 = vst [vmem:[%s7716_s17 + $0x1778] sm:$0xff] %v6009_v63  ;;  %v6013_v18 = vmul.f32 %v4989_v4, %v893_v21  ;;  %v6014_v7 = vmul.f32 %v4990_v6, %v894_v26  ;;  %v6015_v16 = vmul.f32 %v4991_v59, %v895_v34  ;;  %v1921_v20 = vadd.f32 3.0, %v11073_v60  ;;  %v910_v61 = vld [vmem:[%s7688_s30 + $0x1820] sm:$0xff] }
 0x3ef   : > { %7034 = vst [vmem:[%s7716_s17 + $0x1780] sm:$0xff] %v6010_v9  ;;  %7035 = vst [vmem:[%s7716_s17 + $0x1788] sm:$0xff] %v6011_v57  ;;  %v2944_v14 = vmax.f32 %v1920_v0, 0.0  ;;  %v1922_v11 = vadd.f32 3.0, %v11076_v58  ;;  %v1923_v17 = vadd.f32 3.0, %v11079_v62  ;;  %v1924_v22 = vadd.f32 3.0, %v11082_v1 }
 0x3f0   : > { %7036 = vst [vmem:[%s7716_s17 + $0x1790] sm:$0xff] %v6012_v3  ;;  %7037 = vst [vmem:[%s7716_s17 + $0x1798] sm:$0xff] %v6013_v18  ;;  %v2945_v12 = vmax.f32 %v1921_v20, 0.0  ;;  %v1925_v25 = vadd.f32 3.0, %v901_v5  ;;  %v1926_v8 = vadd.f32 3.0, %v902_v10  ;;  %v1927_v19 = vadd.f32 3.0, %v903_v13 }
 0x3f1   : > { %7038 = vst [vmem:[%s7716_s17 + $0x17a0] sm:$0xff] %v6014_v7  ;;  %7039 = vst [vmem:[%s7716_s17 + $0x17a8] sm:$0xff] %v6015_v16  ;;  %v3968_v15 = vmin.f32 %v2944_v14, 6.0  ;;  %v2946_v21 = vmax.f32 %v1922_v11, 0.0  ;;  %v2947_v26 = vmax.f32 %v1923_v17, 0.0  ;;  %v2948_v34 = vmax.f32 %v1924_v22, 0.0 }
 0x3f2   : > { %v3969_v31 = vmin.f32 %v2945_v12, 6.0  ;;  %v2949_v23 = vmax.f32 %v1925_v25, 0.0  ;;  %v2950_v29 = vmax.f32 %v1926_v8, 0.0  ;;  %v2951_v36 = vmax.f32 %v1927_v19, 0.0  ;;  %v11142_v14 = vld [vmem:[%s7688_s30 + $0x1830] sm:$0xff]  ;;  %v11145_v25 = vld [vmem:[%s7688_s30 + $0x1838] sm:$0xff] }
 0x3f3   : > { %v4992_v27 = vmul.f32 0.16666667, %v3968_v15  ;;  %v3970_v30 = vmin.f32 %v2946_v21, 6.0  ;;  %v3971_v38 = vmin.f32 %v2947_v26, 6.0  ;;  %v3972_v33 = vmin.f32 %v2948_v34, 6.0  ;;  %v11148_v26 = vld [vmem:[%s7688_s30 + $0x1840] sm:$0xff] }
 0x3f4   : > { %v4993_v24 = vmul.f32 0.16666667, %v3969_v31  ;;  %v3973_v32 = vmin.f32 %v2949_v23, 6.0  ;;  %v3974_v28 = vmin.f32 %v2950_v29, 6.0  ;;  %v3975_v37 = vmin.f32 %v2951_v36, 6.0  ;;  %v11151_v34 = vld [vmem:[%s7688_s30 + $0x1848] sm:$0xff] }
 0x3f5   : > { %v6016_v39 = vmul.f32 %v4992_v27, %v11070_v47  ;;  %v4994_v45 = vmul.f32 0.16666667, %v3970_v30  ;;  %v4995_v50 = vmul.f32 0.16666667, %v3971_v38  ;;  %v4996_v43 = vmul.f32 0.16666667, %v3972_v33 }
 0x3f6   : > { %v6017_v48 = vmul.f32 %v4993_v24, %v11073_v60  ;;  %v4997_v54 = vmul.f32 0.16666667, %v3973_v32  ;;  %v4998_v52 = vmul.f32 0.16666667, %v3974_v28  ;;  %v4999_v40 = vmul.f32 0.16666667, %v3975_v37 }
 0x3f7   : > { %7040 = vst [vmem:[%s7716_s17 + $0x17b0] sm:$0xff] %v6016_v39  ;;  %v6018_v53 = vmul.f32 %v4994_v45, %v11076_v58  ;;  %v6019_v44 = vmul.f32 %v4995_v50, %v11079_v62  ;;  %v6020_v51 = vmul.f32 %v4996_v43, %v11082_v1  ;;  %v1928_v47 = vadd.f32 3.0, %v11106_v35  ;;  %v911_v60 = vld [vmem:[%s7688_s30 + $0x1828] sm:$0xff]  ;;  %v11154_v31 = vld [vmem:[%s7688_s30 + $0x1850] sm:$0xff]  ;;  %v917_v39 = vld [vmem:[%s7688_s30 + $0x1858] sm:$0xff] }
 0x3f8   : > { %7041 = vst [vmem:[%s7716_s17 + $0x17b8] sm:$0xff] %v6017_v48  ;;  %v6021_v2 = vmul.f32 %v4997_v54, %v901_v5  ;;  %v6022_v56 = vmul.f32 %v4998_v52, %v902_v10  ;;  %v6023_v63 = vmul.f32 %v4999_v40, %v903_v13  ;;  %v1929_v4 = vadd.f32 3.0, %v11109_v41  ;;  %v918_v45 = vld [vmem:[%s7688_s30 + $0x1860] sm:$0xff] }
 0x3f9   : > { %7042 = vst [vmem:[%s7716_s17 + $0x17c0] sm:$0xff] %v6018_v53  ;;  %7043 = vst [vmem:[%s7716_s17 + $0x17c8] sm:$0xff] %v6019_v44  ;;  %v2952_v58 = vmax.f32 %v1928_v47, 0.0  ;;  %v1930_v62 = vadd.f32 3.0, %v11112_v42  ;;  %v1931_v1 = vadd.f32 3.0, %v11115_v46  ;;  %v1932_v6 = vadd.f32 3.0, %v11118_v49 }
 0x3fa   : > { %7044 = vst [vmem:[%s7716_s17 + $0x17d0] sm:$0xff] %v6020_v51  ;;  %7045 = vst [vmem:[%s7716_s17 + $0x17d8] sm:$0xff] %v6021_v2  ;;  %v2953_v59 = vmax.f32 %v1929_v4, 0.0  ;;  %v1933_v9 = vadd.f32 3.0, %v909_v55  ;;  %v1934_v57 = vadd.f32 3.0, %v910_v61  ;;  %v1935_v3 = vadd.f32 3.0, %v911_v60 }
 0x3fb   : > { %7046 = vst [vmem:[%s7716_s17 + $0x17e0] sm:$0xff] %v6022_v56  ;;  %7047 = vst [vmem:[%s7716_s17 + $0x17e8] sm:$0xff] %v6023_v63  ;;  %v3976_v0 = vmin.f32 %v2952_v58, 6.0  ;;  %v2954_v5 = vmax.f32 %v1930_v62, 0.0  ;;  %v2955_v10 = vmax.f32 %v1931_v1, 0.0  ;;  %v2956_v13 = vmax.f32 %v1932_v6, 0.0 }
 0x3fc   : > { %v3977_v18 = vmin.f32 %v2953_v59, 6.0  ;;  %v2957_v7 = vmax.f32 %v1933_v9, 0.0  ;;  %v2958_v16 = vmax.f32 %v1934_v57, 0.0  ;;  %v2959_v20 = vmax.f32 %v1935_v3, 0.0  ;;  %v11178_v58 = vld [vmem:[%s7688_s30 + $0x1870] sm:$0xff]  ;;  %v11181_v9 = vld [vmem:[%s7688_s30 + $0x1878] sm:$0xff] }
 0x3fd   : > { %v5000_v11 = vmul.f32 0.16666667, %v3976_v0  ;;  %v3978_v17 = vmin.f32 %v2954_v5, 6.0  ;;  %v3979_v22 = vmin.f32 %v2955_v10, 6.0  ;;  %v3980_v12 = vmin.f32 %v2956_v13, 6.0  ;;  %v11184_v10 = vld [vmem:[%s7688_s30 + $0x1880] sm:$0xff] }
 0x3fe   : > { %v5001_v8 = vmul.f32 0.16666667, %v3977_v18  ;;  %v3981_v19 = vmin.f32 %v2957_v7, 6.0  ;;  %v3982_v15 = vmin.f32 %v2958_v16, 6.0  ;;  %v3983_v21 = vmin.f32 %v2959_v20, 6.0  ;;  %v11187_v13 = vld [vmem:[%s7688_s30 + $0x1888] sm:$0xff] }
 0x3ff   : > { %v6024_v23 = vmul.f32 %v5000_v11, %v11106_v35  ;;  %v5002_v29 = vmul.f32 0.16666667, %v3978_v17  ;;  %v5003_v36 = vmul.f32 0.16666667, %v3979_v22  ;;  %v5004_v27 = vmul.f32 0.16666667, %v3980_v12 }
 0x400   : > { %v6025_v30 = vmul.f32 %v5001_v8, %v11109_v41  ;;  %v5005_v38 = vmul.f32 0.16666667, %v3981_v19  ;;  %v5006_v33 = vmul.f32 0.16666667, %v3982_v15  ;;  %v5007_v24 = vmul.f32 0.16666667, %v3983_v21 }
 0x401   : > { %7048 = vst [vmem:[%s7716_s17 + $0x17f0] sm:$0xff] %v6024_v23  ;;  %v6026_v32 = vmul.f32 %v5002_v29, %v11112_v42  ;;  %v6027_v28 = vmul.f32 %v5003_v36, %v11115_v46  ;;  %v6028_v37 = vmul.f32 %v5004_v27, %v11118_v49  ;;  %v1936_v35 = vadd.f32 3.0, %v11142_v14  ;;  %v919_v41 = vld [vmem:[%s7688_s30 + $0x1868] sm:$0xff]  ;;  %v11190_v18 = vld [vmem:[%s7688_s30 + $0x1890] sm:$0xff]  ;;  %v925_v23 = vld [vmem:[%s7688_s30 + $0x1898] sm:$0xff] }
 0x402   : > { %7049 = vst [vmem:[%s7716_s17 + $0x17f8] sm:$0xff] %v6025_v30  ;;  %v6029_v50 = vmul.f32 %v5005_v38, %v909_v55  ;;  %v6030_v43 = vmul.f32 %v5006_v33, %v910_v61  ;;  %v6031_v48 = vmul.f32 %v5007_v24, %v911_v60  ;;  %v1937_v54 = vadd.f32 3.0, %v11145_v25  ;;  %v926_v29 = vld [vmem:[%s7688_s30 + $0x18a0] sm:$0xff] }
 0x403   : > { %7050 = vst [vmem:[%s7716_s17 + $0x1800] sm:$0xff] %v6026_v32  ;;  %7051 = vst [vmem:[%s7716_s17 + $0x1808] sm:$0xff] %v6027_v28  ;;  %v2960_v42 = vmax.f32 %v1936_v35, 0.0  ;;  %v1938_v46 = vadd.f32 3.0, %v11148_v26  ;;  %v1939_v49 = vadd.f32 3.0, %v11151_v34  ;;  %v1940_v52 = vadd.f32 3.0, %v11154_v31 }
 0x404   : > { %7052 = vst [vmem:[%s7716_s17 + $0x1810] sm:$0xff] %v6028_v37  ;;  %7053 = vst [vmem:[%s7716_s17 + $0x1818] sm:$0xff] %v6029_v50  ;;  %v2961_v40 = vmax.f32 %v1937_v54, 0.0  ;;  %v1941_v53 = vadd.f32 3.0, %v917_v39  ;;  %v1942_v44 = vadd.f32 3.0, %v918_v45  ;;  %v1943_v51 = vadd.f32 3.0, %v919_v41 }
 0x405   : > { %7054 = vst [vmem:[%s7716_s17 + $0x1820] sm:$0xff] %v6030_v43  ;;  %7055 = vst [vmem:[%s7716_s17 + $0x1828] sm:$0xff] %v6031_v48  ;;  %v3984_v47 = vmin.f32 %v2960_v42, 6.0  ;;  %v2962_v55 = vmax.f32 %v1938_v46, 0.0  ;;  %v2963_v61 = vmax.f32 %v1939_v49, 0.0  ;;  %v2964_v60 = vmax.f32 %v1940_v52, 0.0 }
 0x406   : > { %v3985_v2 = vmin.f32 %v2961_v40, 6.0  ;;  %v2965_v56 = vmax.f32 %v1941_v53, 0.0  ;;  %v2966_v63 = vmax.f32 %v1942_v44, 0.0  ;;  %v2967_v4 = vmax.f32 %v1943_v51, 0.0  ;;  %v11214_v42 = vld [vmem:[%s7688_s30 + $0x18b0] sm:$0xff]  ;;  %v11217_v53 = vld [vmem:[%s7688_s30 + $0x18b8] sm:$0xff] }
 0x407   : > { %v5008_v62 = vmul.f32 0.16666667, %v3984_v47  ;;  %v3986_v1 = vmin.f32 %v2962_v55, 6.0  ;;  %v3987_v6 = vmin.f32 %v2963_v61, 6.0  ;;  %v3988_v59 = vmin.f32 %v2964_v60, 6.0  ;;  %v11220_v61 = vld [vmem:[%s7688_s30 + $0x18c0] sm:$0xff] }
 0x408   : > { %v5009_v57 = vmul.f32 0.16666667, %v3985_v2  ;;  %v3989_v3 = vmin.f32 %v2965_v56, 6.0  ;;  %v3990_v0 = vmin.f32 %v2966_v63, 6.0  ;;  %v3991_v5 = vmin.f32 %v2967_v4, 6.0  ;;  %v11223_v60 = vld [vmem:[%s7688_s30 + $0x18c8] sm:$0xff] }
 0x409   : > { %v6032_v7 = vmul.f32 %v5008_v62, %v11142_v14  ;;  %v5010_v16 = vmul.f32 0.16666667, %v3986_v1  ;;  %v5011_v20 = vmul.f32 0.16666667, %v3987_v6  ;;  %v5012_v11 = vmul.f32 0.16666667, %v3988_v59 }
 0x40a   : > { %v6033_v17 = vmul.f32 %v5009_v57, %v11145_v25  ;;  %v5013_v22 = vmul.f32 0.16666667, %v3989_v3  ;;  %v5014_v12 = vmul.f32 0.16666667, %v3990_v0  ;;  %v5015_v8 = vmul.f32 0.16666667, %v3991_v5 }
 0x40b   : > { %7056 = vst [vmem:[%s7716_s17 + $0x1830] sm:$0xff] %v6032_v7  ;;  %v6034_v19 = vmul.f32 %v5010_v16, %v11148_v26  ;;  %v6035_v15 = vmul.f32 %v5011_v20, %v11151_v34  ;;  %v6036_v21 = vmul.f32 %v5012_v11, %v11154_v31  ;;  %v1944_v14 = vadd.f32 3.0, %v11178_v58  ;;  %v927_v25 = vld [vmem:[%s7688_s30 + $0x18a8] sm:$0xff]  ;;  %v11226_v2 = vld [vmem:[%s7688_s30 + $0x18d0] sm:$0xff]  ;;  %v933_v7 = vld [vmem:[%s7688_s30 + $0x18d8] sm:$0xff] }
 0x40c   : > { %7057 = vst [vmem:[%s7716_s17 + $0x1838] sm:$0xff] %v6033_v17  ;;  %v6037_v36 = vmul.f32 %v5013_v22, %v917_v39  ;;  %v6038_v27 = vmul.f32 %v5014_v12, %v918_v45  ;;  %v6039_v30 = vmul.f32 %v5015_v8, %v919_v41  ;;  %v1945_v38 = vadd.f32 3.0, %v11181_v9  ;;  %v934_v16 = vld [vmem:[%s7688_s30 + $0x18e0] sm:$0xff] }
 0x40d   : > { %7058 = vst [vmem:[%s7716_s17 + $0x1840] sm:$0xff] %v6034_v19  ;;  %7059 = vst [vmem:[%s7716_s17 + $0x1848] sm:$0xff] %v6035_v15  ;;  %v2968_v26 = vmax.f32 %v1944_v14, 0.0  ;;  %v1946_v34 = vadd.f32 3.0, %v11184_v10  ;;  %v1947_v31 = vadd.f32 3.0, %v11187_v13  ;;  %v1948_v33 = vadd.f32 3.0, %v11190_v18 }
 0x40e   : > { %7060 = vst [vmem:[%s7716_s17 + $0x1850] sm:$0xff] %v6036_v21  ;;  %7061 = vst [vmem:[%s7716_s17 + $0x1858] sm:$0xff] %v6037_v36  ;;  %v2969_v24 = vmax.f32 %v1945_v38, 0.0  ;;  %v1949_v32 = vadd.f32 3.0, %v925_v23  ;;  %v1950_v28 = vadd.f32 3.0, %v926_v29  ;;  %v1951_v37 = vadd.f32 3.0, %v927_v25 }
 0x40f   : > { %7062 = vst [vmem:[%s7716_s17 + $0x1860] sm:$0xff] %v6038_v27  ;;  %7063 = vst [vmem:[%s7716_s17 + $0x1868] sm:$0xff] %v6039_v30  ;;  %v3992_v35 = vmin.f32 %v2968_v26, 6.0  ;;  %v2970_v39 = vmax.f32 %v1946_v34, 0.0  ;;  %v2971_v45 = vmax.f32 %v1947_v31, 0.0  ;;  %v2972_v41 = vmax.f32 %v1948_v33, 0.0 }
 0x410   : > { %v3993_v50 = vmin.f32 %v2969_v24, 6.0  ;;  %v2973_v43 = vmax.f32 %v1949_v32, 0.0  ;;  %v2974_v48 = vmax.f32 %v1950_v28, 0.0  ;;  %v2975_v54 = vmax.f32 %v1951_v37, 0.0  ;;  %v11250_v26 = vld [vmem:[%s7688_s30 + $0x18f0] sm:$0xff]  ;;  %v11253_v32 = vld [vmem:[%s7688_s30 + $0x18f8] sm:$0xff] }
 0x411   : > { %v5016_v46 = vmul.f32 0.16666667, %v3992_v35  ;;  %v3994_v49 = vmin.f32 %v2970_v39, 6.0  ;;  %v3995_v52 = vmin.f32 %v2971_v45, 6.0  ;;  %v3996_v40 = vmin.f32 %v2972_v41, 6.0  ;;  %v11256_v45 = vld [vmem:[%s7688_s30 + $0x1900] sm:$0xff] }
 0x412   : > { %v5017_v44 = vmul.f32 0.16666667, %v3993_v50  ;;  %v3997_v51 = vmin.f32 %v2973_v43, 6.0  ;;  %v3998_v47 = vmin.f32 %v2974_v48, 6.0  ;;  %v3999_v55 = vmin.f32 %v2975_v54, 6.0  ;;  %v11259_v41 = vld [vmem:[%s7688_s30 + $0x1908] sm:$0xff] }
 0x413   : > { %v6040_v56 = vmul.f32 %v5016_v46, %v11178_v58  ;;  %v5018_v63 = vmul.f32 0.16666667, %v3994_v49  ;;  %v5019_v4 = vmul.f32 0.16666667, %v3995_v52  ;;  %v5020_v62 = vmul.f32 0.16666667, %v3996_v40 }
 0x414   : > { %v6041_v1 = vmul.f32 %v5017_v44, %v11181_v9  ;;  %v5021_v6 = vmul.f32 0.16666667, %v3997_v51  ;;  %v5022_v59 = vmul.f32 0.16666667, %v3998_v47  ;;  %v5023_v57 = vmul.f32 0.16666667, %v3999_v55 }
 0x415   : > { %7064 = vst [vmem:[%s7716_s17 + $0x1870] sm:$0xff] %v6040_v56  ;;  %v6042_v3 = vmul.f32 %v5018_v63, %v11184_v10  ;;  %v6043_v0 = vmul.f32 %v5019_v4, %v11187_v13  ;;  %v6044_v5 = vmul.f32 %v5020_v62, %v11190_v18  ;;  %v1952_v58 = vadd.f32 3.0, %v11214_v42  ;;  %v935_v9 = vld [vmem:[%s7688_s30 + $0x18e8] sm:$0xff]  ;;  %v11262_v50 = vld [vmem:[%s7688_s30 + $0x1910] sm:$0xff]  ;;  %v941_v56 = vld [vmem:[%s7688_s30 + $0x1918] sm:$0xff] }
 0x416   : > { %7065 = vst [vmem:[%s7716_s17 + $0x1878] sm:$0xff] %v6041_v1  ;;  %v6045_v20 = vmul.f32 %v5021_v6, %v925_v23  ;;  %v6046_v11 = vmul.f32 %v5022_v59, %v926_v29  ;;  %v6047_v17 = vmul.f32 %v5023_v57, %v927_v25  ;;  %v1953_v22 = vadd.f32 3.0, %v11217_v53  ;;  %v942_v63 = vld [vmem:[%s7688_s30 + $0x1920] sm:$0xff] }
 0x417   : > { %7066 = vst [vmem:[%s7716_s17 + $0x1880] sm:$0xff] %v6042_v3  ;;  %7067 = vst [vmem:[%s7716_s17 + $0x1888] sm:$0xff] %v6043_v0  ;;  %v2976_v10 = vmax.f32 %v1952_v58, 0.0  ;;  %v1954_v13 = vadd.f32 3.0, %v11220_v61  ;;  %v1955_v18 = vadd.f32 3.0, %v11223_v60  ;;  %v1956_v12 = vadd.f32 3.0, %v11226_v2 }
 0x418   : > { %7068 = vst [vmem:[%s7716_s17 + $0x1890] sm:$0xff] %v6044_v5  ;;  %7069 = vst [vmem:[%s7716_s17 + $0x1898] sm:$0xff] %v6045_v20  ;;  %v2977_v8 = vmax.f32 %v1953_v22, 0.0  ;;  %v1957_v19 = vadd.f32 3.0, %v933_v7  ;;  %v1958_v15 = vadd.f32 3.0, %v934_v16  ;;  %v1959_v21 = vadd.f32 3.0, %v935_v9 }
 0x419   : > { %7070 = vst [vmem:[%s7716_s17 + $0x18a0] sm:$0xff] %v6046_v11  ;;  %7071 = vst [vmem:[%s7716_s17 + $0x18a8] sm:$0xff] %v6047_v17  ;;  %v4000_v14 = vmin.f32 %v2976_v10, 6.0  ;;  %v2978_v23 = vmax.f32 %v1954_v13, 0.0  ;;  %v2979_v29 = vmax.f32 %v1955_v18, 0.0  ;;  %v2980_v25 = vmax.f32 %v1956_v12, 0.0 }
 0x41a   : > { %v4001_v36 = vmin.f32 %v2977_v8, 6.0  ;;  %v2981_v27 = vmax.f32 %v1957_v19, 0.0  ;;  %v2982_v30 = vmax.f32 %v1958_v15, 0.0  ;;  %v2983_v38 = vmax.f32 %v1959_v21, 0.0  ;;  %v11286_v10 = vld [vmem:[%s7688_s30 + $0x1930] sm:$0xff]  ;;  %v11289_v19 = vld [vmem:[%s7688_s30 + $0x1938] sm:$0xff] }
 0x41b   : > { %v5024_v34 = vmul.f32 0.16666667, %v4000_v14  ;;  %v4002_v31 = vmin.f32 %v2978_v23, 6.0  ;;  %v4003_v33 = vmin.f32 %v2979_v29, 6.0  ;;  %v4004_v24 = vmin.f32 %v2980_v25, 6.0  ;;  %v11292_v29 = vld [vmem:[%s7688_s30 + $0x1940] sm:$0xff] }
 0x41c   : > { %v5025_v28 = vmul.f32 0.16666667, %v4001_v36  ;;  %v4005_v37 = vmin.f32 %v2981_v27, 6.0  ;;  %v4006_v35 = vmin.f32 %v2982_v30, 6.0  ;;  %v4007_v39 = vmin.f32 %v2983_v38, 6.0  ;;  %v11295_v25 = vld [vmem:[%s7688_s30 + $0x1948] sm:$0xff] }
 0x41d   : > { %v6048_v43 = vmul.f32 %v5024_v34, %v11214_v42  ;;  %v5026_v48 = vmul.f32 0.16666667, %v4002_v31  ;;  %v5027_v54 = vmul.f32 0.16666667, %v4003_v33  ;;  %v5028_v46 = vmul.f32 0.16666667, %v4004_v24 }
 0x41e   : > { %v6049_v49 = vmul.f32 %v5025_v28, %v11217_v53  ;;  %v5029_v52 = vmul.f32 0.16666667, %v4005_v37  ;;  %v5030_v40 = vmul.f32 0.16666667, %v4006_v35  ;;  %v5031_v44 = vmul.f32 0.16666667, %v4007_v39 }
 0x41f   : > { %7072 = vst [vmem:[%s7716_s17 + $0x18b0] sm:$0xff] %v6048_v43  ;;  %v6050_v51 = vmul.f32 %v5026_v48, %v11220_v61  ;;  %v6051_v47 = vmul.f32 %v5027_v54, %v11223_v60  ;;  %v6052_v55 = vmul.f32 %v5028_v46, %v11226_v2  ;;  %v1960_v42 = vadd.f32 3.0, %v11250_v26  ;;  %v943_v53 = vld [vmem:[%s7688_s30 + $0x1928] sm:$0xff]  ;;  %v11298_v36 = vld [vmem:[%s7688_s30 + $0x1950] sm:$0xff]  ;;  %v949_v43 = vld [vmem:[%s7688_s30 + $0x1958] sm:$0xff] }
 0x420   : > { %7073 = vst [vmem:[%s7716_s17 + $0x18b8] sm:$0xff] %v6049_v49  ;;  %v6053_v4 = vmul.f32 %v5029_v52, %v933_v7  ;;  %v6054_v62 = vmul.f32 %v5030_v40, %v934_v16  ;;  %v6055_v1 = vmul.f32 %v5031_v44, %v935_v9  ;;  %v1961_v6 = vadd.f32 3.0, %v11253_v32  ;;  %v950_v48 = vld [vmem:[%s7688_s30 + $0x1960] sm:$0xff] }
 0x421   : > { %7074 = vst [vmem:[%s7716_s17 + $0x18c0] sm:$0xff] %v6050_v51  ;;  %7075 = vst [vmem:[%s7716_s17 + $0x18c8] sm:$0xff] %v6051_v47  ;;  %v2984_v61 = vmax.f32 %v1960_v42, 0.0  ;;  %v1962_v60 = vadd.f32 3.0, %v11256_v45  ;;  %v1963_v2 = vadd.f32 3.0, %v11259_v41  ;;  %v1964_v59 = vadd.f32 3.0, %v11262_v50 }
 0x422   : > { %7076 = vst [vmem:[%s7716_s17 + $0x18d0] sm:$0xff] %v6052_v55  ;;  %7077 = vst [vmem:[%s7716_s17 + $0x18d8] sm:$0xff] %v6053_v4  ;;  %v2985_v57 = vmax.f32 %v1961_v6, 0.0  ;;  %v1965_v3 = vadd.f32 3.0, %v941_v56  ;;  %v1966_v0 = vadd.f32 3.0, %v942_v63  ;;  %v1967_v5 = vadd.f32 3.0, %v943_v53 }
 0x423   : > { %7078 = vst [vmem:[%s7716_s17 + $0x18e0] sm:$0xff] %v6054_v62  ;;  %7079 = vst [vmem:[%s7716_s17 + $0x18e8] sm:$0xff] %v6055_v1  ;;  %v4008_v58 = vmin.f32 %v2984_v61, 6.0  ;;  %v2986_v7 = vmax.f32 %v1962_v60, 0.0  ;;  %v2987_v16 = vmax.f32 %v1963_v2, 0.0  ;;  %v2988_v9 = vmax.f32 %v1964_v59, 0.0 }
 0x424   : > { %v4009_v20 = vmin.f32 %v2985_v57, 6.0  ;;  %v2989_v11 = vmax.f32 %v1965_v3, 0.0  ;;  %v2990_v17 = vmax.f32 %v1966_v0, 0.0  ;;  %v2991_v22 = vmax.f32 %v1967_v5, 0.0  ;;  %v11322_v61 = vld [vmem:[%s7688_s30 + $0x1970] sm:$0xff]  ;;  %v11325_v3 = vld [vmem:[%s7688_s30 + $0x1978] sm:$0xff] }
 0x425   : > { %v5032_v13 = vmul.f32 0.16666667, %v4008_v58  ;;  %v4010_v18 = vmin.f32 %v2986_v7, 6.0  ;;  %v4011_v12 = vmin.f32 %v2987_v16, 6.0  ;;  %v4012_v8 = vmin.f32 %v2988_v9, 6.0  ;;  %v11328_v16 = vld [vmem:[%s7688_s30 + $0x1980] sm:$0xff] }
 0x426   : > { %v5033_v15 = vmul.f32 0.16666667, %v4009_v20  ;;  %v4013_v21 = vmin.f32 %v2989_v11, 6.0  ;;  %v4014_v14 = vmin.f32 %v2990_v17, 6.0  ;;  %v4015_v23 = vmin.f32 %v2991_v22, 6.0  ;;  %v11331_v9 = vld [vmem:[%s7688_s30 + $0x1988] sm:$0xff] }
 0x427   : > { %v6056_v27 = vmul.f32 %v5032_v13, %v11250_v26  ;;  %v5034_v30 = vmul.f32 0.16666667, %v4010_v18  ;;  %v5035_v38 = vmul.f32 0.16666667, %v4011_v12  ;;  %v5036_v34 = vmul.f32 0.16666667, %v4012_v8 }
 0x428   : > { %v6057_v31 = vmul.f32 %v5033_v15, %v11253_v32  ;;  %v5037_v33 = vmul.f32 0.16666667, %v4013_v21  ;;  %v5038_v24 = vmul.f32 0.16666667, %v4014_v14  ;;  %v5039_v28 = vmul.f32 0.16666667, %v4015_v23 }
 0x429   : > { %7080 = vst [vmem:[%s7716_s17 + $0x18f0] sm:$0xff] %v6056_v27  ;;  %v6058_v37 = vmul.f32 %v5034_v30, %v11256_v45  ;;  %v6059_v35 = vmul.f32 %v5035_v38, %v11259_v41  ;;  %v6060_v39 = vmul.f32 %v5036_v34, %v11262_v50  ;;  %v1968_v26 = vadd.f32 3.0, %v11286_v10  ;;  %v951_v32 = vld [vmem:[%s7688_s30 + $0x1968] sm:$0xff]  ;;  %v11334_v20 = vld [vmem:[%s7688_s30 + $0x1990] sm:$0xff]  ;;  %v957_v27 = vld [vmem:[%s7688_s30 + $0x1998] sm:$0xff] }
 0x42a   : > { %7081 = vst [vmem:[%s7716_s17 + $0x18f8] sm:$0xff] %v6057_v31  ;;  %v6061_v54 = vmul.f32 %v5037_v33, %v941_v56  ;;  %v6062_v46 = vmul.f32 %v5038_v24, %v942_v63  ;;  %v6063_v49 = vmul.f32 %v5039_v28, %v943_v53  ;;  %v1969_v52 = vadd.f32 3.0, %v11289_v19  ;;  %v958_v30 = vld [vmem:[%s7688_s30 + $0x19a0] sm:$0xff] }
 0x42b   : > { %7082 = vst [vmem:[%s7716_s17 + $0x1900] sm:$0xff] %v6058_v37  ;;  %7083 = vst [vmem:[%s7716_s17 + $0x1908] sm:$0xff] %v6059_v35  ;;  %v2992_v45 = vmax.f32 %v1968_v26, 0.0  ;;  %v1970_v41 = vadd.f32 3.0, %v11292_v29  ;;  %v1971_v50 = vadd.f32 3.0, %v11295_v25  ;;  %v1972_v40 = vadd.f32 3.0, %v11298_v36 }
 0x42c   : > { %7084 = vst [vmem:[%s7716_s17 + $0x1910] sm:$0xff] %v6060_v39  ;;  %7085 = vst [vmem:[%s7716_s17 + $0x1918] sm:$0xff] %v6061_v54  ;;  %v2993_v44 = vmax.f32 %v1969_v52, 0.0  ;;  %v1973_v51 = vadd.f32 3.0, %v949_v43  ;;  %v1974_v47 = vadd.f32 3.0, %v950_v48  ;;  %v1975_v55 = vadd.f32 3.0, %v951_v32 }
 0x42d   : > { %7086 = vst [vmem:[%s7716_s17 + $0x1920] sm:$0xff] %v6062_v46  ;;  %7087 = vst [vmem:[%s7716_s17 + $0x1928] sm:$0xff] %v6063_v49  ;;  %v4016_v42 = vmin.f32 %v2992_v45, 6.0  ;;  %v2994_v56 = vmax.f32 %v1970_v41, 0.0  ;;  %v2995_v63 = vmax.f32 %v1971_v50, 0.0  ;;  %v2996_v53 = vmax.f32 %v1972_v40, 0.0 }
 0x42e   : > { %v4017_v4 = vmin.f32 %v2993_v44, 6.0  ;;  %v2997_v62 = vmax.f32 %v1973_v51, 0.0  ;;  %v2998_v1 = vmax.f32 %v1974_v47, 0.0  ;;  %v2999_v6 = vmax.f32 %v1975_v55, 0.0  ;;  %v11358_v45 = vld [vmem:[%s7688_s30 + $0x19b0] sm:$0xff]  ;;  %v11361_v51 = vld [vmem:[%s7688_s30 + $0x19b8] sm:$0xff] }
 0x42f   : > { %v5040_v60 = vmul.f32 0.16666667, %v4016_v42  ;;  %v4018_v2 = vmin.f32 %v2994_v56, 6.0  ;;  %v4019_v59 = vmin.f32 %v2995_v63, 6.0  ;;  %v4020_v57 = vmin.f32 %v2996_v53, 6.0  ;;  %v11364_v63 = vld [vmem:[%s7688_s30 + $0x19c0] sm:$0xff] }
 0x430   : > { %v5041_v0 = vmul.f32 0.16666667, %v4017_v4  ;;  %v4021_v5 = vmin.f32 %v2997_v62, 6.0  ;;  %v4022_v58 = vmin.f32 %v2998_v1, 6.0  ;;  %v4023_v7 = vmin.f32 %v2999_v6, 6.0  ;;  %v11367_v53 = vld [vmem:[%s7688_s30 + $0x19c8] sm:$0xff] }
 0x431   : > { %v6064_v11 = vmul.f32 %v5040_v60, %v11286_v10  ;;  %v5042_v17 = vmul.f32 0.16666667, %v4018_v2  ;;  %v5043_v22 = vmul.f32 0.16666667, %v4019_v59  ;;  %v5044_v13 = vmul.f32 0.16666667, %v4020_v57 }
 0x432   : > { %v6065_v18 = vmul.f32 %v5041_v0, %v11289_v19  ;;  %v5045_v12 = vmul.f32 0.16666667, %v4021_v5  ;;  %v5046_v8 = vmul.f32 0.16666667, %v4022_v58  ;;  %v5047_v15 = vmul.f32 0.16666667, %v4023_v7 }
 0x433   : > { %7088 = vst [vmem:[%s7716_s17 + $0x1930] sm:$0xff] %v6064_v11  ;;  %v6066_v21 = vmul.f32 %v5042_v17, %v11292_v29  ;;  %v6067_v14 = vmul.f32 %v5043_v22, %v11295_v25  ;;  %v6068_v23 = vmul.f32 %v5044_v13, %v11298_v36  ;;  %v1976_v10 = vadd.f32 3.0, %v11322_v61  ;;  %v959_v19 = vld [vmem:[%s7688_s30 + $0x19a8] sm:$0xff]  ;;  %v11370_v4 = vld [vmem:[%s7688_s30 + $0x19d0] sm:$0xff]  ;;  %v965_v11 = vld [vmem:[%s7688_s30 + $0x19d8] sm:$0xff] }
 0x434   : > { %7089 = vst [vmem:[%s7716_s17 + $0x1938] sm:$0xff] %v6065_v18  ;;  %v6069_v38 = vmul.f32 %v5045_v12, %v949_v43  ;;  %v6070_v34 = vmul.f32 %v5046_v8, %v950_v48  ;;  %v6071_v31 = vmul.f32 %v5047_v15, %v951_v32  ;;  %v1977_v33 = vadd.f32 3.0, %v11325_v3  ;;  %v966_v17 = vld [vmem:[%s7688_s30 + $0x19e0] sm:$0xff] }
 0x435   : > { %7090 = vst [vmem:[%s7716_s17 + $0x1940] sm:$0xff] %v6066_v21  ;;  %7091 = vst [vmem:[%s7716_s17 + $0x1948] sm:$0xff] %v6067_v14  ;;  %v3000_v29 = vmax.f32 %v1976_v10, 0.0  ;;  %v1978_v25 = vadd.f32 3.0, %v11328_v16  ;;  %v1979_v36 = vadd.f32 3.0, %v11331_v9  ;;  %v1980_v24 = vadd.f32 3.0, %v11334_v20 }
 0x436   : > { %7092 = vst [vmem:[%s7716_s17 + $0x1950] sm:$0xff] %v6068_v23  ;;  %7093 = vst [vmem:[%s7716_s17 + $0x1958] sm:$0xff] %v6069_v38  ;;  %v3001_v28 = vmax.f32 %v1977_v33, 0.0  ;;  %v1981_v37 = vadd.f32 3.0, %v957_v27  ;;  %v1982_v35 = vadd.f32 3.0, %v958_v30  ;;  %v1983_v39 = vadd.f32 3.0, %v959_v19 }
 0x437   : > { %7094 = vst [vmem:[%s7716_s17 + $0x1960] sm:$0xff] %v6070_v34  ;;  %7095 = vst [vmem:[%s7716_s17 + $0x1968] sm:$0xff] %v6071_v31  ;;  %v4024_v26 = vmin.f32 %v3000_v29, 6.0  ;;  %v3002_v43 = vmax.f32 %v1978_v25, 0.0  ;;  %v3003_v48 = vmax.f32 %v1979_v36, 0.0  ;;  %v3004_v32 = vmax.f32 %v1980_v24, 0.0 }
 0x438   : > { %v4025_v54 = vmin.f32 %v3001_v28, 6.0  ;;  %v3005_v46 = vmax.f32 %v1981_v37, 0.0  ;;  %v3006_v49 = vmax.f32 %v1982_v35, 0.0  ;;  %v3007_v52 = vmax.f32 %v1983_v39, 0.0  ;;  %v11394_v29 = vld [vmem:[%s7688_s30 + $0x19f0] sm:$0xff]  ;;  %v11397_v37 = vld [vmem:[%s7688_s30 + $0x19f8] sm:$0xff] }
 0x439   : > { %v5048_v41 = vmul.f32 0.16666667, %v4024_v26  ;;  %v4026_v50 = vmin.f32 %v3002_v43, 6.0  ;;  %v4027_v40 = vmin.f32 %v3003_v48, 6.0  ;;  %v4028_v44 = vmin.f32 %v3004_v32, 6.0  ;;  %v11400_v48 = vld [vmem:[%s7688_s30 + $0x1a00] sm:$0xff] }
 0x43a   : > { %v5049_v47 = vmul.f32 0.16666667, %v4025_v54  ;;  %v4029_v55 = vmin.f32 %v3005_v46, 6.0  ;;  %v4030_v42 = vmin.f32 %v3006_v49, 6.0  ;;  %v4031_v56 = vmin.f32 %v3007_v52, 6.0  ;;  %v11403_v32 = vld [vmem:[%s7688_s30 + $0x1a08] sm:$0xff] }
 0x43b   : > { %v6072_v62 = vmul.f32 %v5048_v41, %v11322_v61  ;;  %v5050_v1 = vmul.f32 0.16666667, %v4026_v50  ;;  %v5051_v6 = vmul.f32 0.16666667, %v4027_v40  ;;  %v5052_v60 = vmul.f32 0.16666667, %v4028_v44 }
 0x43c   : > { %v6073_v2 = vmul.f32 %v5049_v47, %v11325_v3  ;;  %v5053_v59 = vmul.f32 0.16666667, %v4029_v55  ;;  %v5054_v57 = vmul.f32 0.16666667, %v4030_v42  ;;  %v5055_v0 = vmul.f32 0.16666667, %v4031_v56 }
 0x43d   : > { %7096 = vst [vmem:[%s7716_s17 + $0x1970] sm:$0xff] %v6072_v62  ;;  %v6074_v5 = vmul.f32 %v5050_v1, %v11328_v16  ;;  %v6075_v58 = vmul.f32 %v5051_v6, %v11331_v9  ;;  %v6076_v7 = vmul.f32 %v5052_v60, %v11334_v20  ;;  %v1984_v61 = vadd.f32 3.0, %v11358_v45  ;;  %v967_v3 = vld [vmem:[%s7688_s30 + $0x19e8] sm:$0xff]  ;;  %v11406_v54 = vld [vmem:[%s7688_s30 + $0x1a10] sm:$0xff]  ;;  %v973_v62 = vld [vmem:[%s7688_s30 + $0x1a18] sm:$0xff] }
 0x43e   : > { %7097 = vst [vmem:[%s7716_s17 + $0x1978] sm:$0xff] %v6073_v2  ;;  %v6077_v22 = vmul.f32 %v5053_v59, %v957_v27  ;;  %v6078_v13 = vmul.f32 %v5054_v57, %v958_v30  ;;  %v6079_v18 = vmul.f32 %v5055_v0, %v959_v19  ;;  %v1985_v12 = vadd.f32 3.0, %v11361_v51  ;;  %v974_v1 = vld [vmem:[%s7688_s30 + $0x1a20] sm:$0xff] }
 0x43f   : > { %7098 = vst [vmem:[%s7716_s17 + $0x1980] sm:$0xff] %v6074_v5  ;;  %7099 = vst [vmem:[%s7716_s17 + $0x1988] sm:$0xff] %v6075_v58  ;;  %v3008_v16 = vmax.f32 %v1984_v61, 0.0  ;;  %v1986_v9 = vadd.f32 3.0, %v11364_v63  ;;  %v1987_v20 = vadd.f32 3.0, %v11367_v53  ;;  %v1988_v8 = vadd.f32 3.0, %v11370_v4 }
 0x440   : > { %7100 = vst [vmem:[%s7716_s17 + $0x1990] sm:$0xff] %v6076_v7  ;;  %7101 = vst [vmem:[%s7716_s17 + $0x1998] sm:$0xff] %v6077_v22  ;;  %v3009_v15 = vmax.f32 %v1985_v12, 0.0  ;;  %v1989_v21 = vadd.f32 3.0, %v965_v11  ;;  %v1990_v14 = vadd.f32 3.0, %v966_v17  ;;  %v1991_v23 = vadd.f32 3.0, %v967_v3 }
 0x441   : > { %7102 = vst [vmem:[%s7716_s17 + $0x19a0] sm:$0xff] %v6078_v13  ;;  %7103 = vst [vmem:[%s7716_s17 + $0x19a8] sm:$0xff] %v6079_v18  ;;  %v4032_v10 = vmin.f32 %v3008_v16, 6.0  ;;  %v3010_v27 = vmax.f32 %v1986_v9, 0.0  ;;  %v3011_v30 = vmax.f32 %v1987_v20, 0.0  ;;  %v3012_v19 = vmax.f32 %v1988_v8, 0.0 }
 0x442   : > { %v4033_v38 = vmin.f32 %v3009_v15, 6.0  ;;  %v3013_v34 = vmax.f32 %v1989_v21, 0.0  ;;  %v3014_v31 = vmax.f32 %v1990_v14, 0.0  ;;  %v3015_v33 = vmax.f32 %v1991_v23, 0.0  ;;  %v11430_v16 = vld [vmem:[%s7688_s30 + $0x1a30] sm:$0xff]  ;;  %v11433_v21 = vld [vmem:[%s7688_s30 + $0x1a38] sm:$0xff] }
 0x443   : > { %v5056_v25 = vmul.f32 0.16666667, %v4032_v10  ;;  %v4034_v36 = vmin.f32 %v3010_v27, 6.0  ;;  %v4035_v24 = vmin.f32 %v3011_v30, 6.0  ;;  %v4036_v28 = vmin.f32 %v3012_v19, 6.0  ;;  %v11436_v30 = vld [vmem:[%s7688_s30 + $0x1a40] sm:$0xff] }
 0x444   : > { %v5057_v35 = vmul.f32 0.16666667, %v4033_v38  ;;  %v4037_v39 = vmin.f32 %v3013_v34, 6.0  ;;  %v4038_v26 = vmin.f32 %v3014_v31, 6.0  ;;  %v4039_v43 = vmin.f32 %v3015_v33, 6.0  ;;  %v11439_v19 = vld [vmem:[%s7688_s30 + $0x1a48] sm:$0xff] }
 0x445   : > { %v6080_v46 = vmul.f32 %v5056_v25, %v11358_v45  ;;  %v5058_v49 = vmul.f32 0.16666667, %v4034_v36  ;;  %v5059_v52 = vmul.f32 0.16666667, %v4035_v24  ;;  %v5060_v41 = vmul.f32 0.16666667, %v4036_v28 }
 0x446   : > { %v6081_v50 = vmul.f32 %v5057_v35, %v11361_v51  ;;  %v5061_v40 = vmul.f32 0.16666667, %v4037_v39  ;;  %v5062_v44 = vmul.f32 0.16666667, %v4038_v26  ;;  %v5063_v47 = vmul.f32 0.16666667, %v4039_v43 }
 0x447   : > { %7104 = vst [vmem:[%s7716_s17 + $0x19b0] sm:$0xff] %v6080_v46  ;;  %v6082_v55 = vmul.f32 %v5058_v49, %v11364_v63  ;;  %v6083_v42 = vmul.f32 %v5059_v52, %v11367_v53  ;;  %v6084_v56 = vmul.f32 %v5060_v41, %v11370_v4  ;;  %v1992_v45 = vadd.f32 3.0, %v11394_v29  ;;  %v975_v51 = vld [vmem:[%s7688_s30 + $0x1a28] sm:$0xff]  ;;  %v11442_v38 = vld [vmem:[%s7688_s30 + $0x1a50] sm:$0xff]  ;;  %v981_v46 = vld [vmem:[%s7688_s30 + $0x1a58] sm:$0xff] }
 0x448   : > { %7105 = vst [vmem:[%s7716_s17 + $0x19b8] sm:$0xff] %v6081_v50  ;;  %v6085_v6 = vmul.f32 %v5061_v40, %v965_v11  ;;  %v6086_v60 = vmul.f32 %v5062_v44, %v966_v17  ;;  %v6087_v2 = vmul.f32 %v5063_v47, %v967_v3  ;;  %v1993_v59 = vadd.f32 3.0, %v11397_v37  ;;  %v982_v49 = vld [vmem:[%s7688_s30 + $0x1a60] sm:$0xff] }
 0x449   : > { %7106 = vst [vmem:[%s7716_s17 + $0x19c0] sm:$0xff] %v6082_v55  ;;  %7107 = vst [vmem:[%s7716_s17 + $0x19c8] sm:$0xff] %v6083_v42  ;;  %v3016_v63 = vmax.f32 %v1992_v45, 0.0  ;;  %v1994_v53 = vadd.f32 3.0, %v11400_v48  ;;  %v1995_v4 = vadd.f32 3.0, %v11403_v32  ;;  %v1996_v57 = vadd.f32 3.0, %v11406_v54 }
 0x44a   : > { %7108 = vst [vmem:[%s7716_s17 + $0x19d0] sm:$0xff] %v6084_v56  ;;  %7109 = vst [vmem:[%s7716_s17 + $0x19d8] sm:$0xff] %v6085_v6  ;;  %v3017_v0 = vmax.f32 %v1993_v59, 0.0  ;;  %v1997_v5 = vadd.f32 3.0, %v973_v62  ;;  %v1998_v58 = vadd.f32 3.0, %v974_v1  ;;  %v1999_v7 = vadd.f32 3.0, %v975_v51 }
 0x44b   : > { %7110 = vst [vmem:[%s7716_s17 + $0x19e0] sm:$0xff] %v6086_v60  ;;  %7111 = vst [vmem:[%s7716_s17 + $0x19e8] sm:$0xff] %v6087_v2  ;;  %v4040_v61 = vmin.f32 %v3016_v63, 6.0  ;;  %v3018_v11 = vmax.f32 %v1994_v53, 0.0  ;;  %v3019_v17 = vmax.f32 %v1995_v4, 0.0  ;;  %v3020_v3 = vmax.f32 %v1996_v57, 0.0 }
 0x44c   : > { %v4041_v22 = vmin.f32 %v3017_v0, 6.0  ;;  %v3021_v13 = vmax.f32 %v1997_v5, 0.0  ;;  %v3022_v18 = vmax.f32 %v1998_v58, 0.0  ;;  %v3023_v12 = vmax.f32 %v1999_v7, 0.0  ;;  %v11466_v63 = vld [vmem:[%s7688_s30 + $0x1a70] sm:$0xff]  ;;  %v11469_v5 = vld [vmem:[%s7688_s30 + $0x1a78] sm:$0xff] }
 0x44d   : > { %v5064_v9 = vmul.f32 0.16666667, %v4040_v61  ;;  %v4042_v20 = vmin.f32 %v3018_v11, 6.0  ;;  %v4043_v8 = vmin.f32 %v3019_v17, 6.0  ;;  %v4044_v15 = vmin.f32 %v3020_v3, 6.0  ;;  %v11472_v17 = vld [vmem:[%s7688_s30 + $0x1a80] sm:$0xff] }
 0x44e   : > { %v5065_v14 = vmul.f32 0.16666667, %v4041_v22  ;;  %v4045_v23 = vmin.f32 %v3021_v13, 6.0  ;;  %v4046_v10 = vmin.f32 %v3022_v18, 6.0  ;;  %v4047_v27 = vmin.f32 %v3023_v12, 6.0  ;;  %v11475_v3 = vld [vmem:[%s7688_s30 + $0x1a88] sm:$0xff] }
 0x44f   : > { %v6088_v34 = vmul.f32 %v5064_v9, %v11394_v29  ;;  %v5066_v31 = vmul.f32 0.16666667, %v4042_v20  ;;  %v5067_v33 = vmul.f32 0.16666667, %v4043_v8  ;;  %v5068_v25 = vmul.f32 0.16666667, %v4044_v15 }
 0x450   : > { %v6089_v36 = vmul.f32 %v5065_v14, %v11397_v37  ;;  %v5069_v24 = vmul.f32 0.16666667, %v4045_v23  ;;  %v5070_v28 = vmul.f32 0.16666667, %v4046_v10  ;;  %v5071_v35 = vmul.f32 0.16666667, %v4047_v27 }
 0x451   : > { %7112 = vst [vmem:[%s7716_s17 + $0x19f0] sm:$0xff] %v6088_v34  ;;  %v6090_v39 = vmul.f32 %v5066_v31, %v11400_v48  ;;  %v6091_v26 = vmul.f32 %v5067_v33, %v11403_v32  ;;  %v6092_v43 = vmul.f32 %v5068_v25, %v11406_v54  ;;  %v2000_v29 = vadd.f32 3.0, %v11430_v16  ;;  %v983_v37 = vld [vmem:[%s7688_s30 + $0x1a68] sm:$0xff]  ;;  %v11478_v22 = vld [vmem:[%s7688_s30 + $0x1a90] sm:$0xff]  ;;  %v989_v34 = vld [vmem:[%s7688_s30 + $0x1a98] sm:$0xff] }
 0x452   : > { %7113 = vst [vmem:[%s7716_s17 + $0x19f8] sm:$0xff] %v6089_v36  ;;  %v6093_v52 = vmul.f32 %v5069_v24, %v973_v62  ;;  %v6094_v41 = vmul.f32 %v5070_v28, %v974_v1  ;;  %v6095_v50 = vmul.f32 %v5071_v35, %v975_v51  ;;  %v2001_v40 = vadd.f32 3.0, %v11433_v21  ;;  %v990_v31 = vld [vmem:[%s7688_s30 + $0x1aa0] sm:$0xff] }
 0x453   : > { %7114 = vst [vmem:[%s7716_s17 + $0x1a00] sm:$0xff] %v6090_v39  ;;  %7115 = vst [vmem:[%s7716_s17 + $0x1a08] sm:$0xff] %v6091_v26  ;;  %v3024_v48 = vmax.f32 %v2000_v29, 0.0  ;;  %v2002_v32 = vadd.f32 3.0, %v11436_v30  ;;  %v2003_v54 = vadd.f32 3.0, %v11439_v19  ;;  %v2004_v44 = vadd.f32 3.0, %v11442_v38 }
 0x454   : > { %7116 = vst [vmem:[%s7716_s17 + $0x1a10] sm:$0xff] %v6092_v43  ;;  %7117 = vst [vmem:[%s7716_s17 + $0x1a18] sm:$0xff] %v6093_v52  ;;  %v3025_v47 = vmax.f32 %v2001_v40, 0.0  ;;  %v2005_v55 = vadd.f32 3.0, %v981_v46  ;;  %v2006_v42 = vadd.f32 3.0, %v982_v49  ;;  %v2007_v56 = vadd.f32 3.0, %v983_v37 }
 0x455   : > { %7118 = vst [vmem:[%s7716_s17 + $0x1a20] sm:$0xff] %v6094_v41  ;;  %7119 = vst [vmem:[%s7716_s17 + $0x1a28] sm:$0xff] %v6095_v50  ;;  %v4048_v45 = vmin.f32 %v3024_v48, 6.0  ;;  %v3026_v62 = vmax.f32 %v2002_v32, 0.0  ;;  %v3027_v1 = vmax.f32 %v2003_v54, 0.0  ;;  %v3028_v51 = vmax.f32 %v2004_v44, 0.0 }
 0x456   : > { %v4049_v6 = vmin.f32 %v3025_v47, 6.0  ;;  %v3029_v60 = vmax.f32 %v2005_v55, 0.0  ;;  %v3030_v2 = vmax.f32 %v2006_v42, 0.0  ;;  %v3031_v59 = vmax.f32 %v2007_v56, 0.0  ;;  %v11502_v48 = vld [vmem:[%s7688_s30 + $0x1ab0] sm:$0xff]  ;;  %v11505_v55 = vld [vmem:[%s7688_s30 + $0x1ab8] sm:$0xff] }
 0x457   : > { %v5072_v53 = vmul.f32 0.16666667, %v4048_v45  ;;  %v4050_v4 = vmin.f32 %v3026_v62, 6.0  ;;  %v4051_v57 = vmin.f32 %v3027_v1, 6.0  ;;  %v4052_v0 = vmin.f32 %v3028_v51, 6.0  ;;  %v11508_v1 = vld [vmem:[%s7688_s30 + $0x1ac0] sm:$0xff] }
 0x458   : > { %v5073_v58 = vmul.f32 0.16666667, %v4049_v6  ;;  %v4053_v7 = vmin.f32 %v3029_v60, 6.0  ;;  %v4054_v61 = vmin.f32 %v3030_v2, 6.0  ;;  %v4055_v11 = vmin.f32 %v3031_v59, 6.0  ;;  %v11511_v51 = vld [vmem:[%s7688_s30 + $0x1ac8] sm:$0xff] }
 0x459   : > { %v6096_v13 = vmul.f32 %v5072_v53, %v11430_v16  ;;  %v5074_v18 = vmul.f32 0.16666667, %v4050_v4  ;;  %v5075_v12 = vmul.f32 0.16666667, %v4051_v57  ;;  %v5076_v9 = vmul.f32 0.16666667, %v4052_v0 }
 0x45a   : > { %v6097_v20 = vmul.f32 %v5073_v58, %v11433_v21  ;;  %v5077_v8 = vmul.f32 0.16666667, %v4053_v7  ;;  %v5078_v15 = vmul.f32 0.16666667, %v4054_v61  ;;  %v5079_v14 = vmul.f32 0.16666667, %v4055_v11 }
 0x45b   : > { %7120 = vst [vmem:[%s7716_s17 + $0x1a30] sm:$0xff] %v6096_v13  ;;  %v6098_v23 = vmul.f32 %v5074_v18, %v11436_v30  ;;  %v6099_v10 = vmul.f32 %v5075_v12, %v11439_v19  ;;  %v6100_v27 = vmul.f32 %v5076_v9, %v11442_v38  ;;  %v2008_v16 = vadd.f32 3.0, %v11466_v63  ;;  %v991_v21 = vld [vmem:[%s7688_s30 + $0x1aa8] sm:$0xff]  ;;  %v11514_v6 = vld [vmem:[%s7688_s30 + $0x1ad0] sm:$0xff]  ;;  %v997_v13 = vld [vmem:[%s7688_s30 + $0x1ad8] sm:$0xff] }
 0x45c   : > { %7121 = vst [vmem:[%s7716_s17 + $0x1a38] sm:$0xff] %v6097_v20  ;;  %v6101_v33 = vmul.f32 %v5077_v8, %v981_v46  ;;  %v6102_v25 = vmul.f32 %v5078_v15, %v982_v49  ;;  %v6103_v36 = vmul.f32 %v5079_v14, %v983_v37  ;;  %v2009_v24 = vadd.f32 3.0, %v11469_v5  ;;  %v998_v18 = vld [vmem:[%s7688_s30 + $0x1ae0] sm:$0xff] }
 0x45d   : > { %7122 = vst [vmem:[%s7716_s17 + $0x1a40] sm:$0xff] %v6098_v23  ;;  %7123 = vst [vmem:[%s7716_s17 + $0x1a48] sm:$0xff] %v6099_v10  ;;  %v3032_v30 = vmax.f32 %v2008_v16, 0.0  ;;  %v2010_v19 = vadd.f32 3.0, %v11472_v17  ;;  %v2011_v38 = vadd.f32 3.0, %v11475_v3  ;;  %v2012_v28 = vadd.f32 3.0, %v11478_v22 }
 0x45e   : > { %7124 = vst [vmem:[%s7716_s17 + $0x1a50] sm:$0xff] %v6100_v27  ;;  %7125 = vst [vmem:[%s7716_s17 + $0x1a58] sm:$0xff] %v6101_v33  ;;  %v3033_v35 = vmax.f32 %v2009_v24, 0.0  ;;  %v2013_v39 = vadd.f32 3.0, %v989_v34  ;;  %v2014_v26 = vadd.f32 3.0, %v990_v31  ;;  %v2015_v43 = vadd.f32 3.0, %v991_v21 }
 0x45f   : > { %7126 = vst [vmem:[%s7716_s17 + $0x1a60] sm:$0xff] %v6102_v25  ;;  %7127 = vst [vmem:[%s7716_s17 + $0x1a68] sm:$0xff] %v6103_v36  ;;  %v4056_v29 = vmin.f32 %v3032_v30, 6.0  ;;  %v3034_v46 = vmax.f32 %v2010_v19, 0.0  ;;  %v3035_v49 = vmax.f32 %v2011_v38, 0.0  ;;  %v3036_v37 = vmax.f32 %v2012_v28, 0.0 }
 0x460   : > { %v4057_v52 = vmin.f32 %v3033_v35, 6.0  ;;  %v3037_v41 = vmax.f32 %v2013_v39, 0.0  ;;  %v3038_v50 = vmax.f32 %v2014_v26, 0.0  ;;  %v3039_v40 = vmax.f32 %v2015_v43, 0.0  ;;  %v11538_v30 = vld [vmem:[%s7688_s30 + $0x1af0] sm:$0xff]  ;;  %v11541_v39 = vld [vmem:[%s7688_s30 + $0x1af8] sm:$0xff] }
 0x461   : > { %v5080_v32 = vmul.f32 0.16666667, %v4056_v29  ;;  %v4058_v54 = vmin.f32 %v3034_v46, 6.0  ;;  %v4059_v44 = vmin.f32 %v3035_v49, 6.0  ;;  %v4060_v47 = vmin.f32 %v3036_v37, 6.0  ;;  %v11544_v49 = vld [vmem:[%s7688_s30 + $0x1b00] sm:$0xff] }
 0x462   : > { %v5081_v42 = vmul.f32 0.16666667, %v4057_v52  ;;  %v4061_v56 = vmin.f32 %v3037_v41, 6.0  ;;  %v4062_v45 = vmin.f32 %v3038_v50, 6.0  ;;  %v4063_v62 = vmin.f32 %v3039_v40, 6.0  ;;  %v11547_v37 = vld [vmem:[%s7688_s30 + $0x1b08] sm:$0xff] }
 0x463   : > { %v6104_v60 = vmul.f32 %v5080_v32, %v11466_v63  ;;  %v5082_v2 = vmul.f32 0.16666667, %v4058_v54  ;;  %v5083_v59 = vmul.f32 0.16666667, %v4059_v44  ;;  %v5084_v53 = vmul.f32 0.16666667, %v4060_v47 }
 0x464   : > { %v6105_v4 = vmul.f32 %v5081_v42, %v11469_v5  ;;  %v5085_v57 = vmul.f32 0.16666667, %v4061_v56  ;;  %v5086_v0 = vmul.f32 0.16666667, %v4062_v45  ;;  %v5087_v58 = vmul.f32 0.16666667, %v4063_v62 }
 0x465   : > { %7128 = vst [vmem:[%s7716_s17 + $0x1a70] sm:$0xff] %v6104_v60  ;;  %v6106_v7 = vmul.f32 %v5082_v2, %v11472_v17  ;;  %v6107_v61 = vmul.f32 %v5083_v59, %v11475_v3  ;;  %v6108_v11 = vmul.f32 %v5084_v53, %v11478_v22  ;;  %v2016_v63 = vadd.f32 3.0, %v11502_v48  ;;  %v999_v5 = vld [vmem:[%s7688_s30 + $0x1ae8] sm:$0xff]  ;;  %v11550_v52 = vld [vmem:[%s7688_s30 + $0x1b10] sm:$0xff]  ;;  %v1005_v60 = vld [vmem:[%s7688_s30 + $0x1b18] sm:$0xff] }
 0x466   : > { %7129 = vst [vmem:[%s7716_s17 + $0x1a78] sm:$0xff] %v6105_v4  ;;  %v6109_v12 = vmul.f32 %v5085_v57, %v989_v34  ;;  %v6110_v9 = vmul.f32 %v5086_v0, %v990_v31  ;;  %v6111_v20 = vmul.f32 %v5087_v58, %v991_v21  ;;  %v2017_v8 = vadd.f32 3.0, %v11505_v55  ;;  %v1006_v2 = vld [vmem:[%s7688_s30 + $0x1b20] sm:$0xff] }
 0x467   : > { %7130 = vst [vmem:[%s7716_s17 + $0x1a80] sm:$0xff] %v6106_v7  ;;  %7131 = vst [vmem:[%s7716_s17 + $0x1a88] sm:$0xff] %v6107_v61  ;;  %v3040_v17 = vmax.f32 %v2016_v63, 0.0  ;;  %v2018_v3 = vadd.f32 3.0, %v11508_v1  ;;  %v2019_v22 = vadd.f32 3.0, %v11511_v51  ;;  %v2020_v15 = vadd.f32 3.0, %v11514_v6 }
 0x468   : > { %7132 = vst [vmem:[%s7716_s17 + $0x1a90] sm:$0xff] %v6108_v11  ;;  %7133 = vst [vmem:[%s7716_s17 + $0x1a98] sm:$0xff] %v6109_v12  ;;  %v3041_v14 = vmax.f32 %v2017_v8, 0.0  ;;  %v2021_v23 = vadd.f32 3.0, %v997_v13  ;;  %v2022_v10 = vadd.f32 3.0, %v998_v18  ;;  %v2023_v27 = vadd.f32 3.0, %v999_v5 }
 0x469   : > { %7134 = vst [vmem:[%s7716_s17 + $0x1aa0] sm:$0xff] %v6110_v9  ;;  %7135 = vst [vmem:[%s7716_s17 + $0x1aa8] sm:$0xff] %v6111_v20  ;;  %v4064_v16 = vmin.f32 %v3040_v17, 6.0  ;;  %v3042_v34 = vmax.f32 %v2018_v3, 0.0  ;;  %v3043_v31 = vmax.f32 %v2019_v22, 0.0  ;;  %v3044_v21 = vmax.f32 %v2020_v15, 0.0 }
 0x46a   : > { %v4065_v33 = vmin.f32 %v3041_v14, 6.0  ;;  %v3045_v25 = vmax.f32 %v2021_v23, 0.0  ;;  %v3046_v36 = vmax.f32 %v2022_v10, 0.0  ;;  %v3047_v24 = vmax.f32 %v2023_v27, 0.0  ;;  %v11574_v17 = vld [vmem:[%s7688_s30 + $0x1b30] sm:$0xff]  ;;  %v11577_v23 = vld [vmem:[%s7688_s30 + $0x1b38] sm:$0xff] }
 0x46b   : > { %v5088_v19 = vmul.f32 0.16666667, %v4064_v16  ;;  %v4066_v38 = vmin.f32 %v3042_v34, 6.0  ;;  %v4067_v28 = vmin.f32 %v3043_v31, 6.0  ;;  %v4068_v35 = vmin.f32 %v3044_v21, 6.0  ;;  %v11580_v31 = vld [vmem:[%s7688_s30 + $0x1b40] sm:$0xff] }
 0x46c   : > { %v5089_v26 = vmul.f32 0.16666667, %v4065_v33  ;;  %v4069_v43 = vmin.f32 %v3045_v25, 6.0  ;;  %v4070_v29 = vmin.f32 %v3046_v36, 6.0  ;;  %v4071_v46 = vmin.f32 %v3047_v24, 6.0  ;;  %v11583_v21 = vld [vmem:[%s7688_s30 + $0x1b48] sm:$0xff] }
 0x46d   : > { %v6112_v41 = vmul.f32 %v5088_v19, %v11502_v48  ;;  %v5090_v50 = vmul.f32 0.16666667, %v4066_v38  ;;  %v5091_v40 = vmul.f32 0.16666667, %v4067_v28  ;;  %v5092_v32 = vmul.f32 0.16666667, %v4068_v35 }
 0x46e   : > { %v6113_v54 = vmul.f32 %v5089_v26, %v11505_v55  ;;  %v5093_v44 = vmul.f32 0.16666667, %v4069_v43  ;;  %v5094_v47 = vmul.f32 0.16666667, %v4070_v29  ;;  %v5095_v42 = vmul.f32 0.16666667, %v4071_v46 }
 0x46f   : > { %7136 = vst [vmem:[%s7716_s17 + $0x1ab0] sm:$0xff] %v6112_v41  ;;  %v6114_v56 = vmul.f32 %v5090_v50, %v11508_v1  ;;  %v6115_v45 = vmul.f32 %v5091_v40, %v11511_v51  ;;  %v6116_v62 = vmul.f32 %v5092_v32, %v11514_v6  ;;  %v2024_v48 = vadd.f32 3.0, %v11538_v30  ;;  %v1007_v55 = vld [vmem:[%s7688_s30 + $0x1b28] sm:$0xff]  ;;  %v11586_v33 = vld [vmem:[%s7688_s30 + $0x1b50] sm:$0xff]  ;;  %v1013_v41 = vld [vmem:[%s7688_s30 + $0x1b58] sm:$0xff] }
 0x470   : > { %7137 = vst [vmem:[%s7716_s17 + $0x1ab8] sm:$0xff] %v6113_v54  ;;  %v6117_v59 = vmul.f32 %v5093_v44, %v997_v13  ;;  %v6118_v53 = vmul.f32 %v5094_v47, %v998_v18  ;;  %v6119_v4 = vmul.f32 %v5095_v42, %v999_v5  ;;  %v2025_v57 = vadd.f32 3.0, %v11541_v39  ;;  %v1014_v50 = vld [vmem:[%s7688_s30 + $0x1b60] sm:$0xff] }
 0x471   : > { %7138 = vst [vmem:[%s7716_s17 + $0x1ac0] sm:$0xff] %v6114_v56  ;;  %7139 = vst [vmem:[%s7716_s17 + $0x1ac8] sm:$0xff] %v6115_v45  ;;  %v3048_v1 = vmax.f32 %v2024_v48, 0.0  ;;  %v2026_v51 = vadd.f32 3.0, %v11544_v49  ;;  %v2027_v6 = vadd.f32 3.0, %v11547_v37  ;;  %v2028_v0 = vadd.f32 3.0, %v11550_v52 }
 0x472   : > { %7140 = vst [vmem:[%s7716_s17 + $0x1ad0] sm:$0xff] %v6116_v62  ;;  %7141 = vst [vmem:[%s7716_s17 + $0x1ad8] sm:$0xff] %v6117_v59  ;;  %v3049_v58 = vmax.f32 %v2025_v57, 0.0  ;;  %v2029_v7 = vadd.f32 3.0, %v1005_v60  ;;  %v2030_v61 = vadd.f32 3.0, %v1006_v2  ;;  %v2031_v11 = vadd.f32 3.0, %v1007_v55 }
 0x473   : > { %7142 = vst [vmem:[%s7716_s17 + $0x1ae0] sm:$0xff] %v6118_v53  ;;  %7143 = vst [vmem:[%s7716_s17 + $0x1ae8] sm:$0xff] %v6119_v4  ;;  %v4072_v63 = vmin.f32 %v3048_v1, 6.0  ;;  %v3050_v13 = vmax.f32 %v2026_v51, 0.0  ;;  %v3051_v18 = vmax.f32 %v2027_v6, 0.0  ;;  %v3052_v5 = vmax.f32 %v2028_v0, 0.0 }
 0x474   : > { %v4073_v12 = vmin.f32 %v3049_v58, 6.0  ;;  %v3053_v9 = vmax.f32 %v2029_v7, 0.0  ;;  %v3054_v20 = vmax.f32 %v2030_v61, 0.0  ;;  %v3055_v8 = vmax.f32 %v2031_v11, 0.0  ;;  %v11610_v1 = vld [vmem:[%s7688_s30 + $0x1b70] sm:$0xff]  ;;  %v11613_v7 = vld [vmem:[%s7688_s30 + $0x1b78] sm:$0xff] }
 0x475   : > { %v5096_v3 = vmul.f32 0.16666667, %v4072_v63  ;;  %v4074_v22 = vmin.f32 %v3050_v13, 6.0  ;;  %v4075_v15 = vmin.f32 %v3051_v18, 6.0  ;;  %v4076_v14 = vmin.f32 %v3052_v5, 6.0  ;;  %v11616_v18 = vld [vmem:[%s7688_s30 + $0x1b80] sm:$0xff] }
 0x476   : > { %v5097_v10 = vmul.f32 0.16666667, %v4073_v12  ;;  %v4077_v27 = vmin.f32 %v3053_v9, 6.0  ;;  %v4078_v16 = vmin.f32 %v3054_v20, 6.0  ;;  %v4079_v34 = vmin.f32 %v3055_v8, 6.0  ;;  %v11619_v5 = vld [vmem:[%s7688_s30 + $0x1b88] sm:$0xff] }
 0x477   : > { %v6120_v25 = vmul.f32 %v5096_v3, %v11538_v30  ;;  %v5098_v36 = vmul.f32 0.16666667, %v4074_v22  ;;  %v5099_v24 = vmul.f32 0.16666667, %v4075_v15  ;;  %v5100_v19 = vmul.f32 0.16666667, %v4076_v14 }
 0x478   : > { %v6121_v38 = vmul.f32 %v5097_v10, %v11541_v39  ;;  %v5101_v28 = vmul.f32 0.16666667, %v4077_v27  ;;  %v5102_v35 = vmul.f32 0.16666667, %v4078_v16  ;;  %v5103_v26 = vmul.f32 0.16666667, %v4079_v34 }
 0x479   : > { %7144 = vst [vmem:[%s7716_s17 + $0x1af0] sm:$0xff] %v6120_v25  ;;  %v6122_v43 = vmul.f32 %v5098_v36, %v11544_v49  ;;  %v6123_v29 = vmul.f32 %v5099_v24, %v11547_v37  ;;  %v6124_v46 = vmul.f32 %v5100_v19, %v11550_v52  ;;  %v2032_v30 = vadd.f32 3.0, %v11574_v17  ;;  %v1015_v39 = vld [vmem:[%s7688_s30 + $0x1b68] sm:$0xff]  ;;  %v11622_v12 = vld [vmem:[%s7688_s30 + $0x1b90] sm:$0xff]  ;;  %v1021_v25 = vld [vmem:[%s7688_s30 + $0x1b98] sm:$0xff] }
 0x47a   : > { %7145 = vst [vmem:[%s7716_s17 + $0x1af8] sm:$0xff] %v6121_v38  ;;  %v6125_v40 = vmul.f32 %v5101_v28, %v1005_v60  ;;  %v6126_v32 = vmul.f32 %v5102_v35, %v1006_v2  ;;  %v6127_v54 = vmul.f32 %v5103_v26, %v1007_v55  ;;  %v2033_v44 = vadd.f32 3.0, %v11577_v23  ;;  %v1022_v36 = vld [vmem:[%s7688_s30 + $0x1ba0] sm:$0xff] }
 0x47b   : > { %7146 = vst [vmem:[%s7716_s17 + $0x1b00] sm:$0xff] %v6122_v43  ;;  %7147 = vst [vmem:[%s7716_s17 + $0x1b08] sm:$0xff] %v6123_v29  ;;  %v3056_v49 = vmax.f32 %v2032_v30, 0.0  ;;  %v2034_v37 = vadd.f32 3.0, %v11580_v31  ;;  %v2035_v52 = vadd.f32 3.0, %v11583_v21  ;;  %v2036_v47 = vadd.f32 3.0, %v11586_v33 }
 0x47c   : > { %7148 = vst [vmem:[%s7716_s17 + $0x1b10] sm:$0xff] %v6124_v46  ;;  %7149 = vst [vmem:[%s7716_s17 + $0x1b18] sm:$0xff] %v6125_v40  ;;  %v3057_v42 = vmax.f32 %v2033_v44, 0.0  ;;  %v2037_v56 = vadd.f32 3.0, %v1013_v41  ;;  %v2038_v45 = vadd.f32 3.0, %v1014_v50  ;;  %v2039_v62 = vadd.f32 3.0, %v1015_v39 }
 0x47d   : > { %7150 = vst [vmem:[%s7716_s17 + $0x1b20] sm:$0xff] %v6126_v32  ;;  %7151 = vst [vmem:[%s7716_s17 + $0x1b28] sm:$0xff] %v6127_v54  ;;  %v4080_v48 = vmin.f32 %v3056_v49, 6.0  ;;  %v3058_v60 = vmax.f32 %v2034_v37, 0.0  ;;  %v3059_v2 = vmax.f32 %v2035_v52, 0.0  ;;  %v3060_v55 = vmax.f32 %v2036_v47, 0.0 }
 0x47e   : > { %v4081_v59 = vmin.f32 %v3057_v42, 6.0  ;;  %v3061_v53 = vmax.f32 %v2037_v56, 0.0  ;;  %v3062_v4 = vmax.f32 %v2038_v45, 0.0  ;;  %v3063_v57 = vmax.f32 %v2039_v62, 0.0  ;;  %v11646_v49 = vld [vmem:[%s7688_s30 + $0x1bb0] sm:$0xff]  ;;  %v11649_v56 = vld [vmem:[%s7688_s30 + $0x1bb8] sm:$0xff] }
 0x47f   : > { %v5104_v51 = vmul.f32 0.16666667, %v4080_v48  ;;  %v4082_v6 = vmin.f32 %v3058_v60, 6.0  ;;  %v4083_v0 = vmin.f32 %v3059_v2, 6.0  ;;  %v4084_v58 = vmin.f32 %v3060_v55, 6.0  ;;  %v11652_v2 = vld [vmem:[%s7688_s30 + $0x1bc0] sm:$0xff] }
 0x480   : > { %v5105_v61 = vmul.f32 0.16666667, %v4081_v59  ;;  %v4085_v11 = vmin.f32 %v3061_v53, 6.0  ;;  %v4086_v63 = vmin.f32 %v3062_v4, 6.0  ;;  %v4087_v13 = vmin.f32 %v3063_v57, 6.0  ;;  %v11655_v55 = vld [vmem:[%s7688_s30 + $0x1bc8] sm:$0xff] }
 0x481   : > { %v6128_v9 = vmul.f32 %v5104_v51, %v11574_v17  ;;  %v5106_v20 = vmul.f32 0.16666667, %v4082_v6  ;;  %v5107_v8 = vmul.f32 0.16666667, %v4083_v0  ;;  %v5108_v3 = vmul.f32 0.16666667, %v4084_v58 }
 0x482   : > { %v6129_v22 = vmul.f32 %v5105_v61, %v11577_v23  ;;  %v5109_v15 = vmul.f32 0.16666667, %v4085_v11  ;;  %v5110_v14 = vmul.f32 0.16666667, %v4086_v63  ;;  %v5111_v10 = vmul.f32 0.16666667, %v4087_v13 }
 0x483   : > { %7152 = vst [vmem:[%s7716_s17 + $0x1b30] sm:$0xff] %v6128_v9  ;;  %v6130_v27 = vmul.f32 %v5106_v20, %v11580_v31  ;;  %v6131_v16 = vmul.f32 %v5107_v8, %v11583_v21  ;;  %v6132_v34 = vmul.f32 %v5108_v3, %v11586_v33  ;;  %v2040_v17 = vadd.f32 3.0, %v11610_v1  ;;  %v1023_v23 = vld [vmem:[%s7688_s30 + $0x1ba8] sm:$0xff]  ;;  %v11658_v59 = vld [vmem:[%s7688_s30 + $0x1bd0] sm:$0xff]  ;;  %v1029_v9 = vld [vmem:[%s7688_s30 + $0x1bd8] sm:$0xff] }
 0x484   : > { %7153 = vst [vmem:[%s7716_s17 + $0x1b38] sm:$0xff] %v6129_v22  ;;  %v6133_v24 = vmul.f32 %v5109_v15, %v1013_v41  ;;  %v6134_v19 = vmul.f32 %v5110_v14, %v1014_v50  ;;  %v6135_v38 = vmul.f32 %v5111_v10, %v1015_v39  ;;  %v2041_v28 = vadd.f32 3.0, %v11613_v7  ;;  %v1030_v20 = vld [vmem:[%s7688_s30 + $0x1be0] sm:$0xff] }
 0x485   : > { %7154 = vst [vmem:[%s7716_s17 + $0x1b40] sm:$0xff] %v6130_v27  ;;  %7155 = vst [vmem:[%s7716_s17 + $0x1b48] sm:$0xff] %v6131_v16  ;;  %v3064_v31 = vmax.f32 %v2040_v17, 0.0  ;;  %v2042_v21 = vadd.f32 3.0, %v11616_v18  ;;  %v2043_v33 = vadd.f32 3.0, %v11619_v5  ;;  %v2044_v35 = vadd.f32 3.0, %v11622_v12 }
 0x486   : > { %7156 = vst [vmem:[%s7716_s17 + $0x1b50] sm:$0xff] %v6132_v34  ;;  %7157 = vst [vmem:[%s7716_s17 + $0x1b58] sm:$0xff] %v6133_v24  ;;  %v3065_v26 = vmax.f32 %v2041_v28, 0.0  ;;  %v2045_v43 = vadd.f32 3.0, %v1021_v25  ;;  %v2046_v29 = vadd.f32 3.0, %v1022_v36  ;;  %v2047_v46 = vadd.f32 3.0, %v1023_v23 }
 0x487   : > { %7158 = vst [vmem:[%s7716_s17 + $0x1b60] sm:$0xff] %v6134_v19  ;;  %7159 = vst [vmem:[%s7716_s17 + $0x1b68] sm:$0xff] %v6135_v38  ;;  %v4088_v30 = vmin.f32 %v3064_v31, 6.0  ;;  %v3066_v41 = vmax.f32 %v2042_v21, 0.0  ;;  %v3067_v50 = vmax.f32 %v2043_v33, 0.0  ;;  %v3068_v39 = vmax.f32 %v2044_v35, 0.0 }
 0x488   : > { %v4089_v40 = vmin.f32 %v3065_v26, 6.0  ;;  %v3069_v32 = vmax.f32 %v2045_v43, 0.0  ;;  %v3070_v54 = vmax.f32 %v2046_v29, 0.0  ;;  %v3071_v44 = vmax.f32 %v2047_v46, 0.0  ;;  %v11682_v31 = vld [vmem:[%s7688_s30 + $0x1bf0] sm:$0xff]  ;;  %v11685_v43 = vld [vmem:[%s7688_s30 + $0x1bf8] sm:$0xff] }
 0x489   : > { %v5112_v37 = vmul.f32 0.16666667, %v4088_v30  ;;  %v4090_v52 = vmin.f32 %v3066_v41, 6.0  ;;  %v4091_v47 = vmin.f32 %v3067_v50, 6.0  ;;  %v4092_v42 = vmin.f32 %v3068_v39, 6.0  ;;  %v11688_v50 = vld [vmem:[%s7688_s30 + $0x1c00] sm:$0xff] }
 0x48a   : > { %v5113_v45 = vmul.f32 0.16666667, %v4089_v40  ;;  %v4093_v62 = vmin.f32 %v3069_v32, 6.0  ;;  %v4094_v48 = vmin.f32 %v3070_v54, 6.0  ;;  %v4095_v60 = vmin.f32 %v3071_v44, 6.0  ;;  %v11691_v39 = vld [vmem:[%s7688_s30 + $0x1c08] sm:$0xff] }
 0x48b   : > { %v6136_v53 = vmul.f32 %v5112_v37, %v11610_v1  ;;  %v5114_v4 = vmul.f32 0.16666667, %v4090_v52  ;;  %v5115_v57 = vmul.f32 0.16666667, %v4091_v47  ;;  %v5116_v51 = vmul.f32 0.16666667, %v4092_v42 }
 0x48c   : > { %v6137_v6 = vmul.f32 %v5113_v45, %v11613_v7  ;;  %v5117_v0 = vmul.f32 0.16666667, %v4093_v62  ;;  %v5118_v58 = vmul.f32 0.16666667, %v4094_v48  ;;  %v5119_v61 = vmul.f32 0.16666667, %v4095_v60 }
 0x48d   : > { %7160 = vst [vmem:[%s7716_s17 + $0x1b70] sm:$0xff] %v6136_v53  ;;  %v6138_v11 = vmul.f32 %v5114_v4, %v11616_v18  ;;  %v6139_v63 = vmul.f32 %v5115_v57, %v11619_v5  ;;  %v6140_v13 = vmul.f32 %v5116_v51, %v11622_v12  ;;  %v2048_v1 = vadd.f32 3.0, %v11646_v49  ;;  %v1031_v7 = vld [vmem:[%s7688_s30 + $0x1be8] sm:$0xff]  ;;  %v11694_v40 = vld [vmem:[%s7688_s30 + $0x1c10] sm:$0xff]  ;;  %v1037_v53 = vld [vmem:[%s7688_s30 + $0x1c18] sm:$0xff] }
 0x48e   : > { %7161 = vst [vmem:[%s7716_s17 + $0x1b78] sm:$0xff] %v6137_v6  ;;  %v6141_v8 = vmul.f32 %v5117_v0, %v1021_v25  ;;  %v6142_v3 = vmul.f32 %v5118_v58, %v1022_v36  ;;  %v6143_v22 = vmul.f32 %v5119_v61, %v1023_v23  ;;  %v2049_v15 = vadd.f32 3.0, %v11649_v56  ;;  %v1038_v4 = vld [vmem:[%s7688_s30 + $0x1c20] sm:$0xff] }
 0x48f   : > { %7162 = vst [vmem:[%s7716_s17 + $0x1b80] sm:$0xff] %v6138_v11  ;;  %7163 = vst [vmem:[%s7716_s17 + $0x1b88] sm:$0xff] %v6139_v63  ;;  %v3072_v18 = vmax.f32 %v2048_v1, 0.0  ;;  %v2050_v5 = vadd.f32 3.0, %v11652_v2  ;;  %v2051_v12 = vadd.f32 3.0, %v11655_v55  ;;  %v2052_v14 = vadd.f32 3.0, %v11658_v59 }
 0x490   : > { %7164 = vst [vmem:[%s7716_s17 + $0x1b90] sm:$0xff] %v6140_v13  ;;  %7165 = vst [vmem:[%s7716_s17 + $0x1b98] sm:$0xff] %v6141_v8  ;;  %v3073_v10 = vmax.f32 %v2049_v15, 0.0  ;;  %v2053_v27 = vadd.f32 3.0, %v1029_v9  ;;  %v2054_v16 = vadd.f32 3.0, %v1030_v20  ;;  %v2055_v34 = vadd.f32 3.0, %v1031_v7 }
 0x491   : > { %7166 = vst [vmem:[%s7716_s17 + $0x1ba0] sm:$0xff] %v6142_v3  ;;  %7167 = vst [vmem:[%s7716_s17 + $0x1ba8] sm:$0xff] %v6143_v22  ;;  %v4096_v17 = vmin.f32 %v3072_v18, 6.0  ;;  %v3074_v25 = vmax.f32 %v2050_v5, 0.0  ;;  %v3075_v36 = vmax.f32 %v2051_v12, 0.0  ;;  %v3076_v23 = vmax.f32 %v2052_v14, 0.0 }
 0x492   : > { %v4097_v24 = vmin.f32 %v3073_v10, 6.0  ;;  %v3077_v19 = vmax.f32 %v2053_v27, 0.0  ;;  %v3078_v38 = vmax.f32 %v2054_v16, 0.0  ;;  %v3079_v28 = vmax.f32 %v2055_v34, 0.0  ;;  %v11718_v18 = vld [vmem:[%s7688_s30 + $0x1c30] sm:$0xff]  ;;  %v11721_v27 = vld [vmem:[%s7688_s30 + $0x1c38] sm:$0xff] }
 0x493   : > { %v5120_v21 = vmul.f32 0.16666667, %v4096_v17  ;;  %v4098_v33 = vmin.f32 %v3074_v25, 6.0  ;;  %v4099_v35 = vmin.f32 %v3075_v36, 6.0  ;;  %v4100_v26 = vmin.f32 %v3076_v23, 6.0  ;;  %v11724_v36 = vld [vmem:[%s7688_s30 + $0x1c40] sm:$0xff] }
 0x494   : > { %v5121_v29 = vmul.f32 0.16666667, %v4097_v24  ;;  %v4101_v46 = vmin.f32 %v3077_v19, 6.0  ;;  %v4102_v30 = vmin.f32 %v3078_v38, 6.0  ;;  %v4103_v41 = vmin.f32 %v3079_v28, 6.0  ;;  %v11727_v23 = vld [vmem:[%s7688_s30 + $0x1c48] sm:$0xff] }
 0x495   : > { %v6144_v32 = vmul.f32 %v5120_v21, %v11646_v49  ;;  %v5122_v54 = vmul.f32 0.16666667, %v4098_v33  ;;  %v5123_v44 = vmul.f32 0.16666667, %v4099_v35  ;;  %v5124_v37 = vmul.f32 0.16666667, %v4100_v26 }
 0x496   : > { %v6145_v52 = vmul.f32 %v5121_v29, %v11649_v56  ;;  %v5125_v47 = vmul.f32 0.16666667, %v4101_v46  ;;  %v5126_v42 = vmul.f32 0.16666667, %v4102_v30  ;;  %v5127_v45 = vmul.f32 0.16666667, %v4103_v41 }
 0x497   : > { %7168 = vst [vmem:[%s7716_s17 + $0x1bb0] sm:$0xff] %v6144_v32  ;;  %v6146_v62 = vmul.f32 %v5122_v54, %v11652_v2  ;;  %v6147_v48 = vmul.f32 %v5123_v44, %v11655_v55  ;;  %v6148_v60 = vmul.f32 %v5124_v37, %v11658_v59  ;;  %v2056_v49 = vadd.f32 3.0, %v11682_v31  ;;  %v1039_v56 = vld [vmem:[%s7688_s30 + $0x1c28] sm:$0xff]  ;;  %v11730_v24 = vld [vmem:[%s7688_s30 + $0x1c50] sm:$0xff]  ;;  %v1045_v32 = vld [vmem:[%s7688_s30 + $0x1c58] sm:$0xff] }
 0x498   : > { %7169 = vst [vmem:[%s7716_s17 + $0x1bb8] sm:$0xff] %v6145_v52  ;;  %v6149_v57 = vmul.f32 %v5125_v47, %v1029_v9  ;;  %v6150_v51 = vmul.f32 %v5126_v42, %v1030_v20  ;;  %v6151_v6 = vmul.f32 %v5127_v45, %v1031_v7  ;;  %v2057_v0 = vadd.f32 3.0, %v11685_v43  ;;  %v1046_v54 = vld [vmem:[%s7688_s30 + $0x1c60] sm:$0xff] }
 0x499   : > { %7170 = vst [vmem:[%s7716_s17 + $0x1bc0] sm:$0xff] %v6146_v62  ;;  %7171 = vst [vmem:[%s7716_s17 + $0x1bc8] sm:$0xff] %v6147_v48  ;;  %v3080_v2 = vmax.f32 %v2056_v49, 0.0  ;;  %v2058_v55 = vadd.f32 3.0, %v11688_v50  ;;  %v2059_v59 = vadd.f32 3.0, %v11691_v39  ;;  %v2060_v58 = vadd.f32 3.0, %v11694_v40 }
 0x49a   : > { %7172 = vst [vmem:[%s7716_s17 + $0x1bd0] sm:$0xff] %v6148_v60  ;;  %7173 = vst [vmem:[%s7716_s17 + $0x1bd8] sm:$0xff] %v6149_v57  ;;  %v3081_v61 = vmax.f32 %v2057_v0, 0.0  ;;  %v2061_v11 = vadd.f32 3.0, %v1037_v53  ;;  %v2062_v63 = vadd.f32 3.0, %v1038_v4  ;;  %v2063_v13 = vadd.f32 3.0, %v1039_v56 }
 0x49b   : > { %7174 = vst [vmem:[%s7716_s17 + $0x1be0] sm:$0xff] %v6150_v51  ;;  %7175 = vst [vmem:[%s7716_s17 + $0x1be8] sm:$0xff] %v6151_v6  ;;  %v4104_v1 = vmin.f32 %v3080_v2, 6.0  ;;  %v3082_v9 = vmax.f32 %v2058_v55, 0.0  ;;  %v3083_v20 = vmax.f32 %v2059_v59, 0.0  ;;  %v3084_v7 = vmax.f32 %v2060_v58, 0.0 }
 0x49c   : > { %v4105_v8 = vmin.f32 %v3081_v61, 6.0  ;;  %v3085_v3 = vmax.f32 %v2061_v11, 0.0  ;;  %v3086_v22 = vmax.f32 %v2062_v63, 0.0  ;;  %v3087_v15 = vmax.f32 %v2063_v13, 0.0  ;;  %v11754_v2 = vld [vmem:[%s7688_s30 + $0x1c70] sm:$0xff]  ;;  %v11757_v11 = vld [vmem:[%s7688_s30 + $0x1c78] sm:$0xff] }
 0x49d   : > { %v5128_v5 = vmul.f32 0.16666667, %v4104_v1  ;;  %v4106_v12 = vmin.f32 %v3082_v9, 6.0  ;;  %v4107_v14 = vmin.f32 %v3083_v20, 6.0  ;;  %v4108_v10 = vmin.f32 %v3084_v7, 6.0  ;;  %v11760_v20 = vld [vmem:[%s7688_s30 + $0x1c80] sm:$0xff] }
 0x49e   : > { %v5129_v16 = vmul.f32 0.16666667, %v4105_v8  ;;  %v4109_v34 = vmin.f32 %v3085_v3, 6.0  ;;  %v4110_v17 = vmin.f32 %v3086_v22, 6.0  ;;  %v4111_v25 = vmin.f32 %v3087_v15, 6.0  ;;  %v11763_v7 = vld [vmem:[%s7688_s30 + $0x1c88] sm:$0xff] }
 0x49f   : > { %v6152_v19 = vmul.f32 %v5128_v5, %v11682_v31  ;;  %v5130_v38 = vmul.f32 0.16666667, %v4106_v12  ;;  %v5131_v28 = vmul.f32 0.16666667, %v4107_v14  ;;  %v5132_v21 = vmul.f32 0.16666667, %v4108_v10 }
 0x4a0   : > { %v6153_v33 = vmul.f32 %v5129_v16, %v11685_v43  ;;  %v5133_v35 = vmul.f32 0.16666667, %v4109_v34  ;;  %v5134_v26 = vmul.f32 0.16666667, %v4110_v17  ;;  %v5135_v29 = vmul.f32 0.16666667, %v4111_v25 }
 0x4a1   : > { %7176 = vst [vmem:[%s7716_s17 + $0x1bf0] sm:$0xff] %v6152_v19  ;;  %v6154_v46 = vmul.f32 %v5130_v38, %v11688_v50  ;;  %v6155_v30 = vmul.f32 %v5131_v28, %v11691_v39  ;;  %v6156_v41 = vmul.f32 %v5132_v21, %v11694_v40  ;;  %v2064_v31 = vadd.f32 3.0, %v11718_v18  ;;  %v1047_v43 = vld [vmem:[%s7688_s30 + $0x1c68] sm:$0xff]  ;;  %v11766_v8 = vld [vmem:[%s7688_s30 + $0x1c90] sm:$0xff]  ;;  %v1053_v19 = vld [vmem:[%s7688_s30 + $0x1c98] sm:$0xff] }
 0x4a2   : > { %7177 = vst [vmem:[%s7716_s17 + $0x1bf8] sm:$0xff] %v6153_v33  ;;  %v6157_v44 = vmul.f32 %v5133_v35, %v1037_v53  ;;  %v6158_v37 = vmul.f32 %v5134_v26, %v1038_v4  ;;  %v6159_v52 = vmul.f32 %v5135_v29, %v1039_v56  ;;  %v2065_v47 = vadd.f32 3.0, %v11721_v27  ;;  %v1054_v38 = vld [vmem:[%s7688_s30 + $0x1ca0] sm:$0xff] }
 0x4a3   : > { %7178 = vst [vmem:[%s7716_s17 + $0x1c00] sm:$0xff] %v6154_v46  ;;  %7179 = vst [vmem:[%s7716_s17 + $0x1c08] sm:$0xff] %v6155_v30  ;;  %v3088_v50 = vmax.f32 %v2064_v31, 0.0  ;;  %v2066_v39 = vadd.f32 3.0, %v11724_v36  ;;  %v2067_v40 = vadd.f32 3.0, %v11727_v23  ;;  %v2068_v42 = vadd.f32 3.0, %v11730_v24 }
 0x4a4   : > { %7180 = vst [vmem:[%s7716_s17 + $0x1c10] sm:$0xff] %v6156_v41  ;;  %7181 = vst [vmem:[%s7716_s17 + $0x1c18] sm:$0xff] %v6157_v44  ;;  %v3089_v45 = vmax.f32 %v2065_v47, 0.0  ;;  %v2069_v62 = vadd.f32 3.0, %v1045_v32  ;;  %v2070_v48 = vadd.f32 3.0, %v1046_v54  ;;  %v2071_v60 = vadd.f32 3.0, %v1047_v43 }
 0x4a5   : > { %7182 = vst [vmem:[%s7716_s17 + $0x1c20] sm:$0xff] %v6158_v37  ;;  %7183 = vst [vmem:[%s7716_s17 + $0x1c28] sm:$0xff] %v6159_v52  ;;  %v4112_v49 = vmin.f32 %v3088_v50, 6.0  ;;  %v3090_v53 = vmax.f32 %v2066_v39, 0.0  ;;  %v3091_v4 = vmax.f32 %v2067_v40, 0.0  ;;  %v3092_v56 = vmax.f32 %v2068_v42, 0.0 }
 0x4a6   : > { %v4113_v57 = vmin.f32 %v3089_v45, 6.0  ;;  %v3093_v51 = vmax.f32 %v2069_v62, 0.0  ;;  %v3094_v6 = vmax.f32 %v2070_v48, 0.0  ;;  %v3095_v0 = vmax.f32 %v2071_v60, 0.0  ;;  %v11790_v50 = vld [vmem:[%s7688_s30 + $0x1cb0] sm:$0xff]  ;;  %v11793_v62 = vld [vmem:[%s7688_s30 + $0x1cb8] sm:$0xff] }
 0x4a7   : > { %v5136_v55 = vmul.f32 0.16666667, %v4112_v49  ;;  %v4114_v59 = vmin.f32 %v3090_v53, 6.0  ;;  %v4115_v58 = vmin.f32 %v3091_v4, 6.0  ;;  %v4116_v61 = vmin.f32 %v3092_v56, 6.0  ;;  %v11796_v4 = vld [vmem:[%s7688_s30 + $0x1cc0] sm:$0xff] }
 0x4a8   : > { %v5137_v63 = vmul.f32 0.16666667, %v4113_v57  ;;  %v4117_v13 = vmin.f32 %v3093_v51, 6.0  ;;  %v4118_v1 = vmin.f32 %v3094_v6, 6.0  ;;  %v4119_v9 = vmin.f32 %v3095_v0, 6.0  ;;  %v11799_v56 = vld [vmem:[%s7688_s30 + $0x1cc8] sm:$0xff] }
 0x4a9   : > { %v6160_v3 = vmul.f32 %v5136_v55, %v11718_v18  ;;  %v5138_v22 = vmul.f32 0.16666667, %v4114_v59  ;;  %v5139_v15 = vmul.f32 0.16666667, %v4115_v58  ;;  %v5140_v5 = vmul.f32 0.16666667, %v4116_v61 }
 0x4aa   : > { %v6161_v12 = vmul.f32 %v5137_v63, %v11721_v27  ;;  %v5141_v14 = vmul.f32 0.16666667, %v4117_v13  ;;  %v5142_v10 = vmul.f32 0.16666667, %v4118_v1  ;;  %v5143_v16 = vmul.f32 0.16666667, %v4119_v9 }
 0x4ab   : > { %7184 = vst [vmem:[%s7716_s17 + $0x1c30] sm:$0xff] %v6160_v3  ;;  %v6162_v34 = vmul.f32 %v5138_v22, %v11724_v36  ;;  %v6163_v17 = vmul.f32 %v5139_v15, %v11727_v23  ;;  %v6164_v25 = vmul.f32 %v5140_v5, %v11730_v24  ;;  %v2072_v18 = vadd.f32 3.0, %v11754_v2  ;;  %v1055_v27 = vld [vmem:[%s7688_s30 + $0x1ca8] sm:$0xff]  ;;  %v11802_v57 = vld [vmem:[%s7688_s30 + $0x1cd0] sm:$0xff]  ;;  %v1061_v3 = vld [vmem:[%s7688_s30 + $0x1cd8] sm:$0xff] }
 0x4ac   : > { %7185 = vst [vmem:[%s7716_s17 + $0x1c38] sm:$0xff] %v6161_v12  ;;  %v6165_v28 = vmul.f32 %v5141_v14, %v1045_v32  ;;  %v6166_v21 = vmul.f32 %v5142_v10, %v1046_v54  ;;  %v6167_v33 = vmul.f32 %v5143_v16, %v1047_v43  ;;  %v2073_v35 = vadd.f32 3.0, %v11757_v11  ;;  %v1062_v22 = vld [vmem:[%s7688_s30 + $0x1ce0] sm:$0xff] }
 0x4ad   : > { %7186 = vst [vmem:[%s7716_s17 + $0x1c40] sm:$0xff] %v6162_v34  ;;  %7187 = vst [vmem:[%s7716_s17 + $0x1c48] sm:$0xff] %v6163_v17  ;;  %v3096_v36 = vmax.f32 %v2072_v18, 0.0  ;;  %v2074_v23 = vadd.f32 3.0, %v11760_v20  ;;  %v2075_v24 = vadd.f32 3.0, %v11763_v7  ;;  %v2076_v26 = vadd.f32 3.0, %v11766_v8 }
 0x4ae   : > { %7188 = vst [vmem:[%s7716_s17 + $0x1c50] sm:$0xff] %v6164_v25  ;;  %7189 = vst [vmem:[%s7716_s17 + $0x1c58] sm:$0xff] %v6165_v28  ;;  %v3097_v29 = vmax.f32 %v2073_v35, 0.0  ;;  %v2077_v46 = vadd.f32 3.0, %v1053_v19  ;;  %v2078_v30 = vadd.f32 3.0, %v1054_v38  ;;  %v2079_v41 = vadd.f32 3.0, %v1055_v27 }
 0x4af   : > { %7190 = vst [vmem:[%s7716_s17 + $0x1c60] sm:$0xff] %v6166_v21  ;;  %7191 = vst [vmem:[%s7716_s17 + $0x1c68] sm:$0xff] %v6167_v33  ;;  %v4120_v31 = vmin.f32 %v3096_v36, 6.0  ;;  %v3098_v32 = vmax.f32 %v2074_v23, 0.0  ;;  %v3099_v54 = vmax.f32 %v2075_v24, 0.0  ;;  %v3100_v43 = vmax.f32 %v2076_v26, 0.0 }
 0x4b0   : > { %v4121_v44 = vmin.f32 %v3097_v29, 6.0  ;;  %v3101_v37 = vmax.f32 %v2077_v46, 0.0  ;;  %v3102_v52 = vmax.f32 %v2078_v30, 0.0  ;;  %v3103_v47 = vmax.f32 %v2079_v41, 0.0  ;;  %v11826_v36 = vld [vmem:[%s7688_s30 + $0x1cf0] sm:$0xff]  ;;  %v11829_v46 = vld [vmem:[%s7688_s30 + $0x1cf8] sm:$0xff] }
 0x4b1   : > { %v5144_v39 = vmul.f32 0.16666667, %v4120_v31  ;;  %v4122_v40 = vmin.f32 %v3098_v32, 6.0  ;;  %v4123_v42 = vmin.f32 %v3099_v54, 6.0  ;;  %v4124_v45 = vmin.f32 %v3100_v43, 6.0  ;;  %v11832_v54 = vld [vmem:[%s7688_s30 + $0x1d00] sm:$0xff] }
 0x4b2   : > { %v5145_v48 = vmul.f32 0.16666667, %v4121_v44  ;;  %v4125_v60 = vmin.f32 %v3101_v37, 6.0  ;;  %v4126_v49 = vmin.f32 %v3102_v52, 6.0  ;;  %v4127_v53 = vmin.f32 %v3103_v47, 6.0  ;;  %v11835_v43 = vld [vmem:[%s7688_s30 + $0x1d08] sm:$0xff] }
 0x4b3   : > { %v6168_v51 = vmul.f32 %v5144_v39, %v11754_v2  ;;  %v5146_v6 = vmul.f32 0.16666667, %v4122_v40  ;;  %v5147_v0 = vmul.f32 0.16666667, %v4123_v42  ;;  %v5148_v55 = vmul.f32 0.16666667, %v4124_v45 }
 0x4b4   : > { %v6169_v59 = vmul.f32 %v5145_v48, %v11757_v11  ;;  %v5149_v58 = vmul.f32 0.16666667, %v4125_v60  ;;  %v5150_v61 = vmul.f32 0.16666667, %v4126_v49  ;;  %v5151_v63 = vmul.f32 0.16666667, %v4127_v53 }
 0x4b5   : > { %7192 = vst [vmem:[%s7716_s17 + $0x1c70] sm:$0xff] %v6168_v51  ;;  %v6170_v13 = vmul.f32 %v5146_v6, %v11760_v20  ;;  %v6171_v1 = vmul.f32 %v5147_v0, %v11763_v7  ;;  %v6172_v9 = vmul.f32 %v5148_v55, %v11766_v8  ;;  %v2080_v2 = vadd.f32 3.0, %v11790_v50  ;;  %v1063_v11 = vld [vmem:[%s7688_s30 + $0x1ce8] sm:$0xff]  ;;  %v11838_v44 = vld [vmem:[%s7688_s30 + $0x1d10] sm:$0xff]  ;;  %v1069_v51 = vld [vmem:[%s7688_s30 + $0x1d18] sm:$0xff] }
 0x4b6   : > { %7193 = vst [vmem:[%s7716_s17 + $0x1c78] sm:$0xff] %v6169_v59  ;;  %v6173_v15 = vmul.f32 %v5149_v58, %v1053_v19  ;;  %v6174_v5 = vmul.f32 %v5150_v61, %v1054_v38  ;;  %v6175_v12 = vmul.f32 %v5151_v63, %v1055_v27  ;;  %v2081_v14 = vadd.f32 3.0, %v11793_v62  ;;  %v1070_v6 = vld [vmem:[%s7688_s30 + $0x1d20] sm:$0xff] }
 0x4b7   : > { %7194 = vst [vmem:[%s7716_s17 + $0x1c80] sm:$0xff] %v6170_v13  ;;  %7195 = vst [vmem:[%s7716_s17 + $0x1c88] sm:$0xff] %v6171_v1  ;;  %v3104_v20 = vmax.f32 %v2080_v2, 0.0  ;;  %v2082_v7 = vadd.f32 3.0, %v11796_v4  ;;  %v2083_v8 = vadd.f32 3.0, %v11799_v56  ;;  %v2084_v10 = vadd.f32 3.0, %v11802_v57 }
 0x4b8   : > { %7196 = vst [vmem:[%s7716_s17 + $0x1c90] sm:$0xff] %v6172_v9  ;;  %7197 = vst [vmem:[%s7716_s17 + $0x1c98] sm:$0xff] %v6173_v15  ;;  %v3105_v16 = vmax.f32 %v2081_v14, 0.0  ;;  %v2085_v34 = vadd.f32 3.0, %v1061_v3  ;;  %v2086_v17 = vadd.f32 3.0, %v1062_v22  ;;  %v2087_v25 = vadd.f32 3.0, %v1063_v11 }
 0x4b9   : > { %7198 = vst [vmem:[%s7716_s17 + $0x1ca0] sm:$0xff] %v6174_v5  ;;  %7199 = vst [vmem:[%s7716_s17 + $0x1ca8] sm:$0xff] %v6175_v12  ;;  %v4128_v18 = vmin.f32 %v3104_v20, 6.0  ;;  %v3106_v19 = vmax.f32 %v2082_v7, 0.0  ;;  %v3107_v38 = vmax.f32 %v2083_v8, 0.0  ;;  %v3108_v27 = vmax.f32 %v2084_v10, 0.0 }
 0x4ba   : > { %v4129_v28 = vmin.f32 %v3105_v16, 6.0  ;;  %v3109_v21 = vmax.f32 %v2085_v34, 0.0  ;;  %v3110_v33 = vmax.f32 %v2086_v17, 0.0  ;;  %v3111_v35 = vmax.f32 %v2087_v25, 0.0  ;;  %v11862_v20 = vld [vmem:[%s7688_s30 + $0x1d30] sm:$0xff]  ;;  %v11865_v34 = vld [vmem:[%s7688_s30 + $0x1d38] sm:$0xff] }
 0x4bb   : > { %v5152_v23 = vmul.f32 0.16666667, %v4128_v18  ;;  %v4130_v24 = vmin.f32 %v3106_v19, 6.0  ;;  %v4131_v26 = vmin.f32 %v3107_v38, 6.0  ;;  %v4132_v29 = vmin.f32 %v3108_v27, 6.0  ;;  %v11868_v38 = vld [vmem:[%s7688_s30 + $0x1d40] sm:$0xff] }
 0x4bc   : > { %v5153_v30 = vmul.f32 0.16666667, %v4129_v28  ;;  %v4133_v41 = vmin.f32 %v3109_v21, 6.0  ;;  %v4134_v31 = vmin.f32 %v3110_v33, 6.0  ;;  %v4135_v32 = vmin.f32 %v3111_v35, 6.0  ;;  %v11871_v27 = vld [vmem:[%s7688_s30 + $0x1d48] sm:$0xff] }
 0x4bd   : > { %v6176_v37 = vmul.f32 %v5152_v23, %v11790_v50  ;;  %v5154_v52 = vmul.f32 0.16666667, %v4130_v24  ;;  %v5155_v47 = vmul.f32 0.16666667, %v4131_v26  ;;  %v5156_v39 = vmul.f32 0.16666667, %v4132_v29 }
 0x4be   : > { %v6177_v40 = vmul.f32 %v5153_v30, %v11793_v62  ;;  %v5157_v42 = vmul.f32 0.16666667, %v4133_v41  ;;  %v5158_v45 = vmul.f32 0.16666667, %v4134_v31  ;;  %v5159_v48 = vmul.f32 0.16666667, %v4135_v32 }
 0x4bf   : > { %7200 = vst [vmem:[%s7716_s17 + $0x1cb0] sm:$0xff] %v6176_v37  ;;  %v6178_v60 = vmul.f32 %v5154_v52, %v11796_v4  ;;  %v6179_v49 = vmul.f32 %v5155_v47, %v11799_v56  ;;  %v6180_v53 = vmul.f32 %v5156_v39, %v11802_v57  ;;  %v2088_v50 = vadd.f32 3.0, %v11826_v36  ;;  %v1071_v62 = vld [vmem:[%s7688_s30 + $0x1d28] sm:$0xff]  ;;  %v11874_v28 = vld [vmem:[%s7688_s30 + $0x1d50] sm:$0xff]  ;;  %v1077_v37 = vld [vmem:[%s7688_s30 + $0x1d58] sm:$0xff] }
 0x4c0   : > { %7201 = vst [vmem:[%s7716_s17 + $0x1cb8] sm:$0xff] %v6177_v40  ;;  %v6181_v0 = vmul.f32 %v5157_v42, %v1061_v3  ;;  %v6182_v55 = vmul.f32 %v5158_v45, %v1062_v22  ;;  %v6183_v59 = vmul.f32 %v5159_v48, %v1063_v11  ;;  %v2089_v58 = vadd.f32 3.0, %v11829_v46  ;;  %v1078_v52 = vld [vmem:[%s7688_s30 + $0x1d60] sm:$0xff] }
 0x4c1   : > { %7202 = vst [vmem:[%s7716_s17 + $0x1cc0] sm:$0xff] %v6178_v60  ;;  %7203 = vst [vmem:[%s7716_s17 + $0x1cc8] sm:$0xff] %v6179_v49  ;;  %v3112_v4 = vmax.f32 %v2088_v50, 0.0  ;;  %v2090_v56 = vadd.f32 3.0, %v11832_v54  ;;  %v2091_v57 = vadd.f32 3.0, %v11835_v43  ;;  %v2092_v61 = vadd.f32 3.0, %v11838_v44 }
 0x4c2   : > { %7204 = vst [vmem:[%s7716_s17 + $0x1cd0] sm:$0xff] %v6180_v53  ;;  %7205 = vst [vmem:[%s7716_s17 + $0x1cd8] sm:$0xff] %v6181_v0  ;;  %v3113_v63 = vmax.f32 %v2089_v58, 0.0  ;;  %v2093_v13 = vadd.f32 3.0, %v1069_v51  ;;  %v2094_v1 = vadd.f32 3.0, %v1070_v6  ;;  %v2095_v9 = vadd.f32 3.0, %v1071_v62 }
 0x4c3   : > { %7206 = vst [vmem:[%s7716_s17 + $0x1ce0] sm:$0xff] %v6182_v55  ;;  %7207 = vst [vmem:[%s7716_s17 + $0x1ce8] sm:$0xff] %v6183_v59  ;;  %v4136_v2 = vmin.f32 %v3112_v4, 6.0  ;;  %v3114_v3 = vmax.f32 %v2090_v56, 0.0  ;;  %v3115_v22 = vmax.f32 %v2091_v57, 0.0  ;;  %v3116_v11 = vmax.f32 %v2092_v61, 0.0 }
 0x4c4   : > { %v4137_v15 = vmin.f32 %v3113_v63, 6.0  ;;  %v3117_v5 = vmax.f32 %v2093_v13, 0.0  ;;  %v3118_v12 = vmax.f32 %v2094_v1, 0.0  ;;  %v3119_v14 = vmax.f32 %v2095_v9, 0.0  ;;  %v11898_v4 = vld [vmem:[%s7688_s30 + $0x1d70] sm:$0xff]  ;;  %v11901_v13 = vld [vmem:[%s7688_s30 + $0x1d78] sm:$0xff] }
 0x4c5   : > { %v5160_v7 = vmul.f32 0.16666667, %v4136_v2  ;;  %v4138_v8 = vmin.f32 %v3114_v3, 6.0  ;;  %v4139_v10 = vmin.f32 %v3115_v22, 6.0  ;;  %v4140_v16 = vmin.f32 %v3116_v11, 6.0  ;;  %v11904_v22 = vld [vmem:[%s7688_s30 + $0x1d80] sm:$0xff] }
 0x4c6   : > { %v5161_v17 = vmul.f32 0.16666667, %v4137_v15  ;;  %v4141_v25 = vmin.f32 %v3117_v5, 6.0  ;;  %v4142_v18 = vmin.f32 %v3118_v12, 6.0  ;;  %v4143_v19 = vmin.f32 %v3119_v14, 6.0  ;;  %v11907_v11 = vld [vmem:[%s7688_s30 + $0x1d88] sm:$0xff] }
 0x4c7   : > { %v6184_v21 = vmul.f32 %v5160_v7, %v11826_v36  ;;  %v5162_v33 = vmul.f32 0.16666667, %v4138_v8  ;;  %v5163_v35 = vmul.f32 0.16666667, %v4139_v10  ;;  %v5164_v23 = vmul.f32 0.16666667, %v4140_v16 }
 0x4c8   : > { %v6185_v24 = vmul.f32 %v5161_v17, %v11829_v46  ;;  %v5165_v26 = vmul.f32 0.16666667, %v4141_v25  ;;  %v5166_v29 = vmul.f32 0.16666667, %v4142_v18  ;;  %v5167_v30 = vmul.f32 0.16666667, %v4143_v19 }
 0x4c9   : > { %7208 = vst [vmem:[%s7716_s17 + $0x1cf0] sm:$0xff] %v6184_v21  ;;  %v6186_v41 = vmul.f32 %v5162_v33, %v11832_v54  ;;  %v6187_v31 = vmul.f32 %v5163_v35, %v11835_v43  ;;  %v6188_v32 = vmul.f32 %v5164_v23, %v11838_v44  ;;  %v2096_v36 = vadd.f32 3.0, %v11862_v20  ;;  %v1079_v46 = vld [vmem:[%s7688_s30 + $0x1d68] sm:$0xff]  ;;  %v11910_v15 = vld [vmem:[%s7688_s30 + $0x1d90] sm:$0xff]  ;;  %v1085_v21 = vld [vmem:[%s7688_s30 + $0x1d98] sm:$0xff] }
 0x4ca   : > { %7209 = vst [vmem:[%s7716_s17 + $0x1cf8] sm:$0xff] %v6185_v24  ;;  %v6189_v47 = vmul.f32 %v5165_v26, %v1069_v51  ;;  %v6190_v39 = vmul.f32 %v5166_v29, %v1070_v6  ;;  %v6191_v40 = vmul.f32 %v5167_v30, %v1071_v62  ;;  %v2097_v42 = vadd.f32 3.0, %v11865_v34  ;;  %v1086_v33 = vld [vmem:[%s7688_s30 + $0x1da0] sm:$0xff] }
 0x4cb   : > { %7210 = vst [vmem:[%s7716_s17 + $0x1d00] sm:$0xff] %v6186_v41  ;;  %7211 = vst [vmem:[%s7716_s17 + $0x1d08] sm:$0xff] %v6187_v31  ;;  %v3120_v54 = vmax.f32 %v2096_v36, 0.0  ;;  %v2098_v43 = vadd.f32 3.0, %v11868_v38  ;;  %v2099_v44 = vadd.f32 3.0, %v11871_v27  ;;  %v2100_v45 = vadd.f32 3.0, %v11874_v28 }
 0x4cc   : > { %7212 = vst [vmem:[%s7716_s17 + $0x1d10] sm:$0xff] %v6188_v32  ;;  %7213 = vst [vmem:[%s7716_s17 + $0x1d18] sm:$0xff] %v6189_v47  ;;  %v3121_v48 = vmax.f32 %v2097_v42, 0.0  ;;  %v2101_v60 = vadd.f32 3.0, %v1077_v37  ;;  %v2102_v49 = vadd.f32 3.0, %v1078_v52  ;;  %v2103_v53 = vadd.f32 3.0, %v1079_v46 }
 0x4cd   : > { %7214 = vst [vmem:[%s7716_s17 + $0x1d20] sm:$0xff] %v6190_v39  ;;  %7215 = vst [vmem:[%s7716_s17 + $0x1d28] sm:$0xff] %v6191_v40  ;;  %v4144_v50 = vmin.f32 %v3120_v54, 6.0  ;;  %v3122_v51 = vmax.f32 %v2098_v43, 0.0  ;;  %v3123_v6 = vmax.f32 %v2099_v44, 0.0  ;;  %v3124_v62 = vmax.f32 %v2100_v45, 0.0 }
 0x4ce   : > { %v4145_v0 = vmin.f32 %v3121_v48, 6.0  ;;  %v3125_v55 = vmax.f32 %v2101_v60, 0.0  ;;  %v3126_v59 = vmax.f32 %v2102_v49, 0.0  ;;  %v3127_v58 = vmax.f32 %v2103_v53, 0.0  ;;  %v11934_v54 = vld [vmem:[%s7688_s30 + $0x1db0] sm:$0xff]  ;;  %v11937_v60 = vld [vmem:[%s7688_s30 + $0x1db8] sm:$0xff] }
 0x4cf   : > { %v5168_v56 = vmul.f32 0.16666667, %v4144_v50  ;;  %v4146_v57 = vmin.f32 %v3122_v51, 6.0  ;;  %v4147_v61 = vmin.f32 %v3123_v6, 6.0  ;;  %v4148_v63 = vmin.f32 %v3124_v62, 6.0  ;;  %v11940_v6 = vld [vmem:[%s7688_s30 + $0x1dc0] sm:$0xff] }
 0x4d0   : > { %v5169_v1 = vmul.f32 0.16666667, %v4145_v0  ;;  %v4149_v9 = vmin.f32 %v3125_v55, 6.0  ;;  %v4150_v2 = vmin.f32 %v3126_v59, 6.0  ;;  %v4151_v3 = vmin.f32 %v3127_v58, 6.0  ;;  %v11943_v62 = vld [vmem:[%s7688_s30 + $0x1dc8] sm:$0xff] }
 0x4d1   : > { %v6192_v5 = vmul.f32 %v5168_v56, %v11862_v20  ;;  %v5170_v12 = vmul.f32 0.16666667, %v4146_v57  ;;  %v5171_v14 = vmul.f32 0.16666667, %v4147_v61  ;;  %v5172_v7 = vmul.f32 0.16666667, %v4148_v63 }
 0x4d2   : > { %v6193_v8 = vmul.f32 %v5169_v1, %v11865_v34  ;;  %v5173_v10 = vmul.f32 0.16666667, %v4149_v9  ;;  %v5174_v16 = vmul.f32 0.16666667, %v4150_v2  ;;  %v5175_v17 = vmul.f32 0.16666667, %v4151_v3 }
 0x4d3   : > { %7216 = vst [vmem:[%s7716_s17 + $0x1d30] sm:$0xff] %v6192_v5  ;;  %v6194_v25 = vmul.f32 %v5170_v12, %v11868_v38  ;;  %v6195_v18 = vmul.f32 %v5171_v14, %v11871_v27  ;;  %v6196_v19 = vmul.f32 %v5172_v7, %v11874_v28  ;;  %v2104_v20 = vadd.f32 3.0, %v11898_v4  ;;  %v1087_v34 = vld [vmem:[%s7688_s30 + $0x1da8] sm:$0xff]  ;;  %v11946_v0 = vld [vmem:[%s7688_s30 + $0x1dd0] sm:$0xff]  ;;  %v1093_v5 = vld [vmem:[%s7688_s30 + $0x1dd8] sm:$0xff] }
 0x4d4   : > { %7217 = vst [vmem:[%s7716_s17 + $0x1d38] sm:$0xff] %v6193_v8  ;;  %v6197_v35 = vmul.f32 %v5173_v10, %v1077_v37  ;;  %v6198_v23 = vmul.f32 %v5174_v16, %v1078_v52  ;;  %v6199_v24 = vmul.f32 %v5175_v17, %v1079_v46  ;;  %v2105_v26 = vadd.f32 3.0, %v11901_v13  ;;  %v1094_v12 = vld [vmem:[%s7688_s30 + $0x1de0] sm:$0xff] }
 0x4d5   : > { %7218 = vst [vmem:[%s7716_s17 + $0x1d40] sm:$0xff] %v6194_v25  ;;  %7219 = vst [vmem:[%s7716_s17 + $0x1d48] sm:$0xff] %v6195_v18  ;;  %v3128_v38 = vmax.f32 %v2104_v20, 0.0  ;;  %v2106_v27 = vadd.f32 3.0, %v11904_v22  ;;  %v2107_v28 = vadd.f32 3.0, %v11907_v11  ;;  %v2108_v29 = vadd.f32 3.0, %v11910_v15 }
 0x4d6   : > { %7220 = vst [vmem:[%s7716_s17 + $0x1d50] sm:$0xff] %v6196_v19  ;;  %7221 = vst [vmem:[%s7716_s17 + $0x1d58] sm:$0xff] %v6197_v35  ;;  %v3129_v30 = vmax.f32 %v2105_v26, 0.0  ;;  %v2109_v41 = vadd.f32 3.0, %v1085_v21  ;;  %v2110_v31 = vadd.f32 3.0, %v1086_v33  ;;  %v2111_v32 = vadd.f32 3.0, %v1087_v34 }
 0x4d7   : > { %7222 = vst [vmem:[%s7716_s17 + $0x1d60] sm:$0xff] %v6198_v23  ;;  %7223 = vst [vmem:[%s7716_s17 + $0x1d68] sm:$0xff] %v6199_v24  ;;  %v4152_v36 = vmin.f32 %v3128_v38, 6.0  ;;  %v3130_v37 = vmax.f32 %v2106_v27, 0.0  ;;  %v3131_v52 = vmax.f32 %v2107_v28, 0.0  ;;  %v3132_v46 = vmax.f32 %v2108_v29, 0.0 }
 0x4d8   : > { %v4153_v47 = vmin.f32 %v3129_v30, 6.0  ;;  %v3133_v39 = vmax.f32 %v2109_v41, 0.0  ;;  %v3134_v40 = vmax.f32 %v2110_v31, 0.0  ;;  %v3135_v42 = vmax.f32 %v2111_v32, 0.0  ;;  %v11970_v38 = vld [vmem:[%s7688_s30 + $0x1df0] sm:$0xff]  ;;  %v11973_v41 = vld [vmem:[%s7688_s30 + $0x1df8] sm:$0xff] }
 0x4d9   : > { %v5176_v43 = vmul.f32 0.16666667, %v4152_v36  ;;  %v4154_v44 = vmin.f32 %v3130_v37, 6.0  ;;  %v4155_v45 = vmin.f32 %v3131_v52, 6.0  ;;  %v4156_v48 = vmin.f32 %v3132_v46, 6.0  ;;  %v11976_v52 = vld [vmem:[%s7688_s30 + $0x1e00] sm:$0xff] }
 0x4da   : > { %v5177_v49 = vmul.f32 0.16666667, %v4153_v47  ;;  %v4157_v53 = vmin.f32 %v3133_v39, 6.0  ;;  %v4158_v50 = vmin.f32 %v3134_v40, 6.0  ;;  %v4159_v51 = vmin.f32 %v3135_v42, 6.0  ;;  %v11979_v46 = vld [vmem:[%s7688_s30 + $0x1e08] sm:$0xff] }
 0x4db   : > { %v6200_v55 = vmul.f32 %v5176_v43, %v11898_v4  ;;  %v5178_v59 = vmul.f32 0.16666667, %v4154_v44  ;;  %v5179_v58 = vmul.f32 0.16666667, %v4155_v45  ;;  %v5180_v56 = vmul.f32 0.16666667, %v4156_v48 }
 0x4dc   : > { %v6201_v57 = vmul.f32 %v5177_v49, %v11901_v13  ;;  %v5181_v61 = vmul.f32 0.16666667, %v4157_v53  ;;  %v5182_v63 = vmul.f32 0.16666667, %v4158_v50  ;;  %v5183_v1 = vmul.f32 0.16666667, %v4159_v51 }
 0x4dd   : > { %7224 = vst [vmem:[%s7716_s17 + $0x1d70] sm:$0xff] %v6200_v55  ;;  %v6202_v9 = vmul.f32 %v5178_v59, %v11904_v22  ;;  %v6203_v2 = vmul.f32 %v5179_v58, %v11907_v11  ;;  %v6204_v3 = vmul.f32 %v5180_v56, %v11910_v15  ;;  %v2112_v4 = vadd.f32 3.0, %v11934_v54  ;;  %v1095_v13 = vld [vmem:[%s7688_s30 + $0x1de8] sm:$0xff]  ;;  %v11982_v47 = vld [vmem:[%s7688_s30 + $0x1e10] sm:$0xff]  ;;  %v1101_v55 = vld [vmem:[%s7688_s30 + $0x1e18] sm:$0xff] }
 0x4de   : > { %7225 = vst [vmem:[%s7716_s17 + $0x1d78] sm:$0xff] %v6201_v57  ;;  %v6205_v14 = vmul.f32 %v5181_v61, %v1085_v21  ;;  %v6206_v7 = vmul.f32 %v5182_v63, %v1086_v33  ;;  %v6207_v8 = vmul.f32 %v5183_v1, %v1087_v34  ;;  %v2113_v10 = vadd.f32 3.0, %v11937_v60  ;;  %v1102_v59 = vld [vmem:[%s7688_s30 + $0x1e20] sm:$0xff] }
 0x4df   : > { %7226 = vst [vmem:[%s7716_s17 + $0x1d80] sm:$0xff] %v6202_v9  ;;  %7227 = vst [vmem:[%s7716_s17 + $0x1d88] sm:$0xff] %v6203_v2  ;;  %v3136_v22 = vmax.f32 %v2112_v4, 0.0  ;;  %v2114_v11 = vadd.f32 3.0, %v11940_v6  ;;  %v2115_v15 = vadd.f32 3.0, %v11943_v62  ;;  %v2116_v16 = vadd.f32 3.0, %v11946_v0 }
 0x4e0   : > { %7228 = vst [vmem:[%s7716_s17 + $0x1d90] sm:$0xff] %v6204_v3  ;;  %7229 = vst [vmem:[%s7716_s17 + $0x1d98] sm:$0xff] %v6205_v14  ;;  %v3137_v17 = vmax.f32 %v2113_v10, 0.0  ;;  %v2117_v25 = vadd.f32 3.0, %v1093_v5  ;;  %v2118_v18 = vadd.f32 3.0, %v1094_v12  ;;  %v2119_v19 = vadd.f32 3.0, %v1095_v13 }
 0x4e1   : > { %7230 = vst [vmem:[%s7716_s17 + $0x1da0] sm:$0xff] %v6206_v7  ;;  %7231 = vst [vmem:[%s7716_s17 + $0x1da8] sm:$0xff] %v6207_v8  ;;  %v4160_v20 = vmin.f32 %v3136_v22, 6.0  ;;  %v3138_v21 = vmax.f32 %v2114_v11, 0.0  ;;  %v3139_v33 = vmax.f32 %v2115_v15, 0.0  ;;  %v3140_v34 = vmax.f32 %v2116_v16, 0.0 }
 0x4e2   : > { %v4161_v35 = vmin.f32 %v3137_v17, 6.0  ;;  %v3141_v23 = vmax.f32 %v2117_v25, 0.0  ;;  %v3142_v24 = vmax.f32 %v2118_v18, 0.0  ;;  %v3143_v26 = vmax.f32 %v2119_v19, 0.0  ;;  %v12006_v22 = vld [vmem:[%s7688_s30 + $0x1e30] sm:$0xff]  ;;  %v12009_v25 = vld [vmem:[%s7688_s30 + $0x1e38] sm:$0xff] }
 0x4e3   : > { %v5184_v27 = vmul.f32 0.16666667, %v4160_v20  ;;  %v4162_v28 = vmin.f32 %v3138_v21, 6.0  ;;  %v4163_v29 = vmin.f32 %v3139_v33, 6.0  ;;  %v4164_v30 = vmin.f32 %v3140_v34, 6.0  ;;  %v12012_v33 = vld [vmem:[%s7688_s30 + $0x1e40] sm:$0xff] }
 0x4e4   : > { %v5185_v31 = vmul.f32 0.16666667, %v4161_v35  ;;  %v4165_v32 = vmin.f32 %v3141_v23, 6.0  ;;  %v4166_v36 = vmin.f32 %v3142_v24, 6.0  ;;  %v4167_v37 = vmin.f32 %v3143_v26, 6.0  ;;  %v12015_v34 = vld [vmem:[%s7688_s30 + $0x1e48] sm:$0xff] }
 0x4e5   : > { %v6208_v39 = vmul.f32 %v5184_v27, %v11934_v54  ;;  %v5186_v40 = vmul.f32 0.16666667, %v4162_v28  ;;  %v5187_v42 = vmul.f32 0.16666667, %v4163_v29  ;;  %v5188_v43 = vmul.f32 0.16666667, %v4164_v30 }
 0x4e6   : > { %v6209_v44 = vmul.f32 %v5185_v31, %v11937_v60  ;;  %v5189_v45 = vmul.f32 0.16666667, %v4165_v32  ;;  %v5190_v48 = vmul.f32 0.16666667, %v4166_v36  ;;  %v5191_v49 = vmul.f32 0.16666667, %v4167_v37 }
 0x4e7   : > { %7232 = vst [vmem:[%s7716_s17 + $0x1db0] sm:$0xff] %v6208_v39  ;;  %v6210_v53 = vmul.f32 %v5186_v40, %v11940_v6  ;;  %v6211_v50 = vmul.f32 %v5187_v42, %v11943_v62  ;;  %v6212_v51 = vmul.f32 %v5188_v43, %v11946_v0  ;;  %v2120_v54 = vadd.f32 3.0, %v11970_v38  ;;  %v1103_v60 = vld [vmem:[%s7688_s30 + $0x1e28] sm:$0xff]  ;;  %v12018_v35 = vld [vmem:[%s7688_s30 + $0x1e50] sm:$0xff]  ;;  %v1109_v39 = vld [vmem:[%s7688_s30 + $0x1e58] sm:$0xff] }
 0x4e8   : > { %7233 = vst [vmem:[%s7716_s17 + $0x1db8] sm:$0xff] %v6209_v44  ;;  %v6213_v58 = vmul.f32 %v5189_v45, %v1093_v5  ;;  %v6214_v56 = vmul.f32 %v5190_v48, %v1094_v12  ;;  %v6215_v57 = vmul.f32 %v5191_v49, %v1095_v13  ;;  %v2121_v61 = vadd.f32 3.0, %v11973_v41  ;;  %v1110_v40 = vld [vmem:[%s7688_s30 + $0x1e60] sm:$0xff] }
 0x4e9   : > { %7234 = vst [vmem:[%s7716_s17 + $0x1dc0] sm:$0xff] %v6210_v53  ;;  %7235 = vst [vmem:[%s7716_s17 + $0x1dc8] sm:$0xff] %v6211_v50  ;;  %v3144_v6 = vmax.f32 %v2120_v54, 0.0  ;;  %v2122_v62 = vadd.f32 3.0, %v11976_v52  ;;  %v2123_v0 = vadd.f32 3.0, %v11979_v46  ;;  %v2124_v63 = vadd.f32 3.0, %v11982_v47 }
 0x4ea   : > { %7236 = vst [vmem:[%s7716_s17 + $0x1dd0] sm:$0xff] %v6212_v51  ;;  %7237 = vst [vmem:[%s7716_s17 + $0x1dd8] sm:$0xff] %v6213_v58  ;;  %v3145_v1 = vmax.f32 %v2121_v61, 0.0  ;;  %v2125_v9 = vadd.f32 3.0, %v1101_v55  ;;  %v2126_v2 = vadd.f32 3.0, %v1102_v59  ;;  %v2127_v3 = vadd.f32 3.0, %v1103_v60 }
 0x4eb   : > { %7238 = vst [vmem:[%s7716_s17 + $0x1de0] sm:$0xff] %v6214_v56  ;;  %7239 = vst [vmem:[%s7716_s17 + $0x1de8] sm:$0xff] %v6215_v57  ;;  %v4168_v4 = vmin.f32 %v3144_v6, 6.0  ;;  %v3146_v5 = vmax.f32 %v2122_v62, 0.0  ;;  %v3147_v12 = vmax.f32 %v2123_v0, 0.0  ;;  %v3148_v13 = vmax.f32 %v2124_v63, 0.0 }
 0x4ec   : > { %v4169_v14 = vmin.f32 %v3145_v1, 6.0  ;;  %v3149_v7 = vmax.f32 %v2125_v9, 0.0  ;;  %v3150_v8 = vmax.f32 %v2126_v2, 0.0  ;;  %v3151_v10 = vmax.f32 %v2127_v3, 0.0  ;;  %v12042_v6 = vld [vmem:[%s7688_s30 + $0x1e70] sm:$0xff]  ;;  %v12045_v9 = vld [vmem:[%s7688_s30 + $0x1e78] sm:$0xff] }
 0x4ed   : > { %v5192_v11 = vmul.f32 0.16666667, %v4168_v4  ;;  %v4170_v15 = vmin.f32 %v3146_v5, 6.0  ;;  %v4171_v16 = vmin.f32 %v3147_v12, 6.0  ;;  %v4172_v17 = vmin.f32 %v3148_v13, 6.0  ;;  %v12048_v12 = vld [vmem:[%s7688_s30 + $0x1e80] sm:$0xff] }
 0x4ee   : > { %v5193_v18 = vmul.f32 0.16666667, %v4169_v14  ;;  %v4173_v19 = vmin.f32 %v3149_v7, 6.0  ;;  %v4174_v20 = vmin.f32 %v3150_v8, 6.0  ;;  %v4175_v21 = vmin.f32 %v3151_v10, 6.0  ;;  %v12051_v13 = vld [vmem:[%s7688_s30 + $0x1e88] sm:$0xff] }
 0x4ef   : > { %v6216_v23 = vmul.f32 %v5192_v11, %v11970_v38  ;;  %v5194_v24 = vmul.f32 0.16666667, %v4170_v15  ;;  %v5195_v26 = vmul.f32 0.16666667, %v4171_v16  ;;  %v5196_v27 = vmul.f32 0.16666667, %v4172_v17 }
 0x4f0   : > { %v6217_v28 = vmul.f32 %v5193_v18, %v11973_v41  ;;  %v5197_v29 = vmul.f32 0.16666667, %v4173_v19  ;;  %v5198_v30 = vmul.f32 0.16666667, %v4174_v20  ;;  %v5199_v31 = vmul.f32 0.16666667, %v4175_v21 }
 0x4f1   : > { %7240 = vst [vmem:[%s7716_s17 + $0x1df0] sm:$0xff] %v6216_v23  ;;  %v6218_v32 = vmul.f32 %v5194_v24, %v11976_v52  ;;  %v6219_v36 = vmul.f32 %v5195_v26, %v11979_v46  ;;  %v6220_v37 = vmul.f32 %v5196_v27, %v11982_v47  ;;  %v2128_v38 = vadd.f32 3.0, %v12006_v22  ;;  %v1111_v41 = vld [vmem:[%s7688_s30 + $0x1e68] sm:$0xff]  ;;  %v12054_v14 = vld [vmem:[%s7688_s30 + $0x1e90] sm:$0xff]  ;;  %v1117_v23 = vld [vmem:[%s7688_s30 + $0x1e98] sm:$0xff] }
 0x4f2   : > { %7241 = vst [vmem:[%s7716_s17 + $0x1df8] sm:$0xff] %v6217_v28  ;;  %v6221_v42 = vmul.f32 %v5197_v29, %v1101_v55  ;;  %v6222_v43 = vmul.f32 %v5198_v30, %v1102_v59  ;;  %v6223_v44 = vmul.f32 %v5199_v31, %v1103_v60  ;;  %v2129_v45 = vadd.f32 3.0, %v12009_v25  ;;  %v1118_v24 = vld [vmem:[%s7688_s30 + $0x1ea0] sm:$0xff] }
 0x4f3   : > { %7242 = vst [vmem:[%s7716_s17 + $0x1e00] sm:$0xff] %v6218_v32  ;;  %7243 = vst [vmem:[%s7716_s17 + $0x1e08] sm:$0xff] %v6219_v36  ;;  %v3152_v52 = vmax.f32 %v2128_v38, 0.0  ;;  %v2130_v46 = vadd.f32 3.0, %v12012_v33  ;;  %v2131_v47 = vadd.f32 3.0, %v12015_v34  ;;  %v2132_v48 = vadd.f32 3.0, %v12018_v35 }
 0x4f4   : > { %7244 = vst [vmem:[%s7716_s17 + $0x1e10] sm:$0xff] %v6220_v37  ;;  %7245 = vst [vmem:[%s7716_s17 + $0x1e18] sm:$0xff] %v6221_v42  ;;  %v3153_v49 = vmax.f32 %v2129_v45, 0.0  ;;  %v2133_v53 = vadd.f32 3.0, %v1109_v39  ;;  %v2134_v50 = vadd.f32 3.0, %v1110_v40  ;;  %v2135_v51 = vadd.f32 3.0, %v1111_v41 }
 0x4f5   : > { %7246 = vst [vmem:[%s7716_s17 + $0x1e20] sm:$0xff] %v6222_v43  ;;  %7247 = vst [vmem:[%s7716_s17 + $0x1e28] sm:$0xff] %v6223_v44  ;;  %v4176_v54 = vmin.f32 %v3152_v52, 6.0  ;;  %v3154_v55 = vmax.f32 %v2130_v46, 0.0  ;;  %v3155_v59 = vmax.f32 %v2131_v47, 0.0  ;;  %v3156_v60 = vmax.f32 %v2132_v48, 0.0 }
 0x4f6   : > { %v4177_v58 = vmin.f32 %v3153_v49, 6.0  ;;  %v3157_v56 = vmax.f32 %v2133_v53, 0.0  ;;  %v3158_v57 = vmax.f32 %v2134_v50, 0.0  ;;  %v3159_v61 = vmax.f32 %v2135_v51, 0.0  ;;  %v12078_v52 = vld [vmem:[%s7688_s30 + $0x1eb0] sm:$0xff]  ;;  %v12081_v53 = vld [vmem:[%s7688_s30 + $0x1eb8] sm:$0xff] }
 0x4f7   : > { %v5200_v62 = vmul.f32 0.16666667, %v4176_v54  ;;  %v4178_v0 = vmin.f32 %v3154_v55, 6.0  ;;  %v4179_v63 = vmin.f32 %v3155_v59, 6.0  ;;  %v4180_v1 = vmin.f32 %v3156_v60, 6.0  ;;  %v12084_v59 = vld [vmem:[%s7688_s30 + $0x1ec0] sm:$0xff] }
 0x4f8   : > { %v5201_v2 = vmul.f32 0.16666667, %v4177_v58  ;;  %v4181_v3 = vmin.f32 %v3157_v56, 6.0  ;;  %v4182_v4 = vmin.f32 %v3158_v57, 6.0  ;;  %v4183_v5 = vmin.f32 %v3159_v61, 6.0  ;;  %v12087_v60 = vld [vmem:[%s7688_s30 + $0x1ec8] sm:$0xff] }
 0x4f9   : > { %v6224_v7 = vmul.f32 %v5200_v62, %v12006_v22  ;;  %v5202_v8 = vmul.f32 0.16666667, %v4178_v0  ;;  %v5203_v10 = vmul.f32 0.16666667, %v4179_v63  ;;  %v5204_v11 = vmul.f32 0.16666667, %v4180_v1 }
 0x4fa   : > { %v6225_v15 = vmul.f32 %v5201_v2, %v12009_v25  ;;  %v5205_v16 = vmul.f32 0.16666667, %v4181_v3  ;;  %v5206_v17 = vmul.f32 0.16666667, %v4182_v4  ;;  %v5207_v18 = vmul.f32 0.16666667, %v4183_v5 }
 0x4fb   : > { %7248 = vst [vmem:[%s7716_s17 + $0x1e30] sm:$0xff] %v6224_v7  ;;  %v6226_v19 = vmul.f32 %v5202_v8, %v12012_v33  ;;  %v6227_v20 = vmul.f32 %v5203_v10, %v12015_v34  ;;  %v6228_v21 = vmul.f32 %v5204_v11, %v12018_v35  ;;  %v2136_v22 = vadd.f32 3.0, %v12042_v6  ;;  %v1119_v25 = vld [vmem:[%s7688_s30 + $0x1ea8] sm:$0xff]  ;;  %v12090_v58 = vld [vmem:[%s7688_s30 + $0x1ed0] sm:$0xff]  ;;  %v1125_v7 = vld [vmem:[%s7688_s30 + $0x1ed8] sm:$0xff] }
 0x4fc   : > { %7249 = vst [vmem:[%s7716_s17 + $0x1e38] sm:$0xff] %v6225_v15  ;;  %v6229_v26 = vmul.f32 %v5205_v16, %v1109_v39  ;;  %v6230_v27 = vmul.f32 %v5206_v17, %v1110_v40  ;;  %v6231_v28 = vmul.f32 %v5207_v18, %v1111_v41  ;;  %v2137_v29 = vadd.f32 3.0, %v12045_v9  ;;  %v1126_v8 = vld [vmem:[%s7688_s30 + $0x1ee0] sm:$0xff] }
 0x4fd   : > { %7250 = vst [vmem:[%s7716_s17 + $0x1e40] sm:$0xff] %v6226_v19  ;;  %7251 = vst [vmem:[%s7716_s17 + $0x1e48] sm:$0xff] %v6227_v20  ;;  %v3160_v33 = vmax.f32 %v2136_v22, 0.0  ;;  %v2138_v34 = vadd.f32 3.0, %v12048_v12  ;;  %v2139_v35 = vadd.f32 3.0, %v12051_v13  ;;  %v2140_v30 = vadd.f32 3.0, %v12054_v14 }
 0x4fe   : > { %7252 = vst [vmem:[%s7716_s17 + $0x1e50] sm:$0xff] %v6228_v21  ;;  %7253 = vst [vmem:[%s7716_s17 + $0x1e58] sm:$0xff] %v6229_v26  ;;  %v3161_v31 = vmax.f32 %v2137_v29, 0.0  ;;  %v2141_v32 = vadd.f32 3.0, %v1117_v23  ;;  %v2142_v36 = vadd.f32 3.0, %v1118_v24  ;;  %v2143_v37 = vadd.f32 3.0, %v1119_v25 }
 0x4ff   : > { %7254 = vst [vmem:[%s7716_s17 + $0x1e60] sm:$0xff] %v6230_v27  ;;  %7255 = vst [vmem:[%s7716_s17 + $0x1e68] sm:$0xff] %v6231_v28  ;;  %v4184_v38 = vmin.f32 %v3160_v33, 6.0  ;;  %v3162_v39 = vmax.f32 %v2138_v34, 0.0  ;;  %v3163_v40 = vmax.f32 %v2139_v35, 0.0  ;;  %v3164_v41 = vmax.f32 %v2140_v30, 0.0 }
 0x500   : > { %v4185_v42 = vmin.f32 %v3161_v31, 6.0  ;;  %v3165_v43 = vmax.f32 %v2141_v32, 0.0  ;;  %v3166_v44 = vmax.f32 %v2142_v36, 0.0  ;;  %v3167_v45 = vmax.f32 %v2143_v37, 0.0  ;;  %v12114_v33 = vld [vmem:[%s7688_s30 + $0x1ef0] sm:$0xff]  ;;  %v12117_v32 = vld [vmem:[%s7688_s30 + $0x1ef8] sm:$0xff] }
 0x501   : > { %v5208_v46 = vmul.f32 0.16666667, %v4184_v38  ;;  %v4186_v47 = vmin.f32 %v3162_v39, 6.0  ;;  %v4187_v48 = vmin.f32 %v3163_v40, 6.0  ;;  %v4188_v49 = vmin.f32 %v3164_v41, 6.0  ;;  %v12120_v40 = vld [vmem:[%s7688_s30 + $0x1f00] sm:$0xff] }
 0x502   : > { %v5209_v50 = vmul.f32 0.16666667, %v4185_v42  ;;  %v4189_v51 = vmin.f32 %v3165_v43, 6.0  ;;  %v4190_v54 = vmin.f32 %v3166_v44, 6.0  ;;  %v4191_v55 = vmin.f32 %v3167_v45, 6.0  ;;  %v12123_v41 = vld [vmem:[%s7688_s30 + $0x1f08] sm:$0xff] }
 0x503   : > { %v6232_v56 = vmul.f32 %v5208_v46, %v12042_v6  ;;  %v5210_v57 = vmul.f32 0.16666667, %v4186_v47  ;;  %v5211_v61 = vmul.f32 0.16666667, %v4187_v48  ;;  %v5212_v62 = vmul.f32 0.16666667, %v4188_v49 }
 0x504   : > { %v6233_v0 = vmul.f32 %v5209_v50, %v12045_v9  ;;  %v5213_v63 = vmul.f32 0.16666667, %v4189_v51  ;;  %v5214_v1 = vmul.f32 0.16666667, %v4190_v54  ;;  %v5215_v2 = vmul.f32 0.16666667, %v4191_v55 }
 0x505   : > { %7256 = vst [vmem:[%s7716_s17 + $0x1e70] sm:$0xff] %v6232_v56  ;;  %v6234_v3 = vmul.f32 %v5210_v57, %v12048_v12  ;;  %v6235_v4 = vmul.f32 %v5211_v61, %v12051_v13  ;;  %v6236_v5 = vmul.f32 %v5212_v62, %v12054_v14  ;;  %v2144_v6 = vadd.f32 3.0, %v12078_v52  ;;  %v1127_v9 = vld [vmem:[%s7688_s30 + $0x1ee8] sm:$0xff]  ;;  %v12126_v42 = vld [vmem:[%s7688_s30 + $0x1f10] sm:$0xff]  ;;  %v1133_v56 = vld [vmem:[%s7688_s30 + $0x1f18] sm:$0xff] }
 0x506   : > { %7257 = vst [vmem:[%s7716_s17 + $0x1e78] sm:$0xff] %v6233_v0  ;;  %v6237_v10 = vmul.f32 %v5213_v63, %v1117_v23  ;;  %v6238_v11 = vmul.f32 %v5214_v1, %v1118_v24  ;;  %v6239_v15 = vmul.f32 %v5215_v2, %v1119_v25  ;;  %v2145_v16 = vadd.f32 3.0, %v12081_v53  ;;  %v1134_v57 = vld [vmem:[%s7688_s30 + $0x1f20] sm:$0xff] }
 0x507   : > { %7258 = vst [vmem:[%s7716_s17 + $0x1e80] sm:$0xff] %v6234_v3  ;;  %7259 = vst [vmem:[%s7716_s17 + $0x1e88] sm:$0xff] %v6235_v4  ;;  %v3168_v12 = vmax.f32 %v2144_v6, 0.0  ;;  %v2146_v13 = vadd.f32 3.0, %v12084_v59  ;;  %v2147_v14 = vadd.f32 3.0, %v12087_v60  ;;  %v2148_v17 = vadd.f32 3.0, %v12090_v58 }
 0x508   : > { %7260 = vst [vmem:[%s7716_s17 + $0x1e90] sm:$0xff] %v6236_v5  ;;  %7261 = vst [vmem:[%s7716_s17 + $0x1e98] sm:$0xff] %v6237_v10  ;;  %v3169_v18 = vmax.f32 %v2145_v16, 0.0  ;;  %v2149_v19 = vadd.f32 3.0, %v1125_v7  ;;  %v2150_v20 = vadd.f32 3.0, %v1126_v8  ;;  %v2151_v21 = vadd.f32 3.0, %v1127_v9 }
 0x509   : > { %7262 = vst [vmem:[%s7716_s17 + $0x1ea0] sm:$0xff] %v6238_v11  ;;  %7263 = vst [vmem:[%s7716_s17 + $0x1ea8] sm:$0xff] %v6239_v15  ;;  %v4192_v22 = vmin.f32 %v3168_v12, 6.0  ;;  %v3170_v23 = vmax.f32 %v2146_v13, 0.0  ;;  %v3171_v24 = vmax.f32 %v2147_v14, 0.0  ;;  %v3172_v25 = vmax.f32 %v2148_v17, 0.0 }
 0x50a   : > { %v4193_v26 = vmin.f32 %v3169_v18, 6.0  ;;  %v3173_v27 = vmax.f32 %v2149_v19, 0.0  ;;  %v3174_v28 = vmax.f32 %v2150_v20, 0.0  ;;  %v3175_v29 = vmax.f32 %v2151_v21, 0.0  ;;  %v12150_v12 = vld [vmem:[%s7688_s30 + $0x1f30] sm:$0xff]  ;;  %v12153_v19 = vld [vmem:[%s7688_s30 + $0x1f38] sm:$0xff] }
 0x50b   : > { %v5216_v34 = vmul.f32 0.16666667, %v4192_v22  ;;  %v4194_v35 = vmin.f32 %v3170_v23, 6.0  ;;  %v4195_v30 = vmin.f32 %v3171_v24, 6.0  ;;  %v4196_v31 = vmin.f32 %v3172_v25, 6.0  ;;  %v12156_v24 = vld [vmem:[%s7688_s30 + $0x1f40] sm:$0xff] }
 0x50c   : > { %v5217_v36 = vmul.f32 0.16666667, %v4193_v26  ;;  %v4197_v37 = vmin.f32 %v3173_v27, 6.0  ;;  %v4198_v38 = vmin.f32 %v3174_v28, 6.0  ;;  %v4199_v39 = vmin.f32 %v3175_v29, 6.0  ;;  %v12159_v25 = vld [vmem:[%s7688_s30 + $0x1f48] sm:$0xff] }
 0x50d   : > { %v6240_v43 = vmul.f32 %v5216_v34, %v12078_v52  ;;  %v5218_v44 = vmul.f32 0.16666667, %v4194_v35  ;;  %v5219_v45 = vmul.f32 0.16666667, %v4195_v30  ;;  %v5220_v46 = vmul.f32 0.16666667, %v4196_v31 }
 0x50e   : > { %v6241_v47 = vmul.f32 %v5217_v36, %v12081_v53  ;;  %v5221_v48 = vmul.f32 0.16666667, %v4197_v37  ;;  %v5222_v49 = vmul.f32 0.16666667, %v4198_v38  ;;  %v5223_v50 = vmul.f32 0.16666667, %v4199_v39 }
 0x50f   : > { %7264 = vst [vmem:[%s7716_s17 + $0x1eb0] sm:$0xff] %v6240_v43  ;;  %v6242_v51 = vmul.f32 %v5218_v44, %v12084_v59  ;;  %v6243_v54 = vmul.f32 %v5219_v45, %v12087_v60  ;;  %v6244_v55 = vmul.f32 %v5220_v46, %v12090_v58  ;;  %v2152_v52 = vadd.f32 3.0, %v12114_v33  ;;  %v1135_v53 = vld [vmem:[%s7688_s30 + $0x1f28] sm:$0xff]  ;;  %v12162_v26 = vld [vmem:[%s7688_s30 + $0x1f50] sm:$0xff]  ;;  %v1141_v43 = vld [vmem:[%s7688_s30 + $0x1f58] sm:$0xff] }
 0x510   : > { %7265 = vst [vmem:[%s7716_s17 + $0x1eb8] sm:$0xff] %v6241_v47  ;;  %v6245_v61 = vmul.f32 %v5221_v48, %v1125_v7  ;;  %v6246_v62 = vmul.f32 %v5222_v49, %v1126_v8  ;;  %v6247_v0 = vmul.f32 %v5223_v50, %v1127_v9  ;;  %v2153_v63 = vadd.f32 3.0, %v12117_v32  ;;  %v1142_v44 = vld [vmem:[%s7688_s30 + $0x1f60] sm:$0xff] }
 0x511   : > { %7266 = vst [vmem:[%s7716_s17 + $0x1ec0] sm:$0xff] %v6242_v51  ;;  %7267 = vst [vmem:[%s7716_s17 + $0x1ec8] sm:$0xff] %v6243_v54  ;;  %v3176_v59 = vmax.f32 %v2152_v52, 0.0  ;;  %v2154_v60 = vadd.f32 3.0, %v12120_v40  ;;  %v2155_v58 = vadd.f32 3.0, %v12123_v41  ;;  %v2156_v1 = vadd.f32 3.0, %v12126_v42 }
 0x512   : > { %7268 = vst [vmem:[%s7716_s17 + $0x1ed0] sm:$0xff] %v6244_v55  ;;  %7269 = vst [vmem:[%s7716_s17 + $0x1ed8] sm:$0xff] %v6245_v61  ;;  %v3177_v2 = vmax.f32 %v2153_v63, 0.0  ;;  %v2157_v3 = vadd.f32 3.0, %v1133_v56  ;;  %v2158_v4 = vadd.f32 3.0, %v1134_v57  ;;  %v2159_v5 = vadd.f32 3.0, %v1135_v53 }
 0x513   : > { %7270 = vst [vmem:[%s7716_s17 + $0x1ee0] sm:$0xff] %v6246_v62  ;;  %7271 = vst [vmem:[%s7716_s17 + $0x1ee8] sm:$0xff] %v6247_v0  ;;  %v4200_v6 = vmin.f32 %v3176_v59, 6.0  ;;  %v3178_v7 = vmax.f32 %v2154_v60, 0.0  ;;  %v3179_v8 = vmax.f32 %v2155_v58, 0.0  ;;  %v3180_v9 = vmax.f32 %v2156_v1, 0.0 }
 0x514   : > { %v4201_v10 = vmin.f32 %v3177_v2, 6.0  ;;  %v3181_v11 = vmax.f32 %v2157_v3, 0.0  ;;  %v3182_v15 = vmax.f32 %v2158_v4, 0.0  ;;  %v3183_v16 = vmax.f32 %v2159_v5, 0.0  ;;  %v12186_v59 = vld [vmem:[%s7688_s30 + $0x1f70] sm:$0xff]  ;;  %v12189_v3 = vld [vmem:[%s7688_s30 + $0x1f78] sm:$0xff] }
 0x515   : > { %v5224_v13 = vmul.f32 0.16666667, %v4200_v6  ;;  %v4202_v14 = vmin.f32 %v3178_v7, 6.0  ;;  %v4203_v17 = vmin.f32 %v3179_v8, 6.0  ;;  %v4204_v18 = vmin.f32 %v3180_v9, 6.0  ;;  %v12192_v8 = vld [vmem:[%s7688_s30 + $0x1f80] sm:$0xff] }
 0x516   : > { %v5225_v20 = vmul.f32 0.16666667, %v4201_v10  ;;  %v4205_v21 = vmin.f32 %v3181_v11, 6.0  ;;  %v4206_v22 = vmin.f32 %v3182_v15, 6.0  ;;  %v4207_v23 = vmin.f32 %v3183_v16, 6.0  ;;  %v12195_v9 = vld [vmem:[%s7688_s30 + $0x1f88] sm:$0xff] }
 0x517   : > { %v6248_v27 = vmul.f32 %v5224_v13, %v12114_v33  ;;  %v5226_v28 = vmul.f32 0.16666667, %v4202_v14  ;;  %v5227_v29 = vmul.f32 0.16666667, %v4203_v17  ;;  %v5228_v34 = vmul.f32 0.16666667, %v4204_v18 }
 0x518   : > { %v6249_v35 = vmul.f32 %v5225_v20, %v12117_v32  ;;  %v5229_v30 = vmul.f32 0.16666667, %v4205_v21  ;;  %v5230_v31 = vmul.f32 0.16666667, %v4206_v22  ;;  %v5231_v36 = vmul.f32 0.16666667, %v4207_v23 }
 0x519   : > { %7272 = vst [vmem:[%s7716_s17 + $0x1ef0] sm:$0xff] %v6248_v27  ;;  %v6250_v37 = vmul.f32 %v5226_v28, %v12120_v40  ;;  %v6251_v38 = vmul.f32 %v5227_v29, %v12123_v41  ;;  %v6252_v39 = vmul.f32 %v5228_v34, %v12126_v42  ;;  %v2160_v33 = vadd.f32 3.0, %v12150_v12  ;;  %v1143_v32 = vld [vmem:[%s7688_s30 + $0x1f68] sm:$0xff]  ;;  %v12198_v10 = vld [vmem:[%s7688_s30 + $0x1f90] sm:$0xff]  ;;  %v1149_v27 = vld [vmem:[%s7688_s30 + $0x1f98] sm:$0xff] }
 0x51a   : > { %7273 = vst [vmem:[%s7716_s17 + $0x1ef8] sm:$0xff] %v6249_v35  ;;  %v6253_v45 = vmul.f32 %v5229_v30, %v1133_v56  ;;  %v6254_v46 = vmul.f32 %v5230_v31, %v1134_v57  ;;  %v6255_v47 = vmul.f32 %v5231_v36, %v1135_v53  ;;  %v2161_v48 = vadd.f32 3.0, %v12153_v19  ;;  %v1150_v28 = vld [vmem:[%s7688_s30 + $0x1fa0] sm:$0xff] }
 0x51b   : > { %7274 = vst [vmem:[%s7716_s17 + $0x1f00] sm:$0xff] %v6250_v37  ;;  %7275 = vst [vmem:[%s7716_s17 + $0x1f08] sm:$0xff] %v6251_v38  ;;  %v3184_v40 = vmax.f32 %v2160_v33, 0.0  ;;  %v2162_v41 = vadd.f32 3.0, %v12156_v24  ;;  %v2163_v42 = vadd.f32 3.0, %v12159_v25  ;;  %v2164_v49 = vadd.f32 3.0, %v12162_v26 }
 0x51c   : > { %7276 = vst [vmem:[%s7716_s17 + $0x1f10] sm:$0xff] %v6252_v39  ;;  %7277 = vst [vmem:[%s7716_s17 + $0x1f18] sm:$0xff] %v6253_v45  ;;  %v3185_v50 = vmax.f32 %v2161_v48, 0.0  ;;  %v2165_v51 = vadd.f32 3.0, %v1141_v43  ;;  %v2166_v54 = vadd.f32 3.0, %v1142_v44  ;;  %v2167_v55 = vadd.f32 3.0, %v1143_v32 }
 0x51d   : > { %7278 = vst [vmem:[%s7716_s17 + $0x1f20] sm:$0xff] %v6254_v46  ;;  %7279 = vst [vmem:[%s7716_s17 + $0x1f28] sm:$0xff] %v6255_v47  ;;  %v4208_v52 = vmin.f32 %v3184_v40, 6.0  ;;  %v3186_v56 = vmax.f32 %v2162_v41, 0.0  ;;  %v3187_v57 = vmax.f32 %v2163_v42, 0.0  ;;  %v3188_v53 = vmax.f32 %v2164_v49, 0.0 }
 0x51e   : > { %v4209_v61 = vmin.f32 %v3185_v50, 6.0  ;;  %v3189_v62 = vmax.f32 %v2165_v51, 0.0  ;;  %v3190_v0 = vmax.f32 %v2166_v54, 0.0  ;;  %v3191_v63 = vmax.f32 %v2167_v55, 0.0  ;;  %v12222_v40 = vld [vmem:[%s7688_s30 + $0x1fb0] sm:$0xff]  ;;  %v12225_v51 = vld [vmem:[%s7688_s30 + $0x1fb8] sm:$0xff] }
 0x51f   : > { %v5232_v60 = vmul.f32 0.16666667, %v4208_v52  ;;  %v4210_v58 = vmin.f32 %v3186_v56, 6.0  ;;  %v4211_v1 = vmin.f32 %v3187_v57, 6.0  ;;  %v4212_v2 = vmin.f32 %v3188_v53, 6.0  ;;  %v12228_v57 = vld [vmem:[%s7688_s30 + $0x1fc0] sm:$0xff] }
 0x520   : > { %v5233_v4 = vmul.f32 0.16666667, %v4209_v61  ;;  %v4213_v5 = vmin.f32 %v3189_v62, 6.0  ;;  %v4214_v6 = vmin.f32 %v3190_v0, 6.0  ;;  %v4215_v7 = vmin.f32 %v3191_v63, 6.0  ;;  %v12231_v53 = vld [vmem:[%s7688_s30 + $0x1fc8] sm:$0xff] }
 0x521   : > { %v6256_v11 = vmul.f32 %v5232_v60, %v12150_v12  ;;  %v5234_v15 = vmul.f32 0.16666667, %v4210_v58  ;;  %v5235_v16 = vmul.f32 0.16666667, %v4211_v1  ;;  %v5236_v13 = vmul.f32 0.16666667, %v4212_v2 }
 0x522   : > { %v6257_v14 = vmul.f32 %v5233_v4, %v12153_v19  ;;  %v5237_v17 = vmul.f32 0.16666667, %v4213_v5  ;;  %v5238_v18 = vmul.f32 0.16666667, %v4214_v6  ;;  %v5239_v20 = vmul.f32 0.16666667, %v4215_v7 }
 0x523   : > { %7280 = vst [vmem:[%s7716_s17 + $0x1f30] sm:$0xff] %v6256_v11  ;;  %v6258_v21 = vmul.f32 %v5234_v15, %v12156_v24  ;;  %v6259_v22 = vmul.f32 %v5235_v16, %v12159_v25  ;;  %v6260_v23 = vmul.f32 %v5236_v13, %v12162_v26  ;;  %v2168_v12 = vadd.f32 3.0, %v12186_v59  ;;  %v1151_v19 = vld [vmem:[%s7688_s30 + $0x1fa8] sm:$0xff]  ;;  %v12234_v61 = vld [vmem:[%s7688_s30 + $0x1fd0] sm:$0xff]  ;;  %v1157_v11 = vld [vmem:[%s7688_s30 + $0x1fd8] sm:$0xff] }
 0x524   : > { %7281 = vst [vmem:[%s7716_s17 + $0x1f38] sm:$0xff] %v6257_v14  ;;  %v6261_v29 = vmul.f32 %v5237_v17, %v1141_v43  ;;  %v6262_v34 = vmul.f32 %v5238_v18, %v1142_v44  ;;  %v6263_v35 = vmul.f32 %v5239_v20, %v1143_v32  ;;  %v2169_v30 = vadd.f32 3.0, %v12189_v3  ;;  %v1158_v15 = vld [vmem:[%s7688_s30 + $0x1fe0] sm:$0xff] }
 0x525   : > { %7282 = vst [vmem:[%s7716_s17 + $0x1f40] sm:$0xff] %v6258_v21  ;;  %7283 = vst [vmem:[%s7716_s17 + $0x1f48] sm:$0xff] %v6259_v22  ;;  %v3192_v24 = vmax.f32 %v2168_v12, 0.0  ;;  %v2170_v25 = vadd.f32 3.0, %v12192_v8  ;;  %v2171_v26 = vadd.f32 3.0, %v12195_v9  ;;  %v2172_v31 = vadd.f32 3.0, %v12198_v10 }
 0x526   : > { %7284 = vst [vmem:[%s7716_s17 + $0x1f50] sm:$0xff] %v6260_v23  ;;  %7285 = vst [vmem:[%s7716_s17 + $0x1f58] sm:$0xff] %v6261_v29  ;;  %v3193_v36 = vmax.f32 %v2169_v30, 0.0  ;;  %v2173_v37 = vadd.f32 3.0, %v1149_v27  ;;  %v2174_v38 = vadd.f32 3.0, %v1150_v28  ;;  %v2175_v39 = vadd.f32 3.0, %v1151_v19 }
 0x527   : > { %7286 = vst [vmem:[%s7716_s17 + $0x1f60] sm:$0xff] %v6262_v34  ;;  %7287 = vst [vmem:[%s7716_s17 + $0x1f68] sm:$0xff] %v6263_v35  ;;  %v4216_v33 = vmin.f32 %v3192_v24, 6.0  ;;  %v3194_v43 = vmax.f32 %v2170_v25, 0.0  ;;  %v3195_v44 = vmax.f32 %v2171_v26, 0.0  ;;  %v3196_v32 = vmax.f32 %v2172_v31, 0.0 }
 0x528   : > { %v4217_v45 = vmin.f32 %v3193_v36, 6.0  ;;  %v3197_v46 = vmax.f32 %v2173_v37, 0.0  ;;  %v3198_v47 = vmax.f32 %v2174_v38, 0.0  ;;  %v3199_v48 = vmax.f32 %v2175_v39, 0.0  ;;  %v1160_v36 = vld [vmem:[%s7688_s30 + $0x1ff0] sm:$0xff] }
 0x529   : > { %v5240_v41 = vmul.f32 0.16666667, %v4216_v33  ;;  %v4218_v42 = vmin.f32 %v3194_v43, 6.0  ;;  %v4219_v49 = vmin.f32 %v3195_v44, 6.0  ;;  %v4220_v50 = vmin.f32 %v3196_v32, 6.0  ;;  %v1161_v43 = vld [vmem:[%s7688_s30 + $0x1ff8] sm:$0xff] }
 0x52a   : > { %v5241_v54 = vmul.f32 0.16666667, %v4217_v45  ;;  %v4221_v55 = vmin.f32 %v3197_v46, 6.0  ;;  %v4222_v52 = vmin.f32 %v3198_v47, 6.0  ;;  %v4223_v56 = vmin.f32 %v3199_v48, 6.0 }
 0x52b   : > { %v6264_v62 = vmul.f32 %v5240_v41, %v12186_v59  ;;  %v5242_v0 = vmul.f32 0.16666667, %v4218_v42  ;;  %v5243_v63 = vmul.f32 0.16666667, %v4219_v49  ;;  %v5244_v60 = vmul.f32 0.16666667, %v4220_v50 }
 0x52c   : > { %v6265_v58 = vmul.f32 %v5241_v54, %v12189_v3  ;;  %v5245_v1 = vmul.f32 0.16666667, %v4221_v55  ;;  %v5246_v2 = vmul.f32 0.16666667, %v4222_v52  ;;  %v5247_v4 = vmul.f32 0.16666667, %v4223_v56 }
 0x52d   : > { %7288 = vst [vmem:[%s7716_s17 + $0x1f70] sm:$0xff] %v6264_v62  ;;  %v6266_v5 = vmul.f32 %v5242_v0, %v12192_v8  ;;  %v6267_v6 = vmul.f32 %v5243_v63, %v12195_v9  ;;  %v6268_v7 = vmul.f32 %v5244_v60, %v12198_v10  ;;  %v2176_v59 = vadd.f32 3.0, %v12222_v40  ;;  %v1159_v3 = vld [vmem:[%s7688_s30 + $0x1fe8] sm:$0xff] }
 0x52e   : > { %7289 = vst [vmem:[%s7716_s17 + $0x1f78] sm:$0xff] %v6265_v58  ;;  %v6269_v16 = vmul.f32 %v5245_v1, %v1149_v27  ;;  %v6270_v13 = vmul.f32 %v5246_v2, %v1150_v28  ;;  %v6271_v14 = vmul.f32 %v5247_v4, %v1151_v19  ;;  %v2177_v17 = vadd.f32 3.0, %v12225_v51 }
 0x52f   : > { %7290 = vst [vmem:[%s7716_s17 + $0x1f80] sm:$0xff] %v6266_v5  ;;  %7291 = vst [vmem:[%s7716_s17 + $0x1f88] sm:$0xff] %v6267_v6  ;;  %v3200_v8 = vmax.f32 %v2176_v59, 0.0  ;;  %v2178_v9 = vadd.f32 3.0, %v12228_v57  ;;  %v2179_v10 = vadd.f32 3.0, %v12231_v53  ;;  %v2180_v18 = vadd.f32 3.0, %v12234_v61 }
 0x530   : > { %7292 = vst [vmem:[%s7716_s17 + $0x1f90] sm:$0xff] %v6268_v7  ;;  %7293 = vst [vmem:[%s7716_s17 + $0x1f98] sm:$0xff] %v6269_v16  ;;  %v3201_v20 = vmax.f32 %v2177_v17, 0.0  ;;  %v2181_v21 = vadd.f32 3.0, %v1157_v11  ;;  %v2182_v22 = vadd.f32 3.0, %v1158_v15  ;;  %v2183_v23 = vadd.f32 3.0, %v1159_v3 }
 0x531   : > { %7294 = vst [vmem:[%s7716_s17 + $0x1fa0] sm:$0xff] %v6270_v13  ;;  %7295 = vst [vmem:[%s7716_s17 + $0x1fa8] sm:$0xff] %v6271_v14  ;;  %v4224_v12 = vmin.f32 %v3200_v8, 6.0  ;;  %v3202_v27 = vmax.f32 %v2178_v9, 0.0  ;;  %v3203_v28 = vmax.f32 %v2179_v10, 0.0  ;;  %v3204_v19 = vmax.f32 %v2180_v18, 0.0 }
 0x532   : > { %v4225_v29 = vmin.f32 %v3201_v20, 6.0  ;;  %v3205_v34 = vmax.f32 %v2181_v21, 0.0  ;;  %v3206_v35 = vmax.f32 %v2182_v22, 0.0  ;;  %v3207_v30 = vmax.f32 %v2183_v23, 0.0 }
 0x533   : > { %v5248_v24 = vmul.f32 0.16666667, %v4224_v12  ;;  %v4226_v25 = vmin.f32 %v3202_v27, 6.0  ;;  %v4227_v26 = vmin.f32 %v3203_v28, 6.0  ;;  %v4228_v31 = vmin.f32 %v3204_v19, 6.0 }
 0x534   : > { %v5249_v37 = vmul.f32 0.16666667, %v4225_v29  ;;  %v4229_v38 = vmin.f32 %v3205_v34, 6.0  ;;  %v4230_v39 = vmin.f32 %v3206_v35, 6.0  ;;  %v4231_v33 = vmin.f32 %v3207_v30, 6.0 }
 0x535   : > { %v6272_v44 = vmul.f32 %v5248_v24, %v12222_v40  ;;  %v5250_v32 = vmul.f32 0.16666667, %v4226_v25  ;;  %v5251_v45 = vmul.f32 0.16666667, %v4227_v26  ;;  %v5252_v46 = vmul.f32 0.16666667, %v4228_v31 }
 0x536   : > { %v6273_v47 = vmul.f32 %v5249_v37, %v12225_v51  ;;  %v5253_v48 = vmul.f32 0.16666667, %v4229_v38  ;;  %v5254_v41 = vmul.f32 0.16666667, %v4230_v39  ;;  %v5255_v42 = vmul.f32 0.16666667, %v4231_v33 }
 0x537   : > { %7296 = vst [vmem:[%s7716_s17 + $0x1fb0] sm:$0xff] %v6272_v44  ;;  %v6274_v49 = vmul.f32 %v5250_v32, %v12228_v57  ;;  %v6275_v50 = vmul.f32 %v5251_v45, %v12231_v53  ;;  %v6276_v40 = vmul.f32 %v5252_v46, %v12234_v61  ;;  %v2184_v54 = vadd.f32 3.0, %v1160_v36 }
 0x538   : > { %7297 = vst [vmem:[%s7716_s17 + $0x1fb8] sm:$0xff] %v6273_v47  ;;  %v6277_v55 = vmul.f32 %v5253_v48, %v1157_v11  ;;  %v6278_v51 = vmul.f32 %v5254_v41, %v1158_v15  ;;  %v6279_v52 = vmul.f32 %v5255_v42, %v1159_v3  ;;  %v2185_v56 = vadd.f32 3.0, %v1161_v43 }
 0x539   : > { %7298 = vst [vmem:[%s7716_s17 + $0x1fc0] sm:$0xff] %v6274_v49  ;;  %7299 = vst [vmem:[%s7716_s17 + $0x1fc8] sm:$0xff] %v6275_v50  ;;  %v3208_v62 = vmax.f32 %v2184_v54, 0.0 }
 0x53a   : > { %7300 = vst [vmem:[%s7716_s17 + $0x1fd0] sm:$0xff] %v6276_v40  ;;  %7301 = vst [vmem:[%s7716_s17 + $0x1fd8] sm:$0xff] %v6277_v55  ;;  %v3209_v57 = vmax.f32 %v2185_v56, 0.0 }
 0x53b   : > { %7302 = vst [vmem:[%s7716_s17 + $0x1fe0] sm:$0xff] %v6278_v51  ;;  %7303 = vst [vmem:[%s7716_s17 + $0x1fe8] sm:$0xff] %v6279_v52  ;;  %v4232_v53 = vmin.f32 %v3208_v62, 6.0 }
 0x53c   : > { %v4233_v61 = vmin.f32 %v3209_v57, 6.0 }
 0x53d   : > { %v5256_v0 = vmul.f32 0.16666667, %v4232_v53 }
 0x53e   : > { %v5257_v63 = vmul.f32 0.16666667, %v4233_v61 }
 0x53f   : > { %v6280_v60 = vmul.f32 %v5256_v0, %v1160_v36 }
 0x540   : > { %v6281_v58 = vmul.f32 %v5257_v63, %v1161_v43 }
 0x541   : > { %7304 = vst [vmem:[%s7716_s17 + $0x1ff0] sm:$0xff] %v6280_v60 }
 0x542   : > { %7305 = vst [vmem:[%s7716_s17 + $0x1ff8] sm:$0xff] %v6281_v58 }
 0x543   : > { %7507 = shalt.err (!%p7504_p2)
}
 0x544   : > { %s7508_s13 = scalar_lea.hbm %s12277_s2, 131072  ;;  %s7512_s20 = scalar_lea.hbm %s12326_s1, 262144 }
 0x545   : > { %p7509_p4 = scmp.ne.s32.totalorder %s12277_s2, %s7508_s13  ;;  %p7513_p9 = scmp.lt.u32.totalorder %s12277_s2, %s12326_s1 }
 0x546   : > { %p7514_p1 = scmp.lt.u32.totalorder %s7512_s20, %s7508_s13  ;;  %p7516_p6 = scmp.lt.u32.totalorder %s7508_s13, %s12277_s2 }
 0x547   : > { %p7510_p5 = pnand %p7509_p4, %p12333_p11 }
 0x548   : > { %p7515_p3 = por %p7514_p1, %p7513_p9 }
 0x549   : > { %p7511_p7 = pneg %p7510_p5 }
 0x54a   : > { %p7517_p12 = por %p7516_p6, %p7515_p3 }
 0x54c   : > { %p7518_p13 = pnand %p7517_p12, %p7511_p7 }
 0x54e   : > { %7521 = shalt.err (!%p7518_p13)
}
 0x54f   : > { %s7566_s24 = smov 2048   ;;  %s7567_s26 = smov 128  }
 0x550   : > { %7416 = dma.vmem_to_hbm [thread:$0]  (%p12333_p11), %s12279_s27, 131072, %s12277_s2, %s7307_s3, %s7566_s24, %s7566_s24, %s7567_s26  }
 0x551 PF: > { %s7336_s30 = sand.u32 1, %s7548_s6   ;;  %p12334_p8 = scmp.ne.s32.totalorder %s12331_s19, 0 }
 0x552   : > { %p12335_p10 = scmp.ge.s32.totalorder %s7560_s9, 2  ;;  %s7337_s17 = scalar_lea.sflag [#allocation4], %s7336_s30 }
 0x554   : > { %p7423_p0 = pnand %p12335_p10, %p12334_p8 }
 0x556   : > { %7543 = dma.done.wait (!%p7423_p0), %s7337_s17, 131072  }
 0x557   : > { %7545 = vsyncadd (!%p7423_p0), %s7337_s17, 4294836224  ;;  %p14_p2 = scmp.ge.s32.totalorder %s7603_s12, 4   ;;  %s12336_s6 = smov %s7552_s7 }
 0x558   : > { %s12337_s7 = smov %s7556_s8  ;;  %s12338_s8 = smov %s7615_s15 }
 0x559   : > { %s12339_s9 = smov %s7603_s12  ;;  %16 = sbr.rel (!%p14_p2) target bundleno = 5 (0x5), region = 69 }
 0x560   :  { %7342 = vsyncpa [#allocation3], 1 }
 0x561   :  { %7344 = vsyncpa [#allocation3 + $0x1], 1 }
 0x562   :  { %7345 = vsyncpa [#allocation4], 1 }
 0x563   :  { %7347 = vsyncpa [#allocation4 + $0x1], 1 }

</bundles_post_ra>
